<compile_context>
chip_gen: v7x
topology: tpu7x:2x2x1
jax: 0.10.0
libtpu: 0.0.40
codegen_flags: <defaults>
</compile_context>

<pallas_src>
import jax
import jax.numpy as jnp
import numpy as np
from jax import lax
from jax.experimental import pallas as pl
from jax.experimental.pallas import tpu as pltpu

# ---------------------------------------------------------------------------
# static geometry (28x28 -> 14 -> 7 -> 3, floor pooling), flat padded layouts
# ---------------------------------------------------------------------------
H1, W1, WP1 = 28, 28, 32      # conv1 output grid, padded flat width (multiple of 8)
H2, W2, WP2 = 14, 14, 16      # conv2
H3, W3, WP3 = 7, 7, 16        # conv3
L1, L2, L3 = H1 * WP1, H2 * WP2, H3 * WP3            # 896, 224, 112 flat conv-output rows
P2ROWS, P3ROWS = (H2 + 3) * WP2, (H3 + 3) * WP3      # 272, 160 rows of the next padded input
LM1, LM2, LM3 = L1 - 1 - WP1, L2 - 1 - WP2, L3 - 1 - WP3   # 863, 207, 95 rows of m_v
FROWS = 9                     # final 3x3 features, row = h*3 + w (PyTorch flatten order)
MXU_DTYPE = jnp.bfloat16      # MXU operand dtype; accumulation stays f32

# Static invariants (review "fragility" note): re-derived for WP1=32 + wrapper-side conv1 im2col.
assert WP1 % 8 == 0 and WP2 % 8 == 0 and WP3 % 8 == 0
assert W2 + 2 <= WP2 and W3 + 2 <= WP3                # conv2/3 column taps stay inside padded width
assert (L2 - 1) + 2 * WP2 + 2 < P2ROWS                # conv2 flat tap slices stay inside p2
assert (L3 - 1) + 2 * WP3 + 2 < P3ROWS                # conv3 flat tap slices stay inside p3
assert (H2 - 1) * 2 * WP1 + (W2 - 1) * 2 < LM1        # pool anchors stay inside m_v
assert (H3 - 1) * 2 * WP2 + (W3 - 1) * 2 < LM2
assert 2 * 2 * WP3 + 2 * 2 < LM3
assert 2 * H2 <= H1 and 2 * W2 <= W1                  # pool windows never read junk cols/rows
assert 2 * H3 <= H2 and 2 * W3 <= W2
assert 2 * 3 <= H3 and 2 * 3 <= W3


# ---------------------------------------------------------------------------
# fused kernel
# ---------------------------------------------------------------------------
def _make_kernel(tb, cin, hid, out):
    """Fused forward kernel for a tile of `tb` 28x28 images."""

    def conv3x3_relu(pin_f32, length, wp, w, b):
        # pin_f32: zero-padded flat input (rows r = y*wp + x), cast ONCE to bf16.
        # w: (9*cin_l, cout) bf16, rows ordered ((dy*3+dx)*cin_l + ci).  b: (1, cout) f32.
        pin = pin_f32.astype(MXU_DTYPE)
        cin_l = pin_f32.shape[1]
        acc = jnp.zeros((length, w.shape[1]), jnp.float32)
        for dy in range(3):
            for dx in range(3):
                t = dy * 3 + dx
                o = dy * wp + dx                       # dy*wp is sublane-aligned (wp % 8 == 0)
                acc = acc + jnp.dot(pin[o:o + length, :], w[t * cin_l:(t + 1) * cin_l, :],
                                    preferred_element_type=jnp.float32)
        # Columns x in [w_valid, wp) of each flat row are wrap-around junk, never read later.
        return jnp.maximum(acc + b, 0.0)

    def pool2x2(acc, length, wp, lm, sel):
        # Two shifted maxes + one 0/1 scatter matmul (sel is precomputed on the host,
        # VMEM-resident).  Invalid sel rows are all-zero -> they also produce the next
        # conv's zero padding.
        m_h = jnp.maximum(acc[:length - 1, :], acc[1:length, :])    # max over (x, x+1)
        m_v = jnp.maximum(m_h[:lm, :], m_h[wp:wp + lm, :])          # max over (y, y+1)
        return jnp.dot(sel, m_v.astype(MXU_DTYPE), preferred_element_type=jnp.float32)

    def kernel(x_ref, w1_ref, b1_ref, w2_ref, b2_ref, w3_ref, b3_ref,
               wfc_ref, bfc_ref, s1_ref, s2_ref, s3_ref, o_ref):
        # Hoist all weight/sel loads out of the per-image loop.
        w1, b1 = w1_ref[...], b1_ref[...]
        w2, b2 = w2_ref[...], b2_ref[...]
        w3, b3 = w3_ref[...], b3_ref[...]
        wfc, bfc = wfc_ref[...], bfc_ref[...]
        s1, s2, s3 = s1_ref[...], s2_ref[...], s3_ref[...]

        rows = []
        for i in range(tb):                                          # unrolled batch tile
            xcol = x_ref[i]                                          # (L1, 9*cin) bf16 im2col
            # conv1: a single K=9*cin matmul (im2col built in the wrapper).
            a1 = jnp.maximum(
                jnp.dot(xcol, w1, preferred_element_type=jnp.float32) + b1, 0.0)   # (896, hid)
            p2 = pool2x2(a1, L1, WP1, LM1, s1)                       # (272, hid) padded input
            a2 = conv3x3_relu(p2, L2, WP2, w2, b2)                   # (224, hid)
            p3 = pool2x2(a2, L2, WP2, LM2, s2)                       # (160, hid) padded input
            a3 = conv3x3_relu(p3, L3, WP3, w3, b3)                   # (112, hid)
            f = pool2x2(a3, L3, WP3, LM3, s3).astype(MXU_DTYPE)      # (9, hid), row = h*3 + w
            lg = bfc                                                 # (1, out) f32
            for r in range(FROWS):
                lg = lg + jnp.dot(f[r:r + 1, :], wfc[r * hid:(r + 1) * hid, :],
                                  preferred_element_type=jnp.float32)
            rows.append(lg)
        # One batched store per grid step.
        o_ref[0] = rows[0] if tb == 1 else jnp.concatenate(rows, axis=0)

    return kernel


# ---------------------------------------------------------------------------
# host-side helpers (hoisted one-time work)
# ---------------------------------------------------------------------------
def _make_sel(h_in, wp_in, ho, wo, out_rows, out_cols, pad):
    """0/1 matrix scattering the 2x2/stride-2 max (held in m_v at anchor 2*y*wp_in + 2*x)
    into the next layer's zero-padded flat layout.  Built once on the host."""
    lm = h_in * wp_in - 1 - wp_in
    sel = np.zeros((out_rows * out_cols, lm), np.float32)
    off = 1 if pad else 0
    for d in range(out_rows * out_cols):
        yo, xo = d // out_cols - off, d % out_cols - off
        if 0 <= yo < ho and 0 <= xo < wo:
            sel[d, yo * 2 * wp_in + xo * 2] = 1.0
    return jnp.asarray(sel, MXU_DTYPE)          # 0/1 is exact in bf16


def _choose_batch_tile(batch):
    # Amortize per-grid-step overhead while keeping >=4 grid steps when possible
    # (>=2 steps per TensorCore on v7x so the software pipeline actually overlaps).
    return max(1, min(8, batch // 4))


def build_forward(cin, hid, out):
    @jax.jit
    def forward(prepped, x_nchw):
        batch = x_nchw.shape[0]
        tb = _choose_batch_tile(batch)
        g = pl.cdiv(batch, tb)
        bpad = g * tb

        x = jnp.transpose(x_nchw, (0, 2, 3, 1)).astype(jnp.float32)   # (B, 28, 28, cin)
        if bpad != batch:
            x = jnp.pad(x, ((0, bpad - batch), (0, 0), (0, 0), (0, 0)))
        # One-shot conv1 im2col (layout plumbing only, no arithmetic): row i*WP1+j, column
        # t*cin+ci holds padded_input[i+dy, j+dx, ci] for tap t = dy*3+dx.  Rows with
        # j in [28, 32) are junk, never read downstream.
        xp = jnp.pad(x, ((0, 0), (1, 1), (1, (WP1 + 2) - (W1 + 1)), (0, 0)))   # (B, 30, 34, cin)
        taps = [xp[:, dy:dy + H1, dx:dx + WP1, :] for dy in range(3) for dx in range(3)]
        xcol = jnp.stack(taps, axis=3).reshape(bpad, L1, 9 * cin).astype(MXU_DTYPE)

        kernel = _make_kernel(tb, cin, hid, out)
        const = lambda i: (0, 0)
        logits3 = pl.pallas_call(
            kernel,
            out_shape=jax.ShapeDtypeStruct((g, tb, out), jnp.float32),
            grid=(g,),
            in_specs=[
                pl.BlockSpec((tb, L1, 9 * cin), lambda i: (i, 0, 0)),   # conv1 im2col tile
                pl.BlockSpec((9 * cin, hid), const),                    # w1 (bf16)
                pl.BlockSpec((1, hid), const),                          # b1 (f32)
                pl.BlockSpec((9 * hid, hid), const),                    # w2
                pl.BlockSpec((1, hid), const),                          # b2
                pl.BlockSpec((9 * hid, hid), const),                    # w3
                pl.BlockSpec((1, hid), const),                          # b3
                pl.BlockSpec((9 * hid, out), const),                    # wfc
                pl.BlockSpec((1, out), const),                          # bfc
                pl.BlockSpec((P2ROWS, LM1), const),                     # sel1 (272, 863) bf16
                pl.BlockSpec((P3ROWS, LM2), const),                     # sel2 (160, 207) bf16
                pl.BlockSpec((FROWS, LM3), const),                      # sel3 (9, 95) bf16
            ],
            out_specs=pl.BlockSpec((1, tb, out), lambda i: (i, 0, 0)),
            compiler_params=pltpu.CompilerParams(
                dimension_semantics=("parallel",),       # shards batch tiles over 2 TCs on v7x
                vmem_limit_bytes=32 * 1024 * 1024,
            ),
        )(xcol, prepped["w1"], prepped["b1"], prepped["w2"], prepped["b2"],
          prepped["w3"], prepped["b3"], prepped["wfc"], prepped["bfc"],
          prepped["sel1"], prepped["sel2"], prepped["sel3"])
        return logits3.reshape(bpad, out)[:batch]

    return forward


# ---------------------------------------------------------------------------
# parameters
# ---------------------------------------------------------------------------
def init_params(key, input_shape, hidden_units, output_shape):
    """PyTorch-layout parameters (conv: (Cout, Cin, 3, 3), fc: (Out, C*3*3))."""
    ks = jax.random.split(key, 8)

    def conv_w(k, cin, cout):
        return jax.random.normal(k, (cout, cin, 3, 3), jnp.float32) / jnp.sqrt(cin * 9.0)

    fc_in = hidden_units * 3 * 3
    return {
        "w1": conv_w(ks[0], input_shape, hidden_units),
        "b1": 0.01 * jax.random.normal(ks[1], (hidden_units,), jnp.float32),
        "w2": conv_w(ks[2], hidden_units, hidden_units),
        "b2": 0.01 * jax.random.normal(ks[3], (hidden_units,), jnp.float32),
        "w3": conv_w(ks[4], hidden_units, hidden_units),
        "b3": 0.01 * jax.random.normal(ks[5], (hidden_units,), jnp.float32),
        "wfc": jax.random.normal(ks[6], (output_shape, fc_in), jnp.float32) / jnp.sqrt(float(fc_in)),
        "bfc": 0.01 * jax.random.normal(ks[7], (output_shape,), jnp.float32),
    }


def prepare_params(params):
    """One-time (hoisted) re-layout of PyTorch-style params + pooling scatter matrices."""
    def conv_mat(w):  # (cout, cin, 3, 3) -> (9*cin, cout), row = (dy*3+dx)*cin + ci
        cout, cin = w.shape[0], w.shape[1]
        return jnp.transpose(w, (2, 3, 1, 0)).reshape(9 * cin, cout).astype(MXU_DTYPE)

    hid = params["w1"].shape[0]
    out = params["wfc"].shape[0]
    # PyTorch nn.Flatten order is (c, h, w); the kernel's feature order is (h*3+w, c).
    wfc = params["wfc"].reshape(out, hid, 9)                               # [o, c, h*3+w]
    wfc_p = jnp.transpose(wfc, (2, 1, 0)).reshape(9 * hid, out).astype(MXU_DTYPE)
    f32row = lambda b: b.reshape(1, -1).astype(jnp.float32)
    return {
        "w1": conv_mat(params["w1"]), "b1": f32row(params["b1"]),
        "w2": conv_mat(params["w2"]), "b2": f32row(params["b2"]),
        "w3": conv_mat(params["w3"]), "b3": f32row(params["b3"]),
        "wfc": wfc_p, "bfc": f32row(params["bfc"]),
        # 0/1 pooling scatter matrices (hoisted out of the kernel per the perf review).
        "sel1": _make_sel(H1, WP1, H2, W2, H2 + 3, WP2, pad=True),
        "sel2": _make_sel(H2, WP2, H3, W3, H3 + 3, WP3, pad=True),
        "sel3": _make_sel(H3, WP3, 3, 3, 3, 3, pad=False),
    }


# ---------------------------------------------------------------------------
# pure-JAX reference (PyTorch semantics) for a numerical check
# ---------------------------------------------------------------------------
def reference_forward(params, x_nchw):
    def block(x, w, b):
        y = lax.conv_general_dilated(
            x, w, window_strides=(1, 1), padding=((1, 1), (1, 1)),
            dimension_numbers=("NCHW", "OIHW", "NCHW"))
        y = jnp.maximum(y + b.reshape(1, -1, 1, 1), 0.0)
        return lax.reduce_window(y, -jnp.inf, lax.max, (1, 1, 2, 2), (1, 1, 2, 2), "VALID")

    x = block(x_nchw.astype(jnp.float32), params["w1"], params["b1"])
    x = block(x, params["w2"], params["b2"])
    x = block(x, params["w3"], params["b3"])
    feat = x.reshape(x.shape[0], -1)            # NCHW flatten, same as nn.Flatten
    return feat @ params["wfc"].T + params["bfc"]


if __name__ == "__main__":
    # 28x28 input -> 14 -> 7 -> 3, matching Linear(hidden_units * 3 * 3, ...)
    B, C_IN, H, W = 8, 1, 28, 28
    HIDDEN, N_CLASSES = 8, 10

    key = jax.random.PRNGKey(0)
    k_params, k_x = jax.random.split(key)
    params = init_params(k_params, C_IN, HIDDEN, N_CLASSES)
    prepped = prepare_params(params)            # one-time weight/sel re-layout (hoisted)
    x = jax.random.normal(k_x, (B, C_IN, H, W), jnp.float32)

    forward = build_forward(C_IN, HIDDEN, N_CLASSES)
    logits = forward(prepped, x)
    jax.block_until_ready(logits)
    assert logits.shape == (B, N_CLASSES), logits.shape

    ref = reference_forward(params, x)
    err = float(jnp.max(jnp.abs(logits - ref)))
    scale = float(jnp.max(jnp.abs(ref)))
    # bf16 MXU operands with f32 accumulation -> relative tolerance.
    assert err <= 0.05 * scale + 0.05, f"kernel/reference mismatch: err={err}, scale={scale}"

    print("KERNEL_OK")
</pallas_src>

<mosaic_0001>
module attributes {stable_mosaic.version = 11 : i64} {
  func.func @kernel(%arg0: i32, %arg1: memref<2x896x9xbf16, #tpu.memory_space<vmem>>, %arg2: memref<9x8xbf16, #tpu.memory_space<vmem>>, %arg3: memref<1x8xf32, #tpu.memory_space<vmem>>, %arg4: memref<72x8xbf16, #tpu.memory_space<vmem>>, %arg5: memref<1x8xf32, #tpu.memory_space<vmem>>, %arg6: memref<72x8xbf16, #tpu.memory_space<vmem>>, %arg7: memref<1x8xf32, #tpu.memory_space<vmem>>, %arg8: memref<72x10xbf16, #tpu.memory_space<vmem>>, %arg9: memref<1x10xf32, #tpu.memory_space<vmem>>, %arg10: memref<272x863xbf16, #tpu.memory_space<vmem>>, %arg11: memref<160x207xbf16, #tpu.memory_space<vmem>>, %arg12: memref<9x95xbf16, #tpu.memory_space<vmem>>, %arg13: memref<1x2x10xf32, #tpu.memory_space<vmem>>) attributes {dimension_semantics = [#tpu.dimension_semantics<parallel>], iteration_bounds = array<i64: 4>, scalar_prefetch = 0 : i64, scratch_operands = 0 : i64, tpu.core_type = #tpu.core_type<tc>, window_params = [{transform_indices = @transform_0, window_bounds = array<i64: 2, 896, 9>}, {pipeline_mode = #tpu.pipeline_mode<synchronous>, transform_indices = @transform_1, window_bounds = array<i64: 9, 8>}, {pipeline_mode = #tpu.pipeline_mode<synchronous>, transform_indices = @transform_2, window_bounds = array<i64: 1, 8>}, {pipeline_mode = #tpu.pipeline_mode<synchronous>, transform_indices = @transform_3, window_bounds = array<i64: 72, 8>}, {pipeline_mode = #tpu.pipeline_mode<synchronous>, transform_indices = @transform_4, window_bounds = array<i64: 1, 8>}, {pipeline_mode = #tpu.pipeline_mode<synchronous>, transform_indices = @transform_5, window_bounds = array<i64: 72, 8>}, {pipeline_mode = #tpu.pipeline_mode<synchronous>, transform_indices = @transform_6, window_bounds = array<i64: 1, 8>}, {pipeline_mode = #tpu.pipeline_mode<synchronous>, transform_indices = @transform_7, window_bounds = array<i64: 72, 10>}, {pipeline_mode = #tpu.pipeline_mode<synchronous>, transform_indices = @transform_8, window_bounds = array<i64: 1, 10>}, {pipeline_mode = #tpu.pipeline_mode<synchronous>, transform_indices = @transform_9, window_bounds = array<i64: 272, 863>}, {pipeline_mode = #tpu.pipeline_mode<synchronous>, transform_indices = @transform_10, window_bounds = array<i64: 160, 207>}, {pipeline_mode = #tpu.pipeline_mode<synchronous>, transform_indices = @transform_11, window_bounds = array<i64: 9, 95>}, {transform_indices = @transform_12, window_bounds = array<i64: 1, 2, 10>}]} {
    %c0 = arith.constant 0 : index
    %c0_0 = arith.constant 0 : index
    %0 = vector.load %arg2[%c0, %c0_0] : memref<9x8xbf16, #tpu.memory_space<vmem>>, vector<9x8xbf16>
    %c0_1 = arith.constant 0 : index
    %c0_2 = arith.constant 0 : index
    %1 = vector.load %arg3[%c0_1, %c0_2] : memref<1x8xf32, #tpu.memory_space<vmem>>, vector<1x8xf32>
    %c0_3 = arith.constant 0 : index
    %c0_4 = arith.constant 0 : index
    %2 = vector.load %arg4[%c0_3, %c0_4] : memref<72x8xbf16, #tpu.memory_space<vmem>>, vector<72x8xbf16>
    %c0_5 = arith.constant 0 : index
    %c0_6 = arith.constant 0 : index
    %3 = vector.load %arg5[%c0_5, %c0_6] : memref<1x8xf32, #tpu.memory_space<vmem>>, vector<1x8xf32>
    %c0_7 = arith.constant 0 : index
    %c0_8 = arith.constant 0 : index
    %4 = vector.load %arg6[%c0_7, %c0_8] : memref<72x8xbf16, #tpu.memory_space<vmem>>, vector<72x8xbf16>
    %c0_9 = arith.constant 0 : index
    %c0_10 = arith.constant 0 : index
    %5 = vector.load %arg7[%c0_9, %c0_10] : memref<1x8xf32, #tpu.memory_space<vmem>>, vector<1x8xf32>
    %c0_11 = arith.constant 0 : index
    %c0_12 = arith.constant 0 : index
    %6 = vector.load %arg8[%c0_11, %c0_12] : memref<72x10xbf16, #tpu.memory_space<vmem>>, vector<72x10xbf16>
    %c0_13 = arith.constant 0 : index
    %c0_14 = arith.constant 0 : index
    %7 = vector.load %arg9[%c0_13, %c0_14] : memref<1x10xf32, #tpu.memory_space<vmem>>, vector<1x10xf32>
    %c0_15 = arith.constant 0 : index
    %c0_16 = arith.constant 0 : index
    %8 = vector.load %arg10[%c0_15, %c0_16] : memref<272x863xbf16, #tpu.memory_space<vmem>>, vector<272x863xbf16>
    %c0_17 = arith.constant 0 : index
    %c0_18 = arith.constant 0 : index
    %9 = vector.load %arg11[%c0_17, %c0_18] : memref<160x207xbf16, #tpu.memory_space<vmem>>, vector<160x207xbf16>
    %c0_19 = arith.constant 0 : index
    %c0_20 = arith.constant 0 : index
    %10 = vector.load %arg12[%c0_19, %c0_20] : memref<9x95xbf16, #tpu.memory_space<vmem>>, vector<9x95xbf16>
    %c0_21 = arith.constant 0 : index
    %c0_22 = arith.constant 0 : index
    %c0_23 = arith.constant 0 : index
    %11 = vector.load %arg1[%c0_21, %c0_22, %c0_23] : memref<2x896x9xbf16, #tpu.memory_space<vmem>>, vector<1x896x9xbf16>
    %12 = vector.shape_cast %11 : vector<1x896x9xbf16> to vector<896x9xbf16>
    %cst = arith.constant dense<0.000000e+00> : vector<896x8xf32>
    %13 = tpu.matmul %12, %0, %cst {dimension_numbers = #tpu.dot_dimension_numbers<[1], [0], [0], [1], [0, 0, 1, 1], [], []>} : vector<896x9xbf16>, vector<9x8xbf16>, vector<896x8xf32> -> vector<896x8xf32>
    %14 = vector.broadcast %1 : vector<1x8xf32> to vector<896x8xf32>
    %15 = arith.addf %13, %14 : vector<896x8xf32>
    %cst_24 = arith.constant 0.000000e+00 : f32
    %16 = vector.broadcast %cst_24 : f32 to vector<896x8xf32>
    %17 = arith.maximumf %15, %16 : vector<896x8xf32>
    %18 = vector.extract_strided_slice %17 {offsets = [0, 0], sizes = [895, 8], strides = [1, 1]} : vector<896x8xf32> to vector<895x8xf32>
    %19 = vector.extract_strided_slice %17 {offsets = [1, 0], sizes = [895, 8], strides = [1, 1]} : vector<896x8xf32> to vector<895x8xf32>
    %20 = arith.maximumf %18, %19 : vector<895x8xf32>
    %21 = vector.extract_strided_slice %20 {offsets = [0, 0], sizes = [863, 8], strides = [1, 1]} : vector<895x8xf32> to vector<863x8xf32>
    %22 = vector.extract_strided_slice %20 {offsets = [32, 0], sizes = [863, 8], strides = [1, 1]} : vector<895x8xf32> to vector<863x8xf32>
    %23 = arith.maximumf %21, %22 : vector<863x8xf32>
    %24 = arith.truncf %23 : vector<863x8xf32> to vector<863x8xbf16>
    %cst_25 = arith.constant dense<0.000000e+00> : vector<272x8xf32>
    %25 = tpu.matmul %8, %24, %cst_25 {dimension_numbers = #tpu.dot_dimension_numbers<[1], [0], [0], [1], [0, 0, 1, 1], [], []>} : vector<272x863xbf16>, vector<863x8xbf16>, vector<272x8xf32> -> vector<272x8xf32>
    %26 = arith.truncf %25 : vector<272x8xf32> to vector<272x8xbf16>
    %cst_26 = arith.constant 0.000000e+00 : f32
    %27 = vector.broadcast %cst_26 : f32 to vector<224x8xf32>
    %28 = vector.extract_strided_slice %26 {offsets = [0, 0], sizes = [224, 8], strides = [1, 1]} : vector<272x8xbf16> to vector<224x8xbf16>
    %29 = vector.extract_strided_slice %2 {offsets = [0, 0], sizes = [8, 8], strides = [1, 1]} : vector<72x8xbf16> to vector<8x8xbf16>
    %cst_27 = arith.constant dense<0.000000e+00> : vector<224x8xf32>
    %30 = tpu.matmul %28, %29, %cst_27 {dimension_numbers = #tpu.dot_dimension_numbers<[1], [0], [0], [1], [0, 0, 1, 1], [], []>} : vector<224x8xbf16>, vector<8x8xbf16>, vector<224x8xf32> -> vector<224x8xf32>
    %31 = arith.addf %27, %30 : vector<224x8xf32>
    %32 = vector.extract_strided_slice %26 {offsets = [1, 0], sizes = [224, 8], strides = [1, 1]} : vector<272x8xbf16> to vector<224x8xbf16>
    %33 = vector.extract_strided_slice %2 {offsets = [8, 0], sizes = [8, 8], strides = [1, 1]} : vector<72x8xbf16> to vector<8x8xbf16>
    %cst_28 = arith.constant dense<0.000000e+00> : vector<224x8xf32>
    %34 = tpu.matmul %32, %33, %cst_28 {dimension_numbers = #tpu.dot_dimension_numbers<[1], [0], [0], [1], [0, 0, 1, 1], [], []>} : vector<224x8xbf16>, vector<8x8xbf16>, vector<224x8xf32> -> vector<224x8xf32>
    %35 = arith.addf %31, %34 : vector<224x8xf32>
    %36 = vector.extract_strided_slice %26 {offsets = [2, 0], sizes = [224, 8], strides = [1, 1]} : vector<272x8xbf16> to vector<224x8xbf16>
    %37 = vector.extract_strided_slice %2 {offsets = [16, 0], sizes = [8, 8], strides = [1, 1]} : vector<72x8xbf16> to vector<8x8xbf16>
    %cst_29 = arith.constant dense<0.000000e+00> : vector<224x8xf32>
    %38 = tpu.matmul %36, %37, %cst_29 {dimension_numbers = #tpu.dot_dimension_numbers<[1], [0], [0], [1], [0, 0, 1, 1], [], []>} : vector<224x8xbf16>, vector<8x8xbf16>, vector<224x8xf32> -> vector<224x8xf32>
    %39 = arith.addf %35, %38 : vector<224x8xf32>
    %40 = vector.extract_strided_slice %26 {offsets = [16, 0], sizes = [224, 8], strides = [1, 1]} : vector<272x8xbf16> to vector<224x8xbf16>
    %41 = vector.extract_strided_slice %2 {offsets = [24, 0], sizes = [8, 8], strides = [1, 1]} : vector<72x8xbf16> to vector<8x8xbf16>
    %cst_30 = arith.constant dense<0.000000e+00> : vector<224x8xf32>
    %42 = tpu.matmul %40, %41, %cst_30 {dimension_numbers = #tpu.dot_dimension_numbers<[1], [0], [0], [1], [0, 0, 1, 1], [], []>} : vector<224x8xbf16>, vector<8x8xbf16>, vector<224x8xf32> -> vector<224x8xf32>
    %43 = arith.addf %39, %42 : vector<224x8xf32>
    %44 = vector.extract_strided_slice %26 {offsets = [17, 0], sizes = [224, 8], strides = [1, 1]} : vector<272x8xbf16> to vector<224x8xbf16>
    %45 = vector.extract_strided_slice %2 {offsets = [32, 0], sizes = [8, 8], strides = [1, 1]} : vector<72x8xbf16> to vector<8x8xbf16>
    %cst_31 = arith.constant dense<0.000000e+00> : vector<224x8xf32>
    %46 = tpu.matmul %44, %45, %cst_31 {dimension_numbers = #tpu.dot_dimension_numbers<[1], [0], [0], [1], [0, 0, 1, 1], [], []>} : vector<224x8xbf16>, vector<8x8xbf16>, vector<224x8xf32> -> vector<224x8xf32>
    %47 = arith.addf %43, %46 : vector<224x8xf32>
    %48 = vector.extract_strided_slice %26 {offsets = [18, 0], sizes = [224, 8], strides = [1, 1]} : vector<272x8xbf16> to vector<224x8xbf16>
    %49 = vector.extract_strided_slice %2 {offsets = [40, 0], sizes = [8, 8], strides = [1, 1]} : vector<72x8xbf16> to vector<8x8xbf16>
    %cst_32 = arith.constant dense<0.000000e+00> : vector<224x8xf32>
    %50 = tpu.matmul %48, %49, %cst_32 {dimension_numbers = #tpu.dot_dimension_numbers<[1], [0], [0], [1], [0, 0, 1, 1], [], []>} : vector<224x8xbf16>, vector<8x8xbf16>, vector<224x8xf32> -> vector<224x8xf32>
    %51 = arith.addf %47, %50 : vector<224x8xf32>
    %52 = vector.extract_strided_slice %26 {offsets = [32, 0], sizes = [224, 8], strides = [1, 1]} : vector<272x8xbf16> to vector<224x8xbf16>
    %53 = vector.extract_strided_slice %2 {offsets = [48, 0], sizes = [8, 8], strides = [1, 1]} : vector<72x8xbf16> to vector<8x8xbf16>
    %cst_33 = arith.constant dense<0.000000e+00> : vector<224x8xf32>
    %54 = tpu.matmul %52, %53, %cst_33 {dimension_numbers = #tpu.dot_dimension_numbers<[1], [0], [0], [1], [0, 0, 1, 1], [], []>} : vector<224x8xbf16>, vector<8x8xbf16>, vector<224x8xf32> -> vector<224x8xf32>
    %55 = arith.addf %51, %54 : vector<224x8xf32>
    %56 = vector.extract_strided_slice %26 {offsets = [33, 0], sizes = [224, 8], strides = [1, 1]} : vector<272x8xbf16> to vector<224x8xbf16>
    %57 = vector.extract_strided_slice %2 {offsets = [56, 0], sizes = [8, 8], strides = [1, 1]} : vector<72x8xbf16> to vector<8x8xbf16>
    %cst_34 = arith.constant dense<0.000000e+00> : vector<224x8xf32>
    %58 = tpu.matmul %56, %57, %cst_34 {dimension_numbers = #tpu.dot_dimension_numbers<[1], [0], [0], [1], [0, 0, 1, 1], [], []>} : vector<224x8xbf16>, vector<8x8xbf16>, vector<224x8xf32> -> vector<224x8xf32>
    %59 = arith.addf %55, %58 : vector<224x8xf32>
    %60 = vector.extract_strided_slice %26 {offsets = [34, 0], sizes = [224, 8], strides = [1, 1]} : vector<272x8xbf16> to vector<224x8xbf16>
    %61 = vector.extract_strided_slice %2 {offsets = [64, 0], sizes = [8, 8], strides = [1, 1]} : vector<72x8xbf16> to vector<8x8xbf16>
    %cst_35 = arith.constant dense<0.000000e+00> : vector<224x8xf32>
    %62 = tpu.matmul %60, %61, %cst_35 {dimension_numbers = #tpu.dot_dimension_numbers<[1], [0], [0], [1], [0, 0, 1, 1], [], []>} : vector<224x8xbf16>, vector<8x8xbf16>, vector<224x8xf32> -> vector<224x8xf32>
    %63 = arith.addf %59, %62 : vector<224x8xf32>
    %64 = vector.broadcast %3 : vector<1x8xf32> to vector<224x8xf32>
    %65 = arith.addf %63, %64 : vector<224x8xf32>
    %cst_36 = arith.constant 0.000000e+00 : f32
    %66 = vector.broadcast %cst_36 : f32 to vector<224x8xf32>
    %67 = arith.maximumf %65, %66 : vector<224x8xf32>
    %68 = vector.extract_strided_slice %67 {offsets = [0, 0], sizes = [223, 8], strides = [1, 1]} : vector<224x8xf32> to vector<223x8xf32>
    %69 = vector.extract_strided_slice %67 {offsets = [1, 0], sizes = [223, 8], strides = [1, 1]} : vector<224x8xf32> to vector<223x8xf32>
    %70 = arith.maximumf %68, %69 : vector<223x8xf32>
    %71 = vector.extract_strided_slice %70 {offsets = [0, 0], sizes = [207, 8], strides = [1, 1]} : vector<223x8xf32> to vector<207x8xf32>
    %72 = vector.extract_strided_slice %70 {offsets = [16, 0], sizes = [207, 8], strides = [1, 1]} : vector<223x8xf32> to vector<207x8xf32>
    %73 = arith.maximumf %71, %72 : vector<207x8xf32>
    %74 = arith.truncf %73 : vector<207x8xf32> to vector<207x8xbf16>
    %cst_37 = arith.constant dense<0.000000e+00> : vector<160x8xf32>
    %75 = tpu.matmul %9, %74, %cst_37 {dimension_numbers = #tpu.dot_dimension_numbers<[1], [0], [0], [1], [0, 0, 1, 1], [], []>} : vector<160x207xbf16>, vector<207x8xbf16>, vector<160x8xf32> -> vector<160x8xf32>
    %76 = arith.truncf %75 : vector<160x8xf32> to vector<160x8xbf16>
    %cst_38 = arith.constant 0.000000e+00 : f32
    %77 = vector.broadcast %cst_38 : f32 to vector<112x8xf32>
    %78 = vector.extract_strided_slice %76 {offsets = [0, 0], sizes = [112, 8], strides = [1, 1]} : vector<160x8xbf16> to vector<112x8xbf16>
    %79 = vector.extract_strided_slice %4 {offsets = [0, 0], sizes = [8, 8], strides = [1, 1]} : vector<72x8xbf16> to vector<8x8xbf16>
    %cst_39 = arith.constant dense<0.000000e+00> : vector<112x8xf32>
    %80 = tpu.matmul %78, %79, %cst_39 {dimension_numbers = #tpu.dot_dimension_numbers<[1], [0], [0], [1], [0, 0, 1, 1], [], []>} : vector<112x8xbf16>, vector<8x8xbf16>, vector<112x8xf32> -> vector<112x8xf32>
    %81 = arith.addf %77, %80 : vector<112x8xf32>
    %82 = vector.extract_strided_slice %76 {offsets = [1, 0], sizes = [112, 8], strides = [1, 1]} : vector<160x8xbf16> to vector<112x8xbf16>
    %83 = vector.extract_strided_slice %4 {offsets = [8, 0], sizes = [8, 8], strides = [1, 1]} : vector<72x8xbf16> to vector<8x8xbf16>
    %cst_40 = arith.constant dense<0.000000e+00> : vector<112x8xf32>
    %84 = tpu.matmul %82, %83, %cst_40 {dimension_numbers = #tpu.dot_dimension_numbers<[1], [0], [0], [1], [0, 0, 1, 1], [], []>} : vector<112x8xbf16>, vector<8x8xbf16>, vector<112x8xf32> -> vector<112x8xf32>
    %85 = arith.addf %81, %84 : vector<112x8xf32>
    %86 = vector.extract_strided_slice %76 {offsets = [2, 0], sizes = [112, 8], strides = [1, 1]} : vector<160x8xbf16> to vector<112x8xbf16>
    %87 = vector.extract_strided_slice %4 {offsets = [16, 0], sizes = [8, 8], strides = [1, 1]} : vector<72x8xbf16> to vector<8x8xbf16>
    %cst_41 = arith.constant dense<0.000000e+00> : vector<112x8xf32>
    %88 = tpu.matmul %86, %87, %cst_41 {dimension_numbers = #tpu.dot_dimension_numbers<[1], [0], [0], [1], [0, 0, 1, 1], [], []>} : vector<112x8xbf16>, vector<8x8xbf16>, vector<112x8xf32> -> vector<112x8xf32>
    %89 = arith.addf %85, %88 : vector<112x8xf32>
    %90 = vector.extract_strided_slice %76 {offsets = [16, 0], sizes = [112, 8], strides = [1, 1]} : vector<160x8xbf16> to vector<112x8xbf16>
    %91 = vector.extract_strided_slice %4 {offsets = [24, 0], sizes = [8, 8], strides = [1, 1]} : vector<72x8xbf16> to vector<8x8xbf16>
    %cst_42 = arith.constant dense<0.000000e+00> : vector<112x8xf32>
    %92 = tpu.matmul %90, %91, %cst_42 {dimension_numbers = #tpu.dot_dimension_numbers<[1], [0], [0], [1], [0, 0, 1, 1], [], []>} : vector<112x8xbf16>, vector<8x8xbf16>, vector<112x8xf32> -> vector<112x8xf32>
    %93 = arith.addf %89, %92 : vector<112x8xf32>
    %94 = vector.extract_strided_slice %76 {offsets = [17, 0], sizes = [112, 8], strides = [1, 1]} : vector<160x8xbf16> to vector<112x8xbf16>
    %95 = vector.extract_strided_slice %4 {offsets = [32, 0], sizes = [8, 8], strides = [1, 1]} : vector<72x8xbf16> to vector<8x8xbf16>
    %cst_43 = arith.constant dense<0.000000e+00> : vector<112x8xf32>
    %96 = tpu.matmul %94, %95, %cst_43 {dimension_numbers = #tpu.dot_dimension_numbers<[1], [0], [0], [1], [0, 0, 1, 1], [], []>} : vector<112x8xbf16>, vector<8x8xbf16>, vector<112x8xf32> -> vector<112x8xf32>
    %97 = arith.addf %93, %96 : vector<112x8xf32>
    %98 = vector.extract_strided_slice %76 {offsets = [18, 0], sizes = [112, 8], strides = [1, 1]} : vector<160x8xbf16> to vector<112x8xbf16>
    %99 = vector.extract_strided_slice %4 {offsets = [40, 0], sizes = [8, 8], strides = [1, 1]} : vector<72x8xbf16> to vector<8x8xbf16>
    %cst_44 = arith.constant dense<0.000000e+00> : vector<112x8xf32>
    %100 = tpu.matmul %98, %99, %cst_44 {dimension_numbers = #tpu.dot_dimension_numbers<[1], [0], [0], [1], [0, 0, 1, 1], [], []>} : vector<112x8xbf16>, vector<8x8xbf16>, vector<112x8xf32> -> vector<112x8xf32>
    %101 = arith.addf %97, %100 : vector<112x8xf32>
    %102 = vector.extract_strided_slice %76 {offsets = [32, 0], sizes = [112, 8], strides = [1, 1]} : vector<160x8xbf16> to vector<112x8xbf16>
    %103 = vector.extract_strided_slice %4 {offsets = [48, 0], sizes = [8, 8], strides = [1, 1]} : vector<72x8xbf16> to vector<8x8xbf16>
    %cst_45 = arith.constant dense<0.000000e+00> : vector<112x8xf32>
    %104 = tpu.matmul %102, %103, %cst_45 {dimension_numbers = #tpu.dot_dimension_numbers<[1], [0], [0], [1], [0, 0, 1, 1], [], []>} : vector<112x8xbf16>, vector<8x8xbf16>, vector<112x8xf32> -> vector<112x8xf32>
    %105 = arith.addf %101, %104 : vector<112x8xf32>
    %106 = vector.extract_strided_slice %76 {offsets = [33, 0], sizes = [112, 8], strides = [1, 1]} : vector<160x8xbf16> to vector<112x8xbf16>
    %107 = vector.extract_strided_slice %4 {offsets = [56, 0], sizes = [8, 8], strides = [1, 1]} : vector<72x8xbf16> to vector<8x8xbf16>
    %cst_46 = arith.constant dense<0.000000e+00> : vector<112x8xf32>
    %108 = tpu.matmul %106, %107, %cst_46 {dimension_numbers = #tpu.dot_dimension_numbers<[1], [0], [0], [1], [0, 0, 1, 1], [], []>} : vector<112x8xbf16>, vector<8x8xbf16>, vector<112x8xf32> -> vector<112x8xf32>
    %109 = arith.addf %105, %108 : vector<112x8xf32>
    %110 = vector.extract_strided_slice %76 {offsets = [34, 0], sizes = [112, 8], strides = [1, 1]} : vector<160x8xbf16> to vector<112x8xbf16>
    %111 = vector.extract_strided_slice %4 {offsets = [64, 0], sizes = [8, 8], strides = [1, 1]} : vector<72x8xbf16> to vector<8x8xbf16>
    %cst_47 = arith.constant dense<0.000000e+00> : vector<112x8xf32>
    %112 = tpu.matmul %110, %111, %cst_47 {dimension_numbers = #tpu.dot_dimension_numbers<[1], [0], [0], [1], [0, 0, 1, 1], [], []>} : vector<112x8xbf16>, vector<8x8xbf16>, vector<112x8xf32> -> vector<112x8xf32>
    %113 = arith.addf %109, %112 : vector<112x8xf32>
    %114 = vector.broadcast %5 : vector<1x8xf32> to vector<112x8xf32>
    %115 = arith.addf %113, %114 : vector<112x8xf32>
    %cst_48 = arith.constant 0.000000e+00 : f32
    %116 = vector.broadcast %cst_48 : f32 to vector<112x8xf32>
    %117 = arith.maximumf %115, %116 : vector<112x8xf32>
    %118 = vector.extract_strided_slice %117 {offsets = [0, 0], sizes = [111, 8], strides = [1, 1]} : vector<112x8xf32> to vector<111x8xf32>
    %119 = vector.extract_strided_slice %117 {offsets = [1, 0], sizes = [111, 8], strides = [1, 1]} : vector<112x8xf32> to vector<111x8xf32>
    %120 = arith.maximumf %118, %119 : vector<111x8xf32>
    %121 = vector.extract_strided_slice %120 {offsets = [0, 0], sizes = [95, 8], strides = [1, 1]} : vector<111x8xf32> to vector<95x8xf32>
    %122 = vector.extract_strided_slice %120 {offsets = [16, 0], sizes = [95, 8], strides = [1, 1]} : vector<111x8xf32> to vector<95x8xf32>
    %123 = arith.maximumf %121, %122 : vector<95x8xf32>
    %124 = arith.truncf %123 : vector<95x8xf32> to vector<95x8xbf16>
    %cst_49 = arith.constant dense<0.000000e+00> : vector<9x8xf32>
    %125 = tpu.matmul %10, %124, %cst_49 {dimension_numbers = #tpu.dot_dimension_numbers<[1], [0], [0], [1], [0, 0, 1, 1], [], []>} : vector<9x95xbf16>, vector<95x8xbf16>, vector<9x8xf32> -> vector<9x8xf32>
    %126 = arith.truncf %125 : vector<9x8xf32> to vector<9x8xbf16>
    %127 = vector.extract_strided_slice %126 {offsets = [0, 0], sizes = [1, 8], strides = [1, 1]} : vector<9x8xbf16> to vector<1x8xbf16>
    %128 = vector.extract_strided_slice %6 {offsets = [0, 0], sizes = [8, 10], strides = [1, 1]} : vector<72x10xbf16> to vector<8x10xbf16>
    %cst_50 = arith.constant dense<0.000000e+00> : vector<1x10xf32>
    %129 = tpu.matmul %127, %128, %cst_50 {dimension_numbers = #tpu.dot_dimension_numbers<[1], [0], [0], [1], [0, 0, 1, 1], [], []>} : vector<1x8xbf16>, vector<8x10xbf16>, vector<1x10xf32> -> vector<1x10xf32>
    %130 = arith.addf %7, %129 : vector<1x10xf32>
    %131 = vector.extract_strided_slice %126 {offsets = [1, 0], sizes = [1, 8], strides = [1, 1]} : vector<9x8xbf16> to vector<1x8xbf16>
    %132 = vector.extract_strided_slice %6 {offsets = [8, 0], sizes = [8, 10], strides = [1, 1]} : vector<72x10xbf16> to vector<8x10xbf16>
    %cst_51 = arith.constant dense<0.000000e+00> : vector<1x10xf32>
    %133 = tpu.matmul %131, %132, %cst_51 {dimension_numbers = #tpu.dot_dimension_numbers<[1], [0], [0], [1], [0, 0, 1, 1], [], []>} : vector<1x8xbf16>, vector<8x10xbf16>, vector<1x10xf32> -> vector<1x10xf32>
    %134 = arith.addf %130, %133 : vector<1x10xf32>
    %135 = vector.extract_strided_slice %126 {offsets = [2, 0], sizes = [1, 8], strides = [1, 1]} : vector<9x8xbf16> to vector<1x8xbf16>
    %136 = vector.extract_strided_slice %6 {offsets = [16, 0], sizes = [8, 10], strides = [1, 1]} : vector<72x10xbf16> to vector<8x10xbf16>
    %cst_52 = arith.constant dense<0.000000e+00> : vector<1x10xf32>
    %137 = tpu.matmul %135, %136, %cst_52 {dimension_numbers = #tpu.dot_dimension_numbers<[1], [0], [0], [1], [0, 0, 1, 1], [], []>} : vector<1x8xbf16>, vector<8x10xbf16>, vector<1x10xf32> -> vector<1x10xf32>
    %138 = arith.addf %134, %137 : vector<1x10xf32>
    %139 = vector.extract_strided_slice %126 {offsets = [3, 0], sizes = [1, 8], strides = [1, 1]} : vector<9x8xbf16> to vector<1x8xbf16>
    %140 = vector.extract_strided_slice %6 {offsets = [24, 0], sizes = [8, 10], strides = [1, 1]} : vector<72x10xbf16> to vector<8x10xbf16>
    %cst_53 = arith.constant dense<0.000000e+00> : vector<1x10xf32>
    %141 = tpu.matmul %139, %140, %cst_53 {dimension_numbers = #tpu.dot_dimension_numbers<[1], [0], [0], [1], [0, 0, 1, 1], [], []>} : vector<1x8xbf16>, vector<8x10xbf16>, vector<1x10xf32> -> vector<1x10xf32>
    %142 = arith.addf %138, %141 : vector<1x10xf32>
    %143 = vector.extract_strided_slice %126 {offsets = [4, 0], sizes = [1, 8], strides = [1, 1]} : vector<9x8xbf16> to vector<1x8xbf16>
    %144 = vector.extract_strided_slice %6 {offsets = [32, 0], sizes = [8, 10], strides = [1, 1]} : vector<72x10xbf16> to vector<8x10xbf16>
    %cst_54 = arith.constant dense<0.000000e+00> : vector<1x10xf32>
    %145 = tpu.matmul %143, %144, %cst_54 {dimension_numbers = #tpu.dot_dimension_numbers<[1], [0], [0], [1], [0, 0, 1, 1], [], []>} : vector<1x8xbf16>, vector<8x10xbf16>, vector<1x10xf32> -> vector<1x10xf32>
    %146 = arith.addf %142, %145 : vector<1x10xf32>
    %147 = vector.extract_strided_slice %126 {offsets = [5, 0], sizes = [1, 8], strides = [1, 1]} : vector<9x8xbf16> to vector<1x8xbf16>
    %148 = vector.extract_strided_slice %6 {offsets = [40, 0], sizes = [8, 10], strides = [1, 1]} : vector<72x10xbf16> to vector<8x10xbf16>
    %cst_55 = arith.constant dense<0.000000e+00> : vector<1x10xf32>
    %149 = tpu.matmul %147, %148, %cst_55 {dimension_numbers = #tpu.dot_dimension_numbers<[1], [0], [0], [1], [0, 0, 1, 1], [], []>} : vector<1x8xbf16>, vector<8x10xbf16>, vector<1x10xf32> -> vector<1x10xf32>
    %150 = arith.addf %146, %149 : vector<1x10xf32>
    %151 = vector.extract_strided_slice %126 {offsets = [6, 0], sizes = [1, 8], strides = [1, 1]} : vector<9x8xbf16> to vector<1x8xbf16>
    %152 = vector.extract_strided_slice %6 {offsets = [48, 0], sizes = [8, 10], strides = [1, 1]} : vector<72x10xbf16> to vector<8x10xbf16>
    %cst_56 = arith.constant dense<0.000000e+00> : vector<1x10xf32>
    %153 = tpu.matmul %151, %152, %cst_56 {dimension_numbers = #tpu.dot_dimension_numbers<[1], [0], [0], [1], [0, 0, 1, 1], [], []>} : vector<1x8xbf16>, vector<8x10xbf16>, vector<1x10xf32> -> vector<1x10xf32>
    %154 = arith.addf %150, %153 : vector<1x10xf32>
    %155 = vector.extract_strided_slice %126 {offsets = [7, 0], sizes = [1, 8], strides = [1, 1]} : vector<9x8xbf16> to vector<1x8xbf16>
    %156 = vector.extract_strided_slice %6 {offsets = [56, 0], sizes = [8, 10], strides = [1, 1]} : vector<72x10xbf16> to vector<8x10xbf16>
    %cst_57 = arith.constant dense<0.000000e+00> : vector<1x10xf32>
    %157 = tpu.matmul %155, %156, %cst_57 {dimension_numbers = #tpu.dot_dimension_numbers<[1], [0], [0], [1], [0, 0, 1, 1], [], []>} : vector<1x8xbf16>, vector<8x10xbf16>, vector<1x10xf32> -> vector<1x10xf32>
    %158 = arith.addf %154, %157 : vector<1x10xf32>
    %159 = vector.extract_strided_slice %126 {offsets = [8, 0], sizes = [1, 8], strides = [1, 1]} : vector<9x8xbf16> to vector<1x8xbf16>
    %160 = vector.extract_strided_slice %6 {offsets = [64, 0], sizes = [8, 10], strides = [1, 1]} : vector<72x10xbf16> to vector<8x10xbf16>
    %cst_58 = arith.constant dense<0.000000e+00> : vector<1x10xf32>
    %161 = tpu.matmul %159, %160, %cst_58 {dimension_numbers = #tpu.dot_dimension_numbers<[1], [0], [0], [1], [0, 0, 1, 1], [], []>} : vector<1x8xbf16>, vector<8x10xbf16>, vector<1x10xf32> -> vector<1x10xf32>
    %162 = arith.addf %158, %161 : vector<1x10xf32>
    %c1 = arith.constant 1 : index
    %c0_59 = arith.constant 0 : index
    %c0_60 = arith.constant 0 : index
    %163 = vector.load %arg1[%c1, %c0_59, %c0_60] : memref<2x896x9xbf16, #tpu.memory_space<vmem>>, vector<1x896x9xbf16>
    %164 = vector.shape_cast %163 : vector<1x896x9xbf16> to vector<896x9xbf16>
    %cst_61 = arith.constant dense<0.000000e+00> : vector<896x8xf32>
    %165 = tpu.matmul %164, %0, %cst_61 {dimension_numbers = #tpu.dot_dimension_numbers<[1], [0], [0], [1], [0, 0, 1, 1], [], []>} : vector<896x9xbf16>, vector<9x8xbf16>, vector<896x8xf32> -> vector<896x8xf32>
    %166 = vector.broadcast %1 : vector<1x8xf32> to vector<896x8xf32>
    %167 = arith.addf %165, %166 : vector<896x8xf32>
    %cst_62 = arith.constant 0.000000e+00 : f32
    %168 = vector.broadcast %cst_62 : f32 to vector<896x8xf32>
    %169 = arith.maximumf %167, %168 : vector<896x8xf32>
    %170 = vector.extract_strided_slice %169 {offsets = [0, 0], sizes = [895, 8], strides = [1, 1]} : vector<896x8xf32> to vector<895x8xf32>
    %171 = vector.extract_strided_slice %169 {offsets = [1, 0], sizes = [895, 8], strides = [1, 1]} : vector<896x8xf32> to vector<895x8xf32>
    %172 = arith.maximumf %170, %171 : vector<895x8xf32>
    %173 = vector.extract_strided_slice %172 {offsets = [0, 0], sizes = [863, 8], strides = [1, 1]} : vector<895x8xf32> to vector<863x8xf32>
    %174 = vector.extract_strided_slice %172 {offsets = [32, 0], sizes = [863, 8], strides = [1, 1]} : vector<895x8xf32> to vector<863x8xf32>
    %175 = arith.maximumf %173, %174 : vector<863x8xf32>
    %176 = arith.truncf %175 : vector<863x8xf32> to vector<863x8xbf16>
    %cst_63 = arith.constant dense<0.000000e+00> : vector<272x8xf32>
    %177 = tpu.matmul %8, %176, %cst_63 {dimension_numbers = #tpu.dot_dimension_numbers<[1], [0], [0], [1], [0, 0, 1, 1], [], []>} : vector<272x863xbf16>, vector<863x8xbf16>, vector<272x8xf32> -> vector<272x8xf32>
    %178 = arith.truncf %177 : vector<272x8xf32> to vector<272x8xbf16>
    %cst_64 = arith.constant 0.000000e+00 : f32
    %179 = vector.broadcast %cst_64 : f32 to vector<224x8xf32>
    %180 = vector.extract_strided_slice %178 {offsets = [0, 0], sizes = [224, 8], strides = [1, 1]} : vector<272x8xbf16> to vector<224x8xbf16>
    %181 = vector.extract_strided_slice %2 {offsets = [0, 0], sizes = [8, 8], strides = [1, 1]} : vector<72x8xbf16> to vector<8x8xbf16>
    %cst_65 = arith.constant dense<0.000000e+00> : vector<224x8xf32>
    %182 = tpu.matmul %180, %181, %cst_65 {dimension_numbers = #tpu.dot_dimension_numbers<[1], [0], [0], [1], [0, 0, 1, 1], [], []>} : vector<224x8xbf16>, vector<8x8xbf16>, vector<224x8xf32> -> vector<224x8xf32>
    %183 = arith.addf %179, %182 : vector<224x8xf32>
    %184 = vector.extract_strided_slice %178 {offsets = [1, 0], sizes = [224, 8], strides = [1, 1]} : vector<272x8xbf16> to vector<224x8xbf16>
    %185 = vector.extract_strided_slice %2 {offsets = [8, 0], sizes = [8, 8], strides = [1, 1]} : vector<72x8xbf16> to vector<8x8xbf16>
    %cst_66 = arith.constant dense<0.000000e+00> : vector<224x8xf32>
    %186 = tpu.matmul %184, %185, %cst_66 {dimension_numbers = #tpu.dot_dimension_numbers<[1], [0], [0], [1], [0, 0, 1, 1], [], []>} : vector<224x8xbf16>, vector<8x8xbf16>, vector<224x8xf32> -> vector<224x8xf32>
    %187 = arith.addf %183, %186 : vector<224x8xf32>
    %188 = vector.extract_strided_slice %178 {offsets = [2, 0], sizes = [224, 8], strides = [1, 1]} : vector<272x8xbf16> to vector<224x8xbf16>
    %189 = vector.extract_strided_slice %2 {offsets = [16, 0], sizes = [8, 8], strides = [1, 1]} : vector<72x8xbf16> to vector<8x8xbf16>
    %cst_67 = arith.constant dense<0.000000e+00> : vector<224x8xf32>
    %190 = tpu.matmul %188, %189, %cst_67 {dimension_numbers = #tpu.dot_dimension_numbers<[1], [0], [0], [1], [0, 0, 1, 1], [], []>} : vector<224x8xbf16>, vector<8x8xbf16>, vector<224x8xf32> -> vector<224x8xf32>
    %191 = arith.addf %187, %190 : vector<224x8xf32>
    %192 = vector.extract_strided_slice %178 {offsets = [16, 0], sizes = [224, 8], strides = [1, 1]} : vector<272x8xbf16> to vector<224x8xbf16>
    %193 = vector.extract_strided_slice %2 {offsets = [24, 0], sizes = [8, 8], strides = [1, 1]} : vector<72x8xbf16> to vector<8x8xbf16>
    %cst_68 = arith.constant dense<0.000000e+00> : vector<224x8xf32>
    %194 = tpu.matmul %192, %193, %cst_68 {dimension_numbers = #tpu.dot_dimension_numbers<[1], [0], [0], [1], [0, 0, 1, 1], [], []>} : vector<224x8xbf16>, vector<8x8xbf16>, vector<224x8xf32> -> vector<224x8xf32>
    %195 = arith.addf %191, %194 : vector<224x8xf32>
    %196 = vector.extract_strided_slice %178 {offsets = [17, 0], sizes = [224, 8], strides = [1, 1]} : vector<272x8xbf16> to vector<224x8xbf16>
    %197 = vector.extract_strided_slice %2 {offsets = [32, 0], sizes = [8, 8], strides = [1, 1]} : vector<72x8xbf16> to vector<8x8xbf16>
    %cst_69 = arith.constant dense<0.000000e+00> : vector<224x8xf32>
    %198 = tpu.matmul %196, %197, %cst_69 {dimension_numbers = #tpu.dot_dimension_numbers<[1], [0], [0], [1], [0, 0, 1, 1], [], []>} : vector<224x8xbf16>, vector<8x8xbf16>, vector<224x8xf32> -> vector<224x8xf32>
    %199 = arith.addf %195, %198 : vector<224x8xf32>
    %200 = vector.extract_strided_slice %178 {offsets = [18, 0], sizes = [224, 8], strides = [1, 1]} : vector<272x8xbf16> to vector<224x8xbf16>
    %201 = vector.extract_strided_slice %2 {offsets = [40, 0], sizes = [8, 8], strides = [1, 1]} : vector<72x8xbf16> to vector<8x8xbf16>
    %cst_70 = arith.constant dense<0.000000e+00> : vector<224x8xf32>
    %202 = tpu.matmul %200, %201, %cst_70 {dimension_numbers = #tpu.dot_dimension_numbers<[1], [0], [0], [1], [0, 0, 1, 1], [], []>} : vector<224x8xbf16>, vector<8x8xbf16>, vector<224x8xf32> -> vector<224x8xf32>
    %203 = arith.addf %199, %202 : vector<224x8xf32>
    %204 = vector.extract_strided_slice %178 {offsets = [32, 0], sizes = [224, 8], strides = [1, 1]} : vector<272x8xbf16> to vector<224x8xbf16>
    %205 = vector.extract_strided_slice %2 {offsets = [48, 0], sizes = [8, 8], strides = [1, 1]} : vector<72x8xbf16> to vector<8x8xbf16>
    %cst_71 = arith.constant dense<0.000000e+00> : vector<224x8xf32>
    %206 = tpu.matmul %204, %205, %cst_71 {dimension_numbers = #tpu.dot_dimension_numbers<[1], [0], [0], [1], [0, 0, 1, 1], [], []>} : vector<224x8xbf16>, vector<8x8xbf16>, vector<224x8xf32> -> vector<224x8xf32>
    %207 = arith.addf %203, %206 : vector<224x8xf32>
    %208 = vector.extract_strided_slice %178 {offsets = [33, 0], sizes = [224, 8], strides = [1, 1]} : vector<272x8xbf16> to vector<224x8xbf16>
    %209 = vector.extract_strided_slice %2 {offsets = [56, 0], sizes = [8, 8], strides = [1, 1]} : vector<72x8xbf16> to vector<8x8xbf16>
    %cst_72 = arith.constant dense<0.000000e+00> : vector<224x8xf32>
    %210 = tpu.matmul %208, %209, %cst_72 {dimension_numbers = #tpu.dot_dimension_numbers<[1], [0], [0], [1], [0, 0, 1, 1], [], []>} : vector<224x8xbf16>, vector<8x8xbf16>, vector<224x8xf32> -> vector<224x8xf32>
    %211 = arith.addf %207, %210 : vector<224x8xf32>
    %212 = vector.extract_strided_slice %178 {offsets = [34, 0], sizes = [224, 8], strides = [1, 1]} : vector<272x8xbf16> to vector<224x8xbf16>
    %213 = vector.extract_strided_slice %2 {offsets = [64, 0], sizes = [8, 8], strides = [1, 1]} : vector<72x8xbf16> to vector<8x8xbf16>
    %cst_73 = arith.constant dense<0.000000e+00> : vector<224x8xf32>
    %214 = tpu.matmul %212, %213, %cst_73 {dimension_numbers = #tpu.dot_dimension_numbers<[1], [0], [0], [1], [0, 0, 1, 1], [], []>} : vector<224x8xbf16>, vector<8x8xbf16>, vector<224x8xf32> -> vector<224x8xf32>
    %215 = arith.addf %211, %214 : vector<224x8xf32>
    %216 = vector.broadcast %3 : vector<1x8xf32> to vector<224x8xf32>
    %217 = arith.addf %215, %216 : vector<224x8xf32>
    %cst_74 = arith.constant 0.000000e+00 : f32
    %218 = vector.broadcast %cst_74 : f32 to vector<224x8xf32>
    %219 = arith.maximumf %217, %218 : vector<224x8xf32>
    %220 = vector.extract_strided_slice %219 {offsets = [0, 0], sizes = [223, 8], strides = [1, 1]} : vector<224x8xf32> to vector<223x8xf32>
    %221 = vector.extract_strided_slice %219 {offsets = [1, 0], sizes = [223, 8], strides = [1, 1]} : vector<224x8xf32> to vector<223x8xf32>
    %222 = arith.maximumf %220, %221 : vector<223x8xf32>
    %223 = vector.extract_strided_slice %222 {offsets = [0, 0], sizes = [207, 8], strides = [1, 1]} : vector<223x8xf32> to vector<207x8xf32>
    %224 = vector.extract_strided_slice %222 {offsets = [16, 0], sizes = [207, 8], strides = [1, 1]} : vector<223x8xf32> to vector<207x8xf32>
    %225 = arith.maximumf %223, %224 : vector<207x8xf32>
    %226 = arith.truncf %225 : vector<207x8xf32> to vector<207x8xbf16>
    %cst_75 = arith.constant dense<0.000000e+00> : vector<160x8xf32>
    %227 = tpu.matmul %9, %226, %cst_75 {dimension_numbers = #tpu.dot_dimension_numbers<[1], [0], [0], [1], [0, 0, 1, 1], [], []>} : vector<160x207xbf16>, vector<207x8xbf16>, vector<160x8xf32> -> vector<160x8xf32>
    %228 = arith.truncf %227 : vector<160x8xf32> to vector<160x8xbf16>
    %cst_76 = arith.constant 0.000000e+00 : f32
    %229 = vector.broadcast %cst_76 : f32 to vector<112x8xf32>
    %230 = vector.extract_strided_slice %228 {offsets = [0, 0], sizes = [112, 8], strides = [1, 1]} : vector<160x8xbf16> to vector<112x8xbf16>
    %231 = vector.extract_strided_slice %4 {offsets = [0, 0], sizes = [8, 8], strides = [1, 1]} : vector<72x8xbf16> to vector<8x8xbf16>
    %cst_77 = arith.constant dense<0.000000e+00> : vector<112x8xf32>
    %232 = tpu.matmul %230, %231, %cst_77 {dimension_numbers = #tpu.dot_dimension_numbers<[1], [0], [0], [1], [0, 0, 1, 1], [], []>} : vector<112x8xbf16>, vector<8x8xbf16>, vector<112x8xf32> -> vector<112x8xf32>
    %233 = arith.addf %229, %232 : vector<112x8xf32>
    %234 = vector.extract_strided_slice %228 {offsets = [1, 0], sizes = [112, 8], strides = [1, 1]} : vector<160x8xbf16> to vector<112x8xbf16>
    %235 = vector.extract_strided_slice %4 {offsets = [8, 0], sizes = [8, 8], strides = [1, 1]} : vector<72x8xbf16> to vector<8x8xbf16>
    %cst_78 = arith.constant dense<0.000000e+00> : vector<112x8xf32>
    %236 = tpu.matmul %234, %235, %cst_78 {dimension_numbers = #tpu.dot_dimension_numbers<[1], [0], [0], [1], [0, 0, 1, 1], [], []>} : vector<112x8xbf16>, vector<8x8xbf16>, vector<112x8xf32> -> vector<112x8xf32>
    %237 = arith.addf %233, %236 : vector<112x8xf32>
    %238 = vector.extract_strided_slice %228 {offsets = [2, 0], sizes = [112, 8], strides = [1, 1]} : vector<160x8xbf16> to vector<112x8xbf16>
    %239 = vector.extract_strided_slice %4 {offsets = [16, 0], sizes = [8, 8], strides = [1, 1]} : vector<72x8xbf16> to vector<8x8xbf16>
    %cst_79 = arith.constant dense<0.000000e+00> : vector<112x8xf32>
    %240 = tpu.matmul %238, %239, %cst_79 {dimension_numbers = #tpu.dot_dimension_numbers<[1], [0], [0], [1], [0, 0, 1, 1], [], []>} : vector<112x8xbf16>, vector<8x8xbf16>, vector<112x8xf32> -> vector<112x8xf32>
    %241 = arith.addf %237, %240 : vector<112x8xf32>
    %242 = vector.extract_strided_slice %228 {offsets = [16, 0], sizes = [112, 8], strides = [1, 1]} : vector<160x8xbf16> to vector<112x8xbf16>
    %243 = vector.extract_strided_slice %4 {offsets = [24, 0], sizes = [8, 8], strides = [1, 1]} : vector<72x8xbf16> to vector<8x8xbf16>
    %cst_80 = arith.constant dense<0.000000e+00> : vector<112x8xf32>
    %244 = tpu.matmul %242, %243, %cst_80 {dimension_numbers = #tpu.dot_dimension_numbers<[1], [0], [0], [1], [0, 0, 1, 1], [], []>} : vector<112x8xbf16>, vector<8x8xbf16>, vector<112x8xf32> -> vector<112x8xf32>
    %245 = arith.addf %241, %244 : vector<112x8xf32>
    %246 = vector.extract_strided_slice %228 {offsets = [17, 0], sizes = [112, 8], strides = [1, 1]} : vector<160x8xbf16> to vector<112x8xbf16>
    %247 = vector.extract_strided_slice %4 {offsets = [32, 0], sizes = [8, 8], strides = [1, 1]} : vector<72x8xbf16> to vector<8x8xbf16>
    %cst_81 = arith.constant dense<0.000000e+00> : vector<112x8xf32>
    %248 = tpu.matmul %246, %247, %cst_81 {dimension_numbers = #tpu.dot_dimension_numbers<[1], [0], [0], [1], [0, 0, 1, 1], [], []>} : vector<112x8xbf16>, vector<8x8xbf16>, vector<112x8xf32> -> vector<112x8xf32>
    %249 = arith.addf %245, %248 : vector<112x8xf32>
    %250 = vector.extract_strided_slice %228 {offsets = [18, 0], sizes = [112, 8], strides = [1, 1]} : vector<160x8xbf16> to vector<112x8xbf16>
    %251 = vector.extract_strided_slice %4 {offsets = [40, 0], sizes = [8, 8], strides = [1, 1]} : vector<72x8xbf16> to vector<8x8xbf16>
    %cst_82 = arith.constant dense<0.000000e+00> : vector<112x8xf32>
    %252 = tpu.matmul %250, %251, %cst_82 {dimension_numbers = #tpu.dot_dimension_numbers<[1], [0], [0], [1], [0, 0, 1, 1], [], []>} : vector<112x8xbf16>, vector<8x8xbf16>, vector<112x8xf32> -> vector<112x8xf32>
    %253 = arith.addf %249, %252 : vector<112x8xf32>
    %254 = vector.extract_strided_slice %228 {offsets = [32, 0], sizes = [112, 8], strides = [1, 1]} : vector<160x8xbf16> to vector<112x8xbf16>
    %255 = vector.extract_strided_slice %4 {offsets = [48, 0], sizes = [8, 8], strides = [1, 1]} : vector<72x8xbf16> to vector<8x8xbf16>
    %cst_83 = arith.constant dense<0.000000e+00> : vector<112x8xf32>
    %256 = tpu.matmul %254, %255, %cst_83 {dimension_numbers = #tpu.dot_dimension_numbers<[1], [0], [0], [1], [0, 0, 1, 1], [], []>} : vector<112x8xbf16>, vector<8x8xbf16>, vector<112x8xf32> -> vector<112x8xf32>
    %257 = arith.addf %253, %256 : vector<112x8xf32>
    %258 = vector.extract_strided_slice %228 {offsets = [33, 0], sizes = [112, 8], strides = [1, 1]} : vector<160x8xbf16> to vector<112x8xbf16>
    %259 = vector.extract_strided_slice %4 {offsets = [56, 0], sizes = [8, 8], strides = [1, 1]} : vector<72x8xbf16> to vector<8x8xbf16>
    %cst_84 = arith.constant dense<0.000000e+00> : vector<112x8xf32>
    %260 = tpu.matmul %258, %259, %cst_84 {dimension_numbers = #tpu.dot_dimension_numbers<[1], [0], [0], [1], [0, 0, 1, 1], [], []>} : vector<112x8xbf16>, vector<8x8xbf16>, vector<112x8xf32> -> vector<112x8xf32>
    %261 = arith.addf %257, %260 : vector<112x8xf32>
    %262 = vector.extract_strided_slice %228 {offsets = [34, 0], sizes = [112, 8], strides = [1, 1]} : vector<160x8xbf16> to vector<112x8xbf16>
    %263 = vector.extract_strided_slice %4 {offsets = [64, 0], sizes = [8, 8], strides = [1, 1]} : vector<72x8xbf16> to vector<8x8xbf16>
    %cst_85 = arith.constant dense<0.000000e+00> : vector<112x8xf32>
    %264 = tpu.matmul %262, %263, %cst_85 {dimension_numbers = #tpu.dot_dimension_numbers<[1], [0], [0], [1], [0, 0, 1, 1], [], []>} : vector<112x8xbf16>, vector<8x8xbf16>, vector<112x8xf32> -> vector<112x8xf32>
    %265 = arith.addf %261, %264 : vector<112x8xf32>
    %266 = vector.broadcast %5 : vector<1x8xf32> to vector<112x8xf32>
    %267 = arith.addf %265, %266 : vector<112x8xf32>
    %cst_86 = arith.constant 0.000000e+00 : f32
    %268 = vector.broadcast %cst_86 : f32 to vector<112x8xf32>
    %269 = arith.maximumf %267, %268 : vector<112x8xf32>
    %270 = vector.extract_strided_slice %269 {offsets = [0, 0], sizes = [111, 8], strides = [1, 1]} : vector<112x8xf32> to vector<111x8xf32>
    %271 = vector.extract_strided_slice %269 {offsets = [1, 0], sizes = [111, 8], strides = [1, 1]} : vector<112x8xf32> to vector<111x8xf32>
    %272 = arith.maximumf %270, %271 : vector<111x8xf32>
    %273 = vector.extract_strided_slice %272 {offsets = [0, 0], sizes = [95, 8], strides = [1, 1]} : vector<111x8xf32> to vector<95x8xf32>
    %274 = vector.extract_strided_slice %272 {offsets = [16, 0], sizes = [95, 8], strides = [1, 1]} : vector<111x8xf32> to vector<95x8xf32>
    %275 = arith.maximumf %273, %274 : vector<95x8xf32>
    %276 = arith.truncf %275 : vector<95x8xf32> to vector<95x8xbf16>
    %cst_87 = arith.constant dense<0.000000e+00> : vector<9x8xf32>
    %277 = tpu.matmul %10, %276, %cst_87 {dimension_numbers = #tpu.dot_dimension_numbers<[1], [0], [0], [1], [0, 0, 1, 1], [], []>} : vector<9x95xbf16>, vector<95x8xbf16>, vector<9x8xf32> -> vector<9x8xf32>
    %278 = arith.truncf %277 : vector<9x8xf32> to vector<9x8xbf16>
    %279 = vector.extract_strided_slice %278 {offsets = [0, 0], sizes = [1, 8], strides = [1, 1]} : vector<9x8xbf16> to vector<1x8xbf16>
    %280 = vector.extract_strided_slice %6 {offsets = [0, 0], sizes = [8, 10], strides = [1, 1]} : vector<72x10xbf16> to vector<8x10xbf16>
    %cst_88 = arith.constant dense<0.000000e+00> : vector<1x10xf32>
    %281 = tpu.matmul %279, %280, %cst_88 {dimension_numbers = #tpu.dot_dimension_numbers<[1], [0], [0], [1], [0, 0, 1, 1], [], []>} : vector<1x8xbf16>, vector<8x10xbf16>, vector<1x10xf32> -> vector<1x10xf32>
    %282 = arith.addf %7, %281 : vector<1x10xf32>
    %283 = vector.extract_strided_slice %278 {offsets = [1, 0], sizes = [1, 8], strides = [1, 1]} : vector<9x8xbf16> to vector<1x8xbf16>
    %284 = vector.extract_strided_slice %6 {offsets = [8, 0], sizes = [8, 10], strides = [1, 1]} : vector<72x10xbf16> to vector<8x10xbf16>
    %cst_89 = arith.constant dense<0.000000e+00> : vector<1x10xf32>
    %285 = tpu.matmul %283, %284, %cst_89 {dimension_numbers = #tpu.dot_dimension_numbers<[1], [0], [0], [1], [0, 0, 1, 1], [], []>} : vector<1x8xbf16>, vector<8x10xbf16>, vector<1x10xf32> -> vector<1x10xf32>
    %286 = arith.addf %282, %285 : vector<1x10xf32>
    %287 = vector.extract_strided_slice %278 {offsets = [2, 0], sizes = [1, 8], strides = [1, 1]} : vector<9x8xbf16> to vector<1x8xbf16>
    %288 = vector.extract_strided_slice %6 {offsets = [16, 0], sizes = [8, 10], strides = [1, 1]} : vector<72x10xbf16> to vector<8x10xbf16>
    %cst_90 = arith.constant dense<0.000000e+00> : vector<1x10xf32>
    %289 = tpu.matmul %287, %288, %cst_90 {dimension_numbers = #tpu.dot_dimension_numbers<[1], [0], [0], [1], [0, 0, 1, 1], [], []>} : vector<1x8xbf16>, vector<8x10xbf16>, vector<1x10xf32> -> vector<1x10xf32>
    %290 = arith.addf %286, %289 : vector<1x10xf32>
    %291 = vector.extract_strided_slice %278 {offsets = [3, 0], sizes = [1, 8], strides = [1, 1]} : vector<9x8xbf16> to vector<1x8xbf16>
    %292 = vector.extract_strided_slice %6 {offsets = [24, 0], sizes = [8, 10], strides = [1, 1]} : vector<72x10xbf16> to vector<8x10xbf16>
    %cst_91 = arith.constant dense<0.000000e+00> : vector<1x10xf32>
    %293 = tpu.matmul %291, %292, %cst_91 {dimension_numbers = #tpu.dot_dimension_numbers<[1], [0], [0], [1], [0, 0, 1, 1], [], []>} : vector<1x8xbf16>, vector<8x10xbf16>, vector<1x10xf32> -> vector<1x10xf32>
    %294 = arith.addf %290, %293 : vector<1x10xf32>
    %295 = vector.extract_strided_slice %278 {offsets = [4, 0], sizes = [1, 8], strides = [1, 1]} : vector<9x8xbf16> to vector<1x8xbf16>
    %296 = vector.extract_strided_slice %6 {offsets = [32, 0], sizes = [8, 10], strides = [1, 1]} : vector<72x10xbf16> to vector<8x10xbf16>
    %cst_92 = arith.constant dense<0.000000e+00> : vector<1x10xf32>
    %297 = tpu.matmul %295, %296, %cst_92 {dimension_numbers = #tpu.dot_dimension_numbers<[1], [0], [0], [1], [0, 0, 1, 1], [], []>} : vector<1x8xbf16>, vector<8x10xbf16>, vector<1x10xf32> -> vector<1x10xf32>
    %298 = arith.addf %294, %297 : vector<1x10xf32>
    %299 = vector.extract_strided_slice %278 {offsets = [5, 0], sizes = [1, 8], strides = [1, 1]} : vector<9x8xbf16> to vector<1x8xbf16>
    %300 = vector.extract_strided_slice %6 {offsets = [40, 0], sizes = [8, 10], strides = [1, 1]} : vector<72x10xbf16> to vector<8x10xbf16>
    %cst_93 = arith.constant dense<0.000000e+00> : vector<1x10xf32>
    %301 = tpu.matmul %299, %300, %cst_93 {dimension_numbers = #tpu.dot_dimension_numbers<[1], [0], [0], [1], [0, 0, 1, 1], [], []>} : vector<1x8xbf16>, vector<8x10xbf16>, vector<1x10xf32> -> vector<1x10xf32>
    %302 = arith.addf %298, %301 : vector<1x10xf32>
    %303 = vector.extract_strided_slice %278 {offsets = [6, 0], sizes = [1, 8], strides = [1, 1]} : vector<9x8xbf16> to vector<1x8xbf16>
    %304 = vector.extract_strided_slice %6 {offsets = [48, 0], sizes = [8, 10], strides = [1, 1]} : vector<72x10xbf16> to vector<8x10xbf16>
    %cst_94 = arith.constant dense<0.000000e+00> : vector<1x10xf32>
    %305 = tpu.matmul %303, %304, %cst_94 {dimension_numbers = #tpu.dot_dimension_numbers<[1], [0], [0], [1], [0, 0, 1, 1], [], []>} : vector<1x8xbf16>, vector<8x10xbf16>, vector<1x10xf32> -> vector<1x10xf32>
    %306 = arith.addf %302, %305 : vector<1x10xf32>
    %307 = vector.extract_strided_slice %278 {offsets = [7, 0], sizes = [1, 8], strides = [1, 1]} : vector<9x8xbf16> to vector<1x8xbf16>
    %308 = vector.extract_strided_slice %6 {offsets = [56, 0], sizes = [8, 10], strides = [1, 1]} : vector<72x10xbf16> to vector<8x10xbf16>
    %cst_95 = arith.constant dense<0.000000e+00> : vector<1x10xf32>
    %309 = tpu.matmul %307, %308, %cst_95 {dimension_numbers = #tpu.dot_dimension_numbers<[1], [0], [0], [1], [0, 0, 1, 1], [], []>} : vector<1x8xbf16>, vector<8x10xbf16>, vector<1x10xf32> -> vector<1x10xf32>
    %310 = arith.addf %306, %309 : vector<1x10xf32>
    %311 = vector.extract_strided_slice %278 {offsets = [8, 0], sizes = [1, 8], strides = [1, 1]} : vector<9x8xbf16> to vector<1x8xbf16>
    %312 = vector.extract_strided_slice %6 {offsets = [64, 0], sizes = [8, 10], strides = [1, 1]} : vector<72x10xbf16> to vector<8x10xbf16>
    %cst_96 = arith.constant dense<0.000000e+00> : vector<1x10xf32>
    %313 = tpu.matmul %311, %312, %cst_96 {dimension_numbers = #tpu.dot_dimension_numbers<[1], [0], [0], [1], [0, 0, 1, 1], [], []>} : vector<1x8xbf16>, vector<8x10xbf16>, vector<1x10xf32> -> vector<1x10xf32>
    %314 = arith.addf %310, %313 : vector<1x10xf32>
    %315 = tpu.concatenate %162, %314 in 0 : vector<1x10xf32>, vector<1x10xf32> -> vector<2x10xf32>
    %c0_97 = arith.constant 0 : index
    %c0_98 = arith.constant 0 : index
    %c0_99 = arith.constant 0 : index
    %316 = vector.load %arg13[%c0_97, %c0_98, %c0_99] : memref<1x2x10xf32, #tpu.memory_space<vmem>>, vector<1x2x10xf32>
    %317 = vector.shape_cast %316 : vector<1x2x10xf32> to vector<2x10xf32>
    %318 = vector.shape_cast %315 : vector<2x10xf32> to vector<1x2x10xf32>
    tpu.vector_store %arg13[%c0_97, %c0_98, %c0_99], %318 {strides = array<i32>} : memref<1x2x10xf32, #tpu.memory_space<vmem>>, vector<1x2x10xf32>,
    return
  }
  func.func @transform_0(%arg0: i32) -> (i32, i32, i32) {
    %c0_i32 = arith.constant 0 : i32
    %c0_i32_0 = arith.constant 0 : i32
    %c0_i32_1 = arith.constant 0 : i32
    return %arg0, %c0_i32, %c0_i32_0 : i32, i32, i32
  }
  func.func @transform_1(%arg0: i32) -> (i32, i32) {
    %c0_i32 = arith.constant 0 : i32
    %c0_i32_0 = arith.constant 0 : i32
    %c0_i32_1 = arith.constant 0 : i32
    return %c0_i32, %c0_i32_0 : i32, i32
  }
  func.func @transform_2(%arg0: i32) -> (i32, i32) {
    %c0_i32 = arith.constant 0 : i32
    %c0_i32_0 = arith.constant 0 : i32
    %c0_i32_1 = arith.constant 0 : i32
    return %c0_i32, %c0_i32_0 : i32, i32
  }
  func.func @transform_3(%arg0: i32) -> (i32, i32) {
    %c0_i32 = arith.constant 0 : i32
    %c0_i32_0 = arith.constant 0 : i32
    %c0_i32_1 = arith.constant 0 : i32
    return %c0_i32, %c0_i32_0 : i32, i32
  }
  func.func @transform_4(%arg0: i32) -> (i32, i32) {
    %c0_i32 = arith.constant 0 : i32
    %c0_i32_0 = arith.constant 0 : i32
    %c0_i32_1 = arith.constant 0 : i32
    return %c0_i32, %c0_i32_0 : i32, i32
  }
  func.func @transform_5(%arg0: i32) -> (i32, i32) {
    %c0_i32 = arith.constant 0 : i32
    %c0_i32_0 = arith.constant 0 : i32
    %c0_i32_1 = arith.constant 0 : i32
    return %c0_i32, %c0_i32_0 : i32, i32
  }
  func.func @transform_6(%arg0: i32) -> (i32, i32) {
    %c0_i32 = arith.constant 0 : i32
    %c0_i32_0 = arith.constant 0 : i32
    %c0_i32_1 = arith.constant 0 : i32
    return %c0_i32, %c0_i32_0 : i32, i32
  }
  func.func @transform_7(%arg0: i32) -> (i32, i32) {
    %c0_i32 = arith.constant 0 : i32
    %c0_i32_0 = arith.constant 0 : i32
    %c0_i32_1 = arith.constant 0 : i32
    return %c0_i32, %c0_i32_0 : i32, i32
  }
  func.func @transform_8(%arg0: i32) -> (i32, i32) {
    %c0_i32 = arith.constant 0 : i32
    %c0_i32_0 = arith.constant 0 : i32
    %c0_i32_1 = arith.constant 0 : i32
    return %c0_i32, %c0_i32_0 : i32, i32
  }
  func.func @transform_9(%arg0: i32) -> (i32, i32) {
    %c0_i32 = arith.constant 0 : i32
    %c0_i32_0 = arith.constant 0 : i32
    %c0_i32_1 = arith.constant 0 : i32
    return %c0_i32, %c0_i32_0 : i32, i32
  }
  func.func @transform_10(%arg0: i32) -> (i32, i32) {
    %c0_i32 = arith.constant 0 : i32
    %c0_i32_0 = arith.constant 0 : i32
    %c0_i32_1 = arith.constant 0 : i32
    return %c0_i32, %c0_i32_0 : i32, i32
  }
  func.func @transform_11(%arg0: i32) -> (i32, i32) {
    %c0_i32 = arith.constant 0 : i32
    %c0_i32_0 = arith.constant 0 : i32
    %c0_i32_1 = arith.constant 0 : i32
    return %c0_i32, %c0_i32_0 : i32, i32
  }
  func.func @transform_12(%arg0: i32) -> (i32, i32, i32) {
    %c0_i32 = arith.constant 0 : i32
    %c0_i32_0 = arith.constant 0 : i32
    %c0_i32_1 = arith.constant 0 : i32
    return %arg0, %c0_i32, %c0_i32_0 : i32, i32, i32
  }
}

</mosaic_0001>

<bundles_post_ra>
// kernel: forward.1
= control target key start
LH: loop header
LB: loop body
LE: loop exit
PB: predicated region body
PF: predicated region fallthrough
CT: control target
= control target key end

     0   :  { %s24159_s0 = inlined_call_operand.vmem [shape: bf16[8,896,9], index: 0, kind: input, shape index: {}]   ;;  %s24160_s1 = inlined_call_operand.vmem [shape: bf16[9,8], index: 1, kind: input, shape index: {}]   ;;  %s24161_s2 = inlined_call_operand.vmem [shape: f32[1,8], index: 2, kind: input, shape index: {}]   ;;  %s24162_s3 = inlined_call_operand.vmem [shape: bf16[72,8], index: 3, kind: input, shape index: {}]   ;;  %s24163_s4 = inlined_call_operand.vmem [shape: f32[1,8], index: 4, kind: input, shape index: {}]   ;;  %s24164_s5 = inlined_call_operand.vmem [shape: bf16[72,8], index: 5, kind: input, shape index: {}]   ;;  %s24165_s6 = inlined_call_operand.vmem [shape: f32[1,8], index: 6, kind: input, shape index: {}]   ;;  %s24166_s7 = inlined_call_operand.vmem [shape: bf16[72,10], index: 7, kind: input, shape index: {}]   ;;  %s24167_s8 = inlined_call_operand.vmem [shape: f32[1,10], index: 8, kind: input, shape index: {}]   ;;  %s24168_s9 = inlined_call_operand.vmem [shape: bf16[272,863], index: 9, kind: input, shape index: {}]   ;;  %s24169_s10 = inlined_call_operand.vmem [shape: bf16[160,207], index: 10, kind: input, shape index: {}]   ;;  %s24170_s11 = inlined_call_operand.vmem [shape: bf16[9,95], index: 11, kind: input, shape index: {}]   ;;  %s24171_s12 = inlined_call_operand.hbm [shape: f32[4,2,10], index: 12, kind: output, shape index: {}]  }
   0x1   :  { %24191 = sst [smem:[#allocation20_spill]] %s24159_s0 }
   0x2   :  { %24192 = sst [smem:[#allocation21_spill]] %s24160_s1 }
   0x3   :  { %17 = vsyncpa [#allocation3], 0 }
   0x4   :  { %19 = vsyncpa [#allocation3 + $0x1], 0  ;;  %s19119_s21 = smov 0   ;;  %s19121_s22 = smov 0  }
   0x5   :  { %s19123_s23 = smov 0   ;;  %s19125_s24 = smov 0  }
   0x6 LB: > { %s19140_s25 = sadd.s32 4294967295, %s19047_s24   ;;  %s14354_s26 = sadd.s32 4294967294, %s19047_s24   ;;  %s19047_s24 = sphi %s19125_s24, %s24232_s24   ;;  %s19043_s23 = sphi %s19123_s23, %s24231_s23   ;;  %s19039_s22 = sphi %s19121_s22, %s24230_s22   ;;  %s19035_s21 = sphi %s19119_s21, %s24229_s21  }
   0x7   : > { %s19144_s27 = sadd.s32 1, %s19047_s24   ;;  %s289_s28 = sadd.s32 1, %s19043_s23 }
   0x8   : > { %s286_s29 = ssub.s32 %s19047_s24, %s19144_s27  ;;  %p299_p0 = scmp.ne.s32.totalorder %s19043_s23, %s19039_s22 }
   0x9   : > { %p287_p1 = scmp.eq.s32.totalorder %s286_s29, 0  ;;  %p300_p2 = scmp.eq.s32.totalorder %s19140_s25, 3 }
   0xa   : > { %p305_p3 = scmp.ne.s32.totalorder %s19039_s22, %s19035_s21  ;;  %p306_p4 = scmp.eq.s32.totalorder %s14354_s26, 3 }
   0xb   : > { %s19155_s30 = scalar_select %p287_p1, %s19043_s23, %s289_s28  }
   0xc   : > { %p19157_p5 = por %p300_p2, %p299_p0  ;;  %p19161_p6 = por %p306_p4, %p305_p3 }
   0xd   : > { %p14357_p7 = scmp.ge.s32.totalorder %s19047_s24, 1  ;;  %p367_p8 = scmp.lt.s32.totalorder %s19047_s24, 5 }
   0xf   : > { %p368_p9 = pnand %p14357_p7, %p367_p8 }
  0x11   : > { %371 = sbr.rel (%p368_p9) target bundleno = 5596 (0x15dc), region = 68 }
  0x18   : > { %s24195_s1 = sld [smem:[#allocation21_spill]]  ;;  %vm1181_vm0 = vcmask 1043456   ;;  %vm1182_vm1 = vcmask 1044480   ;;  %s14359_s17 = sshll.u32 %s19140_s25, 1  ;;  %v19049_v1 = vmov 65535   ;;  %vm1012_vm2 = vcmask 72704  }
  0x19   : > { %v1183_v2 = vsel %vm1181_vm0, 4294967295, %v19049_v1  ;;  %p411_p10 = scmp.lt.s32.totalorder %s14359_s17, 7  ;;  %s24196_s0 = sld [smem:[#allocation20_spill]]  ;;  %v24172_v36 = vmov 0   ;;  %v18564_v52 = vld [vmem:[%s24168_s9 + $0x4] ss:$28 sps:$4 sm:$0xff]  }
  0x1a   : > { %v1184_v3 = vsel %vm1182_vm1, %v1183_v2, 0  ;;  %3156 = vmatprep.subr.bf16.mxu1 %v24172_v36  ;;  %3188 = vmatprep.mubr.bf16.mxu1 %v18564_v52  ;;  %v19298_v62 = vld [vmem:[%s24161_s2] ss:$0 sm:$0xff]  ;;  %vm1893_vm3 = vcmask 1046528   ;;  %vm3150_vm4 = vcmask 1047552   ;;  %vm19052_vm5 = vmmov 0  }
  0x1b   : > { %s24234_s17 = smov (!%p411_p10, %s14359_s17), 7  ;;  %vm3098_vm6 = vcmask 777216   ;;  %vm3849_vm7 = vsmask.f32 7424  ;;  %vm3966_vm8 = vcmask 64512   ;;  %vm6020_vm9 = vcmask 646144  }
  0x1c   : > { %s18471_s18 = smul.u32 448, %s24234_s17  ;;  %vm14277_vm10 = vcmask 1040384   ;;  %vm14279_vm11 = vcmask 74752  }
  0x1e   : > { %v18515_v0 = vld [vmem:[%s24195_s1] sm:$0x1f]  }
  0x1f   : > { %v19173_v4 = vand.u32 %v18515_v0, %v1184_v3  ;;  %s19180_s26 = scalar_lea.vmem %s24196_s0, %s18471_s18  ;;  %s407_s0 = sand.u32 1, %s19039_s22  }
  0x20   : > { %v18516_v5 = vld [vmem:[%s19180_s26] sm:$0xff]   ;;  %v18517_v6 = vld [vmem:[%s19180_s26 + $0x8] sm:$0xff]   ;;  %v18518_v7 = vld [vmem:[%s19180_s26 + $0x10] sm:$0xff]   ;;  %s14358_s1 = sshll.u32 %s407_s0, 1 }
  0x21   : > { %15921 = vmatprep.subr.bf16.mxu0 %v19173_v4  ;;  %15923 = vmatprep.mubr.msk.bf16.mxu0 %vm1012_vm2, %v18516_v5  ;;  %v18519_v8 = vld [vmem:[%s19180_s26 + $0x18] sm:$0xff]   ;;  %v18520_v9 = vld [vmem:[%s19180_s26 + $0x20] sm:$0xff]   ;;  %v18521_v10 = vld [vmem:[%s19180_s26 + $0x28] sm:$0xff]   ;;  %s409_s17 = scalar_lea.vmem [#allocation2], %s14358_s1  ;;  %s19053_s1 = smov [#allocation2]  }
  0x22   : > { %15922 = vmatpush3.bf16.msra.mxu0 %v19173_v4  ;;  %v18522_v11 = vld [vmem:[%s19180_s26 + $0x30] sm:$0xff]   ;;  %v18523_v12 = vld [vmem:[%s19180_s26 + $0x38] sm:$0xff]   ;;  %v18524_v13 = vld [vmem:[%s19180_s26 + $0x40] sm:$0xff]   ;;  %s14295_s18 = sshll.u32 %s409_s17, 4  ;;  %s18989_s15 = sshll.u32 %s19053_s1, 4  ;;  %s24119_s18 = int_to_ptr.vmem [resolvable:$true] %s14295_s18  ;;  %s18990_s15 = int_to_ptr.vmem [resolvable:$false] %s18989_s15 }
  0x23   : > { %v18525_v14 = vld [vmem:[%s19180_s26 + $0x48] sm:$0xff]   ;;  %v18526_v15 = vld [vmem:[%s19180_s26 + $0x50] sm:$0xff]   ;;  %v18527_v16 = vld [vmem:[%s19180_s26 + $0x58] sm:$0xff]   ;;  %s18985_s29 = scalar_lea.vmem %s24119_s18, 32  ;;  %s18991_s16 = scalar_lea.vmem %s18990_s15, 64 }
  0x24   : > { %v18528_v17 = vld [vmem:[%s19180_s26 + $0x60] sm:$0xff]   ;;  %v18529_v18 = vld [vmem:[%s19180_s26 + $0x68] sm:$0xff]   ;;  %v18530_v19 = vld [vmem:[%s19180_s26 + $0x70] sm:$0xff]   ;;  %p18986_p11 = scmp.ne.s32.totalorder %s24119_s18, %s18985_s29  ;;  %p18992_p0 = scmp.lt.s32.totalorder %s24119_s18, %s18990_s15 }
  0x25   : > { %15924 = vmatmul.mubr.msk.bf16.vlgmr.msra.gmra.mrb[0].mxu0 %vm1012_vm2, %v18517_v6  ;;  %v18531_v20 = vld [vmem:[%s19180_s26 + $0x78] sm:$0xff]   ;;  %v18532_v21 = vld [vmem:[%s19180_s26 + $0x80] sm:$0xff]   ;;  %v18533_v22 = vld [vmem:[%s19180_s26 + $0x88] sm:$0xff]   ;;  %p18993_p1 = scmp.lt.s32.totalorder %s18991_s16, %s18985_s29 }
  0x26   : > { %15927 = vmatprep.mubr.msk.bf16.mxu0 %vm1012_vm2, %v18518_v7  ;;  %v18534_v23 = vld [vmem:[%s19180_s26 + $0x90] sm:$0xff]   ;;  %v18535_v24 = vld [vmem:[%s19180_s26 + $0x98] sm:$0xff]   ;;  %v18536_v25 = vld [vmem:[%s19180_s26 + $0xa0] sm:$0xff]   ;;  %p18987_p12 = pnand %p18986_p11, %p19157_p5 }
  0x27   : > { %v18537_v26 = vld [vmem:[%s19180_s26 + $0xa8] sm:$0xff]   ;;  %v18538_v27 = vld [vmem:[%s19180_s26 + $0xb0] sm:$0xff]   ;;  %v18539_v28 = vld [vmem:[%s19180_s26 + $0xb8] sm:$0xff]   ;;  %p18994_p2 = por %p18993_p1, %p18992_p0 }
  0x28   : > { %v18540_v29 = vld [vmem:[%s19180_s26 + $0xc0] sm:$0xff]   ;;  %v18541_v30 = vld [vmem:[%s19180_s26 + $0xc8] sm:$0xff]   ;;  %v18542_v31 = vld [vmem:[%s19180_s26 + $0xd0] sm:$0xff]   ;;  %p18988_p13 = pneg %p18987_p12 }
  0x29   : > { %v18543_v32 = vld [vmem:[%s19180_s26 + $0xd8] sm:$0xff]   ;;  %v18544_v33 = vld [vmem:[%s19180_s26 + $0xe0] sm:$0xff]   ;;  %v18545_v34 = vld [vmem:[%s19180_s26 + $0xe8] sm:$0xff]  }
  0x2a   : > { %v18546_v35 = vld [vmem:[%s19180_s26 + $0xf0] sm:$0xff]   ;;  %v18547_v37 = vld [vmem:[%s19180_s26 + $0xf8] sm:$0xff]   ;;  %v18548_v38 = vld [vmem:[%s19180_s26 + $0x100] sm:$0xff]   ;;  %p18995_p3 = pnand %p18994_p2, %p18988_p13 }
  0x2b   : > { %v18549_v39 = vld [vmem:[%s19180_s26 + $0x108] sm:$0xff]   ;;  %v18550_v40 = vld [vmem:[%s19180_s26 + $0x110] sm:$0xff]   ;;  %v18551_v41 = vld [vmem:[%s19180_s26 + $0x118] sm:$0xff]  }
  0x2c   : > { %v18552_v42 = vld [vmem:[%s19180_s26 + $0x120] sm:$0xff]   ;;  %v18553_v43 = vld [vmem:[%s19180_s26 + $0x128] sm:$0xff]   ;;  %v18554_v44 = vld [vmem:[%s19180_s26 + $0x130] sm:$0xff]  }
  0x2d   : > { %15928 = vmatmul.mubr.msk.bf16.gmra.mrb[4].mxu0 %vm1012_vm2, %v18519_v8  ;;  %v18555_v45 = vld [vmem:[%s19180_s26 + $0x138] sm:$0xff]   ;;  %v18556_v46 = vld [vmem:[%s19180_s26 + $0x140] sm:$0xff]   ;;  %v18557_v47 = vld [vmem:[%s19180_s26 + $0x148] sm:$0xff]  }
  0x2e   : > { %15931 = vmatprep.mubr.msk.bf16.mxu0 %vm1012_vm2, %v18520_v9  ;;  %v18558_v48 = vld [vmem:[%s19180_s26 + $0x150] sm:$0xff]   ;;  %v18559_v49 = vld [vmem:[%s19180_s26 + $0x158] sm:$0xff]   ;;  %v18560_v50 = vld [vmem:[%s19180_s26 + $0x160] sm:$0xff]  }
  0x2f   : > { %v18561_v51 = vld [vmem:[%s19180_s26 + $0x168] sm:$0xff]   ;;  %v18565_v53 = vld [vmem:[%s19180_s26 + $0x170] sm:$0xff]   ;;  %v18566_v54 = vld [vmem:[%s19180_s26 + $0x178] sm:$0xff]  }
  0x30   : > { %v18570_v55 = vld [vmem:[%s19180_s26 + $0x180] sm:$0xff]   ;;  %v18571_v56 = vld [vmem:[%s19180_s26 + $0x188] sm:$0xff]   ;;  %v18575_v57 = vld [vmem:[%s19180_s26 + $0x190] sm:$0xff]  }
  0x31   : > { %v18576_v58 = vld [vmem:[%s19180_s26 + $0x198] sm:$0xff]   ;;  %v18580_v59 = vld [vmem:[%s19180_s26 + $0x1a0] sm:$0xff]   ;;  %v18581_v60 = vld [vmem:[%s19180_s26 + $0x1a8] sm:$0xff]  }
  0x32   : > { %v18585_v61 = vld [vmem:[%s19180_s26 + $0x1b0] sm:$0xff]   ;;  %v18586_v3 = vld [vmem:[%s19180_s26 + $0x1b8] sm:$0xff]  }
  0x35   : > { %15932 = vmatmul.mubr.msk.bf16.gmra.mrb[8].mxu0 %vm1012_vm2, %v18521_v10 }
  0x36   : > { %15935 = vmatprep.mubr.msk.bf16.mxu0 %vm1012_vm2, %v18522_v11 }
  0x3d   : > { %15936 = vmatmul.mubr.msk.bf16.gmra.mrb[12].mxu0 %vm1012_vm2, %v18523_v12 }
  0x3e   : > { %15939 = vmatprep.mubr.msk.bf16.mxu0 %vm1012_vm2, %v18524_v13 }
  0x45   : > { %15940 = vmatmul.mubr.msk.bf16.gmra.mrb[16].mxu0 %vm1012_vm2, %v18525_v14 }
  0x46   : > { %15943 = vmatprep.mubr.msk.bf16.mxu0 %vm1012_vm2, %v18526_v15 }
  0x4d   : > { %15944 = vmatmul.mubr.msk.bf16.gmra.mrb[20].mxu0 %vm1012_vm2, %v18527_v16 }
  0x4e   : > { %15947 = vmatprep.mubr.msk.bf16.mxu0 %vm1012_vm2, %v18528_v17 }
  0x55   : > { %15948 = vmatmul.mubr.msk.bf16.gmra.mrb[24].mxu0 %vm1012_vm2, %v18529_v18 }
  0x56   : > { %15951 = vmatprep.mubr.msk.bf16.mxu0 %vm1012_vm2, %v18530_v19 }
  0x5d   : > { %15952 = vmatmul.mubr.msk.bf16.gmra.mrb[28].mxu0 %vm1012_vm2, %v18531_v20 }
  0x5e   : > { %15955 = vmatprep.mubr.msk.bf16.mxu0 %vm1012_vm2, %v18532_v21 }
  0x65   : > { %15956 = vmatmul.mubr.msk.bf16.gmra.mrb[32].mxu0 %vm1012_vm2, %v18533_v22 }
  0x66   : > { %15959 = vmatprep.mubr.msk.bf16.mxu0 %vm1012_vm2, %v18534_v23 }
  0x6d   : > { %15960 = vmatmul.mubr.msk.bf16.gmra.mrb[36].mxu0 %vm1012_vm2, %v18535_v24 }
  0x6e   : > { %15963 = vmatprep.mubr.msk.bf16.mxu0 %vm1012_vm2, %v18536_v25 }
  0x75   : > { %15964 = vmatmul.mubr.msk.bf16.gmra.mrb[40].mxu0 %vm1012_vm2, %v18537_v26 }
  0x76   : > { %15967 = vmatprep.mubr.msk.bf16.mxu0 %vm1012_vm2, %v18538_v27 }
  0x7d   : > { %15968 = vmatmul.mubr.msk.bf16.gmra.mrb[44].mxu0 %vm1012_vm2, %v18539_v28 }
  0x7e   : > { %15971 = vmatprep.mubr.msk.bf16.mxu0 %vm1012_vm2, %v18540_v29 }
  0x85   : > { %15972 = vmatmul.mubr.msk.bf16.gmra.mrb[48].mxu0 %vm1012_vm2, %v18541_v30 }
  0x86   : > { %15975 = vmatprep.mubr.msk.bf16.mxu0 %vm1012_vm2, %v18542_v31 }
  0x8d   : > { %15976 = vmatmul.mubr.msk.bf16.gmra.mrb[52].mxu0 %vm1012_vm2, %v18543_v32 }
  0x8e   : > { %15979 = vmatprep.mubr.msk.bf16.mxu0 %vm1012_vm2, %v18544_v33 }
  0x95   : > { %15980 = vmatmul.mubr.msk.bf16.gmra.mrb[56].mxu0 %vm1012_vm2, %v18545_v34 }
  0x96   : > { %15983 = vmatprep.mubr.msk.bf16.mxu0 %vm1012_vm2, %v18546_v35 }
  0x9d   : > { %15984 = vmatmul.mubr.msk.bf16.gmra.mrb[60].mxu0 %vm1012_vm2, %v18547_v37 }
  0x9e   : > { %15987 = vmatprep.mubr.msk.bf16.mxu0 %vm1012_vm2, %v18548_v38 }
  0xa5   : > { %15988 = vmatmul.mubr.msk.bf16.gmra.mrb[64].mxu0 %vm1012_vm2, %v18549_v39 }
  0xa6   : > { %15991 = vmatprep.mubr.msk.bf16.mxu0 %vm1012_vm2, %v18550_v40 }
  0xad   : > { %15992 = vmatmul.mubr.msk.bf16.gmra.mrb[68].mxu0 %vm1012_vm2, %v18551_v41 }
  0xae   : > { %15995 = vmatprep.mubr.msk.bf16.mxu0 %vm1012_vm2, %v18552_v42 }
  0xb5   : > { %15996 = vmatmul.mubr.msk.bf16.gmra.mrb[72].mxu0 %vm1012_vm2, %v18553_v43 }
  0xb6   : > { %15999 = vmatprep.mubr.msk.bf16.mxu0 %vm1012_vm2, %v18554_v44 }
  0xbd   : > { %16000 = vmatmul.mubr.msk.bf16.gmra.mrb[76].mxu0 %vm1012_vm2, %v18555_v45 }
  0xbe   : > { %16003 = vmatprep.mubr.msk.bf16.mxu0 %vm1012_vm2, %v18556_v46 }
  0xc5   : > { %16004 = vmatmul.mubr.msk.bf16.gmra.mrb[80].mxu0 %vm1012_vm2, %v18557_v47 }
  0xc6   : > { %16007 = vmatprep.mubr.msk.bf16.mxu0 %vm1012_vm2, %v18558_v48 }
  0xcd   : > { %16008 = vmatmul.mubr.msk.bf16.gmra.mrb[84].mxu0 %vm1012_vm2, %v18559_v49 }
  0xce   : > { %16011 = vmatprep.mubr.msk.bf16.mxu0 %vm1012_vm2, %v18560_v50 }
  0xd5   : > { %16012 = vmatmul.mubr.msk.bf16.gmra.mrb[88].mxu0 %vm1012_vm2, %v18561_v51 }
  0xd6   : > { %16015 = vmatprep.mubr.msk.bf16.mxu0 %vm1012_vm2, %v18565_v53 }
  0xdd   : > { %16016 = vmatmul.mubr.msk.bf16.gmra.mrb[92].mxu0 %vm1012_vm2, %v18566_v54 }
  0xde   : > { %16019 = vmatprep.mubr.msk.bf16.mxu0 %vm1012_vm2, %v18570_v55 }
  0xe5   : > { %16020 = vmatmul.mubr.msk.bf16.gmra.mrb[96].mxu0 %vm1012_vm2, %v18571_v56 }
  0xe6   : > { %16023 = vmatprep.mubr.msk.bf16.mxu0 %vm1012_vm2, %v18575_v57 }
  0xed   : > { %16024 = vmatmul.mubr.msk.bf16.gmra.mrb[100].mxu0 %vm1012_vm2, %v18576_v58 }
  0xee   : > { %16027 = vmatprep.mubr.msk.bf16.mxu0 %vm1012_vm2, %v18580_v59 }
  0xf5   : > { %16028 = vmatmul.mubr.msk.bf16.gmra.mrb[104].mxu0 %vm1012_vm2, %v18581_v60 }
  0xf6   : > { %16031 = vmatprep.mubr.msk.bf16.mxu0 %vm1012_vm2, %v18585_v61 }
  0xf8   : > { %v15925_v63 = vpop.f32.mrb[0].mxu0 }
  0xf9   : > { %v1231_v0 = vadd.f32 %v15925_v63, %v19298_v62  ;;  %v1222_v2 = vpop.f32.mrb[1].mxu0 }
  0xfa   : > { %v15926_v5 = vpop.f32.mrb[2].mxu0  ;;  %v1223_v6 = vadd.f32 %v19298_v62, %v1222_v2 }
  0xfb   : > { %v1671_v7 = vmax.f32 %v1231_v0, 0.0  ;;  %v1225_v8 = vpop.f32.mrb[3].mxu0  ;;  %v1234_v9 = vadd.f32 %v15926_v5, %v19298_v62 }
  0xfc   : > { %v1226_v10 = vadd.f32 %v19298_v62, %v1225_v8  ;;  %v1669_v11 = vmax.f32 %v1223_v6, 0.0 }
  0xfd   : > { %v1672_v12 = vmax.f32 %v1234_v9, 0.0  ;;  %16032 = vmatmul.mubr.msk.bf16.gmra.mrb[108].mxu0 %vm1012_vm2, %v18586_v3  ;;  %v1897_v14 = vrot.slane %v1671_v7, 1 }
  0xfe   : > { %v1670_v13 = vmax.f32 %v1226_v10, 0.0  ;;  %v1894_v17 = vrot.slane %v1669_v11, 1 }
  0xff   : > { %v1899_v15 = vrot.slane %v1672_v12, 1 }
 0x100   : > { %v15929_v16 = vpop.f32.mrb[4].mxu0  ;;  %v1895_v18 = vrot.slane %v1670_v13, 1 }
 0x101   : > { %v1247_v19 = vadd.f32 %v15929_v16, %v19298_v62  ;;  %v1238_v20 = vpop.f32.mrb[5].mxu0  ;;  %v1900_v21 = vsel %vm1893_vm3, %v1897_v14, %v1899_v15 }
 0x102   : > { %v15930_v22 = vpop.f32.mrb[6].mxu0  ;;  %v1239_v23 = vadd.f32 %v19298_v62, %v1238_v20  ;;  %v1896_v24 = vsel %vm1893_vm3, %v1894_v17, %v1895_v18  ;;  %v1898_v25 = vsel %vm1893_vm3, %v1895_v18, %v1897_v14  ;;  %v19312_v26 = vmax.f32 %v1671_v7, %v1900_v21 }
 0x103   : > { %v1675_v27 = vmax.f32 %v1247_v19, 0.0  ;;  %v1241_v28 = vpop.f32.mrb[7].mxu0  ;;  %v2229_v29 = vmax.f32 %v1669_v11, %v1896_v24  ;;  %v2230_v30 = vmax.f32 %v1670_v13, %v1898_v25  ;;  %v1250_v31 = vadd.f32 %v15930_v22, %v19298_v62 }
 0x104   : > { %v1242_v32 = vadd.f32 %v19298_v62, %v1241_v28  ;;  %v1673_v33 = vmax.f32 %v1239_v23, 0.0 }
 0x105   : > { %v1676_v34 = vmax.f32 %v1250_v31, 0.0  ;;  %v1905_v38 = vrot.slane %v1675_v27, 1 }
 0x106   : > { %v1674_v35 = vmax.f32 %v1242_v32, 0.0  ;;  %v1901_v37 = vrot.slane %v1673_v33, 1 }
 0x107   : > { %v1907_v39 = vrot.slane %v1676_v34, 1 }
 0x108   : > { %v15933_v40 = vpop.f32.mrb[8].mxu0  ;;  %v1903_v41 = vrot.slane %v1674_v35, 1  ;;  %v1902_v42 = vsel %vm1893_vm3, %v1899_v15, %v1901_v37 }
 0x109   : > { %v1263_v43 = vadd.f32 %v15933_v40, %v19298_v62  ;;  %v1254_v44 = vpop.f32.mrb[9].mxu0  ;;  %v1908_v45 = vsel %vm1893_vm3, %v1905_v38, %v1907_v39  ;;  %v2232_v46 = vmax.f32 %v1672_v12, %v1902_v42 }
 0x10a   : > { %v1255_v47 = vadd.f32 %v19298_v62, %v1254_v44  ;;  %v15934_v48 = vpop.f32.mrb[10].mxu0  ;;  %v1904_v49 = vsel %vm1893_vm3, %v1901_v37, %v1903_v41  ;;  %v1906_v50 = vsel %vm1893_vm3, %v1903_v41, %v1905_v38  ;;  %v19322_v51 = vmax.f32 %v1675_v27, %v1908_v45 }
 0x10b   : > { %v1679_v52 = vmax.f32 %v1263_v43, 0.0  ;;  %v1257_v53 = vpop.f32.mrb[11].mxu0  ;;  %v2233_v54 = vmax.f32 %v1673_v33, %v1904_v49  ;;  %v2234_v55 = vmax.f32 %v1674_v35, %v1906_v50  ;;  %v1266_v56 = vadd.f32 %v15934_v48, %v19298_v62 }
 0x10c   : > { %v1677_v57 = vmax.f32 %v1255_v47, 0.0  ;;  %v2343_v58 = vmax.f32 %v19312_v26, %v19322_v51  ;;  %v1258_v59 = vadd.f32 %v19298_v62, %v1257_v53 }
 0x10d   : > { %v2341_v60 = vmax.f32 %v2229_v29, %v2233_v54  ;;  %v2342_v61 = vmax.f32 %v2230_v30, %v2234_v55  ;;  %v1680_v63 = vmax.f32 %v1266_v56, 0.0  ;;  %v1913_v5 = vrot.slane %v1679_v52, 1 }
 0x10e   : > { %v1909_v0 = vrot.slane %v1677_v57, 1  ;;  %v1678_v2 = vmax.f32 %v1258_v59, 0.0 }
 0x10f   : > { %v2449_v3 = vpack.c.bf16 %v2342_v61, %v2341_v60  ;;  %v1915_v6 = vrot.slane %v1680_v63, 1 }
 0x110   : > { %v15937_v7 = vpop.f32.mrb[12].mxu0  ;;  %v1910_v8 = vsel %vm1893_vm3, %v1907_v39, %v1909_v0  ;;  %v1911_v9 = vrot.slane %v1678_v2, 1 }
 0x111   : > { %v1279_v10 = vadd.f32 %v15937_v7, %v19298_v62  ;;  %v1270_v11 = vpop.f32.mrb[13].mxu0  ;;  %3157 = vmatpush1.bf16.msra.mxu1 %v2449_v3  ;;  %v2236_v12 = vmax.f32 %v1676_v34, %v1910_v8  ;;  %v1916_v13 = vsel %vm1893_vm3, %v1913_v5, %v1915_v6 }
 0x112   : > { %v1271_v14 = vadd.f32 %v19298_v62, %v1270_v11  ;;  %v15938_v15 = vpop.f32.mrb[14].mxu0  ;;  %3158 = vmatprep.subr.bf16.mxu1 %v24172_v36  ;;  %v1912_v16 = vsel %vm1893_vm3, %v1909_v0, %v1911_v9  ;;  %v1914_v17 = vsel %vm1893_vm3, %v1911_v9, %v1913_v5  ;;  %v19335_v18 = vmax.f32 %v1679_v52, %v1916_v13 }
 0x113   : > { %v1683_v19 = vmax.f32 %v1279_v10, 0.0  ;;  %v1273_v20 = vpop.f32.mrb[15].mxu0  ;;  %v2344_v21 = vmax.f32 %v2232_v46, %v2236_v12  ;;  %v2237_v22 = vmax.f32 %v1677_v57, %v1912_v16  ;;  %v2238_v23 = vmax.f32 %v1678_v2, %v1914_v17 }
 0x114   : > { %v1681_v24 = vmax.f32 %v1271_v14, 0.0  ;;  %v2347_v25 = vmax.f32 %v19322_v51, %v19335_v18  ;;  %v1274_v26 = vadd.f32 %v19298_v62, %v1273_v20  ;;  %v1282_v27 = vadd.f32 %v15938_v15, %v19298_v62 }
 0x115   : > { %v2450_v28 = vpack.c.bf16 %v2344_v21, %v2343_v58  ;;  %v2345_v29 = vmax.f32 %v2233_v54, %v2237_v22  ;;  %v2346_v30 = vmax.f32 %v2234_v55, %v2238_v23  ;;  %v1921_v39 = vrot.slane %v1683_v19, 1 }
 0x116   : > { %v1917_v31 = vrot.slane %v1681_v24, 1  ;;  %v1682_v32 = vmax.f32 %v1274_v26, 0.0  ;;  %v1684_v33 = vmax.f32 %v1282_v27, 0.0 }
 0x117   : > { %3159 = vmatpush1.bf16.msra.mxu1 %v2450_v28  ;;  %v2451_v34 = vpack.c.bf16 %v2346_v30, %v2345_v29 }
 0x118   : > { %v15941_v35 = vpop.f32.mrb[16].mxu0  ;;  %3160 = vmatprep.subr.bf16.mxu1 %v24172_v36  ;;  %v1918_v37 = vsel %vm1893_vm3, %v1915_v6, %v1917_v31  ;;  %v1919_v38 = vrot.slane %v1682_v32, 1  ;;  %v1923_v40 = vrot.slane %v1684_v33, 1 }
 0x119   : > { %v1295_v41 = vadd.f32 %v15941_v35, %v19298_v62  ;;  %v1286_v42 = vpop.f32.mrb[17].mxu0  ;;  %v2240_v43 = vmax.f32 %v1680_v63, %v1918_v37 }
 0x11a   : > { %v1287_v44 = vadd.f32 %v19298_v62, %v1286_v42  ;;  %v15942_v45 = vpop.f32.mrb[18].mxu0  ;;  %v1920_v46 = vsel %vm1893_vm3, %v1917_v31, %v1919_v38  ;;  %v1922_v47 = vsel %vm1893_vm3, %v1919_v38, %v1921_v39  ;;  %v1924_v48 = vsel %vm1893_vm3, %v1921_v39, %v1923_v40 }
 0x11b   : > { %v1687_v49 = vmax.f32 %v1295_v41, 0.0  ;;  %v1289_v50 = vpop.f32.mrb[19].mxu0  ;;  %3161 = vmatpush1.bf16.msra.mxu1 %v2451_v34  ;;  %v2348_v51 = vmax.f32 %v2236_v12, %v2240_v43  ;;  %v2241_v52 = vmax.f32 %v1681_v24, %v1920_v46  ;;  %v2242_v53 = vmax.f32 %v1682_v32, %v1922_v47 }
 0x11c   : > { %v1685_v54 = vmax.f32 %v1287_v44, 0.0  ;;  %3162 = vmatprep.subr.bf16.mxu1 %v24172_v36  ;;  %v19349_v55 = vmax.f32 %v1683_v19, %v1924_v48  ;;  %v1290_v56 = vadd.f32 %v19298_v62, %v1289_v50  ;;  %v1298_v57 = vadd.f32 %v15942_v45, %v19298_v62 }
 0x11d   : > { %v2452_v58 = vpack.c.bf16 %v2348_v51, %v2347_v25  ;;  %v2349_v59 = vmax.f32 %v2237_v22, %v2241_v52  ;;  %v2350_v60 = vmax.f32 %v2238_v23, %v2242_v53  ;;  %v1929_v8 = vrot.slane %v1687_v49, 1 }
 0x11e   : > { %v1925_v61 = vrot.slane %v1685_v54, 1  ;;  %v2351_v63 = vmax.f32 %v19335_v18, %v19349_v55  ;;  %v1686_v0 = vmax.f32 %v1290_v56, 0.0  ;;  %v1688_v2 = vmax.f32 %v1298_v57, 0.0 }
 0x11f   : > { %3163 = vmatpush1.bf16.msra.mxu1 %v2452_v58  ;;  %v2453_v3 = vpack.c.bf16 %v2350_v60, %v2349_v59 }
 0x120   : > { %v15945_v5 = vpop.f32.mrb[20].mxu0  ;;  %3164 = vmatprep.subr.bf16.mxu1 %v24172_v36  ;;  %v1926_v6 = vsel %vm1893_vm3, %v1923_v40, %v1925_v61  ;;  %v1927_v7 = vrot.slane %v1686_v0, 1  ;;  %v1931_v9 = vrot.slane %v1688_v2, 1 }
 0x121   : > { %v1311_v10 = vadd.f32 %v15945_v5, %v19298_v62  ;;  %v1302_v11 = vpop.f32.mrb[21].mxu0  ;;  %v2244_v12 = vmax.f32 %v1684_v33, %v1926_v6 }
 0x122   : > { %v1303_v13 = vadd.f32 %v19298_v62, %v1302_v11  ;;  %v15946_v14 = vpop.f32.mrb[22].mxu0  ;;  %v1928_v15 = vsel %vm1893_vm3, %v1925_v61, %v1927_v7  ;;  %v1930_v16 = vsel %vm1893_vm3, %v1927_v7, %v1929_v8  ;;  %v1932_v17 = vsel %vm1893_vm3, %v1929_v8, %v1931_v9 }
 0x123   : > { %v1691_v18 = vmax.f32 %v1311_v10, 0.0  ;;  %v1305_v19 = vpop.f32.mrb[23].mxu0  ;;  %3165 = vmatpush1.bf16.msra.mxu1 %v2453_v3  ;;  %v2352_v20 = vmax.f32 %v2240_v43, %v2244_v12  ;;  %v2245_v21 = vmax.f32 %v1685_v54, %v1928_v15  ;;  %v2246_v22 = vmax.f32 %v1686_v0, %v1930_v16 }
 0x124   : > { %v1689_v23 = vmax.f32 %v1303_v13, 0.0  ;;  %3166 = vmatprep.subr.bf16.mxu1 %v24172_v36  ;;  %v19363_v24 = vmax.f32 %v1687_v49, %v1932_v17  ;;  %v1306_v25 = vadd.f32 %v19298_v62, %v1305_v19  ;;  %v1314_v26 = vadd.f32 %v15946_v14, %v19298_v62 }
 0x125   : > { %v2454_v27 = vpack.c.bf16 %v2352_v20, %v2351_v63  ;;  %v2353_v28 = vmax.f32 %v2241_v52, %v2245_v21  ;;  %v2354_v29 = vmax.f32 %v2242_v53, %v2246_v22  ;;  %v1937_v39 = vrot.slane %v1691_v18, 1 }
 0x126   : > { %v1933_v30 = vrot.slane %v1689_v23, 1  ;;  %v2355_v31 = vmax.f32 %v19349_v55, %v19363_v24  ;;  %v1690_v32 = vmax.f32 %v1306_v25, 0.0  ;;  %v1692_v33 = vmax.f32 %v1314_v26, 0.0 }
 0x127   : > { %3167 = vmatpush1.bf16.msra.mxu1 %v2454_v27  ;;  %v2455_v34 = vpack.c.bf16 %v2354_v29, %v2353_v28 }
 0x128   : > { %v15949_v35 = vpop.f32.mrb[24].mxu0  ;;  %3168 = vmatprep.subr.bf16.mxu1 %v24172_v36  ;;  %v1934_v37 = vsel %vm1893_vm3, %v1931_v9, %v1933_v30  ;;  %v1935_v38 = vrot.slane %v1690_v32, 1  ;;  %v1939_v40 = vrot.slane %v1692_v33, 1 }
 0x129   : > { %v1327_v41 = vadd.f32 %v15949_v35, %v19298_v62  ;;  %v1318_v42 = vpop.f32.mrb[25].mxu0  ;;  %v2248_v43 = vmax.f32 %v1688_v2, %v1934_v37 }
 0x12a   : > { %v1319_v44 = vadd.f32 %v19298_v62, %v1318_v42  ;;  %v15950_v45 = vpop.f32.mrb[26].mxu0  ;;  %v1936_v46 = vsel %vm1893_vm3, %v1933_v30, %v1935_v38  ;;  %v1938_v47 = vsel %vm1893_vm3, %v1935_v38, %v1937_v39  ;;  %v1940_v48 = vsel %vm1893_vm3, %v1937_v39, %v1939_v40 }
 0x12b   : > { %v1695_v49 = vmax.f32 %v1327_v41, 0.0  ;;  %v1321_v50 = vpop.f32.mrb[27].mxu0  ;;  %3169 = vmatpush1.bf16.msra.mxu1 %v2455_v34  ;;  %v2356_v51 = vmax.f32 %v2244_v12, %v2248_v43  ;;  %v2249_v52 = vmax.f32 %v1689_v23, %v1936_v46  ;;  %v2250_v53 = vmax.f32 %v1690_v32, %v1938_v47 }
 0x12c   : > { %v1693_v54 = vmax.f32 %v1319_v44, 0.0  ;;  %3170 = vmatprep.subr.bf16.mxu1 %v24172_v36  ;;  %v19377_v55 = vmax.f32 %v1691_v18, %v1940_v48  ;;  %v1322_v56 = vadd.f32 %v19298_v62, %v1321_v50  ;;  %v1330_v57 = vadd.f32 %v15950_v45, %v19298_v62 }
 0x12d   : > { %v2456_v58 = vpack.c.bf16 %v2356_v51, %v2355_v31  ;;  %v2357_v59 = vmax.f32 %v2245_v21, %v2249_v52  ;;  %v2358_v60 = vmax.f32 %v2246_v22, %v2250_v53  ;;  %v1945_v8 = vrot.slane %v1695_v49, 1 }
 0x12e   : > { %v1941_v61 = vrot.slane %v1693_v54, 1  ;;  %v2359_v63 = vmax.f32 %v19363_v24, %v19377_v55  ;;  %v1694_v0 = vmax.f32 %v1322_v56, 0.0  ;;  %v1696_v2 = vmax.f32 %v1330_v57, 0.0 }
 0x12f   : > { %3171 = vmatpush1.bf16.msra.mxu1 %v2456_v58  ;;  %v2457_v3 = vpack.c.bf16 %v2358_v60, %v2357_v59 }
 0x130   : > { %v15953_v5 = vpop.f32.mrb[28].mxu0  ;;  %3172 = vmatprep.subr.bf16.mxu1 %v24172_v36  ;;  %v1942_v6 = vsel %vm1893_vm3, %v1939_v40, %v1941_v61  ;;  %v1943_v7 = vrot.slane %v1694_v0, 1  ;;  %v1947_v9 = vrot.slane %v1696_v2, 1 }
 0x131   : > { %v1343_v10 = vadd.f32 %v15953_v5, %v19298_v62  ;;  %v1334_v11 = vpop.f32.mrb[29].mxu0  ;;  %v2252_v12 = vmax.f32 %v1692_v33, %v1942_v6 }
 0x132   : > { %v1335_v13 = vadd.f32 %v19298_v62, %v1334_v11  ;;  %v15954_v14 = vpop.f32.mrb[30].mxu0  ;;  %v1944_v15 = vsel %vm1893_vm3, %v1941_v61, %v1943_v7  ;;  %v1946_v16 = vsel %vm1893_vm3, %v1943_v7, %v1945_v8  ;;  %v1948_v17 = vsel %vm1893_vm3, %v1945_v8, %v1947_v9 }
 0x133   : > { %v1699_v18 = vmax.f32 %v1343_v10, 0.0  ;;  %v1337_v19 = vpop.f32.mrb[31].mxu0  ;;  %3173 = vmatpush1.bf16.msra.mxu1 %v2457_v3  ;;  %v2360_v20 = vmax.f32 %v2248_v43, %v2252_v12  ;;  %v2253_v21 = vmax.f32 %v1693_v54, %v1944_v15  ;;  %v2254_v22 = vmax.f32 %v1694_v0, %v1946_v16 }
 0x134   : > { %v1697_v23 = vmax.f32 %v1335_v13, 0.0  ;;  %3174 = vmatprep.subr.bf16.mxu1 %v24172_v36  ;;  %v19391_v24 = vmax.f32 %v1695_v49, %v1948_v17  ;;  %v1338_v25 = vadd.f32 %v19298_v62, %v1337_v19  ;;  %v1346_v26 = vadd.f32 %v15954_v14, %v19298_v62 }
 0x135   : > { %v2458_v27 = vpack.c.bf16 %v2360_v20, %v2359_v63  ;;  %v2361_v28 = vmax.f32 %v2249_v52, %v2253_v21  ;;  %v2362_v29 = vmax.f32 %v2250_v53, %v2254_v22  ;;  %v1953_v39 = vrot.slane %v1699_v18, 1 }
 0x136   : > { %v1949_v30 = vrot.slane %v1697_v23, 1  ;;  %v2363_v31 = vmax.f32 %v19377_v55, %v19391_v24  ;;  %v1698_v32 = vmax.f32 %v1338_v25, 0.0  ;;  %v1700_v33 = vmax.f32 %v1346_v26, 0.0 }
 0x137   : > { %3175 = vmatpush1.bf16.msra.mxu1 %v2458_v27  ;;  %v2459_v34 = vpack.c.bf16 %v2362_v29, %v2361_v28 }
 0x138   : > { %v15957_v35 = vpop.f32.mrb[32].mxu0  ;;  %3176 = vmatprep.subr.bf16.mxu1 %v24172_v36  ;;  %v1950_v37 = vsel %vm1893_vm3, %v1947_v9, %v1949_v30  ;;  %v1951_v38 = vrot.slane %v1698_v32, 1  ;;  %v1955_v40 = vrot.slane %v1700_v33, 1 }
 0x139   : > { %v1359_v41 = vadd.f32 %v15957_v35, %v19298_v62  ;;  %v1350_v42 = vpop.f32.mrb[33].mxu0  ;;  %v2256_v43 = vmax.f32 %v1696_v2, %v1950_v37 }
 0x13a   : > { %v1351_v44 = vadd.f32 %v19298_v62, %v1350_v42  ;;  %v15958_v45 = vpop.f32.mrb[34].mxu0  ;;  %v1952_v46 = vsel %vm1893_vm3, %v1949_v30, %v1951_v38  ;;  %v1954_v47 = vsel %vm1893_vm3, %v1951_v38, %v1953_v39  ;;  %v1956_v48 = vsel %vm1893_vm3, %v1953_v39, %v1955_v40 }
 0x13b   : > { %v1703_v49 = vmax.f32 %v1359_v41, 0.0  ;;  %v1353_v50 = vpop.f32.mrb[35].mxu0  ;;  %3177 = vmatpush1.bf16.msra.mxu1 %v2459_v34  ;;  %v2364_v51 = vmax.f32 %v2252_v12, %v2256_v43  ;;  %v2257_v52 = vmax.f32 %v1697_v23, %v1952_v46  ;;  %v2258_v53 = vmax.f32 %v1698_v32, %v1954_v47 }
 0x13c   : > { %v1701_v54 = vmax.f32 %v1351_v44, 0.0  ;;  %3178 = vmatprep.subr.bf16.mxu1 %v24172_v36  ;;  %v19405_v55 = vmax.f32 %v1699_v18, %v1956_v48  ;;  %v1354_v56 = vadd.f32 %v19298_v62, %v1353_v50  ;;  %v1362_v57 = vadd.f32 %v15958_v45, %v19298_v62 }
 0x13d   : > { %v2460_v58 = vpack.c.bf16 %v2364_v51, %v2363_v31  ;;  %v2365_v59 = vmax.f32 %v2253_v21, %v2257_v52  ;;  %v2366_v60 = vmax.f32 %v2254_v22, %v2258_v53  ;;  %v1961_v8 = vrot.slane %v1703_v49, 1 }
 0x13e   : > { %v1957_v61 = vrot.slane %v1701_v54, 1  ;;  %v2367_v63 = vmax.f32 %v19391_v24, %v19405_v55  ;;  %v1702_v0 = vmax.f32 %v1354_v56, 0.0  ;;  %v1704_v2 = vmax.f32 %v1362_v57, 0.0 }
 0x13f   : > { %3179 = vmatpush1.bf16.msra.mxu1 %v2460_v58  ;;  %v2461_v3 = vpack.c.bf16 %v2366_v60, %v2365_v59 }
 0x140   : > { %v15961_v5 = vpop.f32.mrb[36].mxu0  ;;  %3180 = vmatprep.subr.bf16.mxu1 %v24172_v36  ;;  %v1958_v6 = vsel %vm1893_vm3, %v1955_v40, %v1957_v61  ;;  %v1959_v7 = vrot.slane %v1702_v0, 1  ;;  %v1963_v9 = vrot.slane %v1704_v2, 1 }
 0x141   : > { %v1375_v10 = vadd.f32 %v15961_v5, %v19298_v62  ;;  %v1366_v11 = vpop.f32.mrb[37].mxu0  ;;  %v2260_v12 = vmax.f32 %v1700_v33, %v1958_v6 }
 0x142   : > { %v1367_v13 = vadd.f32 %v19298_v62, %v1366_v11  ;;  %v15962_v14 = vpop.f32.mrb[38].mxu0  ;;  %v1960_v15 = vsel %vm1893_vm3, %v1957_v61, %v1959_v7  ;;  %v1962_v16 = vsel %vm1893_vm3, %v1959_v7, %v1961_v8  ;;  %v1964_v17 = vsel %vm1893_vm3, %v1961_v8, %v1963_v9  ;;  %v18567_v7 = vld [vmem:[%s24168_s9 + $0x3c] ss:$28 sps:$4 sm:$0xff]  }
 0x143   : > { %v1707_v18 = vmax.f32 %v1375_v10, 0.0  ;;  %v19419_v19 = vadd.f32 %v15962_v14, %v19298_v62  ;;  %v1369_v20 = vpop.f32.mrb[39].mxu0  ;;  %3181 = vmatpush1.bf16.msra.mxu1 %v2461_v3  ;;  %v2368_v21 = vmax.f32 %v2256_v43, %v2260_v12  ;;  %v2261_v22 = vmax.f32 %v1701_v54, %v1960_v15  ;;  %v18562_v3 = vld [vmem:[%s24168_s9] ss:$28 sps:$4 sm:$0xff]  }
 0x144   : > { %v1705_v23 = vmax.f32 %v1367_v13, 0.0  ;;  %v1370_v24 = vadd.f32 %v19298_v62, %v1369_v20  ;;  %3182 = vmatprep.subr.bf16.mxu1 %v24172_v36  ;;  %v2262_v25 = vmax.f32 %v1702_v0, %v1962_v16  ;;  %v19423_v26 = vmax.f32 %v1703_v49, %v1964_v17 }
 0x145   : > { %v1708_v27 = vmax.f32 %v19419_v19, 0.0  ;;  %v2462_v28 = vpack.c.bf16 %v2368_v21, %v2367_v63  ;;  %v2369_v29 = vmax.f32 %v2257_v52, %v2261_v22  ;;  %v1969_v34 = vrot.slane %v1707_v18, 1 }
 0x146   : > { %v1706_v30 = vmax.f32 %v1370_v24, 0.0  ;;  %v2370_v31 = vmax.f32 %v2258_v53, %v2262_v25  ;;  %v1965_v32 = vrot.slane %v1705_v23, 1  ;;  %v2371_v33 = vmax.f32 %v19405_v55, %v19423_v26 }
 0x147   : > { %v1971_v35 = vrot.slane %v1708_v27, 1  ;;  %3183 = vmatpush1.bf16.msra.mxu1 %v2462_v28 }
 0x148   : > { %v1967_v37 = vrot.slane %v1706_v30, 1  ;;  %v15965_v38 = vpop.f32.mrb[40].mxu0  ;;  %3184 = vmatprep.subr.bf16.mxu1 %v24172_v36  ;;  %v2463_v39 = vpack.c.bf16 %v2370_v31, %v2369_v29  ;;  %v1966_v40 = vsel %vm1893_vm3, %v1963_v9, %v1965_v32 }
 0x149   : > { %v1391_v41 = vadd.f32 %v15965_v38, %v19298_v62  ;;  %v1382_v42 = vpop.f32.mrb[41].mxu0  ;;  %v2264_v43 = vmax.f32 %v1704_v2, %v1966_v40  ;;  %v1972_v44 = vsel %vm1893_vm3, %v1969_v34, %v1971_v35  ;;  %v18572_v40 = vld [vmem:[%s24168_s9 + $0x74] ss:$28 sps:$4 sm:$0xff]  }
 0x14a   : > { %v1383_v45 = vadd.f32 %v19298_v62, %v1382_v42  ;;  %v15966_v46 = vpop.f32.mrb[42].mxu0  ;;  %v1968_v47 = vsel %vm1893_vm3, %v1965_v32, %v1967_v37  ;;  %v1970_v48 = vsel %vm1893_vm3, %v1967_v37, %v1969_v34  ;;  %v19435_v49 = vmax.f32 %v1707_v18, %v1972_v44 }
 0x14b   : > { %v1711_v50 = vmax.f32 %v1391_v41, 0.0  ;;  %v19438_v51 = vadd.f32 %v15966_v46, %v19298_v62  ;;  %v1385_v52 = vpop.f32.mrb[43].mxu0  ;;  %3185 = vmatpush1.bf16.msra.mxu1 %v2463_v39  ;;  %v2372_v53 = vmax.f32 %v2260_v12, %v2264_v43  ;;  %v2265_v54 = vmax.f32 %v1705_v23, %v1968_v47 }
 0x14c   : > { %v1709_v55 = vmax.f32 %v1383_v45, 0.0  ;;  %v1386_v56 = vadd.f32 %v19298_v62, %v1385_v52  ;;  %3186 = vmatprep.subr.bf16.mxu1 %v24172_v36  ;;  %v2266_v57 = vmax.f32 %v1706_v30, %v1970_v48  ;;  %v2375_v58 = vmax.f32 %v19423_v26, %v19435_v49 }
 0x14d   : > { %v1977_v59 = vrot.slane %v1711_v50, 1  ;;  %v1712_v60 = vmax.f32 %v19438_v51, 0.0  ;;  %v2464_v61 = vpack.c.bf16 %v2372_v53, %v2371_v33  ;;  %v2373_v63 = vmax.f32 %v2261_v22, %v2265_v54 }
 0x14e   : > { %v1973_v0 = vrot.slane %v1709_v55, 1  ;;  %v1710_v2 = vmax.f32 %v1386_v56, 0.0  ;;  %v2374_v5 = vmax.f32 %v2262_v25, %v2266_v57 }
 0x14f   : > { %v1979_v6 = vrot.slane %v1712_v60, 1  ;;  %3187 = vmatpush1.bf16.msra.mxu1 %v2464_v61 }
 0x150   : > { %v1975_v8 = vrot.slane %v1710_v2, 1  ;;  %v15969_v9 = vpop.f32.mrb[44].mxu0  ;;  %3325 = vmatprep.subr.bf16.mxu1 %v24172_v36  ;;  %v2465_v10 = vpack.c.bf16 %v2374_v5, %v2373_v63  ;;  %v1974_v11 = vsel %vm1893_vm3, %v1971_v35, %v1973_v0  ;;  %v18569_v35 = vld [vmem:[%s24168_s9 + $0x38] ss:$28 sps:$4 sm:$0xff]   ;;  %v18574_v5 = vld [vmem:[%s24168_s9 + $0x70] ss:$28 sps:$4 sm:$0xff]  }
 0x151   : > { %v1407_v12 = vadd.f32 %v15969_v9, %v19298_v62  ;;  %v1398_v13 = vpop.f32.mrb[45].mxu0  ;;  %v2268_v14 = vmax.f32 %v1708_v27, %v1974_v11  ;;  %v1980_v15 = vsel %vm1893_vm3, %v1977_v59, %v1979_v6 }
 0x152   : > { %v1399_v16 = vadd.f32 %v19298_v62, %v1398_v13  ;;  %3189 = vmatmul.mubr.bf16.vlgmr.msra.gmra.mrb[0].mxu1 %v18562_v3  ;;  %v1976_v17 = vsel %vm1893_vm3, %v1973_v0, %v1975_v8  ;;  %v1978_v18 = vsel %vm1893_vm3, %v1975_v8, %v1977_v59  ;;  %v19458_v19 = vmax.f32 %v1711_v50, %v1980_v15  ;;  %v15970_v20 = vpop.f32.mrb[46].mxu0 }
 0x153   : > { %v1715_v21 = vmax.f32 %v1407_v12, 0.0  ;;  %3326 = vmatpush1.bf16.msra.mxu1 %v2465_v10  ;;  %v2376_v22 = vmax.f32 %v2264_v43, %v2268_v14  ;;  %3196 = vmatprep.mubr.bf16.mxu1 %v18567_v7  ;;  %v2269_v23 = vmax.f32 %v1709_v55, %v1976_v17  ;;  %v2270_v24 = vmax.f32 %v1710_v2, %v1978_v18  ;;  %v1401_v25 = vpop.f32.mrb[47].mxu0  ;;  %v18577_v10 = vld [vmem:[%s24168_s9 + $0xac] ss:$28 sps:$4 sm:$0xff]  }
 0x154   : > { %v1713_v26 = vmax.f32 %v1399_v16, 0.0  ;;  %3327 = vmatprep.subr.bf16.mxu1 %v24172_v36  ;;  %v2379_v27 = vmax.f32 %v19435_v49, %v19458_v19  ;;  %v1410_v28 = vadd.f32 %v15970_v20, %v19298_v62  ;;  %v1402_v29 = vadd.f32 %v19298_v62, %v1401_v25 }
 0x155   : > { %v2466_v30 = vpack.c.bf16 %v2376_v22, %v2375_v58  ;;  %v2377_v31 = vmax.f32 %v2265_v54, %v2269_v23  ;;  %v2378_v32 = vmax.f32 %v2266_v57, %v2270_v24  ;;  %v1985_v33 = vrot.slane %v1715_v21, 1 }
 0x156   : > { %v1981_v34 = vrot.slane %v1713_v26, 1  ;;  %v1716_v37 = vmax.f32 %v1410_v28, 0.0  ;;  %v1714_v38 = vmax.f32 %v1402_v29, 0.0 }
 0x157   : > { %3328 = vmatpush1.bf16.msra.mxu1 %v2466_v30  ;;  %v2467_v39 = vpack.c.bf16 %v2378_v32, %v2377_v31 }
 0x158   : > { %3329 = vmatprep.subr.bf16.mxu1 %v24172_v36  ;;  %v1982_v41 = vsel %vm1893_vm3, %v1979_v6, %v1981_v34  ;;  %v1987_v42 = vrot.slane %v1716_v37, 1  ;;  %v1983_v43 = vrot.slane %v1714_v38, 1  ;;  %v15973_v44 = vpop.f32.mrb[48].mxu0 }
 0x159   : > { %v2272_v45 = vmax.f32 %v1712_v60, %v1982_v41  ;;  %v1423_v46 = vadd.f32 %v15973_v44, %v19298_v62  ;;  %v1414_v47 = vpop.f32.mrb[49].mxu0 }
 0x15a   : > { %3197 = vmatmul.mubr.bf16.gmra.mrb[4].mxu1 %v18569_v35  ;;  %v1415_v48 = vadd.f32 %v19298_v62, %v1414_v47  ;;  %v15974_v49 = vpop.f32.mrb[50].mxu0  ;;  %v1984_v50 = vsel %vm1893_vm3, %v1981_v34, %v1983_v43  ;;  %v1986_v51 = vsel %vm1893_vm3, %v1983_v43, %v1985_v33  ;;  %v1988_v52 = vsel %vm1893_vm3, %v1985_v33, %v1987_v42  ;;  %v18582_v43 = vld [vmem:[%s24168_s9 + $0xe4] ss:$28 sps:$4 sm:$0xff]  }
 0x15b   : > { %3330 = vmatpush1.bf16.msra.mxu1 %v2467_v39  ;;  %v2380_v53 = vmax.f32 %v2268_v14, %v2272_v45  ;;  %3204 = vmatprep.mubr.bf16.mxu1 %v18572_v40  ;;  %v1719_v54 = vmax.f32 %v1423_v46, 0.0  ;;  %v19479_v55 = vadd.f32 %v15974_v49, %v19298_v62  ;;  %v1417_v56 = vpop.f32.mrb[51].mxu0  ;;  %v2273_v57 = vmax.f32 %v1713_v26, %v1984_v50 }
 0x15c   : > { %3331 = vmatprep.subr.bf16.mxu1 %v24172_v36  ;;  %v1717_v58 = vmax.f32 %v1415_v48, 0.0  ;;  %v1418_v59 = vadd.f32 %v19298_v62, %v1417_v56  ;;  %v2274_v60 = vmax.f32 %v1714_v38, %v1986_v51  ;;  %v19483_v61 = vmax.f32 %v1715_v21, %v1988_v52  ;;  %v18579_v38 = vld [vmem:[%s24168_s9 + $0xa8] ss:$28 sps:$4 sm:$0xff]  }
 0x15d   : > { %v2468_v63 = vpack.c.bf16 %v2380_v53, %v2379_v27  ;;  %v1993_v0 = vrot.slane %v1719_v54, 1  ;;  %v1720_v2 = vmax.f32 %v19479_v55, 0.0  ;;  %v2381_v3 = vmax.f32 %v2269_v23, %v2273_v57 }
 0x15e   : > { %v1989_v6 = vrot.slane %v1717_v58, 1  ;;  %v1718_v7 = vmax.f32 %v1418_v59, 0.0  ;;  %v2382_v8 = vmax.f32 %v2270_v24, %v2274_v60  ;;  %v2383_v9 = vmax.f32 %v19458_v19, %v19483_v61 }
 0x15f   : > { %3332 = vmatpush1.bf16.msra.mxu1 %v2468_v63  ;;  %v1995_v11 = vrot.slane %v1720_v2, 1 }
 0x160   : > { %v1991_v12 = vrot.slane %v1718_v7, 1  ;;  %v15977_v13 = vpop.f32.mrb[52].mxu0  ;;  %3333 = vmatprep.subr.bf16.mxu1 %v24172_v36  ;;  %v2469_v14 = vpack.c.bf16 %v2382_v8, %v2381_v3  ;;  %v1990_v15 = vsel %vm1893_vm3, %v1987_v42, %v1989_v6 }
 0x161   : > { %v1439_v16 = vadd.f32 %v15977_v13, %v19298_v62  ;;  %v1430_v17 = vpop.f32.mrb[53].mxu0  ;;  %v2276_v18 = vmax.f32 %v1716_v37, %v1990_v15  ;;  %v1996_v20 = vsel %vm1893_vm3, %v1993_v0, %v1995_v11 }
 0x162   : > { %3205 = vmatmul.mubr.bf16.gmra.mrb[8].mxu1 %v18574_v5  ;;  %v1431_v19 = vadd.f32 %v19298_v62, %v1430_v17  ;;  %v15978_v21 = vpop.f32.mrb[54].mxu0  ;;  %v1992_v22 = vsel %vm1893_vm3, %v1989_v6, %v1991_v12  ;;  %v1994_v23 = vsel %vm1893_vm3, %v1991_v12, %v1993_v0  ;;  %v19501_v24 = vmax.f32 %v1719_v54, %v1996_v20 }
 0x163   : > { %3212 = vmatprep.mubr.bf16.mxu1 %v18577_v10  ;;  %v1723_v25 = vmax.f32 %v1439_v16, 0.0  ;;  %3334 = vmatpush1.bf16.msra.mxu1 %v2469_v14  ;;  %v19504_v26 = vadd.f32 %v15978_v21, %v19298_v62  ;;  %v1433_v27 = vpop.f32.mrb[55].mxu0  ;;  %v2384_v28 = vmax.f32 %v2272_v45, %v2276_v18  ;;  %v2277_v29 = vmax.f32 %v1717_v58, %v1992_v22  ;;  %v18587_v14 = vld [vmem:[%s24168_s9 + $0x11c] ss:$28 sps:$4 sm:$0xff]  }
 0x164   : > { %v1721_v30 = vmax.f32 %v1431_v19, 0.0  ;;  %v1434_v31 = vadd.f32 %v19298_v62, %v1433_v27  ;;  %3335 = vmatprep.subr.bf16.mxu1 %v24172_v36  ;;  %v2278_v32 = vmax.f32 %v1718_v7, %v1994_v23  ;;  %v2387_v33 = vmax.f32 %v19483_v61, %v19501_v24 }
 0x165   : > { %v1724_v34 = vmax.f32 %v19504_v26, 0.0  ;;  %v2470_v35 = vpack.c.bf16 %v2384_v28, %v2383_v9  ;;  %v2385_v37 = vmax.f32 %v2273_v57, %v2277_v29  ;;  %v2001_v39 = vrot.slane %v1723_v25, 1  ;;  %v18584_v9 = vld [vmem:[%s24168_s9 + $0xe0] ss:$28 sps:$4 sm:$0xff]  }
 0x166   : > { %v1997_v40 = vrot.slane %v1721_v30, 1  ;;  %v1722_v41 = vmax.f32 %v1434_v31, 0.0  ;;  %v2386_v42 = vmax.f32 %v2274_v60, %v2278_v32 }
 0x167   : > { %v2003_v44 = vrot.slane %v1724_v34, 1  ;;  %3336 = vmatpush1.bf16.msra.mxu1 %v2470_v35 }
 0x168   : > { %v1999_v45 = vrot.slane %v1722_v41, 1  ;;  %v15981_v46 = vpop.f32.mrb[56].mxu0  ;;  %3337 = vmatprep.subr.bf16.mxu1 %v24172_v36  ;;  %v2471_v47 = vpack.c.bf16 %v2386_v42, %v2385_v37  ;;  %v1998_v48 = vsel %vm1893_vm3, %v1995_v11, %v1997_v40  ;;  %v18589_v42 = vld [vmem:[%s24168_s9 + $0x118] ss:$28 sps:$4 sm:$0xff]  }
 0x169   : > { %v1455_v49 = vadd.f32 %v15981_v46, %v19298_v62  ;;  %v1446_v50 = vpop.f32.mrb[57].mxu0  ;;  %v2280_v51 = vmax.f32 %v1720_v2, %v1998_v48  ;;  %v2004_v52 = vsel %vm1893_vm3, %v2001_v39, %v2003_v44 }
 0x16a   : > { %3213 = vmatmul.mubr.bf16.gmra.mrb[12].mxu1 %v18579_v38  ;;  %v1447_v53 = vadd.f32 %v19298_v62, %v1446_v50  ;;  %v15982_v54 = vpop.f32.mrb[58].mxu0  ;;  %v2000_v55 = vsel %vm1893_vm3, %v1997_v40, %v1999_v45  ;;  %v2002_v56 = vsel %vm1893_vm3, %v1999_v45, %v2001_v39  ;;  %v19524_v57 = vmax.f32 %v1723_v25, %v2004_v52 }
 0x16b   : > { %3220 = vmatprep.mubr.bf16.mxu1 %v18582_v43  ;;  %v1727_v58 = vmax.f32 %v1455_v49, 0.0  ;;  %3338 = vmatpush1.bf16.msra.mxu1 %v2471_v47  ;;  %v19527_v59 = vadd.f32 %v15982_v54, %v19298_v62  ;;  %v1449_v60 = vpop.f32.mrb[59].mxu0  ;;  %v2388_v61 = vmax.f32 %v2276_v18, %v2280_v51  ;;  %v2281_v63 = vmax.f32 %v1721_v30, %v2000_v55  ;;  %v19552_v30 = vld [vmem:[%s24161_s2] ss:$0 sm:$0xff]  ;;  %v18590_v47 = vld [vmem:[%s24168_s9 + $0x154] ss:$28 sps:$4 sm:$0xff]  }
 0x16c   : > { %v1725_v0 = vmax.f32 %v1447_v53, 0.0  ;;  %v1450_v2 = vadd.f32 %v19298_v62, %v1449_v60  ;;  %3339 = vmatprep.subr.bf16.mxu1 %v24172_v36  ;;  %v2282_v3 = vmax.f32 %v1722_v41, %v2002_v56  ;;  %v2391_v5 = vmax.f32 %v19501_v24, %v19524_v57 }
 0x16d   : > { %v1728_v6 = vmax.f32 %v19527_v59, 0.0  ;;  %v2472_v7 = vpack.c.bf16 %v2388_v61, %v2387_v33  ;;  %v2389_v8 = vmax.f32 %v2277_v29, %v2281_v63  ;;  %v2009_v10 = vrot.slane %v1727_v58, 1 }
 0x16e   : > { %v2005_v11 = vrot.slane %v1725_v0, 1  ;;  %v2390_v12 = vmax.f32 %v2278_v32, %v2282_v3  ;;  %v1726_v13 = vmax.f32 %v1450_v2, 0.0 }
 0x16f   : > { %v2011_v15 = vrot.slane %v1728_v6, 1  ;;  %3340 = vmatpush1.bf16.msra.mxu1 %v2472_v7 }
 0x170   : > { %v15985_v16 = vpop.f32.mrb[60].mxu0  ;;  %3341 = vmatprep.subr.bf16.mxu1 %v24172_v36  ;;  %v2473_v17 = vpack.c.bf16 %v2390_v12, %v2389_v8  ;;  %v2007_v18 = vrot.slane %v1726_v13, 1  ;;  %v2006_v20 = vsel %vm1893_vm3, %v2003_v44, %v2005_v11 }
 0x171   : > { %v1471_v19 = vadd.f32 %v15985_v16, %v19298_v62  ;;  %v1462_v21 = vpop.f32.mrb[61].mxu0  ;;  %v2284_v22 = vmax.f32 %v1724_v34, %v2006_v20  ;;  %v2012_v23 = vsel %vm1893_vm3, %v2009_v10, %v2011_v15 }
 0x172   : > { %3221 = vmatmul.mubr.bf16.gmra.mrb[16].mxu1 %v18584_v9  ;;  %v1463_v24 = vadd.f32 %v19298_v62, %v1462_v21  ;;  %v15986_v25 = vpop.f32.mrb[62].mxu0  ;;  %v2010_v26 = vsel %vm1893_vm3, %v2007_v18, %v2009_v10  ;;  %v2008_v27 = vsel %vm1893_vm3, %v2005_v11, %v2007_v18  ;;  %v19547_v28 = vmax.f32 %v1727_v58, %v2012_v23  ;;  %v18593_v18 = vld [vmem:[%s24168_s9 + $0x18c] ss:$28 sps:$4 sm:$0xff]  }
 0x173   : > { %3228 = vmatprep.mubr.bf16.mxu1 %v18587_v14  ;;  %v1731_v29 = vmax.f32 %v1471_v19, 0.0  ;;  %3342 = vmatpush1.bf16.msra.mxu1 %v2473_v17  ;;  %v19555_v31 = vadd.f32 %v19552_v30, %v15986_v25  ;;  %v1465_v32 = vpop.f32.mrb[63].mxu0  ;;  %v2286_v62 = vmax.f32 %v1726_v13, %v2010_v26  ;;  %v2392_v33 = vmax.f32 %v2280_v51, %v2284_v22  ;;  %v18592_v13 = vld [vmem:[%s24168_s9 + $0x150] ss:$28 sps:$4 sm:$0xff]  }
 0x174   : > { %v1729_v34 = vmax.f32 %v1463_v24, 0.0  ;;  %v1466_v35 = vadd.f32 %v19552_v30, %v1465_v32  ;;  %3343 = vmatprep.subr.bf16.mxu1 %v24172_v36  ;;  %v2285_v37 = vmax.f32 %v1725_v0, %v2008_v27  ;;  %v2395_v38 = vmax.f32 %v19524_v57, %v19547_v28 }
 0x175   : > { %v1732_v39 = vmax.f32 %v19555_v31, 0.0  ;;  %v2474_v40 = vpack.c.bf16 %v2392_v33, %v2391_v5  ;;  %v2394_v41 = vmax.f32 %v2282_v3, %v2286_v62  ;;  %v2017_v43 = vrot.slane %v1731_v29, 1 }
 0x176   : > { %v2013_v44 = vrot.slane %v1729_v34, 1  ;;  %v1730_v45 = vmax.f32 %v1466_v35, 0.0  ;;  %v2393_v46 = vmax.f32 %v2281_v63, %v2285_v37 }
 0x177   : > { %v2019_v48 = vrot.slane %v1732_v39, 1  ;;  %3344 = vmatpush1.bf16.msra.mxu1 %v2474_v40 }
 0x178   : > { %v2014_v49 = vsel %vm1893_vm3, %v2011_v15, %v2013_v44  ;;  %v2015_v50 = vrot.slane %v1730_v45, 1  ;;  %v15989_v51 = vpop.f32.mrb[64].mxu0  ;;  %3345 = vmatprep.subr.bf16.mxu1 %v24172_v36  ;;  %v2475_v52 = vpack.c.bf16 %v2394_v41, %v2393_v46 }
 0x179   : > { %v2020_v53 = vsel %vm1893_vm3, %v2017_v43, %v2019_v48  ;;  %v1487_v54 = vadd.f32 %v19552_v30, %v15989_v51  ;;  %v1478_v55 = vpop.f32.mrb[65].mxu0  ;;  %v2288_v56 = vmax.f32 %v1728_v6, %v2014_v49  ;;  %v18596_v51 = vld [vmem:[%s24168_s9 + $0x1c4] ss:$28 sps:$4 sm:$0xff]  }
 0x17a   : > { %3229 = vmatmul.mubr.bf16.gmra.mrb[20].mxu1 %v18589_v42  ;;  %v2016_v57 = vsel %vm1893_vm3, %v2013_v44, %v2015_v50  ;;  %v2018_v58 = vsel %vm1893_vm3, %v2015_v50, %v2017_v43  ;;  %v1479_v59 = vadd.f32 %v19552_v30, %v1478_v55  ;;  %v15990_v60 = vpop.f32.mrb[66].mxu0  ;;  %v19575_v61 = vmax.f32 %v1731_v29, %v2020_v53 }
 0x17b   : > { %3236 = vmatprep.mubr.bf16.mxu1 %v18590_v47  ;;  %v19577_v63 = vmax.f32 %v1730_v45, %v2018_v58  ;;  %v1735_v0 = vmax.f32 %v1487_v54, 0.0  ;;  %3346 = vmatpush1.bf16.msra.mxu1 %v2475_v52  ;;  %v19580_v2 = vadd.f32 %v19552_v30, %v15990_v60  ;;  %v1481_v3 = vpop.f32.mrb[67].mxu0  ;;  %v2396_v5 = vmax.f32 %v2284_v22, %v2288_v56  ;;  %v18595_v47 = vld [vmem:[%s24168_s9 + $0x188] ss:$28 sps:$4 sm:$0xff]  }
 0x17c   : > { %v1733_v6 = vmax.f32 %v1479_v59, 0.0  ;;  %v1482_v7 = vadd.f32 %v19552_v30, %v1481_v3  ;;  %3347 = vmatprep.subr.bf16.mxu1 %v24172_v36  ;;  %v2289_v8 = vmax.f32 %v1729_v34, %v2016_v57  ;;  %v2399_v9 = vmax.f32 %v19547_v28, %v19575_v61 }
 0x17d   : > { %v2398_v10 = vmax.f32 %v2286_v62, %v19577_v63  ;;  %v1736_v11 = vmax.f32 %v19580_v2, 0.0  ;;  %v2476_v12 = vpack.c.bf16 %v2396_v5, %v2395_v38  ;;  %v2025_v14 = vrot.slane %v1735_v0, 1 }
 0x17e   : > { %v2021_v15 = vrot.slane %v1733_v6, 1  ;;  %v1734_v16 = vmax.f32 %v1482_v7, 0.0  ;;  %v2397_v17 = vmax.f32 %v2285_v37, %v2289_v8 }
 0x17f   : > { %v2027_v20 = vrot.slane %v1736_v11, 1  ;;  %3348 = vmatpush1.bf16.msra.mxu1 %v2476_v12 }
 0x180   : > { %v2022_v19 = vsel %vm1893_vm3, %v2019_v48, %v2021_v15  ;;  %v2023_v21 = vrot.slane %v1734_v16, 1  ;;  %v15993_v22 = vpop.f32.mrb[68].mxu0  ;;  %3349 = vmatprep.subr.bf16.mxu1 %v24172_v36  ;;  %v2477_v23 = vpack.c.bf16 %v2398_v10, %v2397_v17 }
 0x181   : > { %v2028_v24 = vsel %vm1893_vm3, %v2025_v14, %v2027_v20  ;;  %v1503_v25 = vadd.f32 %v19552_v30, %v15993_v22  ;;  %v1494_v26 = vpop.f32.mrb[69].mxu0  ;;  %v2292_v27 = vmax.f32 %v1732_v39, %v2022_v19  ;;  %v18599_v22 = vld [vmem:[%s24168_s9 + $0x1fc] ss:$28 sps:$4 sm:$0xff]  }
 0x182   : > { %3237 = vmatmul.mubr.bf16.gmra.mrb[24].mxu1 %v18592_v13  ;;  %v2024_v28 = vsel %vm1893_vm3, %v2021_v15, %v2023_v21  ;;  %v2026_v29 = vsel %vm1893_vm3, %v2023_v21, %v2025_v14  ;;  %v1495_v31 = vadd.f32 %v19552_v30, %v1494_v26  ;;  %v15994_v32 = vpop.f32.mrb[70].mxu0  ;;  %v19601_v62 = vmax.f32 %v1735_v0, %v2028_v24 }
 0x183   : > { %3244 = vmatprep.mubr.bf16.mxu1 %v18593_v18  ;;  %v19603_v33 = vmax.f32 %v1734_v16, %v2026_v29  ;;  %v1739_v34 = vmax.f32 %v1503_v25, 0.0  ;;  %3350 = vmatpush1.bf16.msra.mxu1 %v2477_v23  ;;  %v19606_v35 = vadd.f32 %v19552_v30, %v15994_v32  ;;  %v1497_v37 = vpop.f32.mrb[71].mxu0  ;;  %v2400_v38 = vmax.f32 %v2288_v56, %v2292_v27  ;;  %v18598_v18 = vld [vmem:[%s24168_s9 + $0x1c0] ss:$28 sps:$4 sm:$0xff]  }
 0x184   : > { %v1737_v39 = vmax.f32 %v1495_v31, 0.0  ;;  %3351 = vmatprep.subr.bf16.mxu1 %v24172_v36  ;;  %v1498_v40 = vadd.f32 %v19552_v30, %v1497_v37  ;;  %v2293_v41 = vmax.f32 %v1733_v6, %v2024_v28  ;;  %v2403_v42 = vmax.f32 %v19575_v61, %v19601_v62 }
 0x185   : > { %v2402_v43 = vmax.f32 %v19577_v63, %v19603_v33  ;;  %v2033_v44 = vrot.slane %v1739_v34, 1  ;;  %v1740_v45 = vmax.f32 %v19606_v35, 0.0  ;;  %v2478_v46 = vpack.c.bf16 %v2400_v38, %v2399_v9 }
 0x186   : > { %v2029_v48 = vrot.slane %v1737_v39, 1  ;;  %v1738_v49 = vmax.f32 %v1498_v40, 0.0  ;;  %v2401_v50 = vmax.f32 %v2289_v8, %v2293_v41 }
 0x187   : > { %v2035_v52 = vrot.slane %v1740_v45, 1  ;;  %3352 = vmatpush1.bf16.msra.mxu1 %v2478_v46 }
 0x188   : > { %v2030_v53 = vsel %vm1893_vm3, %v2027_v20, %v2029_v48  ;;  %v2031_v54 = vrot.slane %v1738_v49, 1  ;;  %v15997_v55 = vpop.f32.mrb[72].mxu0  ;;  %3353 = vmatprep.subr.bf16.mxu1 %v24172_v36  ;;  %v2479_v56 = vpack.c.bf16 %v2402_v43, %v2401_v50  ;;  %v18601_v50 = vld [vmem:[%s24168_s9 + $0x1f8] ss:$28 sps:$4 sm:$0xff]  }
 0x189   : > { %v2036_v57 = vsel %vm1893_vm3, %v2033_v44, %v2035_v52  ;;  %v1519_v58 = vadd.f32 %v19552_v30, %v15997_v55  ;;  %v1510_v59 = vpop.f32.mrb[73].mxu0  ;;  %v2296_v60 = vmax.f32 %v1736_v11, %v2030_v53  ;;  %v18602_v55 = vld [vmem:[%s24168_s9 + $0x234] ss:$28 sps:$4 sm:$0xff]  }
 0x18a   : > { %3245 = vmatmul.mubr.bf16.gmra.mrb[28].mxu1 %v18595_v47  ;;  %v2032_v61 = vsel %vm1893_vm3, %v2029_v48, %v2031_v54  ;;  %v2034_v63 = vsel %vm1893_vm3, %v2031_v54, %v2033_v44  ;;  %v1511_v0 = vadd.f32 %v19552_v30, %v1510_v59  ;;  %v15998_v2 = vpop.f32.mrb[74].mxu0  ;;  %v19628_v3 = vmax.f32 %v1739_v34, %v2036_v57 }
 0x18b   : > { %3252 = vmatprep.mubr.bf16.mxu1 %v18596_v51  ;;  %v2298_v5 = vmax.f32 %v1738_v49, %v2034_v63  ;;  %v1743_v6 = vmax.f32 %v1519_v58, 0.0  ;;  %3354 = vmatpush1.bf16.msra.mxu1 %v2479_v56  ;;  %v1522_v7 = vadd.f32 %v19552_v30, %v15998_v2  ;;  %v1513_v8 = vpop.f32.mrb[75].mxu0  ;;  %v2404_v9 = vmax.f32 %v2292_v27, %v2296_v60 }
 0x18c   : > { %v1741_v10 = vmax.f32 %v1511_v0, 0.0  ;;  %3355 = vmatprep.subr.bf16.mxu1 %v24172_v36  ;;  %v1514_v11 = vadd.f32 %v19552_v30, %v1513_v8  ;;  %v2297_v12 = vmax.f32 %v1737_v39, %v2032_v61  ;;  %v2407_v13 = vmax.f32 %v19601_v62, %v19628_v3 }
 0x18d   : > { %v2406_v14 = vmax.f32 %v19603_v33, %v2298_v5  ;;  %v2041_v15 = vrot.slane %v1743_v6, 1  ;;  %v1744_v16 = vmax.f32 %v1522_v7, 0.0  ;;  %v2480_v17 = vpack.c.bf16 %v2404_v9, %v2403_v42 }
 0x18e   : > { %v2037_v20 = vrot.slane %v1741_v10, 1  ;;  %v1742_v19 = vmax.f32 %v1514_v11, 0.0  ;;  %v2405_v21 = vmax.f32 %v2293_v41, %v2297_v12 }
 0x18f   : > { %v2043_v23 = vrot.slane %v1744_v16, 1  ;;  %3356 = vmatpush1.bf16.msra.mxu1 %v2480_v17 }
 0x190   : > { %v2038_v24 = vsel %vm1893_vm3, %v2035_v52, %v2037_v20  ;;  %v2039_v25 = vrot.slane %v1742_v19, 1  ;;  %v16001_v26 = vpop.f32.mrb[76].mxu0  ;;  %3494 = vmatprep.subr.bf16.mxu1 %v24172_v36  ;;  %v19644_v27 = vpack.c.bf16 %v2406_v14, %v2405_v21 }
 0x191   : > { %v2044_v28 = vsel %vm1893_vm3, %v2041_v15, %v2043_v23  ;;  %v1535_v29 = vadd.f32 %v19552_v30, %v16001_v26  ;;  %v1526_v31 = vpop.f32.mrb[77].mxu0  ;;  %v2300_v32 = vmax.f32 %v1740_v45, %v2038_v24  ;;  %v18605_v24 = vld [vmem:[%s24168_s9 + $0x26c] ss:$28 sps:$4 sm:$0xff]  }
 0x192   : > { %3253 = vmatmul.mubr.bf16.gmra.mrb[32].mxu1 %v18598_v18  ;;  %v2040_v62 = vsel %vm1893_vm3, %v2037_v20, %v2039_v25  ;;  %v2042_v33 = vsel %vm1893_vm3, %v2039_v25, %v2041_v15  ;;  %v1527_v34 = vadd.f32 %v19552_v30, %v1526_v31  ;;  %v19651_v35 = vmax.f32 %v1743_v6, %v2044_v28  ;;  %v16002_v37 = vpop.f32.mrb[78].mxu0  ;;  %v18604_v20 = vld [vmem:[%s24168_s9 + $0x230] ss:$28 sps:$4 sm:$0xff]  }
 0x193   : > { %3260 = vmatprep.mubr.bf16.mxu1 %v18599_v22  ;;  %v2302_v38 = vmax.f32 %v1742_v19, %v2042_v33  ;;  %v1747_v39 = vmax.f32 %v1535_v29, 0.0  ;;  %v2408_v40 = vmax.f32 %v2296_v60, %v2300_v32  ;;  %v2301_v41 = vmax.f32 %v1741_v10, %v2040_v62  ;;  %v1529_v42 = vpop.f32.mrb[79].mxu0 }
 0x194   : > { %v1745_v43 = vmax.f32 %v1527_v34, 0.0  ;;  %v2411_v44 = vmax.f32 %v19628_v3, %v19651_v35  ;;  %v1538_v45 = vadd.f32 %v19552_v30, %v16002_v37  ;;  %v1530_v46 = vadd.f32 %v19552_v30, %v1529_v42 }
 0x195   : > { %v2410_v47 = vmax.f32 %v2298_v5, %v2302_v38  ;;  %v19657_v48 = vpack.c.bf16 %v2408_v40, %v2407_v13  ;;  %v2409_v49 = vmax.f32 %v2297_v12, %v2301_v41  ;;  %v2049_v51 = vrot.slane %v1747_v39, 1 }
 0x196   : > { %v2045_v52 = vrot.slane %v1745_v43, 1  ;;  %v1748_v53 = vmax.f32 %v1538_v45, 0.0  ;;  %v1746_v54 = vmax.f32 %v1530_v46, 0.0 }
 0x197   : > { %v19665_v56 = vpack.c.bf16 %v2410_v47, %v2409_v49 }
 0x198   : > { %v2046_v57 = vsel %vm1893_vm3, %v2043_v23, %v2045_v52  ;;  %v2051_v58 = vrot.slane %v1748_v53, 1  ;;  %v2047_v59 = vrot.slane %v1746_v54, 1  ;;  %v16005_v60 = vpop.f32.mrb[80].mxu0 }
 0x199   : > { %v2304_v61 = vmax.f32 %v1744_v16, %v2046_v57  ;;  %v1551_v63 = vadd.f32 %v19552_v30, %v16005_v60  ;;  %v1542_v0 = vpop.f32.mrb[81].mxu0  ;;  %v18608_v60 = vld [vmem:[%s24168_s9 + $0x2a4] ss:$28 sps:$4 sm:$0xff]  }
 0x19a   : > { %3261 = vmatmul.mubr.bf16.gmra.mrb[36].mxu1 %v18601_v50  ;;  %v2052_v2 = vsel %vm1893_vm3, %v2049_v51, %v2051_v58  ;;  %v2048_v3 = vsel %vm1893_vm3, %v2045_v52, %v2047_v59  ;;  %v2050_v5 = vsel %vm1893_vm3, %v2047_v59, %v2049_v51  ;;  %v1543_v6 = vadd.f32 %v19552_v30, %v1542_v0  ;;  %v16006_v7 = vpop.f32.mrb[82].mxu0 }
 0x19b   : > { %3268 = vmatprep.mubr.bf16.mxu1 %v18602_v55  ;;  %v2412_v8 = vmax.f32 %v2300_v32, %v2304_v61  ;;  %v2306_v9 = vmax.f32 %v1746_v54, %v2050_v5  ;;  %v1751_v10 = vmax.f32 %v1551_v63, 0.0  ;;  %v1554_v11 = vadd.f32 %v19552_v30, %v16006_v7  ;;  %v1545_v12 = vpop.f32.mrb[83].mxu0  ;;  %v18607_v54 = vld [vmem:[%s24168_s9 + $0x268] ss:$28 sps:$4 sm:$0xff]  }
 0x19c   : > { %v1749_v13 = vmax.f32 %v1543_v6, 0.0  ;;  %v1546_v14 = vadd.f32 %v19552_v30, %v1545_v12  ;;  %v2305_v15 = vmax.f32 %v1745_v43, %v2048_v3  ;;  %v2307_v26 = vmax.f32 %v1747_v39, %v2052_v2 }
 0x19d   : > { %v19675_v16 = vpack.c.bf16 %v2412_v8, %v2411_v44  ;;  %v2414_v17 = vmax.f32 %v2302_v38, %v2306_v9  ;;  %v1752_v18 = vmax.f32 %v1554_v11, 0.0  ;;  %v2057_v19 = vrot.slane %v1751_v10, 1 }
 0x19e   : > { %v2053_v21 = vrot.slane %v1749_v13, 1  ;;  %v1750_v22 = vmax.f32 %v1546_v14, 0.0  ;;  %v2413_v23 = vmax.f32 %v2301_v41, %v2305_v15  ;;  %v2415_v38 = vmax.f32 %v19651_v35, %v2307_v26 }
 0x19f   : > { %v2059_v25 = vrot.slane %v1752_v18, 1 }
 0x1a0   : > { %v2054_v28 = vsel %vm1893_vm3, %v2051_v58, %v2053_v21  ;;  %v2055_v29 = vrot.slane %v1750_v22, 1  ;;  %v16009_v31 = vpop.f32.mrb[84].mxu0  ;;  %v19684_v32 = vpack.c.bf16 %v2414_v17, %v2413_v23 }
 0x1a1   : > { %v2060_v62 = vsel %vm1893_vm3, %v2057_v19, %v2059_v25  ;;  %v19688_v33 = vadd.f32 %v19552_v30, %v16009_v31  ;;  %v1558_v34 = vpop.f32.mrb[85].mxu0  ;;  %v2308_v37 = vmax.f32 %v1748_v53, %v2054_v28  ;;  %v18610_v28 = vld [vmem:[%s24168_s9 + $0x2a0] ss:$28 sps:$4 sm:$0xff]  }
 0x1a2   : > { %3269 = vmatmul.mubr.bf16.gmra.mrb[40].mxu1 %v18604_v20  ;;  %v2056_v40 = vsel %vm1893_vm3, %v2053_v21, %v2055_v29  ;;  %v2058_v39 = vsel %vm1893_vm3, %v2055_v29, %v2057_v19  ;;  %v1559_v41 = vadd.f32 %v19552_v30, %v1558_v34  ;;  %v16010_v42 = vpop.f32.mrb[86].mxu0  ;;  %v2311_v63 = vmax.f32 %v1751_v10, %v2060_v62  ;;  %v18611_v34 = vld [vmem:[%s24168_s9 + $0x2dc] ss:$28 sps:$4 sm:$0xff]  }
 0x1a3   : > { %3276 = vmatprep.mubr.bf16.mxu1 %v18605_v24  ;;  %v2310_v43 = vmax.f32 %v1750_v22, %v2058_v39  ;;  %v1755_v44 = vmax.f32 %v19688_v33, 0.0  ;;  %v1570_v45 = vadd.f32 %v19552_v30, %v16010_v42  ;;  %v1561_v46 = vpop.f32.mrb[87].mxu0  ;;  %v2416_v47 = vmax.f32 %v2304_v61, %v2308_v37 }
 0x1a4   : > { %v1753_v49 = vmax.f32 %v1559_v41, 0.0  ;;  %v1562_v50 = vadd.f32 %v19552_v30, %v1561_v46  ;;  %v2309_v35 = vmax.f32 %v1749_v13, %v2056_v40  ;;  %v2419_v11 = vmax.f32 %v2307_v26, %v2311_v63 }
 0x1a5   : > { %v2418_v51 = vmax.f32 %v2306_v9, %v2310_v43  ;;  %v1756_v52 = vmax.f32 %v1570_v45, 0.0  ;;  %v19697_v53 = vpack.c.bf16 %v2416_v47, %v2415_v38  ;;  %v2065_v55 = vrot.slane %v1755_v44, 1 }
 0x1a6   : > { %v2061_v57 = vrot.slane %v1753_v49, 1  ;;  %v1754_v58 = vmax.f32 %v1562_v50, 0.0  ;;  %v2417_v59 = vmax.f32 %v2305_v15, %v2309_v35 }
 0x1a7   : > { %v2067_v61 = vrot.slane %v1756_v52, 1 }
 0x1a8   : > { %v2062_v0 = vsel %vm1893_vm3, %v2059_v25, %v2061_v57  ;;  %v2063_v2 = vrot.slane %v1754_v58, 1  ;;  %v16013_v3 = vpop.f32.mrb[88].mxu0  ;;  %v19706_v5 = vpack.c.bf16 %v2418_v51, %v2417_v59 }
 0x1a9   : > { %v2068_v6 = vsel %vm1893_vm3, %v2065_v55, %v2067_v61  ;;  %v19710_v7 = vadd.f32 %v19552_v30, %v16013_v3  ;;  %v1574_v8 = vpop.f32.mrb[89].mxu0  ;;  %v2312_v9 = vmax.f32 %v1752_v18, %v2062_v0  ;;  %v18613_v3 = vld [vmem:[%s24168_s9 + $0x2d8] ss:$28 sps:$4 sm:$0xff]  }
 0x1aa   : > { %3277 = vmatmul.mubr.bf16.gmra.mrb[44].mxu1 %v18607_v54  ;;  %v2064_v12 = vsel %vm1893_vm3, %v2061_v57, %v2063_v2  ;;  %v2066_v13 = vsel %vm1893_vm3, %v2063_v2, %v2065_v55  ;;  %v1575_v10 = vadd.f32 %v19552_v30, %v1574_v8  ;;  %v16014_v14 = vpop.f32.mrb[90].mxu0  ;;  %v2315_v38 = vmax.f32 %v1755_v44, %v2068_v6 }
 0x1ab   : > { %3284 = vmatprep.mubr.bf16.mxu1 %v18608_v60  ;;  %v2314_v15 = vmax.f32 %v1754_v58, %v2066_v13  ;;  %v1759_v17 = vmax.f32 %v19710_v7, 0.0  ;;  %v1586_v20 = vadd.f32 %v19552_v30, %v16014_v14  ;;  %v1577_v19 = vpop.f32.mrb[91].mxu0  ;;  %v2420_v21 = vmax.f32 %v2308_v37, %v2312_v9 }
 0x1ac   : > { %v1757_v22 = vmax.f32 %v1575_v10, 0.0  ;;  %v1578_v18 = vadd.f32 %v19552_v30, %v1577_v19  ;;  %v2313_v23 = vmax.f32 %v1753_v49, %v2064_v12  ;;  %v2423_v49 = vmax.f32 %v2311_v63, %v2315_v38 }
 0x1ad   : > { %v2422_v24 = vmax.f32 %v2310_v43, %v2314_v15  ;;  %v1760_v25 = vmax.f32 %v1586_v20, 0.0  ;;  %v19718_v26 = vpack.c.bf16 %v2420_v21, %v2419_v11  ;;  %v2073_v29 = vrot.slane %v1759_v17, 1 }
 0x1ae   : > { %v2069_v31 = vrot.slane %v1757_v22, 1  ;;  %v1758_v62 = vmax.f32 %v1578_v18, 0.0  ;;  %v2421_v33 = vmax.f32 %v2309_v35, %v2313_v23 }
 0x1af   : > { %v2075_v37 = vrot.slane %v1760_v25, 1 }
 0x1b0   : > { %v2070_v40 = vsel %vm1893_vm3, %v2067_v61, %v2069_v31  ;;  %v2071_v39 = vrot.slane %v1758_v62, 1  ;;  %v16017_v41 = vpop.f32.mrb[92].mxu0  ;;  %v19727_v42 = vpack.c.bf16 %v2422_v24, %v2421_v33 }
 0x1b1   : > { %v2076_v43 = vsel %vm1893_vm3, %v2073_v29, %v2075_v37  ;;  %v19731_v45 = vadd.f32 %v19552_v30, %v16017_v41  ;;  %v1590_v46 = vpop.f32.mrb[93].mxu0  ;;  %v2316_v47 = vmax.f32 %v1756_v52, %v2070_v40 }
 0x1b2   : > { %3285 = vmatmul.mubr.bf16.gmra.mrb[48].mxu1 %v18610_v28  ;;  %v2072_v50 = vsel %vm1893_vm3, %v2069_v31, %v2071_v39  ;;  %v2074_v35 = vsel %vm1893_vm3, %v2071_v39, %v2073_v29  ;;  %v1591_v44 = vadd.f32 %v19552_v30, %v1590_v46  ;;  %v16018_v51 = vpop.f32.mrb[94].mxu0  ;;  %v2319_v13 = vmax.f32 %v1759_v17, %v2076_v43 }
 0x1b3   : > { %3292 = vmatprep.mubr.bf16.mxu1 %v18611_v34  ;;  %v2318_v54 = vmax.f32 %v1758_v62, %v2074_v35  ;;  %v1763_v55 = vmax.f32 %v19731_v45, 0.0  ;;  %v1602_v57 = vadd.f32 %v19552_v30, %v16018_v51  ;;  %v1593_v58 = vpop.f32.mrb[95].mxu0  ;;  %v2424_v59 = vmax.f32 %v2312_v9, %v2316_v47  ;;  %v18614_v9 = vld [vmem:[%s24168_s9 + $0x314] ss:$28 sps:$4 sm:$0xff]  }
 0x1b4   : > { %v1761_v60 = vmax.f32 %v1591_v44, 0.0  ;;  %v1594_v52 = vadd.f32 %v19552_v30, %v1593_v58  ;;  %v2317_v61 = vmax.f32 %v1757_v22, %v2072_v50  ;;  %v18616_v45 = vld [vmem:[%s24168_s9 + $0x310] ss:$28 sps:$4 sm:$0xff]  }
 0x1b5   : > { %v2426_v63 = vmax.f32 %v2314_v15, %v2318_v54  ;;  %v1764_v0 = vmax.f32 %v1602_v57, 0.0  ;;  %v19739_v2 = vpack.c.bf16 %v2424_v59, %v2423_v49  ;;  %v2081_v6 = vrot.slane %v1763_v55, 1 }
 0x1b6   : > { %v2077_v7 = vrot.slane %v1761_v60, 1  ;;  %v1762_v8 = vmax.f32 %v1594_v52, 0.0  ;;  %v2425_v11 = vmax.f32 %v2313_v23, %v2317_v61  ;;  %v2427_v23 = vmax.f32 %v2315_v38, %v2319_v13 }
 0x1b7   : > { %v2083_v12 = vrot.slane %v1764_v0, 1 }
 0x1b8   : > { %v2078_v10 = vsel %vm1893_vm3, %v2075_v37, %v2077_v7  ;;  %v2079_v14 = vrot.slane %v1762_v8, 1  ;;  %v16021_v15 = vpop.f32.mrb[96].mxu0  ;;  %v19748_v20 = vpack.c.bf16 %v2426_v63, %v2425_v11 }
 0x1b9   : > { %v2084_v19 = vsel %vm1893_vm3, %v2081_v6, %v2083_v12  ;;  %v19752_v21 = vadd.f32 %v19552_v30, %v16021_v15  ;;  %v1606_v22 = vpop.f32.mrb[97].mxu0  ;;  %v2320_v18 = vmax.f32 %v1760_v25, %v2078_v10 }
 0x1ba   : > { %3293 = vmatmul.mubr.bf16.gmra.mrb[52].mxu1 %v18613_v3  ;;  %v2080_v24 = vsel %vm1893_vm3, %v2077_v7, %v2079_v14  ;;  %v2082_v28 = vsel %vm1893_vm3, %v2079_v14, %v2081_v6  ;;  %v1607_v17 = vadd.f32 %v19552_v30, %v1606_v22  ;;  %v16022_v29 = vpop.f32.mrb[98].mxu0  ;;  %v2323_v51 = vmax.f32 %v1763_v55, %v2084_v19 }
 0x1bb   : > { %3300 = vmatprep.mubr.bf16.mxu1 %v18614_v9  ;;  %v2322_v31 = vmax.f32 %v1762_v8, %v2082_v28  ;;  %v1767_v62 = vmax.f32 %v19752_v21, 0.0  ;;  %v1618_v33 = vadd.f32 %v19552_v30, %v16022_v29  ;;  %v1609_v34 = vpop.f32.mrb[99].mxu0  ;;  %v2428_v37 = vmax.f32 %v2316_v47, %v2320_v18  ;;  %v18617_v47 = vld [vmem:[%s24168_s9 + $0x34c] ss:$28 sps:$4 sm:$0xff]  }
 0x1bc   : > { %v1765_v40 = vmax.f32 %v1607_v17, 0.0  ;;  %v1610_v25 = vadd.f32 %v19552_v30, %v1609_v34  ;;  %v2321_v38 = vmax.f32 %v1761_v60, %v2080_v24  ;;  %v2431_v6 = vmax.f32 %v2319_v13, %v2323_v51  ;;  %v18619_v24 = vld [vmem:[%s24168_s9 + $0x348] ss:$28 sps:$4 sm:$0xff]  }
 0x1bd   : > { %v2430_v39 = vmax.f32 %v2318_v54, %v2322_v31  ;;  %v1768_v41 = vmax.f32 %v1618_v33, 0.0  ;;  %v19760_v43 = vpack.c.bf16 %v2428_v37, %v2427_v23  ;;  %v2089_v46 = vrot.slane %v1767_v62, 1 }
 0x1be   : > { %v2085_v49 = vrot.slane %v1765_v40, 1  ;;  %v1766_v50 = vmax.f32 %v1610_v25, 0.0  ;;  %v2429_v35 = vmax.f32 %v2317_v61, %v2321_v38 }
 0x1bf   : > { %v2091_v44 = vrot.slane %v1768_v41, 1 }
 0x1c0   : > { %v2086_v57 = vsel %vm1893_vm3, %v2083_v12, %v2085_v49  ;;  %v2087_v54 = vrot.slane %v1766_v50, 1  ;;  %v16025_v58 = vpop.f32.mrb[100].mxu0  ;;  %v19769_v59 = vpack.c.bf16 %v2430_v39, %v2429_v35 }
 0x1c1   : > { %v2092_v60 = vsel %vm1893_vm3, %v2089_v46, %v2091_v44  ;;  %v1631_v52 = vadd.f32 %v19552_v30, %v16025_v58  ;;  %v1622_v63 = vpop.f32.mrb[101].mxu0  ;;  %v2324_v3 = vmax.f32 %v1764_v0, %v2086_v57 }
 0x1c2   : > { %3301 = vmatmul.mubr.bf16.gmra.mrb[56].mxu1 %v18616_v45  ;;  %v2088_v61 = vsel %vm1893_vm3, %v2085_v49, %v2087_v54  ;;  %v2090_v7 = vsel %vm1893_vm3, %v2087_v54, %v2089_v46  ;;  %v1623_v55 = vadd.f32 %v19552_v30, %v1622_v63  ;;  %v16026_v8 = vpop.f32.mrb[102].mxu0  ;;  %v2327_v34 = vmax.f32 %v1767_v62, %v2092_v60 }
 0x1c3   : > { %3308 = vmatprep.mubr.bf16.mxu1 %v18617_v47  ;;  %v19776_v11 = vmax.f32 %v1766_v50, %v2090_v7  ;;  %v1771_v9 = vmax.f32 %v1631_v52, 0.0  ;;  %v1634_v12 = vadd.f32 %v19552_v30, %v16026_v8  ;;  %v1625_v10 = vpop.f32.mrb[103].mxu0  ;;  %v2432_v14 = vmax.f32 %v2320_v18, %v2324_v3  ;;  %v18620_v18 = vld [vmem:[%s24168_s9 + $0x384] ss:$28 sps:$4 sm:$0xff]  }
 0x1c4   : > { %v1769_v15 = vmax.f32 %v1623_v55, 0.0  ;;  %v1626_v0 = vadd.f32 %v19552_v30, %v1625_v10  ;;  %v2325_v13 = vmax.f32 %v1765_v40, %v2088_v61  ;;  %v2435_v50 = vmax.f32 %v2323_v51, %v2327_v34  ;;  %v18622_v7 = vld [vmem:[%s24168_s9 + $0x380] ss:$28 sps:$4 sm:$0xff]  }
 0x1c5   : > { %v2434_v19 = vmax.f32 %v2322_v31, %v19776_v11  ;;  %v2097_v21 = vrot.slane %v1771_v9, 1  ;;  %v1772_v22 = vmax.f32 %v1634_v12, 0.0  ;;  %v19781_v23 = vpack.c.bf16 %v2432_v14, %v2431_v6  ;;  %v18625_v12 = vld [vmem:[%s24168_s9 + $0xc] ss:$28 sps:$4 sm:$0xff]  }
 0x1c6   : > { %v2093_v28 = vrot.slane %v1769_v15, 1  ;;  %v1770_v17 = vmax.f32 %v1626_v0, 0.0  ;;  %v2433_v29 = vmax.f32 %v2321_v38, %v2325_v13 }
 0x1c7   : > { %v2099_v33 = vrot.slane %v1772_v22, 1 }
 0x1c8   : > { %v2094_v37 = vsel %vm1893_vm3, %v2091_v44, %v2093_v28  ;;  %v2095_v31 = vrot.slane %v1770_v17, 1  ;;  %v16029_v40 = vpop.f32.mrb[104].mxu0  ;;  %v19790_v25 = vpack.c.bf16 %v2434_v19, %v2433_v29 }
 0x1c9   : > { %v2100_v39 = vsel %vm1893_vm3, %v2097_v21, %v2099_v33  ;;  %v1647_v45 = vadd.f32 %v19552_v30, %v16029_v40  ;;  %v1638_v46 = vpop.f32.mrb[105].mxu0  ;;  %v2328_v49 = vmax.f32 %v1768_v41, %v2094_v37 }
 0x1ca   : > { %3309 = vmatmul.mubr.bf16.gmra.mrb[60].mxu1 %v18619_v24  ;;  %v2096_v38 = vsel %vm1893_vm3, %v2093_v28, %v2095_v31  ;;  %v2098_v35 = vsel %vm1893_vm3, %v2095_v31, %v2097_v21  ;;  %v1639_v62 = vadd.f32 %v19552_v30, %v1638_v46  ;;  %v16030_v47 = vpop.f32.mrb[106].mxu0  ;;  %v2331_v14 = vmax.f32 %v1771_v9, %v2100_v39  ;;  %v18623_v39 = vld [vmem:[%s24168_s9 + $0x8] ss:$28 sps:$4 sm:$0xff]  }
 0x1cb   : > { %3316 = vmatprep.mubr.bf16.mxu1 %v18620_v18  ;;  %v2330_v44 = vmax.f32 %v1770_v17, %v2098_v35  ;;  %v1775_v57 = vmax.f32 %v1647_v45, 0.0  ;;  %v1650_v54 = vadd.f32 %v19552_v30, %v16030_v47  ;;  %v1641_v58 = vpop.f32.mrb[107].mxu0  ;;  %v2436_v60 = vmax.f32 %v2324_v3, %v2328_v49 }
 0x1cc   : > { %v1773_v52 = vmax.f32 %v1639_v62, 0.0  ;;  %v1642_v63 = vadd.f32 %v19552_v30, %v1641_v58  ;;  %v2329_v10 = vmax.f32 %v1769_v15, %v2096_v38  ;;  %v2439_v15 = vmax.f32 %v2327_v34, %v2331_v14  ;;  %v18626_v34 = vld [vmem:[%s24168_s9 + $0x44] ss:$28 sps:$4 sm:$0xff]  }
 0x1cd   : > { %v2438_v41 = vmax.f32 %v19776_v11, %v2330_v44  ;;  %v2105_v51 = vrot.slane %v1775_v57, 1  ;;  %v1776_v6 = vmax.f32 %v1650_v54, 0.0  ;;  %v19800_v61 = vpack.c.bf16 %v2436_v60, %v2435_v50  ;;  %v18629_v54 = vld [vmem:[%s24168_s9 + $0x7c] ss:$28 sps:$4 sm:$0xff]   ;;  %v18638_v58 = vld [vmem:[%s24168_s9 + $0x124] ss:$28 sps:$4 sm:$0xff]  }
 0x1ce   : > { %v2101_v55 = vrot.slane %v1773_v52, 1  ;;  %v1774_v8 = vmax.f32 %v1642_v63, 0.0  ;;  %v2437_v28 = vmax.f32 %v2325_v13, %v2329_v10  ;;  %v24174_v60 = vmov 0.0   ;;  %v18656_v63 = vld [vmem:[%s24168_s9 + $0x274] ss:$28 sps:$4 sm:$0xff]  }
 0x1cf   : > { %v2107_v3 = vrot.slane %v1776_v6, 1 }
 0x1d0   : > { %v2102_v0 = vsel %vm1893_vm3, %v2099_v33, %v2101_v55  ;;  %v2103_v11 = vrot.slane %v1774_v8, 1  ;;  %v19809_v19 = vpop.f32.mrb[108].mxu0  ;;  %v19819_v33 = vpack.c.bf16 %v2438_v41, %v2437_v28  ;;  %v18658_v41 = vld [vmem:[%s24168_s9 + $0x270] ss:$28 sps:$4 sm:$0xff]  }
 0x1d1   : > { %v2108_v21 = vsel %vm1893_vm3, %v2105_v51, %v2107_v3  ;;  %v1654_v24 = vpop.f32.mrb[109].mxu0  ;;  %v2332_v17 = vmax.f32 %v1772_v22, %v2102_v0 }
 0x1d2   : > { %3317 = vmatmul.mubr.bf16.gmra.mrb[64].mxu1 %v18622_v7  ;;  %v2104_v29 = vsel %vm1893_vm3, %v2101_v55, %v2103_v11  ;;  %v2106_v18 = vsel %vm1893_vm3, %v2103_v11, %v2105_v51  ;;  %v19815_v37 = vadd.f32 %v19552_v30, %v1654_v24  ;;  %v19837_v46 = vmax.f32 %v1775_v57, %v2108_v21  ;;  %v18628_v57 = vld [vmem:[%s24168_s9 + $0x40] ss:$28 sps:$4 sm:$0xff]   ;;  %v16034_v55 = vpop.f32.mrb[110].mxu0 }
 0x1d3   : > { %3357 = vmatprep.mubr.bf16.mxu1 %v18625_v12  ;;  %v19817_v9 = vmax.f32 %v1774_v8, %v2106_v18  ;;  %v2440_v31 = vmax.f32 %v2328_v49, %v2332_v17  ;;  %v19835_v45 = vmax.f32 %v1773_v52, %v2104_v29  ;;  %v18655_v52 = vld [vmem:[%s24168_s9 + $0x238] ss:$28 sps:$4 sm:$0xff]   ;;  %v18830_v51 = vld [vmem:[%s24161_s2] ss:$0 sm:$0xff]  ;;  %v1657_v12 = vpop.f32.mrb[111].mxu0 }
 0x1d4   : > { %v1777_v40 = vmax.f32 %v19815_v37, 0.0  ;;  %v2443_v35 = vmax.f32 %v2331_v14, %v19837_v46  ;;  %v1666_v8 = vadd.f32 %v18830_v51, %v16034_v55  ;;  %v18661_v14 = vld [vmem:[%s24168_s9 + $0x2a8] ss:$28 sps:$4 sm:$0xff]   ;;  %v18670_v37 = vld [vmem:[%s24168_s9 + $0x350] ss:$28 sps:$4 sm:$0xff]  }
 0x1d5   : > { %v2442_v13 = vmax.f32 %v2330_v44, %v19817_v9  ;;  %v19823_v22 = vpack.c.bf16 %v2440_v31, %v2439_v15  ;;  %v2441_v50 = vmax.f32 %v2329_v10, %v19835_v45  ;;  %v18715_v55 = vld [vmem:[%s24168_s9 + $0x2e8] ss:$28 sps:$4 sm:$0xff]  }
 0x1d6   : > { %v19830_v30 = vrot.slane %v1777_v40, 1  ;;  %v1780_v10 = vmax.f32 %v1666_v8, 0.0  ;;  %v18716_v8 = vld [vmem:[%s24168_s9 + $0x324] ss:$28 sps:$4 sm:$0xff]  }
 0x1d7   : > { %v19846_v62 = vpack.c.bf16 %v2442_v13, %v2441_v50 }
 0x1d8   : > { %v2110_v49 = vsel %vm1893_vm3, %v2107_v3, %v19830_v30  ;;  %v1658_v3 = vadd.f32 %v18830_v51, %v1657_v12  ;;  %v2115_v21 = vrot.slane %v1780_v10, 1  ;;  %v18718_v12 = vld [vmem:[%s24168_s9 + $0x320] ss:$28 sps:$4 sm:$0xff]  }
 0x1d9   : > { %v19842_v38 = vmax.f32 %v1776_v6, %v2110_v49  ;;  %v1663_v6 = vadd.f32 %v18830_v51, %v19809_v19  ;;  %v18662_v19 = vld [vmem:[%s24168_s9 + $0x2e4] ss:$28 sps:$4 sm:$0xff]   ;;  %v18665_v49 = vld [vmem:[%s24168_s9 + $0x31c] ss:$28 sps:$4 sm:$0xff]  }
 0x1da   : > { %3358 = vmatmul.mubr.bf16.vlgmr.msra.gmra.mrb[0].mxu1 %v18623_v39  ;;  %v1778_v11 = vmax.f32 %v1658_v3, 0.0  ;;  %v18709_v51 = vld [vmem:[%s24168_s9 + $0x278] ss:$28 sps:$4 sm:$0xff]  }
 0x1db   : > { %3495 = vmatpush1.bf16.msra.mxu1 %v19644_v27  ;;  %3365 = vmatprep.mubr.bf16.mxu1 %v18626_v34  ;;  %v2444_v47 = vmax.f32 %v2332_v17, %v19842_v38  ;;  %v18631_v27 = vld [vmem:[%s24168_s9 + $0x78] ss:$28 sps:$4 sm:$0xff]   ;;  %v1779_v7 = vmax.f32 %v1663_v6, 0.0  ;;  %v2340_v17 = vmax.f32 %v1780_v10, %v2115_v21  ;;  %v18664_v34 = vld [vmem:[%s24168_s9 + $0x2e0] ss:$28 sps:$4 sm:$0xff]  }
 0x1dc   : > { %3496 = vmatprep.subr.bf16.mxu1 %v24172_v36  ;;  %v2111_v24 = vrot.slane %v1778_v11, 1  ;;  %v18710_v6 = vld [vmem:[%s24168_s9 + $0x2b4] ss:$28 sps:$4 sm:$0xff]   ;;  %v18719_v3 = vld [vmem:[%s24168_s9 + $0x35c] ss:$28 sps:$4 sm:$0xff]  }
 0x1dd   : > { %v19850_v44 = vpack.c.bf16 %v2444_v47, %v2443_v35  ;;  %v2113_v0 = vrot.slane %v1779_v7, 1  ;;  %v2448_v31 = vmax.f32 %v19842_v38, %v2340_v17  ;;  %v18667_v38 = vld [vmem:[%s24168_s9 + $0x318] ss:$28 sps:$4 sm:$0xff]   ;;  %v18728_v17 = vld [vmem:[%s24168_s9 + $0xc0] ss:$28 sps:$4 sm:$0xff]  }
 0x1de   : > { %v2112_v18 = vsel %vm1893_vm3, %v19830_v30, %v2111_v24  ;;  %v18668_v35 = vld [vmem:[%s24168_s9 + $0x354] ss:$28 sps:$4 sm:$0xff]  }
 0x1df   : > { %3497 = vmatpush1.bf16.msra.mxu1 %v19657_v48  ;;  %v18632_v48 = vld [vmem:[%s24168_s9 + $0xb4] ss:$28 sps:$4 sm:$0xff]   ;;  %v2116_v28 = vsel %vm1893_vm3, %v2113_v0, %v2115_v21  ;;  %v2114_v15 = vsel %vm1893_vm3, %v2111_v24, %v2113_v0  ;;  %v2337_v30 = vmax.f32 %v1777_v40, %v2112_v18  ;;  %v18671_v40 = vld [vmem:[%s24168_s9 + $0x38c] ss:$28 sps:$4 sm:$0xff]  }
 0x1e0   : > { %3498 = vmatprep.subr.bf16.mxu1 %v24172_v36  ;;  %v2339_v29 = vmax.f32 %v1779_v7, %v2116_v28  ;;  %v2338_v13 = vmax.f32 %v1778_v11, %v2114_v15  ;;  %v18713_v7 = vld [vmem:[%s24168_s9 + $0x2ec] ss:$28 sps:$4 sm:$0xff]   ;;  %v18721_v10 = vld [vmem:[%s24168_s9 + $0x358] ss:$28 sps:$4 sm:$0xff]  }
 0x1e1   : > { %v2445_v50 = vmax.f32 %v19835_v45, %v2337_v30  ;;  %v18673_v45 = vld [vmem:[%s24168_s9 + $0x388] ss:$28 sps:$4 sm:$0xff]   ;;  %v18724_v0 = vld [vmem:[%s24168_s9 + $0x390] ss:$28 sps:$4 sm:$0xff]   ;;  %v18725_v11 = vld [vmem:[%s24168_s9 + $0x18] ss:$28 sps:$4 sm:$0xff]  }
 0x1e2   : > { %3366 = vmatmul.mubr.bf16.gmra.mrb[4].mxu1 %v18628_v57  ;;  %v2446_v39 = vmax.f32 %v19817_v9, %v2338_v13  ;;  %v2447_v47 = vmax.f32 %v19837_v46, %v2339_v29  ;;  %v18676_v46 = vld [vmem:[%s24168_s9 + $0x14] ss:$28 sps:$4 sm:$0xff]   ;;  %v18727_v28 = vld [vmem:[%s24168_s9 + $0x88] ss:$28 sps:$4 sm:$0xff]  }
 0x1e3   : > { %3499 = vmatpush1.bf16.msra.mxu1 %v19665_v56  ;;  %3373 = vmatprep.mubr.bf16.mxu1 %v18629_v54  ;;  %v18634_v56 = vld [vmem:[%s24168_s9 + $0xb0] ss:$28 sps:$4 sm:$0xff]   ;;  %v18729_v29 = vld [vmem:[%s24168_s9 + $0xf8] ss:$28 sps:$4 sm:$0xff]   ;;  %v18731_v15 = vld [vmem:[%s24168_s9 + $0x168] ss:$28 sps:$4 sm:$0xff]  }
 0x1e4   : > { %3500 = vmatprep.subr.bf16.mxu1 %v24172_v36  ;;  %v2501_v9 = vpack.c.bf16 %v2446_v39, %v2445_v50  ;;  %v2502_v57 = vpack.c.bf16 %v2448_v31, %v2447_v47  ;;  %v18674_v54 = vld [vmem:[%s24168_s9 + $0x10] ss:$28 sps:$4 sm:$0xff]   ;;  %v18732_v31 = vld [vmem:[%s24168_s9 + $0x1a0] ss:$28 sps:$4 sm:$0xff]   ;;  %v18733_v13 = vld [vmem:[%s24168_s9 + $0x1d8] ss:$28 sps:$4 sm:$0xff]  }
 0x1e5   : > { %v18726_v24 = vld [vmem:[%s24168_s9 + $0x50] ss:$28 sps:$4 sm:$0xff]   ;;  %v18737_v30 = vld [vmem:[%s24168_s9 + $0x2b8] ss:$28 sps:$4 sm:$0xff]   ;;  %v421_v47 = vld [vmem:[%s24162_s3] sm:$0xf] }
 0x1e6   : > { %v18730_v18 = vld [vmem:[%s24168_s9 + $0x130] ss:$28 sps:$4 sm:$0xff]  }
 0x1e7   : > { %3501 = vmatpush1.bf16.msra.mxu1 %v19675_v16  ;;  %v18635_v16 = vld [vmem:[%s24168_s9 + $0xec] ss:$28 sps:$4 sm:$0xff]  }
 0x1e8   : > { %3502 = vmatprep.subr.bf16.mxu1 %v24172_v36  ;;  %v18734_v39 = vld [vmem:[%s24168_s9 + $0x210] ss:$28 sps:$4 sm:$0xff]  }
 0x1e9   : > { %v18738_v50 = vld [vmem:[%s24168_s9 + $0x2f0] ss:$28 sps:$4 sm:$0xff]  }
 0x1ea   : > { %3374 = vmatmul.mubr.bf16.gmra.mrb[8].mxu1 %v18631_v27  ;;  %v18677_v27 = vld [vmem:[%s24168_s9 + $0x4c] ss:$28 sps:$4 sm:$0xff]  }
 0x1eb   : > { %3381 = vmatprep.mubr.bf16.mxu1 %v18632_v48  ;;  %3503 = vmatpush1.bf16.msra.mxu1 %v19684_v32  ;;  %v18637_v32 = vld [vmem:[%s24168_s9 + $0xe8] ss:$28 sps:$4 sm:$0xff]  }
 0x1ec   : > { %3504 = vmatprep.subr.bf16.mxu1 %v24172_v36  ;;  %v18679_v48 = vld [vmem:[%s24168_s9 + $0x48] ss:$28 sps:$4 sm:$0xff]  }
 0x1ef   : > { %3505 = vmatpush1.bf16.msra.mxu1 %v19697_v53  ;;  %v18640_v53 = vld [vmem:[%s24168_s9 + $0x120] ss:$28 sps:$4 sm:$0xff]  }
 0x1f0   : > { %3506 = vmatprep.subr.bf16.mxu1 %v24172_v36 }
 0x1f2   : > { %3382 = vmatmul.mubr.bf16.gmra.mrb[12].mxu1 %v18634_v56  ;;  %v18680_v56 = vld [vmem:[%s24168_s9 + $0x84] ss:$28 sps:$4 sm:$0xff]  }
 0x1f3   : > { %3389 = vmatprep.mubr.bf16.mxu1 %v18635_v16  ;;  %3507 = vmatpush1.bf16.msra.mxu1 %v19706_v5  ;;  %v18641_v5 = vld [vmem:[%s24168_s9 + $0x15c] ss:$28 sps:$4 sm:$0xff]  }
 0x1f4   : > { %3508 = vmatprep.subr.bf16.mxu1 %v24172_v36  ;;  %v18683_v16 = vld [vmem:[%s24168_s9 + $0xbc] ss:$28 sps:$4 sm:$0xff]  }
 0x1f7   : > { %3509 = vmatpush1.bf16.msra.mxu1 %v19718_v26  ;;  %v18643_v26 = vld [vmem:[%s24168_s9 + $0x158] ss:$28 sps:$4 sm:$0xff]  }
 0x1f8   : > { %3510 = vmatprep.subr.bf16.mxu1 %v24172_v36 }
 0x1fa   : > { %3390 = vmatmul.mubr.bf16.gmra.mrb[16].mxu1 %v18637_v32 }
 0x1fb   : > { %3397 = vmatprep.mubr.bf16.mxu1 %v18638_v58  ;;  %3511 = vmatpush1.bf16.msra.mxu1 %v19727_v42  ;;  %v18644_v42 = vld [vmem:[%s24168_s9 + $0x194] ss:$28 sps:$4 sm:$0xff]  }
 0x1fc   : > { %3512 = vmatprep.subr.bf16.mxu1 %v24172_v36  ;;  %v18688_v58 = vld [vmem:[%s24168_s9 + $0xf0] ss:$28 sps:$4 sm:$0xff]  }
 0x1ff   : > { %3513 = vmatpush1.bf16.msra.mxu1 %v19739_v2  ;;  %v18646_v2 = vld [vmem:[%s24168_s9 + $0x190] ss:$28 sps:$4 sm:$0xff]  }
 0x200   : > { %3514 = vmatprep.subr.bf16.mxu1 %v24172_v36 }
 0x202   : > { %3398 = vmatmul.mubr.bf16.gmra.mrb[20].mxu1 %v18640_v53  ;;  %v18689_v53 = vld [vmem:[%s24168_s9 + $0x12c] ss:$28 sps:$4 sm:$0xff]  }
 0x203   : > { %3405 = vmatprep.mubr.bf16.mxu1 %v18641_v5  ;;  %3515 = vmatpush1.bf16.msra.mxu1 %v19748_v20  ;;  %v18647_v20 = vld [vmem:[%s24168_s9 + $0x1cc] ss:$28 sps:$4 sm:$0xff]  }
 0x204   : > { %3516 = vmatprep.subr.bf16.mxu1 %v24172_v36  ;;  %v18691_v5 = vld [vmem:[%s24168_s9 + $0x128] ss:$28 sps:$4 sm:$0xff]  }
 0x207   : > { %3517 = vmatpush1.bf16.msra.mxu1 %v19760_v43  ;;  %v18649_v43 = vld [vmem:[%s24168_s9 + $0x1c8] ss:$28 sps:$4 sm:$0xff]  }
 0x208   : > { %3518 = vmatprep.subr.bf16.mxu1 %v24172_v36 }
 0x20a   : > { %3406 = vmatmul.mubr.bf16.gmra.mrb[24].mxu1 %v18643_v26  ;;  %v18692_v26 = vld [vmem:[%s24168_s9 + $0x164] ss:$28 sps:$4 sm:$0xff]  }
 0x20b   : > { %3413 = vmatprep.mubr.bf16.mxu1 %v18644_v42  ;;  %3519 = vmatpush1.bf16.msra.mxu1 %v19769_v59  ;;  %v18650_v59 = vld [vmem:[%s24168_s9 + $0x204] ss:$28 sps:$4 sm:$0xff]  }
 0x20c   : > { %3520 = vmatprep.subr.bf16.mxu1 %v24172_v36  ;;  %v18694_v42 = vld [vmem:[%s24168_s9 + $0x160] ss:$28 sps:$4 sm:$0xff]  }
 0x20f   : > { %3521 = vmatpush1.bf16.msra.mxu1 %v19781_v23  ;;  %v18652_v23 = vld [vmem:[%s24168_s9 + $0x200] ss:$28 sps:$4 sm:$0xff]  }
 0x210   : > { %3522 = vmatprep.subr.bf16.mxu1 %v24172_v36 }
 0x212   : > { %3414 = vmatmul.mubr.bf16.gmra.mrb[28].mxu1 %v18646_v2  ;;  %v18695_v2 = vld [vmem:[%s24168_s9 + $0x19c] ss:$28 sps:$4 sm:$0xff]  }
 0x213   : > { %3421 = vmatprep.mubr.bf16.mxu1 %v18647_v20  ;;  %3523 = vmatpush1.bf16.msra.mxu1 %v19790_v25  ;;  %v18653_v25 = vld [vmem:[%s24168_s9 + $0x23c] ss:$28 sps:$4 sm:$0xff]  }
 0x214   : > { %3524 = vmatprep.subr.bf16.mxu1 %v24172_v36  ;;  %v18697_v20 = vld [vmem:[%s24168_s9 + $0x198] ss:$28 sps:$4 sm:$0xff]  }
 0x217   : > { %3525 = vmatpush1.bf16.msra.mxu1 %v19800_v61  ;;  %v18659_v61 = vld [vmem:[%s24168_s9 + $0x2ac] ss:$28 sps:$4 sm:$0xff]  }
 0x218   : > { %16035 = vmatprep.subr.bf16.mxu1 %v24174_v60 }
 0x21a   : > { %3422 = vmatmul.mubr.bf16.gmra.mrb[32].mxu1 %v18649_v43  ;;  %v18698_v43 = vld [vmem:[%s24168_s9 + $0x1d4] ss:$28 sps:$4 sm:$0xff]  }
 0x21b   : > { %3429 = vmatprep.mubr.bf16.mxu1 %v18650_v59  ;;  %v18700_v59 = vld [vmem:[%s24168_s9 + $0x1d0] ss:$28 sps:$4 sm:$0xff]  }
 0x222   : > { %3430 = vmatmul.mubr.bf16.gmra.mrb[36].mxu1 %v18652_v23  ;;  %v18701_v23 = vld [vmem:[%s24168_s9 + $0x20c] ss:$28 sps:$4 sm:$0xff]  }
 0x223   : > { %3437 = vmatprep.mubr.bf16.mxu1 %v18653_v25  ;;  %v18703_v25 = vld [vmem:[%s24168_s9 + $0x208] ss:$28 sps:$4 sm:$0xff]  }
 0x22a   : > { %3438 = vmatmul.mubr.bf16.gmra.mrb[40].mxu1 %v18655_v52  ;;  %v18704_v52 = vld [vmem:[%s24168_s9 + $0x244] ss:$28 sps:$4 sm:$0xff]  }
 0x22b   : > { %3445 = vmatprep.mubr.bf16.mxu1 %v18656_v63  ;;  %v18706_v63 = vld [vmem:[%s24168_s9 + $0x240] ss:$28 sps:$4 sm:$0xff]  }
 0x232   : > { %3446 = vmatmul.mubr.bf16.gmra.mrb[44].mxu1 %v18658_v41  ;;  %v18707_v41 = vld [vmem:[%s24168_s9 + $0x27c] ss:$28 sps:$4 sm:$0xff]  }
 0x233   : > { %3453 = vmatprep.mubr.bf16.mxu1 %v18659_v61  ;;  %v18712_v61 = vld [vmem:[%s24168_s9 + $0x2b0] ss:$28 sps:$4 sm:$0xff]  }
 0x23a   : > { %3454 = vmatmul.mubr.bf16.gmra.mrb[48].mxu1 %v18661_v14  ;;  %v18722_v14 = vld [vmem:[%s24168_s9 + $0x394] ss:$28 sps:$4 sm:$0xff]  }
 0x23b   : > { %3461 = vmatprep.mubr.bf16.mxu1 %v18662_v19  ;;  %v422_v19 = vld [vmem:[%s24162_s3 + $0x4] sm:$0xf] }
 0x23c   : > { %18453 = vmatprep.subr.msk.bf16.mxu0 %vm1181_vm0, %v422_v19  ;;  %v20119_v21 = vsel %vm1181_vm0, %v422_v19, 0 }
 0x23d   : > { %16116 = vmatpush3.bf16.msra.mxu0 %v20119_v21 }
 0x23e   : > { %18454 = vmatprep.subr.msk.bf16.mxu0 %vm1181_vm0, %v421_v47 }
 0x242   : > { %3462 = vmatmul.mubr.bf16.gmra.mrb[52].mxu1 %v18664_v34  ;;  %v18735_v34 = vld [vmem:[%s24168_s9 + $0x248] ss:$28 sps:$4 sm:$0xff]  }
 0x243   : > { %3469 = vmatprep.mubr.bf16.mxu1 %v18665_v49  ;;  %v18736_v49 = vld [vmem:[%s24168_s9 + $0x280] ss:$28 sps:$4 sm:$0xff]  }
 0x24a   : > { %3470 = vmatmul.mubr.bf16.gmra.mrb[56].mxu1 %v18667_v38  ;;  %v18739_v38 = vld [vmem:[%s24168_s9 + $0x328] ss:$28 sps:$4 sm:$0xff]  }
 0x24b   : > { %3477 = vmatprep.mubr.bf16.mxu1 %v18668_v35  ;;  %v18741_v35 = vld [vmem:[%s24168_s9 + $0x398] ss:$28 sps:$4 sm:$0xff]  }
 0x252   : > { %3478 = vmatmul.mubr.bf16.gmra.mrb[60].mxu1 %v18670_v37 }
 0x253   : > { %3485 = vmatprep.mubr.bf16.mxu1 %v18671_v40 }
 0x25a   : > { %3486 = vmatmul.mubr.bf16.gmra.mrb[64].mxu1 %v18673_v45 }
 0x25b   : > { %3526 = vmatprep.mubr.bf16.mxu1 %v18676_v46 }
 0x262   : > { %3527 = vmatmul.mubr.bf16.vlgmr.msra.gmra.mrb[0].mxu1 %v18674_v54 }
 0x263   : > { %16036 = vmatpush3.bf16.msra.mxu1 %v19819_v33  ;;  %3534 = vmatprep.mubr.bf16.mxu1 %v18677_v27  ;;  %v3151_v33 = vsel %vm1893_vm3, 4294967295, %v19049_v1  ;;  %v18685_v1 = vld [vmem:[%s24168_s9 + $0xb8] ss:$28 sps:$4 sm:$0xff]  }
 0x264   : > { %16037 = vmatprep.subr.bf16.mxu1 %v24174_v60  ;;  %v20019_v32 = vsel %vm3150_vm4, %v3151_v33, 0 }
 0x267   : > { %16038 = vmatpush3.bf16.msra.mxu1 %v19823_v22  ;;  %v18682_v22 = vld [vmem:[%s24168_s9 + $0x80] ss:$28 sps:$4 sm:$0xff]  }
 0x268   : > { %16039 = vmatprep.subr.bf16.mxu1 %v24174_v60 }
 0x26a   : > { %3535 = vmatmul.mubr.bf16.gmra.mrb[4].mxu1 %v18679_v48 }
 0x26b   : > { %16040 = vmatpush3.bf16.msra.mxu1 %v19846_v62  ;;  %3542 = vmatprep.mubr.bf16.mxu1 %v18680_v56  ;;  %v3154_v62 = vand.u32 %v20019_v32, %v2502_v57 }
 0x26c   : > { %16041 = vmatprep.subr.bf16.mxu1 %v24174_v60 }
 0x26f   : > { %16042 = vmatpush3.bf16.msra.mxu1 %v19850_v44  ;;  %v18686_v44 = vld [vmem:[%s24168_s9 + $0xf4] ss:$28 sps:$4 sm:$0xff]  }
 0x270   : > { %16043 = vmatprep.subr.bf16.mxu1 %v24174_v60 }
 0x272   : > { %3543 = vmatmul.mubr.bf16.gmra.mrb[8].mxu1 %v18682_v22 }
 0x273   : > { %3550 = vmatprep.mubr.bf16.mxu1 %v18683_v16  ;;  %16044 = vmatpush3.bf16.msra.mxu1 %v2501_v9  ;;  %v18740_v9 = vld [vmem:[%s24168_s9 + $0x360] ss:$28 sps:$4 sm:$0xff]  }
 0x274   : > { %16045 = vmatprep.subr.bf16.mxu1 %v24174_v60 }
 0x277   : > { %16046 = vmatpush3.bf16.msra.mxu1 %v3154_v62 }
 0x278   : > { %6054 = vmatprep.subr.bf16.mxu1 %v24172_v36 }
 0x27a   : > { %3551 = vmatmul.mubr.bf16.gmra.mrb[12].mxu1 %v18685_v1 }
 0x27b   : > { %3558 = vmatprep.mubr.bf16.mxu1 %v18686_v44 }
 0x282   : > { %3559 = vmatmul.mubr.bf16.gmra.mrb[16].mxu1 %v18688_v58 }
 0x283   : > { %3566 = vmatprep.mubr.bf16.mxu1 %v18689_v53 }
 0x28a   : > { %3567 = vmatmul.mubr.bf16.gmra.mrb[20].mxu1 %v18691_v5 }
 0x28b   : > { %3574 = vmatprep.mubr.bf16.mxu1 %v18692_v26 }
 0x292   : > { %3575 = vmatmul.mubr.bf16.gmra.mrb[24].mxu1 %v18694_v42 }
 0x293   : > { %3582 = vmatprep.mubr.bf16.mxu1 %v18695_v2 }
 0x29a   : > { %3583 = vmatmul.mubr.bf16.gmra.mrb[28].mxu1 %v18697_v20 }
 0x29b   : > { %3590 = vmatprep.mubr.bf16.mxu1 %v18698_v43 }
 0x2a2   : > { %3591 = vmatmul.mubr.bf16.gmra.mrb[32].mxu1 %v18700_v59 }
 0x2a3   : > { %3598 = vmatprep.mubr.bf16.mxu1 %v18701_v23 }
 0x2aa   : > { %3599 = vmatmul.mubr.bf16.gmra.mrb[36].mxu1 %v18703_v25 }
 0x2ab   : > { %3606 = vmatprep.mubr.bf16.mxu1 %v18704_v52 }
 0x2b2   : > { %3607 = vmatmul.mubr.bf16.gmra.mrb[40].mxu1 %v18706_v63  ;;  %v20234_v63 = vsel %vm1181_vm0, %v421_v47, 0 }
 0x2b3   : > { %3614 = vmatprep.mubr.bf16.mxu1 %v18707_v41 }
 0x2ba   : > { %3615 = vmatmul.mubr.bf16.gmra.mrb[44].mxu1 %v18709_v51 }
 0x2bb   : > { %3622 = vmatprep.mubr.bf16.mxu1 %v18710_v6 }
 0x2c2   : > { %3623 = vmatmul.mubr.bf16.gmra.mrb[48].mxu1 %v18712_v61 }
 0x2c3   : > { %3630 = vmatprep.mubr.bf16.mxu1 %v18713_v7 }
 0x2ca   : > { %3631 = vmatmul.mubr.bf16.gmra.mrb[52].mxu1 %v18715_v55 }
 0x2cb   : > { %3638 = vmatprep.mubr.bf16.mxu1 %v18716_v8 }
 0x2d2   : > { %3639 = vmatmul.mubr.bf16.gmra.mrb[56].mxu1 %v18718_v12 }
 0x2d3   : > { %3646 = vmatprep.mubr.bf16.mxu1 %v18719_v3 }
 0x2da   : > { %3647 = vmatmul.mubr.bf16.gmra.mrb[60].mxu1 %v18721_v10 }
 0x2db   : > { %3654 = vmatprep.mubr.bf16.mxu1 %v18722_v14 }
 0x2e2   : > { %3655 = vmatmul.mubr.bf16.gmra.mrb[64].mxu1 %v18724_v0 }
 0x2e3   : > { %16047 = vmatprep.mubr.msk.bf16.mxu1 %vm19052_vm5, %v24174_v60 }
 0x2ea   : > { %16048 = vmatmul.mubr.msk.bf16.vlgmr.msra.gmra.mrb[0].mxu1 %vm3098_vm6, %v18725_v11 }
 0x2eb   : > { %16051 = vmatprep.mubr.msk.bf16.mxu1 %vm19052_vm5, %v24174_v60 }
 0x2f2   : > { %16052 = vmatmul.mubr.msk.bf16.gmra.mrb[4].mxu1 %vm3098_vm6, %v18726_v24 }
 0x2f3   : > { %16055 = vmatprep.mubr.msk.bf16.mxu1 %vm19052_vm5, %v24174_v60 }
 0x2fa   : > { %16056 = vmatmul.mubr.msk.bf16.gmra.mrb[8].mxu1 %vm3098_vm6, %v18727_v28 }
 0x2fb   : > { %16059 = vmatprep.mubr.msk.bf16.mxu1 %vm19052_vm5, %v24174_v60 }
 0x302   : > { %16060 = vmatmul.mubr.msk.bf16.gmra.mrb[12].mxu1 %vm3098_vm6, %v18728_v17 }
 0x303   : > { %16063 = vmatprep.mubr.msk.bf16.mxu1 %vm19052_vm5, %v24174_v60 }
 0x30a   : > { %16064 = vmatmul.mubr.msk.bf16.gmra.mrb[16].mxu1 %vm3098_vm6, %v18729_v29 }
 0x30b   : > { %16067 = vmatprep.mubr.msk.bf16.mxu1 %vm19052_vm5, %v24174_v60 }
 0x312   : > { %16068 = vmatmul.mubr.msk.bf16.gmra.mrb[20].mxu1 %vm3098_vm6, %v18730_v18 }
 0x313   : > { %16071 = vmatprep.mubr.msk.bf16.mxu1 %vm19052_vm5, %v24174_v60 }
 0x31a   : > { %16072 = vmatmul.mubr.msk.bf16.gmra.mrb[24].mxu1 %vm3098_vm6, %v18731_v15 }
 0x31b   : > { %16075 = vmatprep.mubr.msk.bf16.mxu1 %vm19052_vm5, %v24174_v60 }
 0x322   : > { %16076 = vmatmul.mubr.msk.bf16.gmra.mrb[28].mxu1 %vm3098_vm6, %v18732_v31 }
 0x323   : > { %16079 = vmatprep.mubr.msk.bf16.mxu1 %vm19052_vm5, %v24174_v60 }
 0x32a   : > { %16080 = vmatmul.mubr.msk.bf16.gmra.mrb[32].mxu1 %vm3098_vm6, %v18733_v13 }
 0x32b   : > { %16083 = vmatprep.mubr.msk.bf16.mxu1 %vm19052_vm5, %v24174_v60 }
 0x332   : > { %16084 = vmatmul.mubr.msk.bf16.gmra.mrb[36].mxu1 %vm3098_vm6, %v18734_v39 }
 0x333   : > { %16087 = vmatprep.mubr.msk.bf16.mxu1 %vm19052_vm5, %v24174_v60 }
 0x33a   : > { %16088 = vmatmul.mubr.msk.bf16.gmra.mrb[40].mxu1 %vm3098_vm6, %v18735_v34 }
 0x33b   : > { %16091 = vmatprep.mubr.msk.bf16.mxu1 %vm19052_vm5, %v24174_v60 }
 0x342   : > { %16092 = vmatmul.mubr.msk.bf16.gmra.mrb[44].mxu1 %vm3098_vm6, %v18736_v49 }
 0x343   : > { %16095 = vmatprep.mubr.msk.bf16.mxu1 %vm19052_vm5, %v24174_v60 }
 0x34a   : > { %16096 = vmatmul.mubr.msk.bf16.gmra.mrb[48].mxu1 %vm3098_vm6, %v18737_v30 }
 0x34b   : > { %16099 = vmatprep.mubr.msk.bf16.mxu1 %vm19052_vm5, %v24174_v60 }
 0x352   : > { %16100 = vmatmul.mubr.msk.bf16.gmra.mrb[52].mxu1 %vm3098_vm6, %v18738_v50 }
 0x353   : > { %16103 = vmatprep.mubr.msk.bf16.mxu1 %vm19052_vm5, %v24174_v60 }
 0x35a   : > { %16104 = vmatmul.mubr.msk.bf16.gmra.mrb[56].mxu1 %vm3098_vm6, %v18739_v38 }
 0x35b   : > { %16107 = vmatprep.mubr.msk.bf16.mxu1 %vm19052_vm5, %v24174_v60 }
 0x362   : > { %16108 = vmatmul.mubr.msk.bf16.gmra.mrb[60].mxu1 %vm3098_vm6, %v18740_v9 }
 0x363   : > { %16111 = vmatprep.mubr.msk.bf16.mxu1 %vm19052_vm5, %v24174_v60 }
 0x36a   : > { %16112 = vmatmul.mubr.msk.bf16.gmra.mrb[64].mxu1 %vm3098_vm6, %v18741_v35 }
 0x3bd   : > { %v3697_v57 = vpop.f32.mrb[0].mxu1 }
 0x3be   : > { %v16049_v37 = vpop.f32.mrb[1].mxu1 }
 0x3bf   : > { %v3700_v40 = vpop.f32.mrb[2].mxu1 }
 0x3c0   : > { %v20220_v45 = vpack.c.bf16 %v3700_v40, %v3697_v57  ;;  %v16050_v46 = vpop.f32.mrb[3].mxu1 }
 0x3c2   : > { %v3853_v54 = vshll.u32 %v20220_v45, 16  ;;  %v3851_v62 = vshrl.u32 %v20220_v45, 16 }
 0x3c4   : > { %v3855_v16 = vrot.slane %v3853_v54, 1  ;;  %v20274_v54 = vld [vmem:[%s24162_s3 + $0x8] sm:$0xf] }
 0x3c5   : > { %v3705_v27 = vpop.f32.mrb[4].mxu1 }
 0x3c6   : > { %v16053_v48 = vpop.f32.mrb[5].mxu1  ;;  %v3856_v44 = vor.u32 %v3855_v16, %v3851_v62 }
 0x3c7   : > { %v3708_v56 = vpop.f32.mrb[6].mxu1 }
 0x3c8   : > { %v20223_v33 = vpack.c.bf16 %v3708_v56, %v3705_v27  ;;  %v16054_v22 = vpop.f32.mrb[7].mxu1 }
 0x3ca   : > { %v3858_v1 = vshll.u32 %v20223_v33, 16  ;;  %v3862_v43 = vshrl.u32 %v20223_v33, 16 }
 0x3cc   : > { %v3860_v58 = vrot.slane %v3858_v1, 1 }
 0x3cd   : > { %v3713_v53 = vpop.f32.mrb[8].mxu1 }
 0x3ce   : > { %v16057_v5 = vpop.f32.mrb[9].mxu1  ;;  %v3861_v26 = vsel %vm3849_vm7, %v3856_v44, %v3860_v58  ;;  %v3864_v23 = vor.u32 %v3862_v43, %v3860_v58 }
 0x3cf   : > { %v3716_v42 = vpop.f32.mrb[10].mxu1  ;;  %16117 = vmatprep.mubr.msk.bf16.mxu0 %vm3966_vm8, %v3861_v26 }
 0x3d0   : > { %v20229_v2 = vpack.c.bf16 %v3716_v42, %v3713_v53  ;;  %v16058_v20 = vpop.f32.mrb[11].mxu1 }
 0x3d2   : > { %v3866_v59 = vshll.u32 %v20229_v2, 16  ;;  %v3870_v55 = vshrl.u32 %v20229_v2, 16 }
 0x3d4   : > { %v3868_v25 = vrot.slane %v3866_v59, 1 }
 0x3d5   : > { %v3721_v52 = vpop.f32.mrb[12].mxu1 }
 0x3d6   : > { %v16061_v41 = vpop.f32.mrb[13].mxu1  ;;  %v20237_v51 = vsel %vm3849_vm7, %v3864_v23, %v3868_v25  ;;  %v3872_v12 = vor.u32 %v3870_v55, %v3868_v25 }
 0x3d7   : > { %v3724_v6 = vpop.f32.mrb[14].mxu1  ;;  %16118 = vmatmul.mubr.msk.bf16.vlgmr.msra.gmra.mrb[112].mxu0 %vm3966_vm8, %v20237_v51 }
 0x3d8   : > { %v20241_v61 = vpack.c.bf16 %v3724_v6, %v3721_v52  ;;  %v16062_v7 = vpop.f32.mrb[15].mxu1  ;;  %16146 = vmatpush3.bf16.msra.mxu0 %v20234_v63 }
 0x3d9   : > { %18455 = vmatprep.subr.msk.bf16.mxu0 %vm1181_vm0, %v20274_v54 }
 0x3da   : > { %v3874_v8 = vshll.u32 %v20241_v61, 16  ;;  %v3878_v28 = vshrl.u32 %v20241_v61, 16 }
 0x3dc   : > { %v3876_v3 = vrot.slane %v3874_v8, 1 }
 0x3dd   : > { %v3729_v10 = vpop.f32.mrb[16].mxu1 }
 0x3de   : > { %v16065_v14 = vpop.f32.mrb[17].mxu1  ;;  %v20247_v0 = vsel %vm3849_vm7, %v3872_v12, %v3876_v3  ;;  %v3880_v29 = vor.u32 %v3878_v28, %v3876_v3 }
 0x3df   : > { %v3732_v11 = vpop.f32.mrb[18].mxu1  ;;  %16121 = vmatprep.mubr.msk.bf16.mxu0 %vm3966_vm8, %v20247_v0 }
 0x3e0   : > { %v20251_v19 = vpack.c.bf16 %v3732_v11, %v3729_v10  ;;  %v16066_v24 = vpop.f32.mrb[19].mxu1 }
 0x3e2   : > { %v3882_v17 = vshll.u32 %v20251_v19, 16  ;;  %v3886_v30 = vshrl.u32 %v20251_v19, 16 }
 0x3e4   : > { %v3884_v18 = vrot.slane %v3882_v17, 1 }
 0x3e5   : > { %v3737_v15 = vpop.f32.mrb[20].mxu1 }
 0x3e6   : > { %v16069_v31 = vpop.f32.mrb[21].mxu1  ;;  %v20256_v13 = vsel %vm3849_vm7, %v3880_v29, %v3884_v18  ;;  %v3888_v38 = vor.u32 %v3886_v30, %v3884_v18 }
 0x3e7   : > { %v3740_v39 = vpop.f32.mrb[22].mxu1  ;;  %16122 = vmatmul.mubr.msk.bf16.gmra.mrb[116].mxu0 %vm3966_vm8, %v20256_v13 }
 0x3e8   : > { %v20260_v34 = vpack.c.bf16 %v3740_v39, %v3737_v15  ;;  %v16070_v49 = vpop.f32.mrb[23].mxu1 }
 0x3ea   : > { %v3890_v50 = vshll.u32 %v20260_v34, 16  ;;  %v3894_v27 = vshrl.u32 %v20260_v34, 16 }
 0x3ec   : > { %v3892_v9 = vrot.slane %v3890_v50, 1 }
 0x3ed   : > { %v3745_v35 = vpop.f32.mrb[24].mxu1 }
 0x3ee   : > { %v16073_v47 = vpop.f32.mrb[25].mxu1  ;;  %v20265_v57 = vsel %vm3849_vm7, %v3888_v38, %v3892_v9  ;;  %v3896_v56 = vor.u32 %v3894_v27, %v3892_v9 }
 0x3ef   : > { %v3748_v37 = vpop.f32.mrb[26].mxu1  ;;  %16125 = vmatprep.mubr.msk.bf16.mxu0 %vm3966_vm8, %v20265_v57 }
 0x3f0   : > { %v20269_v40 = vpack.c.bf16 %v3748_v37, %v3745_v35  ;;  %v16074_v46 = vpop.f32.mrb[27].mxu1 }
 0x3f2   : > { %v3898_v48 = vshll.u32 %v20269_v40, 16  ;;  %v3902_v5 = vshrl.u32 %v20269_v40, 16 }
 0x3f4   : > { %v3900_v22 = vrot.slane %v3898_v48, 1 }
 0x3f5   : > { %v3753_v16 = vpop.f32.mrb[28].mxu1 }
 0x3f6   : > { %v16077_v62 = vpop.f32.mrb[29].mxu1  ;;  %v20281_v1 = vsel %vm3849_vm7, %v3896_v56, %v3900_v22  ;;  %v3904_v42 = vor.u32 %v3902_v5, %v3900_v22 }
 0x3f7   : > { %v3756_v44 = vpop.f32.mrb[30].mxu1  ;;  %16126 = vmatmul.mubr.msk.bf16.gmra.mrb[120].mxu0 %vm3966_vm8, %v20281_v1 }
 0x3f8   : > { %v20285_v58 = vpack.c.bf16 %v3756_v44, %v3753_v16  ;;  %v16078_v53 = vpop.f32.mrb[31].mxu1 }
 0x3fa   : > { %v3906_v26 = vshll.u32 %v20285_v58, 16  ;;  %v3910_v6 = vshrl.u32 %v20285_v58, 16 }
 0x3fc   : > { %v3908_v20 = vrot.slane %v3906_v26, 1 }
 0x3fd   : > { %v3761_v43 = vpop.f32.mrb[32].mxu1 }
 0x3fe   : > { %v16081_v59 = vpop.f32.mrb[33].mxu1  ;;  %v20290_v23 = vsel %vm3849_vm7, %v3904_v42, %v3908_v20  ;;  %v3912_v55 = vor.u32 %v3910_v6, %v3908_v20 }
 0x3ff   : > { %v3764_v25 = vpop.f32.mrb[34].mxu1  ;;  %16129 = vmatprep.mubr.msk.bf16.mxu0 %vm3966_vm8, %v20290_v23 }
 0x400   : > { %v20294_v52 = vpack.c.bf16 %v3764_v25, %v3761_v43  ;;  %v16082_v41 = vpop.f32.mrb[35].mxu1 }
 0x402   : > { %v3914_v7 = vshll.u32 %v20294_v52, 16  ;;  %v3918_v28 = vshrl.u32 %v20294_v52, 16 }
 0x404   : > { %v3916_v8 = vrot.slane %v3914_v7, 1 }
 0x405   : > { %v3769_v12 = vpop.f32.mrb[36].mxu1 }
 0x406   : > { %v16085_v3 = vpop.f32.mrb[37].mxu1  ;;  %v20299_v10 = vsel %vm3849_vm7, %v3912_v55, %v3916_v8  ;;  %v3920_v29 = vor.u32 %v3918_v28, %v3916_v8 }
 0x407   : > { %v3772_v14 = vpop.f32.mrb[38].mxu1  ;;  %16130 = vmatmul.mubr.msk.bf16.gmra.mrb[124].mxu0 %vm3966_vm8, %v20299_v10 }
 0x408   : > { %v20303_v11 = vpack.c.bf16 %v3772_v14, %v3769_v12  ;;  %v16086_v24 = vpop.f32.mrb[39].mxu1 }
 0x40a   : > { %v3922_v17 = vshll.u32 %v20303_v11, 16  ;;  %v3926_v38 = vshrl.u32 %v20303_v11, 16 }
 0x40c   : > { %v3924_v18 = vrot.slane %v3922_v17, 1 }
 0x40d   : > { %v3777_v15 = vpop.f32.mrb[40].mxu1 }
 0x40e   : > { %v16089_v31 = vpop.f32.mrb[41].mxu1  ;;  %v20308_v39 = vsel %vm3849_vm7, %v3920_v29, %v3924_v18  ;;  %v3928_v35 = vor.u32 %v3926_v38, %v3924_v18 }
 0x40f   : > { %v3780_v49 = vpop.f32.mrb[42].mxu1  ;;  %16133 = vmatprep.mubr.msk.bf16.mxu0 %vm3966_vm8, %v20308_v39 }
 0x410   : > { %v20312_v30 = vpack.c.bf16 %v3780_v49, %v3777_v15  ;;  %v16090_v50 = vpop.f32.mrb[43].mxu1 }
 0x412   : > { %v3930_v9 = vshll.u32 %v20312_v30, 16  ;;  %v3934_v16 = vshrl.u32 %v20312_v30, 16 }
 0x414   : > { %v3932_v47 = vrot.slane %v3930_v9, 1 }
 0x415   : > { %v3785_v37 = vpop.f32.mrb[44].mxu1 }
 0x416   : > { %v16093_v46 = vpop.f32.mrb[45].mxu1  ;;  %v20317_v27 = vsel %vm3849_vm7, %v3928_v35, %v3932_v47  ;;  %v3936_v44 = vor.u32 %v3934_v16, %v3932_v47 }
 0x417   : > { %v3788_v48 = vpop.f32.mrb[46].mxu1  ;;  %16134 = vmatmul.mubr.msk.bf16.gmra.mrb[128].mxu0 %vm3966_vm8, %v20317_v27 }
 0x418   : > { %v20321_v56 = vpack.c.bf16 %v3788_v48, %v3785_v37  ;;  %v16094_v22 = vpop.f32.mrb[47].mxu1 }
 0x41a   : > { %v3938_v62 = vshll.u32 %v20321_v56, 16  ;;  %v3942_v25 = vshrl.u32 %v20321_v56, 16 }
 0x41c   : > { %v3940_v53 = vrot.slane %v3938_v62, 1 }
 0x41d   : > { %v3793_v5 = vpop.f32.mrb[48].mxu1 }
 0x41e   : > { %v16097_v26 = vpop.f32.mrb[49].mxu1  ;;  %v20326_v42 = vsel %vm3849_vm7, %v3936_v44, %v3940_v53  ;;  %v3944_v6 = vor.u32 %v3942_v25, %v3940_v53  ;;  %v424_v25 = vld [vmem:[%s24162_s3 + $0xc] sm:$0xf] }
 0x41f   : > { %v3796_v20 = vpop.f32.mrb[50].mxu1  ;;  %16137 = vmatprep.mubr.msk.bf16.mxu0 %vm3966_vm8, %v20326_v42 }
 0x420   : > { %v20330_v43 = vpack.c.bf16 %v3796_v20, %v3793_v5  ;;  %v16098_v59 = vpop.f32.mrb[51].mxu1  ;;  %v20367_v20 = vsel %vm1181_vm0, %v20274_v54, 0 }
 0x422   : > { %v3946_v41 = vshll.u32 %v20330_v43, 16  ;;  %v3950_v28 = vshrl.u32 %v20330_v43, 16 }
 0x424   : > { %v3948_v7 = vrot.slane %v3946_v41, 1 }
 0x425   : > { %v3801_v55 = vpop.f32.mrb[52].mxu1 }
 0x426   : > { %v16101_v8 = vpop.f32.mrb[53].mxu1  ;;  %v20335_v12 = vsel %vm3849_vm7, %v3944_v6, %v3948_v7  ;;  %v3952_v29 = vor.u32 %v3950_v28, %v3948_v7 }
 0x427   : > { %v3804_v3 = vpop.f32.mrb[54].mxu1  ;;  %16138 = vmatmul.mubr.msk.bf16.gmra.mrb[132].mxu0 %vm3966_vm8, %v20335_v12 }
 0x428   : > { %v20339_v14 = vpack.c.bf16 %v3804_v3, %v3801_v55  ;;  %v16102_v24 = vpop.f32.mrb[55].mxu1 }
 0x42a   : > { %v3954_v17 = vshll.u32 %v20339_v14, 16  ;;  %v3958_v35 = vshrl.u32 %v20339_v14, 16 }
 0x42c   : > { %v3956_v18 = vrot.slane %v3954_v17, 1 }
 0x42d   : > { %v3809_v15 = vpop.f32.mrb[56].mxu1 }
 0x42e   : > { %v16105_v31 = vpop.f32.mrb[57].mxu1  ;;  %v20344_v49 = vsel %vm3849_vm7, %v3952_v29, %v3956_v18  ;;  %v3960_v37 = vor.u32 %v3958_v35, %v3956_v18  ;;  %v4354_v35 = vrot.slane %v20241_v61, 1 }
 0x42f   : > { %v3812_v50 = vpop.f32.mrb[58].mxu1  ;;  %16141 = vmatprep.mubr.msk.bf16.mxu0 %vm3966_vm8, %v20344_v49  ;;  %v4349_v31 = vrot.slane %v20220_v45, 1 }
 0x430   : > { %v20348_v38 = vpack.c.bf16 %v3812_v50, %v3809_v15  ;;  %v16106_v9 = vpop.f32.mrb[59].mxu1  ;;  %v4350_v15 = vrot.slane %v20223_v33, 1 }
 0x431   : > { %v4352_v9 = vrot.slane %v20229_v2, 1 }
 0x432   : > { %v3962_v47 = vshll.u32 %v20348_v38, 16  ;;  %v4351_v50 = vsel %vm1893_vm3, %v4349_v31, %v4350_v15  ;;  %v4372_v31 = vrot.slane %v20330_v43, 1 }
 0x434   : > { %v20352_v46 = vrot.slane %v3962_v47, 1  ;;  %v20420_v47 = vsel %vm1181_vm0, %v424_v25, 0 }
 0x435   : > { %v3817_v48 = vpop.f32.mrb[60].mxu1 }
 0x436   : > { %v16109_v22 = vpop.f32.mrb[61].mxu1  ;;  %v20356_v16 = vsel %vm3849_vm7, %v3960_v37, %v20352_v46  ;;  %v20423_v37 = vsel %vm1893_vm3, %v4350_v15, %v4352_v9 }
 0x437   : > { %v3820_v62 = vpop.f32.mrb[62].mxu1  ;;  %16142 = vmatmul.mubr.msk.bf16.gmra.mrb[136].mxu0 %vm3966_vm8, %v20356_v16  ;;  %v4356_v22 = vrot.slane %v20251_v19, 1 }
 0x438   : > { %v20360_v44 = vpack.c.bf16 %v3820_v62, %v3817_v48  ;;  %v16110_v53 = vpop.f32.mrb[63].mxu1  ;;  %16147 = vmatprep.mubr.msk.bf16.mxu0 %vm3966_vm8, %v20220_v45  ;;  %v425_v45 = vld [vmem:[%s24162_s3 + $0x10] sm:$0xf]  ;;  %v20431_v48 = vsel %vm1893_vm3, %v4352_v9, %v4354_v35  ;;  %v4358_v62 = vrot.slane %v20260_v34, 1 }
 0x439   : > { %v20440_v53 = vsel %vm1893_vm3, %v4354_v35, %v4356_v22 }
 0x43a   : > { %v4778_v5 = vshll.u32 %v20360_v44, 16  ;;  %v4962_v3 = vrot.slane %v20360_v44, 1  ;;  %v5321_v24 = vshrl.u32 %v20360_v44, 16 }
 0x43c   : > { %v20377_v55 = vrot.slane %v4778_v5, 1  ;;  %v20445_v5 = vsel %vm1893_vm3, %v4356_v22, %v4358_v62  ;;  %v4376_v22 = vrot.slane %v20348_v38, 1 }
 0x43d   : > { %v3825_v26 = vpop.f32.mrb[64].mxu1 }
 0x43e   : > { %v16113_v59 = vpop.f32.mrb[65].mxu1  ;;  %v5323_v17 = vor.u32 %v5321_v24, %v20377_v55  ;;  %v4368_v24 = vrot.slane %v20312_v30, 1 }
 0x43f   : > { %v3828_v41 = vpop.f32.mrb[66].mxu1  ;;  %16148 = vmatmul.mubr.msk.bf16.vlgmr.msra.gmra.mrb[112].mxu0 %vm3966_vm8, %v20223_v33  ;;  %v4362_v59 = vrot.slane %v20285_v58, 1 }
 0x440   : > { %v3848_v6 = vpack.c.bf16 %v3828_v41, %v3825_v26  ;;  %v16114_v7 = vpop.f32.mrb[67].mxu1  ;;  %16151 = vmatprep.mubr.msk.bf16.mxu0 %vm3966_vm8, %v20229_v2  ;;  %16176 = vmatpush3.bf16.msra.mxu0 %v20367_v20  ;;  %v4360_v26 = vrot.slane %v20269_v40, 1 }
 0x441   : > { %18456 = vmatprep.subr.msk.bf16.mxu0 %vm1181_vm0, %v424_v25  ;;  %v4366_v7 = vrot.slane %v20303_v11, 1 }
 0x442   : > { %v5325_v54 = vshll.u32 %v3848_v6, 16  ;;  %v5509_v8 = vrot.slane %v3848_v6, 1  ;;  %v20452_v25 = vsel %vm1893_vm3, %v4358_v62, %v4360_v26  ;;  %v20457_v41 = vsel %vm1893_vm3, %v4360_v26, %v4362_v59 }
 0x443   : > { %v4364_v6 = vrot.slane %v20294_v52, 1  ;;  %v20506_v26 = vsel %vm1181_vm0, %v425_v45, 0 }
 0x444   : > { %v5327_v28 = vrot.slane %v5325_v54, 1  ;;  %v20386_v29 = vsel %vm1893_vm3, %v4962_v3, %v5509_v8 }
 0x445   : > { %v20464_v54 = vsel %vm1893_vm3, %v4362_v59, %v4364_v6  ;;  %v20469_v8 = vsel %vm1893_vm3, %v4364_v6, %v4366_v7  ;;  %v426_v59 = vld [vmem:[%s24162_s3 + $0x14] sm:$0xf] }
 0x446   : > { %v20389_v18 = vsel %vm3849_vm7, %v5323_v17, %v5327_v28  ;;  %v4370_v28 = vrot.slane %v20321_v56, 1  ;;  %v20476_v17 = vsel %vm1893_vm3, %v4366_v7, %v4368_v24 }
 0x447   : > { %16152 = vmatmul.mubr.msk.bf16.gmra.mrb[116].mxu0 %vm3966_vm8, %v20241_v61 }
 0x448   : > { %16155 = vmatprep.mubr.msk.bf16.mxu0 %vm3966_vm8, %v20251_v19  ;;  %v20481_v15 = vsel %vm1893_vm3, %v4368_v24, %v4370_v28  ;;  %v20488_v9 = vsel %vm1893_vm3, %v4370_v28, %v4372_v31  ;;  %v428_v28 = vld [vmem:[%s24162_s3 + $0x1c] sm:$0xf] }
 0x44f   : > { %16156 = vmatmul.mubr.msk.bf16.gmra.mrb[120].mxu0 %vm3966_vm8, %v20260_v34 }
 0x450   : > { %16159 = vmatprep.mubr.msk.bf16.mxu0 %vm3966_vm8, %v20269_v40 }
 0x457   : > { %16160 = vmatmul.mubr.msk.bf16.gmra.mrb[124].mxu0 %vm3966_vm8, %v20285_v58 }
 0x458   : > { %16163 = vmatprep.mubr.msk.bf16.mxu0 %vm3966_vm8, %v20294_v52 }
 0x45f   : > { %16164 = vmatmul.mubr.msk.bf16.gmra.mrb[128].mxu0 %vm3966_vm8, %v20303_v11 }
 0x460   : > { %16167 = vmatprep.mubr.msk.bf16.mxu0 %vm3966_vm8, %v20312_v30 }
 0x467   : > { %16168 = vmatmul.mubr.msk.bf16.gmra.mrb[132].mxu0 %vm3966_vm8, %v20321_v56 }
 0x468   : > { %16171 = vmatprep.mubr.msk.bf16.mxu0 %vm3966_vm8, %v20330_v43 }
 0x46f   : > { %16172 = vmatmul.mubr.msk.bf16.gmra.mrb[136].mxu0 %vm3966_vm8, %v20339_v14 }
 0x470   : > { %16177 = vmatprep.mubr.msk.bf16.mxu0 %vm3966_vm8, %v4351_v50  ;;  %v4374_v50 = vrot.slane %v20339_v14, 1 }
 0x472   : > { %v20493_v35 = vsel %vm1893_vm3, %v4372_v31, %v4374_v50  ;;  %v20499_v62 = vsel %vm1893_vm3, %v4374_v50, %v4376_v22 }
 0x477   : > { %16178 = vmatmul.mubr.msk.bf16.vlgmr.msra.gmra.mrb[112].mxu0 %vm3966_vm8, %v20423_v37 }
 0x478   : > { %16181 = vmatprep.mubr.msk.bf16.mxu0 %vm3966_vm8, %v20431_v48  ;;  %16206 = vmatpush3.bf16.msra.mxu0 %v20420_v47 }
 0x479   : > { %18457 = vmatprep.subr.msk.bf16.mxu0 %vm1181_vm0, %v425_v45  ;;  %v427_v45 = vld [vmem:[%s24162_s3 + $0x18] sm:$0xf] }
 0x47a   : > { %v20581_v24 = vsel %vm1181_vm0, %v427_v45, 0 }
 0x47f   : > { %16182 = vmatmul.mubr.msk.bf16.gmra.mrb[116].mxu0 %vm3966_vm8, %v20440_v53 }
 0x480   : > { %16185 = vmatprep.mubr.msk.bf16.mxu0 %vm3966_vm8, %v20445_v5 }
 0x487   : > { %16186 = vmatmul.mubr.msk.bf16.gmra.mrb[120].mxu0 %vm3966_vm8, %v20452_v25 }
 0x488   : > { %16189 = vmatprep.mubr.msk.bf16.mxu0 %vm3966_vm8, %v20457_v41 }
 0x48f   : > { %16190 = vmatmul.mubr.msk.bf16.gmra.mrb[124].mxu0 %vm3966_vm8, %v20464_v54 }
 0x490   : > { %16193 = vmatprep.mubr.msk.bf16.mxu0 %vm3966_vm8, %v20469_v8 }
 0x497   : > { %16194 = vmatmul.mubr.msk.bf16.gmra.mrb[128].mxu0 %vm3966_vm8, %v20476_v17 }
 0x498   : > { %16197 = vmatprep.mubr.msk.bf16.mxu0 %vm3966_vm8, %v20481_v15 }
 0x49f   : > { %16198 = vmatmul.mubr.msk.bf16.gmra.mrb[132].mxu0 %vm3966_vm8, %v20488_v9 }
 0x4a0   : > { %16201 = vmatprep.mubr.msk.bf16.mxu0 %vm3966_vm8, %v20493_v35 }
 0x4a7   : > { %16202 = vmatmul.mubr.msk.bf16.gmra.mrb[136].mxu0 %vm3966_vm8, %v20499_v62 }
 0x4a8   : > { %16207 = vmatprep.mubr.msk.bf16.mxu0 %vm3966_vm8, %v20223_v33  ;;  %v20542_v33 = vsel %vm1181_vm0, %v426_v59, 0 }
 0x4af   : > { %16208 = vmatmul.mubr.msk.bf16.vlgmr.msra.gmra.mrb[112].mxu0 %vm3966_vm8, %v20229_v2 }
 0x4b0   : > { %16211 = vmatprep.mubr.msk.bf16.mxu0 %vm3966_vm8, %v20241_v61  ;;  %16236 = vmatpush3.bf16.msra.mxu0 %v20506_v26 }
 0x4b1   : > { %18458 = vmatprep.subr.msk.bf16.mxu0 %vm1181_vm0, %v426_v59 }
 0x4b7   : > { %16212 = vmatmul.mubr.msk.bf16.gmra.mrb[116].mxu0 %vm3966_vm8, %v20251_v19 }
 0x4b8   : > { %16215 = vmatprep.mubr.msk.bf16.mxu0 %vm3966_vm8, %v20260_v34 }
 0x4bf   : > { %16216 = vmatmul.mubr.msk.bf16.gmra.mrb[120].mxu0 %vm3966_vm8, %v20269_v40 }
 0x4c0   : > { %16219 = vmatprep.mubr.msk.bf16.mxu0 %vm3966_vm8, %v20285_v58 }
 0x4c7   : > { %16220 = vmatmul.mubr.msk.bf16.gmra.mrb[124].mxu0 %vm3966_vm8, %v20294_v52 }
 0x4c8   : > { %16223 = vmatprep.mubr.msk.bf16.mxu0 %vm3966_vm8, %v20303_v11 }
 0x4cf   : > { %16224 = vmatmul.mubr.msk.bf16.gmra.mrb[128].mxu0 %vm3966_vm8, %v20312_v30 }
 0x4d0   : > { %16227 = vmatprep.mubr.msk.bf16.mxu0 %vm3966_vm8, %v20321_v56 }
 0x4d7   : > { %16228 = vmatmul.mubr.msk.bf16.gmra.mrb[132].mxu0 %vm3966_vm8, %v20330_v43 }
 0x4d8   : > { %16231 = vmatprep.mubr.msk.bf16.mxu0 %vm3966_vm8, %v20339_v14 }
 0x4df   : > { %16232 = vmatmul.mubr.msk.bf16.gmra.mrb[136].mxu0 %vm3966_vm8, %v20348_v38 }
 0x4e0   : > { %16237 = vmatprep.mubr.msk.bf16.mxu0 %vm3966_vm8, %v20237_v51  ;;  %v4774_v51 = vshrl.u32 %v20348_v38, 16 }
 0x4e2   : > { %v4776_v6 = vor.u32 %v4774_v51, %v20352_v46  ;;  %v4963_v46 = vsel %vm1893_vm3, %v4376_v22, %v4962_v3 }
 0x4e4   : > { %v4781_v7 = vsel %vm3849_vm7, %v4776_v6, %v20377_v55  ;;  %v20619_v55 = vsel %vm1181_vm0, %v428_v28, 0 }
 0x4e7   : > { %16238 = vmatmul.mubr.msk.bf16.vlgmr.msra.gmra.mrb[112].mxu0 %vm3966_vm8, %v20247_v0 }
 0x4e8   : > { %16241 = vmatprep.mubr.msk.bf16.mxu0 %vm3966_vm8, %v20256_v13  ;;  %16266 = vmatpush3.bf16.msra.mxu0 %v20542_v33 }
 0x4e9   : > { %18459 = vmatprep.subr.msk.bf16.mxu0 %vm1181_vm0, %v427_v45 }
 0x4ef   : > { %16242 = vmatmul.mubr.msk.bf16.gmra.mrb[116].mxu0 %vm3966_vm8, %v20265_v57 }
 0x4f0   : > { %16245 = vmatprep.mubr.msk.bf16.mxu0 %vm3966_vm8, %v20281_v1 }
 0x4f7   : > { %16246 = vmatmul.mubr.msk.bf16.gmra.mrb[120].mxu0 %vm3966_vm8, %v20290_v23 }
 0x4f8   : > { %16249 = vmatprep.mubr.msk.bf16.mxu0 %vm3966_vm8, %v20299_v10 }
 0x4ff   : > { %16250 = vmatmul.mubr.msk.bf16.gmra.mrb[124].mxu0 %vm3966_vm8, %v20308_v39 }
 0x500   : > { %16253 = vmatprep.mubr.msk.bf16.mxu0 %vm3966_vm8, %v20317_v27 }
 0x507   : > { %16254 = vmatmul.mubr.msk.bf16.gmra.mrb[128].mxu0 %vm3966_vm8, %v20326_v42 }
 0x508   : > { %16257 = vmatprep.mubr.msk.bf16.mxu0 %vm3966_vm8, %v20335_v12 }
 0x50f   : > { %16258 = vmatmul.mubr.msk.bf16.gmra.mrb[132].mxu0 %vm3966_vm8, %v20344_v49 }
 0x510   : > { %16261 = vmatprep.mubr.msk.bf16.mxu0 %vm3966_vm8, %v20356_v16 }
 0x517   : > { %16262 = vmatmul.mubr.msk.bf16.gmra.mrb[136].mxu0 %vm3966_vm8, %v4781_v7 }
 0x518   : > { %16267 = vmatprep.mubr.msk.bf16.mxu0 %vm3966_vm8, %v20423_v37  ;;  %v429_v37 = vld [vmem:[%s24162_s3 + $0x20] sm:$0xf] }
 0x51f   : > { %16268 = vmatmul.mubr.msk.bf16.vlgmr.msra.gmra.mrb[112].mxu0 %vm3966_vm8, %v20431_v48 }
 0x520   : > { %16271 = vmatprep.mubr.msk.bf16.mxu0 %vm3966_vm8, %v20440_v53  ;;  %16296 = vmatpush3.bf16.msra.mxu0 %v20581_v24 }
 0x521   : > { %18460 = vmatprep.subr.msk.bf16.mxu0 %vm1181_vm0, %v428_v28 }
 0x527   : > { %16272 = vmatmul.mubr.msk.bf16.gmra.mrb[116].mxu0 %vm3966_vm8, %v20445_v5 }
 0x528   : > { %16275 = vmatprep.mubr.msk.bf16.mxu0 %vm3966_vm8, %v20452_v25 }
 0x52f   : > { %16276 = vmatmul.mubr.msk.bf16.gmra.mrb[120].mxu0 %vm3966_vm8, %v20457_v41 }
 0x530   : > { %16279 = vmatprep.mubr.msk.bf16.mxu0 %vm3966_vm8, %v20464_v54 }
 0x537   : > { %16280 = vmatmul.mubr.msk.bf16.gmra.mrb[124].mxu0 %vm3966_vm8, %v20469_v8 }
 0x538   : > { %16283 = vmatprep.mubr.msk.bf16.mxu0 %vm3966_vm8, %v20476_v17 }
 0x53f   : > { %16284 = vmatmul.mubr.msk.bf16.gmra.mrb[128].mxu0 %vm3966_vm8, %v20481_v15 }
 0x540   : > { %16287 = vmatprep.mubr.msk.bf16.mxu0 %vm3966_vm8, %v20488_v9 }
 0x547   : > { %16288 = vmatmul.mubr.msk.bf16.gmra.mrb[132].mxu0 %vm3966_vm8, %v20493_v35 }
 0x548   : > { %16291 = vmatprep.mubr.msk.bf16.mxu0 %vm3966_vm8, %v20499_v62 }
 0x54f   : > { %16292 = vmatmul.mubr.msk.bf16.gmra.mrb[136].mxu0 %vm3966_vm8, %v4963_v46 }
 0x550   : > { %16297 = vmatprep.mubr.msk.bf16.mxu0 %vm3966_vm8, %v20229_v2  ;;  %v20655_v2 = vsel %vm1181_vm0, %v429_v37, 0 }
 0x557   : > { %16298 = vmatmul.mubr.msk.bf16.vlgmr.msra.gmra.mrb[112].mxu0 %vm3966_vm8, %v20241_v61  ;;  %v18744_v61 = vld [vmem:[%s24169_s10 + $0x4] ss:$8 sps:$4 sm:$0xff]  }
 0x558   : > { %16301 = vmatprep.mubr.msk.bf16.mxu0 %vm3966_vm8, %v20251_v19  ;;  %16326 = vmatpush3.bf16.msra.mxu0 %v20619_v55 }
 0x559   : > { %18461 = vmatprep.subr.msk.bf16.mxu0 %vm1181_vm0, %v429_v37  ;;  %14758 = vmatprep.mubr.msk.bf16.mxu1 %vm6020_vm9, %v18744_v61 }
 0x55f   : > { %16302 = vmatmul.mubr.msk.bf16.gmra.mrb[116].mxu0 %vm3966_vm8, %v20260_v34 }
 0x560   : > { %16305 = vmatprep.mubr.msk.bf16.mxu0 %vm3966_vm8, %v20269_v40 }
 0x567   : > { %16306 = vmatmul.mubr.msk.bf16.gmra.mrb[120].mxu0 %vm3966_vm8, %v20285_v58 }
 0x568   : > { %16309 = vmatprep.mubr.msk.bf16.mxu0 %vm3966_vm8, %v20294_v52 }
 0x56f   : > { %16310 = vmatmul.mubr.msk.bf16.gmra.mrb[124].mxu0 %vm3966_vm8, %v20303_v11 }
 0x570   : > { %16313 = vmatprep.mubr.msk.bf16.mxu0 %vm3966_vm8, %v20312_v30 }
 0x577   : > { %16314 = vmatmul.mubr.msk.bf16.gmra.mrb[128].mxu0 %vm3966_vm8, %v20321_v56 }
 0x578   : > { %16317 = vmatprep.mubr.msk.bf16.mxu0 %vm3966_vm8, %v20330_v43 }
 0x57f   : > { %16318 = vmatmul.mubr.msk.bf16.gmra.mrb[132].mxu0 %vm3966_vm8, %v20339_v14 }
 0x580   : > { %16321 = vmatprep.mubr.msk.bf16.mxu0 %vm3966_vm8, %v20348_v38 }
 0x587   : > { %16322 = vmatmul.mubr.msk.bf16.gmra.mrb[136].mxu0 %vm3966_vm8, %v20360_v44 }
 0x588   : > { %16327 = vmatprep.mubr.msk.bf16.mxu0 %vm3966_vm8, %v20247_v0  ;;  %v20720_v0 = vld [vmem:[%s24163_s4] ss:$0 sm:$0xff] }
 0x58f   : > { %16328 = vmatmul.mubr.msk.bf16.vlgmr.msra.gmra.mrb[112].mxu0 %vm3966_vm8, %v20256_v13 }
 0x590   : > { %16331 = vmatprep.mubr.msk.bf16.mxu0 %vm3966_vm8, %v20265_v57  ;;  %16356 = vmatpush3.bf16.msra.mxu0 %v20655_v2 }
 0x591   : > { %16415 = vmatprep.subr.bf16.mxu0 %v24174_v60 }
 0x597   : > { %16332 = vmatmul.mubr.msk.bf16.gmra.mrb[116].mxu0 %vm3966_vm8, %v20281_v1 }
 0x598   : > { %16335 = vmatprep.mubr.msk.bf16.mxu0 %vm3966_vm8, %v20290_v23 }
 0x59f   : > { %16336 = vmatmul.mubr.msk.bf16.gmra.mrb[120].mxu0 %vm3966_vm8, %v20299_v10 }
 0x5a0   : > { %16339 = vmatprep.mubr.msk.bf16.mxu0 %vm3966_vm8, %v20308_v39 }
 0x5a7   : > { %16340 = vmatmul.mubr.msk.bf16.gmra.mrb[124].mxu0 %vm3966_vm8, %v20317_v27 }
 0x5a8   : > { %16343 = vmatprep.mubr.msk.bf16.mxu0 %vm3966_vm8, %v20326_v42 }
 0x5af   : > { %16344 = vmatmul.mubr.msk.bf16.gmra.mrb[128].mxu0 %vm3966_vm8, %v20335_v12 }
 0x5b0   : > { %16347 = vmatprep.mubr.msk.bf16.mxu0 %vm3966_vm8, %v20344_v49 }
 0x5b7   : > { %16348 = vmatmul.mubr.msk.bf16.gmra.mrb[132].mxu0 %vm3966_vm8, %v20356_v16 }
 0x5b8   : > { %16351 = vmatprep.mubr.msk.bf16.mxu0 %vm3966_vm8, %v4781_v7 }
 0x5bf   : > { %16352 = vmatmul.mubr.msk.bf16.gmra.mrb[136].mxu0 %vm3966_vm8, %v20389_v18 }
 0x5c0   : > { %16357 = vmatprep.mubr.msk.bf16.mxu0 %vm3966_vm8, %v20431_v48 }
 0x5c7   : > { %16358 = vmatmul.mubr.msk.bf16.vlgmr.msra.gmra.mrb[112].mxu0 %vm3966_vm8, %v20440_v53 }
 0x5c8   : > { %16361 = vmatprep.mubr.msk.bf16.mxu0 %vm3966_vm8, %v20445_v5 }
 0x5cf   : > { %16362 = vmatmul.mubr.msk.bf16.gmra.mrb[116].mxu0 %vm3966_vm8, %v20452_v25 }
 0x5d0   : > { %16365 = vmatprep.mubr.msk.bf16.mxu0 %vm3966_vm8, %v20457_v41 }
 0x5d7   : > { %16366 = vmatmul.mubr.msk.bf16.gmra.mrb[120].mxu0 %vm3966_vm8, %v20464_v54 }
 0x5d8   : > { %16369 = vmatprep.mubr.msk.bf16.mxu0 %vm3966_vm8, %v20469_v8 }
 0x5df   : > { %16370 = vmatmul.mubr.msk.bf16.gmra.mrb[124].mxu0 %vm3966_vm8, %v20476_v17 }
 0x5e0   : > { %16373 = vmatprep.mubr.msk.bf16.mxu0 %vm3966_vm8, %v20481_v15 }
 0x5e7   : > { %16374 = vmatmul.mubr.msk.bf16.gmra.mrb[128].mxu0 %vm3966_vm8, %v20488_v9 }
 0x5e8   : > { %16377 = vmatprep.mubr.msk.bf16.mxu0 %vm3966_vm8, %v20493_v35 }
 0x5ef   : > { %16378 = vmatmul.mubr.msk.bf16.gmra.mrb[132].mxu0 %vm3966_vm8, %v20499_v62 }
 0x5f0   : > { %16381 = vmatprep.mubr.msk.bf16.mxu0 %vm3966_vm8, %v4963_v46 }
 0x5f7   : > { %16382 = vmatmul.mubr.msk.bf16.gmra.mrb[136].mxu0 %vm3966_vm8, %v20386_v29 }
 0x5f8   : > { %16417 = vmatprep.mubr.msk.bf16.mxu0 %vm19052_vm5, %v24174_v60 }
 0x69a   : > { %v16359_v19 = vpop.f32.mrb[112].mxu0 }
 0x69b   : > { %v5698_v13 = vadd.f32 %v16359_v19, %v20720_v0  ;;  %v5551_v34 = vpop.f32.mrb[113].mxu0 }
 0x69c   : > { %v5696_v57 = vadd.f32 %v20720_v0, %v5551_v34  ;;  %v16360_v40 = vpop.f32.mrb[114].mxu0 }
 0x69d   : > { %v5726_v1 = vmax.f32 %v5698_v13, 0.0  ;;  %v5699_v58 = vadd.f32 %v16360_v40, %v20720_v0  ;;  %v5554_v23 = vpop.f32.mrb[115].mxu0 }
 0x69e   : > { %v5724_v52 = vmax.f32 %v5696_v57, 0.0  ;;  %v5697_v10 = vadd.f32 %v20720_v0, %v5554_v23 }
 0x69f   : > { %v5727_v11 = vmax.f32 %v5699_v58, 0.0  ;;  %v5783_v30 = vrot.slane %v5726_v1, 1 }
 0x6a0   : > { %v5725_v39 = vmax.f32 %v5697_v10, 0.0  ;;  %v5780_v56 = vrot.slane %v5724_v52, 1 }
 0x6a1   : > { %v5785_v27 = vrot.slane %v5727_v11, 1 }
 0x6a2   : > { %v5781_v42 = vrot.slane %v5725_v39, 1  ;;  %v16363_v43 = vpop.f32.mrb[116].mxu0 }
 0x6a3   : > { %v5786_v12 = vsel %vm1893_vm3, %v5783_v30, %v5785_v27  ;;  %v5702_v14 = vadd.f32 %v16363_v43, %v20720_v0  ;;  %v5567_v49 = vpop.f32.mrb[117].mxu0 }
 0x6a4   : > { %v5782_v38 = vsel %vm1893_vm3, %v5780_v56, %v5781_v42  ;;  %v5784_v16 = vsel %vm1893_vm3, %v5781_v42, %v5783_v30  ;;  %v5700_v44 = vadd.f32 %v20720_v0, %v5567_v49  ;;  %v16364_v3 = vpop.f32.mrb[118].mxu0  ;;  %v5865_v29 = vmax.f32 %v5726_v1, %v5786_v12 }
 0x6a5   : > { %v5864_v18 = vmax.f32 %v5725_v39, %v5784_v16  ;;  %v5730_v48 = vmax.f32 %v5702_v14, 0.0  ;;  %v5703_v53 = vadd.f32 %v16364_v3, %v20720_v0  ;;  %v5570_v5 = vpop.f32.mrb[119].mxu0  ;;  %v5863_v25 = vmax.f32 %v5724_v52, %v5782_v38 }
 0x6a6   : > { %v5728_v41 = vmax.f32 %v5700_v44, 0.0  ;;  %v5701_v54 = vadd.f32 %v20720_v0, %v5570_v5 }
 0x6a7   : > { %v5731_v8 = vmax.f32 %v5703_v53, 0.0  ;;  %v5891_v17 = vmax.f32 %v5863_v25, %v5865_v29  ;;  %v5791_v50 = vrot.slane %v5730_v48, 1 }
 0x6a8   : > { %v5787_v15 = vrot.slane %v5728_v41, 1  ;;  %v5729_v31 = vmax.f32 %v5701_v54, 0.0 }
 0x6a9   : > { %v5793_v9 = vrot.slane %v5731_v8, 1 }
 0x6aa   : > { %v5788_v35 = vsel %vm1893_vm3, %v5785_v27, %v5787_v15  ;;  %v5789_v22 = vrot.slane %v5729_v31, 1  ;;  %v16367_v62 = vpop.f32.mrb[120].mxu0 }
 0x6ab   : > { %v5794_v59 = vsel %vm1893_vm3, %v5791_v50, %v5793_v9  ;;  %v5866_v45 = vmax.f32 %v5727_v11, %v5788_v35  ;;  %v5706_v51 = vadd.f32 %v16367_v62, %v20720_v0  ;;  %v5583_v6 = vpop.f32.mrb[121].mxu0 }
 0x6ac   : > { %v5790_v7 = vsel %vm1893_vm3, %v5787_v15, %v5789_v22  ;;  %v5792_v28 = vsel %vm1893_vm3, %v5789_v22, %v5791_v50  ;;  %v5704_v46 = vadd.f32 %v20720_v0, %v5583_v6  ;;  %v16368_v37 = vpop.f32.mrb[122].mxu0  ;;  %v5869_v61 = vmax.f32 %v5730_v48, %v5794_v59 }
 0x6ad   : > { %v5868_v19 = vmax.f32 %v5729_v31, %v5792_v28  ;;  %v5734_v13 = vmax.f32 %v5706_v51, 0.0  ;;  %v5707_v34 = vadd.f32 %v16368_v37, %v20720_v0  ;;  %v5586_v57 = vpop.f32.mrb[123].mxu0  ;;  %v5892_v40 = vmax.f32 %v5864_v18, %v5866_v45 }
 0x6ae   : > { %v5732_v1 = vmax.f32 %v5704_v46, 0.0  ;;  %v5705_v58 = vadd.f32 %v20720_v0, %v5586_v57  ;;  %v5867_v23 = vmax.f32 %v5728_v41, %v5790_v7 }
 0x6af   : > { %v5894_v52 = vmax.f32 %v5866_v45, %v5868_v19  ;;  %v5735_v10 = vmax.f32 %v5707_v34, 0.0  ;;  %v5917_v11 = vpack.c.bf16 %v5892_v40, %v5891_v17  ;;  %v5799_v42 = vrot.slane %v5734_v13, 1 }
 0x6b0   : > { %v5795_v39 = vrot.slane %v5732_v1, 1  ;;  %v5733_v30 = vmax.f32 %v5705_v58, 0.0  ;;  %v5893_v27 = vmax.f32 %v5865_v29, %v5867_v23  ;;  %v5895_v56 = vmax.f32 %v5867_v23, %v5869_v61 }
 0x6b1   : > { %v5801_v43 = vrot.slane %v5735_v10, 1  ;;  %6055 = vmatpush1.bf16.msra.mxu1 %v5917_v11 }
 0x6b2   : > { %v5796_v12 = vsel %vm1893_vm3, %v5793_v9, %v5795_v39  ;;  %v5797_v14 = vrot.slane %v5733_v30, 1  ;;  %v16371_v49 = vpop.f32.mrb[124].mxu0  ;;  %6056 = vmatprep.subr.bf16.mxu1 %v24172_v36  ;;  %v5918_v38 = vpack.c.bf16 %v5894_v52, %v5893_v27 }
 0x6b3   : > { %v5802_v16 = vsel %vm1893_vm3, %v5799_v42, %v5801_v43  ;;  %v5870_v44 = vmax.f32 %v5731_v8, %v5796_v12  ;;  %v5710_v3 = vadd.f32 %v16371_v49, %v20720_v0  ;;  %v5599_v18 = vpop.f32.mrb[125].mxu0 }
 0x6b4   : > { %v5798_v48 = vsel %vm1893_vm3, %v5795_v39, %v5797_v14  ;;  %v5800_v29 = vsel %vm1893_vm3, %v5797_v14, %v5799_v42  ;;  %v5708_v53 = vadd.f32 %v20720_v0, %v5599_v18  ;;  %v16372_v5 = vpop.f32.mrb[126].mxu0  ;;  %v5873_v25 = vmax.f32 %v5734_v13, %v5802_v16 }
 0x6b5   : > { %v5872_v41 = vmax.f32 %v5733_v30, %v5800_v29  ;;  %v5738_v54 = vmax.f32 %v5710_v3, 0.0  ;;  %v5711_v17 = vadd.f32 %v16372_v5, %v20720_v0  ;;  %v5602_v15 = vpop.f32.mrb[127].mxu0  ;;  %6057 = vmatpush1.bf16.msra.mxu1 %v5918_v38  ;;  %v5896_v31 = vmax.f32 %v5868_v19, %v5870_v44 }
 0x6b6   : > { %v5736_v50 = vmax.f32 %v5708_v53, 0.0  ;;  %v5709_v8 = vadd.f32 %v20720_v0, %v5602_v15  ;;  %6058 = vmatprep.subr.bf16.mxu1 %v24172_v36  ;;  %v5871_v9 = vmax.f32 %v5732_v1, %v5798_v48 }
 0x6b7   : > { %v5898_v35 = vmax.f32 %v5870_v44, %v5872_v41  ;;  %v5739_v22 = vmax.f32 %v5711_v17, 0.0  ;;  %v5919_v62 = vpack.c.bf16 %v5896_v31, %v5895_v56  ;;  %v5807_v7 = vrot.slane %v5738_v54, 1 }
 0x6b8   : > { %v5803_v59 = vrot.slane %v5736_v50, 1  ;;  %v5737_v45 = vmax.f32 %v5709_v8, 0.0  ;;  %v5897_v51 = vmax.f32 %v5869_v61, %v5871_v9  ;;  %v5899_v6 = vmax.f32 %v5871_v9, %v5873_v25 }
 0x6b9   : > { %v5809_v28 = vrot.slane %v5739_v22, 1  ;;  %6059 = vmatpush1.bf16.msra.mxu1 %v5919_v62 }
 0x6ba   : > { %v5804_v46 = vsel %vm1893_vm3, %v5801_v43, %v5803_v59  ;;  %v5805_v37 = vrot.slane %v5737_v45, 1  ;;  %v16375_v19 = vpop.f32.mrb[128].mxu0  ;;  %6060 = vmatprep.subr.bf16.mxu1 %v24172_v36  ;;  %v5920_v13 = vpack.c.bf16 %v5898_v35, %v5897_v51 }
 0x6bb   : > { %v5810_v34 = vsel %vm1893_vm3, %v5807_v7, %v5809_v28  ;;  %v5874_v57 = vmax.f32 %v5735_v10, %v5804_v46  ;;  %v5714_v40 = vadd.f32 %v16375_v19, %v20720_v0  ;;  %v5615_v1 = vpop.f32.mrb[129].mxu0 }
 0x6bc   : > { %v5806_v58 = vsel %vm1893_vm3, %v5803_v59, %v5805_v37  ;;  %v5808_v61 = vsel %vm1893_vm3, %v5805_v37, %v5807_v7  ;;  %v5712_v23 = vadd.f32 %v20720_v0, %v5615_v1  ;;  %v16376_v52 = vpop.f32.mrb[130].mxu0  ;;  %v5877_v11 = vmax.f32 %v5738_v54, %v5810_v34 }
 0x6bd   : > { %v5876_v39 = vmax.f32 %v5737_v45, %v5808_v61  ;;  %v5742_v30 = vmax.f32 %v5714_v40, 0.0  ;;  %v5715_v27 = vadd.f32 %v16376_v52, %v20720_v0  ;;  %v5618_v56 = vpop.f32.mrb[131].mxu0  ;;  %6061 = vmatpush1.bf16.msra.mxu1 %v5920_v13  ;;  %v5900_v42 = vmax.f32 %v5872_v41, %v5874_v57 }
 0x6be   : > { %v5740_v43 = vmax.f32 %v5712_v23, 0.0  ;;  %v5713_v10 = vadd.f32 %v20720_v0, %v5618_v56  ;;  %6062 = vmatprep.subr.bf16.mxu1 %v24172_v36  ;;  %v5875_v12 = vmax.f32 %v5736_v50, %v5806_v58 }
 0x6bf   : > { %v5902_v14 = vmax.f32 %v5874_v57, %v5876_v39  ;;  %v5743_v49 = vmax.f32 %v5715_v27, 0.0  ;;  %v5921_v38 = vpack.c.bf16 %v5900_v42, %v5899_v6  ;;  %v5815_v48 = vrot.slane %v5742_v30, 1 }
 0x6c0   : > { %v5811_v16 = vrot.slane %v5740_v43, 1  ;;  %v5741_v44 = vmax.f32 %v5713_v10, 0.0  ;;  %v5901_v3 = vmax.f32 %v5873_v25, %v5875_v12  ;;  %v5903_v18 = vmax.f32 %v5875_v12, %v5877_v11 }
 0x6c1   : > { %v5817_v29 = vrot.slane %v5743_v49, 1  ;;  %6063 = vmatpush1.bf16.msra.mxu1 %v5921_v38 }
 0x6c2   : > { %v5812_v53 = vsel %vm1893_vm3, %v5809_v28, %v5811_v16  ;;  %v5813_v5 = vrot.slane %v5741_v44, 1  ;;  %v16379_v41 = vpop.f32.mrb[132].mxu0  ;;  %6064 = vmatprep.subr.bf16.mxu1 %v24172_v36  ;;  %v5922_v54 = vpack.c.bf16 %v5902_v14, %v5901_v3 }
 0x6c3   : > { %v5818_v17 = vsel %vm1893_vm3, %v5815_v48, %v5817_v29  ;;  %v5878_v15 = vmax.f32 %v5739_v22, %v5812_v53  ;;  %v5718_v31 = vadd.f32 %v16379_v41, %v20720_v0  ;;  %v5631_v50 = vpop.f32.mrb[133].mxu0 }
 0x6c4   : > { %v5814_v8 = vsel %vm1893_vm3, %v5811_v16, %v5813_v5  ;;  %v5816_v25 = vsel %vm1893_vm3, %v5813_v5, %v5815_v48  ;;  %v5716_v9 = vadd.f32 %v20720_v0, %v5631_v50  ;;  %v16380_v35 = vpop.f32.mrb[134].mxu0  ;;  %v5881_v62 = vmax.f32 %v5742_v30, %v5818_v17 }
 0x6c5   : > { %v5880_v59 = vmax.f32 %v5741_v44, %v5816_v25  ;;  %v5746_v45 = vmax.f32 %v5718_v31, 0.0  ;;  %v5719_v51 = vadd.f32 %v16380_v35, %v20720_v0  ;;  %v5634_v6 = vpop.f32.mrb[135].mxu0  ;;  %6065 = vmatpush1.bf16.msra.mxu1 %v5922_v54  ;;  %v5904_v7 = vmax.f32 %v5876_v39, %v5878_v15 }
 0x6c6   : > { %v5744_v28 = vmax.f32 %v5716_v9, 0.0  ;;  %v5717_v22 = vadd.f32 %v20720_v0, %v5634_v6  ;;  %6066 = vmatprep.subr.bf16.mxu1 %v24172_v36  ;;  %v5879_v46 = vmax.f32 %v5740_v43, %v5814_v8 }
 0x6c7   : > { %v5906_v37 = vmax.f32 %v5878_v15, %v5880_v59  ;;  %v5747_v19 = vmax.f32 %v5719_v51, 0.0  ;;  %v5923_v13 = vpack.c.bf16 %v5904_v7, %v5903_v18  ;;  %v5823_v58 = vrot.slane %v5746_v45, 1 }
 0x6c8   : > { %v5819_v34 = vrot.slane %v5744_v28, 1  ;;  %v5745_v57 = vmax.f32 %v5717_v22, 0.0  ;;  %v5905_v40 = vmax.f32 %v5877_v11, %v5879_v46  ;;  %v5907_v1 = vmax.f32 %v5879_v46, %v5881_v62 }
 0x6c9   : > { %v5825_v61 = vrot.slane %v5747_v19, 1  ;;  %6067 = vmatpush1.bf16.msra.mxu1 %v5923_v13 }
 0x6ca   : > { %v5820_v23 = vsel %vm1893_vm3, %v5817_v29, %v5819_v34  ;;  %v5821_v52 = vrot.slane %v5745_v57, 1  ;;  %v16383_v39 = vpop.f32.mrb[136].mxu0  ;;  %6068 = vmatprep.subr.bf16.mxu1 %v24172_v36  ;;  %v5924_v30 = vpack.c.bf16 %v5906_v37, %v5905_v40 }
 0x6cb   : > { %v5826_v27 = vsel %vm1893_vm3, %v5823_v58, %v5825_v61  ;;  %v5882_v56 = vmax.f32 %v5743_v49, %v5820_v23  ;;  %v5722_v42 = vadd.f32 %v16383_v39, %v20720_v0  ;;  %v5647_v43 = vpop.f32.mrb[137].mxu0  ;;  %v18745_v23 = vld [vmem:[%s24169_s10 + $0x14] ss:$8 sps:$4 sm:$0xff]   ;;  %v18748_v39 = vld [vmem:[%s24169_s10 + $0x24] ss:$8 sps:$4 sm:$0xff]  }
 0x6cc   : > { %v5822_v10 = vsel %vm1893_vm3, %v5819_v34, %v5821_v52  ;;  %v5824_v11 = vsel %vm1893_vm3, %v5821_v52, %v5823_v58  ;;  %v5720_v12 = vadd.f32 %v20720_v0, %v5647_v43  ;;  %v16384_v14 = vpop.f32.mrb[138].mxu0  ;;  %v5885_v38 = vmax.f32 %v5746_v45, %v5826_v27  ;;  %v18747_v52 = vld [vmem:[%s24169_s10 + $0x10] ss:$8 sps:$4 sm:$0xff]   ;;  %v18751_v27 = vld [vmem:[%s24169_s10 + $0x34] ss:$8 sps:$4 sm:$0xff]  }
 0x6cd   : > { %v5884_v16 = vmax.f32 %v5745_v57, %v5824_v11  ;;  %v5750_v44 = vmax.f32 %v5722_v42, 0.0  ;;  %v5723_v3 = vadd.f32 %v16384_v14, %v20720_v0  ;;  %v5650_v18 = vpop.f32.mrb[139].mxu0  ;;  %6069 = vmatpush1.bf16.msra.mxu1 %v5924_v30  ;;  %v5908_v48 = vmax.f32 %v5880_v59, %v5882_v56  ;;  %v18750_v30 = vld [vmem:[%s24169_s10 + $0x20] ss:$8 sps:$4 sm:$0xff]   ;;  %v18754_v42 = vld [vmem:[%s24169_s10 + $0x44] ss:$8 sps:$4 sm:$0xff]  }
 0x6ce   : > { %v5748_v29 = vmax.f32 %v5720_v12, 0.0  ;;  %v5721_v49 = vadd.f32 %v20720_v0, %v5650_v18  ;;  %6070 = vmatprep.subr.bf16.mxu1 %v24172_v36  ;;  %v5883_v53 = vmax.f32 %v5744_v28, %v5822_v10  ;;  %v18756_v43 = vld [vmem:[%s24169_s10 + $0x40] ss:$8 sps:$4 sm:$0xff]   ;;  %v18757_v10 = vld [vmem:[%s24169_s10 + $0x54] ss:$8 sps:$4 sm:$0xff]  }
 0x6cf   : > { %v5910_v5 = vmax.f32 %v5882_v56, %v5884_v16  ;;  %v5751_v41 = vmax.f32 %v5723_v3, 0.0  ;;  %v5925_v54 = vpack.c.bf16 %v5908_v48, %v5907_v1  ;;  %v5831_v8 = vrot.slane %v5750_v44, 1  ;;  %v18753_v56 = vld [vmem:[%s24169_s10 + $0x30] ss:$8 sps:$4 sm:$0xff]   ;;  %v18760_v12 = vld [vmem:[%s24169_s10 + $0x64] ss:$8 sps:$4 sm:$0xff]  }
 0x6d0   : > { %v5827_v17 = vrot.slane %v5748_v29, 1  ;;  %v5749_v15 = vmax.f32 %v5721_v49, 0.0  ;;  %v5909_v31 = vmax.f32 %v5881_v62, %v5883_v53  ;;  %v5911_v50 = vmax.f32 %v5883_v53, %v5885_v38  ;;  %v18759_v11 = vld [vmem:[%s24169_s10 + $0x50] ss:$8 sps:$4 sm:$0xff]   ;;  %v18762_v14 = vld [vmem:[%s24169_s10 + $0x60] ss:$8 sps:$4 sm:$0xff]  }
 0x6d1   : > { %v5833_v25 = vrot.slane %v5751_v41, 1  ;;  %6071 = vmatpush1.bf16.msra.mxu1 %v5925_v54  ;;  %v18768_v3 = vld [vmem:[%s24169_s10 + $0x80] ss:$8 sps:$4 sm:$0xff]   ;;  %v18769_v18 = vld [vmem:[%s24169_s10 + $0x94] ss:$8 sps:$4 sm:$0xff]  }
 0x6d2   : > { %v5828_v9 = vsel %vm1893_vm3, %v5825_v61, %v5827_v17  ;;  %v5829_v35 = vrot.slane %v5749_v15, 1  ;;  %6072 = vmatprep.subr.bf16.mxu1 %v24172_v36  ;;  %v5926_v59 = vpack.c.bf16 %v5910_v5, %v5909_v31  ;;  %v18742_v61 = vld [vmem:[%s24169_s10] ss:$8 sps:$4 sm:$0xff]   ;;  %v18771_v48 = vld [vmem:[%s24169_s10 + $0x90] ss:$8 sps:$4 sm:$0xff]  }
 0x6d3   : > { %v5834_v0 = vsel %vm1893_vm3, %v5831_v8, %v5833_v25  ;;  %v5886_v45 = vmax.f32 %v5747_v19, %v5828_v9  ;;  %v5890_v28 = vmax.f32 %v5751_v41, %v5833_v25  ;;  %v432_v53 = vld [vmem:[%s24164_s5 + $0x4] sm:$0xf]  ;;  %v434_v54 = vld [vmem:[%s24164_s5 + $0xc] sm:$0xf] }
 0x6d4   : > { %v5889_v51 = vmax.f32 %v5750_v44, %v5834_v0  ;;  %v5830_v6 = vsel %vm1893_vm3, %v5827_v17, %v5829_v35  ;;  %v5832_v7 = vsel %vm1893_vm3, %v5829_v35, %v5831_v8  ;;  %v18766_v44 = vld [vmem:[%s24169_s10 + $0x84] ss:$8 sps:$4 sm:$0xff]   ;;  %v20871_v5 = vsel %vm1181_vm0, %v432_v53, 0 }
 0x6d5   : > { %v5888_v62 = vmax.f32 %v5749_v15, %v5832_v7  ;;  %6073 = vmatpush1.bf16.msra.mxu1 %v5926_v59  ;;  %v5912_v22 = vmax.f32 %v5884_v16, %v5886_v45  ;;  %v5887_v46 = vmax.f32 %v5748_v29, %v5830_v6  ;;  %v18765_v16 = vld [vmem:[%s24169_s10 + $0x70] ss:$8 sps:$4 sm:$0xff]   ;;  %v431_v29 = vld [vmem:[%s24164_s5] sm:$0xf]  ;;  %v20879_v8 = vsel %vm1181_vm0, %v434_v54, 0 }
 0x6d6   : > { %6074 = vmatprep.subr.bf16.mxu1 %v24172_v36  ;;  %v20863_v49 = vsel %vm1181_vm0, %v431_v29, 0 }
 0x6d7   : > { %v5914_v37 = vmax.f32 %v5886_v45, %v5888_v62  ;;  %v5916_v13 = vmax.f32 %v5888_v62, %v5890_v28  ;;  %v5927_v34 = vpack.c.bf16 %v5912_v22, %v5911_v50  ;;  %v5913_v57 = vmax.f32 %v5885_v38, %v5887_v46  ;;  %v18763_v38 = vld [vmem:[%s24169_s10 + $0x74] ss:$8 sps:$4 sm:$0xff]   ;;  %16416 = vmatpush3.bf16.msra.mxu0 %v20863_v49 }
 0x6d8   : > { %v5915_v40 = vmax.f32 %v5887_v46, %v5889_v51  ;;  %16475 = vmatprep.subr.bf16.mxu0 %v24174_v60 }
 0x6d9   : > { %6075 = vmatpush1.bf16.msra.mxu1 %v5927_v34  ;;  %v5928_v1 = vpack.c.bf16 %v5914_v37, %v5913_v57 }
 0x6da   : > { %6076 = vmatprep.subr.bf16.mxu1 %v24172_v36  ;;  %v5929_v19 = vpack.c.bf16 %v5916_v13, %v5915_v40 }
 0x6dc   : > { %v6052_v58 = vand.u32 %v5929_v19, %v20019_v32 }
 0x6dd   : > { %6077 = vmatpush1.bf16.msra.mxu1 %v5928_v1 }
 0x6de   : > { %6078 = vmatprep.subr.bf16.mxu1 %v24172_v36 }
 0x6e1   : > { %6079 = vmatpush1.bf16.msra.mxu1 %v6052_v58 }
 0x6e2   : > { %16385 = vmatprep.subr.bf16.mxu1 %v24174_v60 }
 0x6e4   : > { %6087 = vmatmul.mubr.bf16.vlgmr.msra.gmra.mrb[68].mxu1 %v18742_v61 }
 0x6e5   : > { %14759 = vmatprep.mubr.msk.bf16.mxu1 %vm6020_vm9, %v18745_v23  ;;  %16386 = vmatpush3.bf16.msra.mxu1 %v20871_v5 }
 0x6e6   : > { %17529 = vmatprep.subr.bf16.mxu1 %v24174_v60 }
 0x6ec   : > { %6095 = vmatmul.mubr.bf16.gmra.mrb[72].mxu1 %v18747_v52 }
 0x6ed   : > { %14760 = vmatprep.mubr.msk.bf16.mxu1 %vm6020_vm9, %v18748_v39 }
 0x6f4   : > { %6103 = vmatmul.mubr.bf16.gmra.mrb[76].mxu1 %v18750_v30 }
 0x6f5   : > { %14761 = vmatprep.mubr.msk.bf16.mxu1 %vm6020_vm9, %v18751_v27 }
 0x6fc   : > { %6111 = vmatmul.mubr.bf16.gmra.mrb[80].mxu1 %v18753_v56 }
 0x6fd   : > { %14762 = vmatprep.mubr.msk.bf16.mxu1 %vm6020_vm9, %v18754_v42 }
 0x704   : > { %6119 = vmatmul.mubr.bf16.gmra.mrb[84].mxu1 %v18756_v43 }
 0x705   : > { %14763 = vmatprep.mubr.msk.bf16.mxu1 %vm6020_vm9, %v18757_v10 }
 0x70c   : > { %6127 = vmatmul.mubr.bf16.gmra.mrb[88].mxu1 %v18759_v11 }
 0x70d   : > { %14764 = vmatprep.mubr.msk.bf16.mxu1 %vm6020_vm9, %v18760_v12 }
 0x714   : > { %6135 = vmatmul.mubr.bf16.gmra.mrb[92].mxu1 %v18762_v14 }
 0x715   : > { %14765 = vmatprep.mubr.msk.bf16.mxu1 %vm6020_vm9, %v18763_v38 }
 0x71c   : > { %6143 = vmatmul.mubr.bf16.gmra.mrb[96].mxu1 %v18765_v16 }
 0x71d   : > { %14766 = vmatprep.mubr.msk.bf16.mxu1 %vm6020_vm9, %v18766_v44 }
 0x724   : > { %6151 = vmatmul.mubr.bf16.gmra.mrb[100].mxu1 %v18768_v3 }
 0x725   : > { %14767 = vmatprep.mubr.msk.bf16.mxu1 %vm6020_vm9, %v18769_v18 }
 0x72c   : > { %6159 = vmatmul.mubr.bf16.gmra.mrb[104].mxu1 %v18771_v48 }
 0x72d   : > { %16387 = vmatprep.mubr.msk.bf16.mxu1 %vm19052_vm5, %v24174_v60 }
 0x7b7   : > { %v6088_v41 = vpop.f32.mrb[68].mxu1 }
 0x7b8   : > { %v6090_v17 = vpop.f32.mrb[69].mxu1 }
 0x7b9   : > { %v6091_v15 = vpop.f32.mrb[70].mxu1 }
 0x7ba   : > { %v6167_v31 = vpack.c.bf16 %v6091_v15, %v6088_v41  ;;  %v6093_v50 = vpop.f32.mrb[71].mxu1  ;;  %v436_v15 = vld [vmem:[%s24164_s5 + $0x14] sm:$0xf] }
 0x7bc   : > { %16418 = vmatmul.mubr.msk.bf16.vlgmr.msra.gmra.mrb[140].mxu0 %vm3966_vm8, %v6167_v31  ;;  %v6180_v25 = vshll.u32 %v6167_v31, 16  ;;  %v6178_v6 = vshrl.u32 %v6167_v31, 16  ;;  %v6464_v7 = vrot.slane %v6167_v31, 1 }
 0x7bd   : > { %16421 = vmatprep.mubr.msk.bf16.mxu0 %vm19052_vm5, %v24174_v60  ;;  %16476 = vmatpush3.bf16.msra.mxu0 %v20879_v8 }
 0x7be   : > { %16535 = vmatprep.subr.bf16.mxu0 %v24174_v60  ;;  %v6182_v0 = vrot.slane %v6180_v25, 1 }
 0x7bf   : > { %v6096_v9 = vpop.f32.mrb[72].mxu1 }
 0x7c0   : > { %v6098_v35 = vpop.f32.mrb[73].mxu1  ;;  %v6183_v22 = vor.u32 %v6182_v0, %v6178_v6 }
 0x7c1   : > { %v6099_v59 = vpop.f32.mrb[74].mxu1 }
 0x7c2   : > { %v20886_v45 = vpack.c.bf16 %v6099_v59, %v6096_v9  ;;  %v6101_v51 = vpop.f32.mrb[75].mxu1  ;;  %v20956_v59 = vsel %vm1181_vm0, %v436_v15, 0 }
 0x7c3   : > { %24197 = vst [vmem:[#allocation5_spill] sm:$0xff] %v20956_v59 }
 0x7c4   : > { %16422 = vmatmul.mubr.msk.bf16.gmra.mrb[144].mxu0 %vm3966_vm8, %v20886_v45  ;;  %v6185_v28 = vshll.u32 %v20886_v45, 16  ;;  %v6465_v62 = vrot.slane %v20886_v45, 1  ;;  %v6189_v58 = vshrl.u32 %v20886_v45, 16 }
 0x7c5   : > { %16425 = vmatprep.mubr.msk.bf16.mxu0 %vm19052_vm5, %v24174_v60 }
 0x7c6   : > { %v6187_v46 = vrot.slane %v6185_v28, 1  ;;  %v20897_v37 = vsel %vm1893_vm3, %v6464_v7, %v6465_v62 }
 0x7c7   : > { %v6104_v13 = vpop.f32.mrb[76].mxu1 }
 0x7c8   : > { %v6106_v34 = vpop.f32.mrb[77].mxu1  ;;  %v6188_v57 = vsel %vm3849_vm7, %v6183_v22, %v6187_v46  ;;  %v6191_v23 = vor.u32 %v6189_v58, %v6187_v46 }
 0x7c9   : > { %v6107_v40 = vpop.f32.mrb[78].mxu1  ;;  %16388 = vmatmul.mubr.msk.bf16.vlgmr.msra.gmra.mrb[108].mxu1 %vm3966_vm8, %v6188_v57 }
 0x7ca   : > { %v20901_v1 = vpack.c.bf16 %v6107_v40, %v6104_v13  ;;  %v6109_v19 = vpop.f32.mrb[79].mxu1  ;;  %16391 = vmatprep.mubr.msk.bf16.mxu1 %vm19052_vm5, %v24174_v60  ;;  %17530 = vmatpush3.bf16.msra.mxu1 %v20863_v49 }
 0x7cb   : > { %16445 = vmatprep.subr.bf16.mxu1 %v24174_v60 }
 0x7cc   : > { %16426 = vmatmul.mubr.msk.bf16.gmra.mrb[148].mxu0 %vm3966_vm8, %v20901_v1  ;;  %v6193_v61 = vshll.u32 %v20901_v1, 16  ;;  %v6197_v10 = vshrl.u32 %v20901_v1, 16 }
 0x7cd   : > { %16429 = vmatprep.mubr.msk.bf16.mxu0 %vm19052_vm5, %v24174_v60 }
 0x7ce   : > { %v6195_v52 = vrot.slane %v6193_v61, 1 }
 0x7cf   : > { %v6112_v39 = vpop.f32.mrb[80].mxu1 }
 0x7d0   : > { %v6114_v30 = vpop.f32.mrb[81].mxu1  ;;  %v20914_v27 = vsel %vm3849_vm7, %v6191_v23, %v6195_v52  ;;  %v6199_v12 = vor.u32 %v6197_v10, %v6195_v52 }
 0x7d1   : > { %v6115_v56 = vpop.f32.mrb[82].mxu1  ;;  %16392 = vmatmul.mubr.msk.bf16.gmra.mrb[112].mxu1 %vm3966_vm8, %v20914_v27 }
 0x7d2   : > { %v20918_v42 = vpack.c.bf16 %v6115_v56, %v6112_v39  ;;  %v6117_v43 = vpop.f32.mrb[83].mxu1  ;;  %16395 = vmatprep.mubr.msk.bf16.mxu1 %vm19052_vm5, %v24174_v60 }
 0x7d4   : > { %16430 = vmatmul.mubr.msk.bf16.gmra.mrb[152].mxu0 %vm3966_vm8, %v20918_v42  ;;  %v6201_v11 = vshll.u32 %v20918_v42, 16  ;;  %v6205_v29 = vshrl.u32 %v20918_v42, 16 }
 0x7d5   : > { %16433 = vmatprep.mubr.msk.bf16.mxu0 %vm19052_vm5, %v24174_v60 }
 0x7d6   : > { %v6203_v14 = vrot.slane %v6201_v11, 1 }
 0x7d7   : > { %v6120_v38 = vpop.f32.mrb[84].mxu1 }
 0x7d8   : > { %v6122_v16 = vpop.f32.mrb[85].mxu1  ;;  %v20929_v44 = vsel %vm3849_vm7, %v6199_v12, %v6203_v14  ;;  %v6207_v41 = vor.u32 %v6205_v29, %v6203_v14 }
 0x7d9   : > { %v6123_v3 = vpop.f32.mrb[86].mxu1  ;;  %16396 = vmatmul.mubr.msk.bf16.gmra.mrb[116].mxu1 %vm3966_vm8, %v20929_v44 }
 0x7da   : > { %v20933_v18 = vpack.c.bf16 %v6123_v3, %v6120_v38  ;;  %v6125_v48 = vpop.f32.mrb[87].mxu1  ;;  %16399 = vmatprep.mubr.msk.bf16.mxu1 %vm19052_vm5, %v24174_v60 }
 0x7dc   : > { %16434 = vmatmul.mubr.msk.bf16.gmra.mrb[156].mxu0 %vm3966_vm8, %v20933_v18  ;;  %v6209_v53 = vshll.u32 %v20933_v18, 16  ;;  %v6213_v0 = vshrl.u32 %v20933_v18, 16 }
 0x7dd   : > { %16477 = vmatprep.mubr.msk.bf16.mxu0 %vm19052_vm5, %v24174_v60 }
 0x7de   : > { %v6211_v54 = vrot.slane %v6209_v53, 1 }
 0x7df   : > { %v6128_v17 = vpop.f32.mrb[88].mxu1 }
 0x7e0   : > { %v6130_v31 = vpop.f32.mrb[89].mxu1  ;;  %v20947_v50 = vsel %vm3849_vm7, %v6207_v41, %v6211_v54  ;;  %v6215_v6 = vor.u32 %v6213_v0, %v6211_v54  ;;  %v433_v41 = vld [vmem:[%s24164_s5 + $0x8] sm:$0xf] }
 0x7e1   : > { %v6131_v25 = vpop.f32.mrb[90].mxu1  ;;  %16400 = vmatmul.mubr.msk.bf16.gmra.mrb[120].mxu1 %vm3966_vm8, %v20947_v50  ;;  %v21016_v54 = vsel %vm1181_vm0, %v433_v41, 0 }
 0x7e2   : > { %v20951_v9 = vpack.c.bf16 %v6131_v25, %v6128_v17  ;;  %v6133_v35 = vpop.f32.mrb[91].mxu1  ;;  %16403 = vmatprep.mubr.msk.bf16.mxu1 %vm19052_vm5, %v24174_v60  ;;  %24198 = vst [vmem:[#allocation6_spill] sm:$0xff] %v21016_v54 }
 0x7e4   : > { %16478 = vmatmul.mubr.msk.bf16.vlgmr.msra.gmra.mrb[160].mxu0 %vm3966_vm8, %v20886_v45  ;;  %v6217_v51 = vshll.u32 %v20951_v9, 16  ;;  %v6221_v40 = vshrl.u32 %v20951_v9, 16 }
 0x7e5   : > { %16481 = vmatprep.mubr.msk.bf16.mxu0 %vm19052_vm5, %v24174_v60  ;;  %16536 = vmatpush3.bf16.msra.mxu0 %v20956_v59 }
 0x7e6   : > { %v6219_v7 = vrot.slane %v6217_v51, 1  ;;  %16595 = vmatprep.subr.bf16.mxu0 %v24174_v60 }
 0x7e7   : > { %v6136_v28 = vpop.f32.mrb[92].mxu1 }
 0x7e8   : > { %v6138_v22 = vpop.f32.mrb[93].mxu1  ;;  %v20967_v46 = vsel %vm3849_vm7, %v6215_v6, %v6219_v7  ;;  %v6223_v58 = vor.u32 %v6221_v40, %v6219_v7  ;;  %v435_v7 = vld [vmem:[%s24164_s5 + $0x10] sm:$0xf]  ;;  %v6469_v40 = vrot.slane %v20918_v42, 1 }
 0x7e9   : > { %v6139_v13 = vpop.f32.mrb[94].mxu1  ;;  %16404 = vmatmul.mubr.msk.bf16.gmra.mrb[124].mxu1 %vm3966_vm8, %v20967_v46  ;;  %v6467_v22 = vrot.slane %v20901_v1, 1 }
 0x7ea   : > { %v20971_v34 = vpack.c.bf16 %v6139_v13, %v6136_v28  ;;  %v6141_v57 = vpop.f32.mrb[95].mxu1  ;;  %16407 = vmatprep.mubr.msk.bf16.mxu1 %vm19052_vm5, %v24174_v60  ;;  %v21047_v28 = vsel %vm1181_vm0, %v435_v7, 0  ;;  %v438_v13 = vld [vmem:[%s24164_s5 + $0x1c] sm:$0xf] }
 0x7eb   : > { %24199 = vst [vmem:[#allocation7_spill] sm:$0xff] %v21047_v28  ;;  %v21070_v57 = vsel %vm1181_vm0, %v438_v13, 0  ;;  %v21079_v45 = vsel %vm1893_vm3, %v6467_v22, %v6469_v40 }
 0x7ec   : > { %16482 = vmatmul.mubr.msk.bf16.gmra.mrb[164].mxu0 %vm3966_vm8, %v20901_v1  ;;  %v6225_v19 = vshll.u32 %v20971_v34, 16  ;;  %v6229_v10 = vshrl.u32 %v20971_v34, 16  ;;  %24200 = vst [vmem:[#allocation8_spill] sm:$0xff] %v21070_v57 }
 0x7ed   : > { %16485 = vmatprep.mubr.msk.bf16.mxu0 %vm19052_vm5, %v24174_v60 }
 0x7ee   : > { %v6227_v61 = vrot.slane %v6225_v19, 1 }
 0x7ef   : > { %v6144_v23 = vpop.f32.mrb[96].mxu1 }
 0x7f0   : > { %v6146_v52 = vpop.f32.mrb[97].mxu1  ;;  %v20982_v39 = vsel %vm3849_vm7, %v6223_v58, %v6227_v61  ;;  %v6231_v12 = vor.u32 %v6229_v10, %v6227_v61  ;;  %v6473_v58 = vrot.slane %v20951_v9, 1  ;;  %v437_v10 = vld [vmem:[%s24164_s5 + $0x18] sm:$0xf] }
 0x7f1   : > { %v6147_v30 = vpop.f32.mrb[98].mxu1  ;;  %16408 = vmatmul.mubr.msk.bf16.gmra.mrb[128].mxu1 %vm3966_vm8, %v20982_v39 }
 0x7f2   : > { %v20986_v56 = vpack.c.bf16 %v6147_v30, %v6144_v23  ;;  %v6149_v43 = vpop.f32.mrb[99].mxu1  ;;  %16411 = vmatprep.mubr.msk.bf16.mxu1 %vm19052_vm5, %v24174_v60  ;;  %v6475_v23 = vrot.slane %v20971_v34, 1 }
 0x7f4   : > { %16486 = vmatmul.mubr.msk.bf16.gmra.mrb[168].mxu0 %vm3966_vm8, %v20918_v42  ;;  %v6233_v11 = vshll.u32 %v20986_v56, 16  ;;  %v21115_v52 = vsel %vm1893_vm3, %v6473_v58, %v6475_v23  ;;  %v6477_v30 = vrot.slane %v20986_v56, 1 }
 0x7f5   : > { %16489 = vmatprep.mubr.msk.bf16.mxu0 %vm19052_vm5, %v24174_v60 }
 0x7f6   : > { %v20996_v14 = vrot.slane %v6233_v11, 1  ;;  %v21127_v43 = vsel %vm1893_vm3, %v6475_v23, %v6477_v30  ;;  %v21141_v11 = vsel %vm1181_vm0, %v437_v10, 0 }
 0x7f7   : > { %v6152_v38 = vpop.f32.mrb[100].mxu1  ;;  %24201 = vst [vmem:[#allocation9_spill] sm:$0xff] %v21141_v11 }
 0x7f8   : > { %v6154_v16 = vpop.f32.mrb[101].mxu1  ;;  %v21000_v3 = vsel %vm3849_vm7, %v6231_v12, %v20996_v14 }
 0x7f9   : > { %v6155_v48 = vpop.f32.mrb[102].mxu1  ;;  %16412 = vmatmul.mubr.msk.bf16.gmra.mrb[132].mxu1 %vm3966_vm8, %v21000_v3 }
 0x7fa   : > { %v21004_v29 = vpack.c.bf16 %v6155_v48, %v6152_v38  ;;  %16437 = vmatprep.mubr.msk.bf16.mxu1 %vm19052_vm5, %v24174_v60  ;;  %v6157_v53 = vpop.f32.mrb[103].mxu1 }
 0x7fc   : > { %16490 = vmatmul.mubr.msk.bf16.gmra.mrb[172].mxu0 %vm3966_vm8, %v20933_v18  ;;  %v6832_v0 = vrot.slane %v21004_v29, 1  ;;  %v7051_v16 = vshrl.u32 %v21004_v29, 16 }
 0x7fd   : > { %16493 = vmatprep.mubr.msk.bf16.mxu0 %vm19052_vm5, %v24174_v60 }
 0x7fe   : > { %v21149_v12 = vsel %vm1893_vm3, %v6477_v30, %v6832_v0 }
 0x7ff   : > { %v6160_v17 = vpop.f32.mrb[104].mxu1 }
 0x800   : > { %v6162_v15 = vpop.f32.mrb[105].mxu1 }
 0x801   : > { %16438 = vmatmul.mubr.msk.bf16.vlgmr.msra.gmra.mrb[136].mxu1 %vm3966_vm8, %v20951_v9  ;;  %v6163_v31 = vpop.f32.mrb[106].mxu1 }
 0x802   : > { %16441 = vmatprep.mubr.msk.bf16.mxu1 %vm19052_vm5, %v24174_v60  ;;  %16446 = vmatpush3.bf16.msra.mxu1 %v21016_v54  ;;  %v21023_v25 = vpack.c.bf16 %v6163_v31, %v6160_v17  ;;  %v6165_v35 = vpop.f32.mrb[107].mxu1 }
 0x803   : > { %16505 = vmatprep.subr.bf16.mxu1 %v24174_v60 }
 0x804   : > { %16494 = vmatmul.mubr.msk.bf16.gmra.mrb[176].mxu0 %vm3966_vm8, %v20951_v9  ;;  %v7169_v51 = vrot.slane %v21023_v25, 1  ;;  %v7055_v38 = vshll.u32 %v21023_v25, 16 }
 0x805   : > { %16497 = vmatprep.mubr.msk.bf16.mxu0 %vm19052_vm5, %v24174_v60 }
 0x806   : > { %v21033_v6 = vsel %vm1893_vm3, %v6832_v0, %v7169_v51 }
 0x809   : > { %16442 = vmatmul.mubr.msk.bf16.gmra.mrb[140].mxu1 %vm3966_vm8, %v20971_v34 }
 0x80a   : > { %16447 = vmatprep.mubr.msk.bf16.mxu1 %vm19052_vm5, %v24174_v60 }
 0x80c   : > { %16498 = vmatmul.mubr.msk.bf16.gmra.mrb[180].mxu0 %vm3966_vm8, %v20971_v34 }
 0x80d   : > { %16501 = vmatprep.mubr.msk.bf16.mxu0 %vm19052_vm5, %v24174_v60 }
 0x811   : > { %16448 = vmatmul.mubr.msk.bf16.vlgmr.msra.gmra.mrb[144].mxu1 %vm3966_vm8, %v20897_v37  ;;  %v6468_v37 = vsel %vm1893_vm3, %v6465_v62, %v6467_v22  ;;  %v6471_v62 = vrot.slane %v20933_v18, 1 }
 0x812   : > { %16451 = vmatprep.mubr.msk.bf16.mxu1 %vm19052_vm5, %v24174_v60  ;;  %16506 = vmatpush3.bf16.msra.mxu1 %v21047_v28 }
 0x813   : > { %16565 = vmatprep.subr.bf16.mxu1 %v24174_v60  ;;  %v21091_v19 = vsel %vm1893_vm3, %v6469_v40, %v6471_v62  ;;  %v21103_v61 = vsel %vm1893_vm3, %v6471_v62, %v6473_v58 }
 0x814   : > { %16502 = vmatmul.mubr.msk.bf16.gmra.mrb[184].mxu0 %vm3966_vm8, %v20986_v56 }
 0x815   : > { %16537 = vmatprep.mubr.msk.bf16.mxu0 %vm19052_vm5, %v24174_v60 }
 0x819   : > { %16452 = vmatmul.mubr.msk.bf16.gmra.mrb[148].mxu1 %vm3966_vm8, %v6468_v37 }
 0x81a   : > { %16455 = vmatprep.mubr.msk.bf16.mxu1 %vm19052_vm5, %v24174_v60 }
 0x81c   : > { %16538 = vmatmul.mubr.msk.bf16.vlgmr.msra.gmra.mrb[188].mxu0 %vm3966_vm8, %v6468_v37 }
 0x81d   : > { %16541 = vmatprep.mubr.msk.bf16.mxu0 %vm19052_vm5, %v24174_v60  ;;  %16596 = vmatpush3.bf16.msra.mxu0 %v21070_v57 }
 0x81e   : > { %16671 = vmatprep.subr.bf16.mxu0 %v24174_v60 }
 0x821   : > { %16456 = vmatmul.mubr.msk.bf16.gmra.mrb[152].mxu1 %vm3966_vm8, %v21079_v45 }
 0x822   : > { %16459 = vmatprep.mubr.msk.bf16.mxu1 %vm19052_vm5, %v24174_v60 }
 0x824   : > { %16542 = vmatmul.mubr.msk.bf16.gmra.mrb[192].mxu0 %vm3966_vm8, %v21079_v45 }
 0x825   : > { %16545 = vmatprep.mubr.msk.bf16.mxu0 %vm19052_vm5, %v24174_v60 }
 0x829   : > { %16460 = vmatmul.mubr.msk.bf16.gmra.mrb[156].mxu1 %vm3966_vm8, %v21091_v19 }
 0x82a   : > { %16463 = vmatprep.mubr.msk.bf16.mxu1 %vm19052_vm5, %v24174_v60 }
 0x82c   : > { %16546 = vmatmul.mubr.msk.bf16.gmra.mrb[196].mxu0 %vm3966_vm8, %v21091_v19 }
 0x82d   : > { %16549 = vmatprep.mubr.msk.bf16.mxu0 %vm19052_vm5, %v24174_v60 }
 0x831   : > { %16464 = vmatmul.mubr.msk.bf16.gmra.mrb[160].mxu1 %vm3966_vm8, %v21103_v61 }
 0x832   : > { %16467 = vmatprep.mubr.msk.bf16.mxu1 %vm19052_vm5, %v24174_v60 }
 0x834   : > { %16550 = vmatmul.mubr.msk.bf16.gmra.mrb[200].mxu0 %vm3966_vm8, %v21103_v61 }
 0x835   : > { %16553 = vmatprep.mubr.msk.bf16.mxu0 %vm19052_vm5, %v24174_v60 }
 0x839   : > { %16468 = vmatmul.mubr.msk.bf16.gmra.mrb[164].mxu1 %vm3966_vm8, %v21115_v52 }
 0x83a   : > { %16471 = vmatprep.mubr.msk.bf16.mxu1 %vm19052_vm5, %v24174_v60 }
 0x83c   : > { %16554 = vmatmul.mubr.msk.bf16.gmra.mrb[204].mxu0 %vm3966_vm8, %v21115_v52 }
 0x83d   : > { %16557 = vmatprep.mubr.msk.bf16.mxu0 %vm19052_vm5, %v24174_v60 }
 0x841   : > { %16472 = vmatmul.mubr.msk.bf16.gmra.mrb[168].mxu1 %vm3966_vm8, %v21127_v43 }
 0x842   : > { %16507 = vmatprep.mubr.msk.bf16.mxu1 %vm19052_vm5, %v24174_v60 }
 0x844   : > { %16558 = vmatmul.mubr.msk.bf16.gmra.mrb[208].mxu0 %vm3966_vm8, %v21127_v43 }
 0x845   : > { %16561 = vmatprep.mubr.msk.bf16.mxu0 %vm19052_vm5, %v24174_v60 }
 0x849   : > { %16508 = vmatmul.mubr.msk.bf16.vlgmr.msra.gmra.mrb[172].mxu1 %vm3966_vm8, %v20914_v27  ;;  %v6718_v27 = vshll.u32 %v21004_v29, 16 }
 0x84a   : > { %16511 = vmatprep.mubr.msk.bf16.mxu1 %vm19052_vm5, %v24174_v60  ;;  %16566 = vmatpush3.bf16.msra.mxu1 %v21141_v11 }
 0x84b   : > { %16625 = vmatprep.subr.bf16.mxu1 %v24174_v60 }
 0x84c   : > { %16562 = vmatmul.mubr.msk.bf16.gmra.mrb[212].mxu0 %vm3966_vm8, %v21149_v12 }
 0x84d   : > { %16597 = vmatprep.mubr.msk.bf16.mxu0 %vm19052_vm5, %v24174_v60 }
 0x851   : > { %16512 = vmatmul.mubr.msk.bf16.gmra.mrb[176].mxu1 %vm3966_vm8, %v20929_v44 }
 0x852   : > { %16515 = vmatprep.mubr.msk.bf16.mxu1 %vm19052_vm5, %v24174_v60 }
 0x854   : > { %16598 = vmatmul.mubr.msk.bf16.vlgmr.msra.gmra.mrb[216].mxu0 %vm3966_vm8, %v20929_v44  ;;  %v6714_v44 = vshrl.u32 %v20986_v56, 16 }
 0x855   : > { %16601 = vmatprep.mubr.msk.bf16.mxu0 %vm19052_vm5, %v24174_v60 }
 0x859   : > { %16516 = vmatmul.mubr.msk.bf16.gmra.mrb[180].mxu1 %vm3966_vm8, %v20947_v50 }
 0x85a   : > { %16519 = vmatprep.mubr.msk.bf16.mxu1 %vm19052_vm5, %v24174_v60 }
 0x85c   : > { %16602 = vmatmul.mubr.msk.bf16.gmra.mrb[220].mxu0 %vm3966_vm8, %v20947_v50  ;;  %v6720_v50 = vrot.slane %v6718_v27, 1 }
 0x85d   : > { %16605 = vmatprep.mubr.msk.bf16.mxu0 %vm19052_vm5, %v24174_v60 }
 0x85e   : > { %v7053_v48 = vor.u32 %v7051_v16, %v6720_v50 }
 0x861   : > { %16520 = vmatmul.mubr.msk.bf16.gmra.mrb[184].mxu1 %vm3966_vm8, %v20967_v46 }
 0x862   : > { %16523 = vmatprep.mubr.msk.bf16.mxu1 %vm19052_vm5, %v24174_v60 }
 0x864   : > { %16606 = vmatmul.mubr.msk.bf16.gmra.mrb[224].mxu0 %vm3966_vm8, %v20967_v46  ;;  %v6716_v46 = vor.u32 %v6714_v44, %v20996_v14  ;;  %v7057_v14 = vrot.slane %v7055_v38, 1 }
 0x865   : > { %16609 = vmatprep.mubr.msk.bf16.mxu0 %vm19052_vm5, %v24174_v60 }
 0x866   : > { %v7058_v41 = vsel %vm3849_vm7, %v7053_v48, %v7057_v14 }
 0x869   : > { %16524 = vmatmul.mubr.msk.bf16.gmra.mrb[188].mxu1 %vm3966_vm8, %v20982_v39 }
 0x86a   : > { %16527 = vmatprep.mubr.msk.bf16.mxu1 %vm19052_vm5, %v24174_v60 }
 0x86c   : > { %16610 = vmatmul.mubr.msk.bf16.gmra.mrb[228].mxu0 %vm3966_vm8, %v20982_v39  ;;  %v6721_v39 = vsel %vm3849_vm7, %v6716_v46, %v6720_v50 }
 0x86d   : > { %16613 = vmatprep.mubr.msk.bf16.mxu0 %vm19052_vm5, %v24174_v60 }
 0x871   : > { %16528 = vmatmul.mubr.msk.bf16.gmra.mrb[192].mxu1 %vm3966_vm8, %v21000_v3 }
 0x872   : > { %16531 = vmatprep.mubr.msk.bf16.mxu1 %vm19052_vm5, %v24174_v60 }
 0x874   : > { %16614 = vmatmul.mubr.msk.bf16.gmra.mrb[232].mxu0 %vm3966_vm8, %v21000_v3  ;;  %v439_v3 = vld [vmem:[%s24164_s5 + $0x20] sm:$0xf] }
 0x875   : > { %16617 = vmatprep.mubr.msk.bf16.mxu0 %vm19052_vm5, %v24174_v60  ;;  %v21212_v53 = vsel %vm1181_vm0, %v439_v3, 0 }
 0x876   : > { %24202 = vst [vmem:[#allocation10_spill] sm:$0xff] %v21212_v53 }
 0x879   : > { %16532 = vmatmul.mubr.msk.bf16.gmra.mrb[196].mxu1 %vm3966_vm8, %v6721_v39 }
 0x87a   : > { %16567 = vmatprep.mubr.msk.bf16.mxu1 %vm19052_vm5, %v24174_v60 }
 0x87c   : > { %16618 = vmatmul.mubr.msk.bf16.gmra.mrb[236].mxu0 %vm3966_vm8, %v6721_v39 }
 0x87d   : > { %16621 = vmatprep.mubr.msk.bf16.mxu0 %vm19052_vm5, %v24174_v60 }
 0x881   : > { %16568 = vmatmul.mubr.msk.bf16.vlgmr.msra.gmra.mrb[200].mxu1 %vm3966_vm8, %v20901_v1 }
 0x882   : > { %16571 = vmatprep.mubr.msk.bf16.mxu1 %vm19052_vm5, %v24174_v60  ;;  %16626 = vmatpush3.bf16.msra.mxu1 %v21212_v53 }
 0x883   : > { %16655 = vmatprep.subr.bf16.mxu1 %v24174_v60 }
 0x884   : > { %16622 = vmatmul.mubr.msk.bf16.gmra.mrb[240].mxu0 %vm3966_vm8, %v7058_v41 }
 0x885   : > { %16673 = vmatprep.mubr.msk.bf16.mxu0 %vm19052_vm5, %v24174_v60 }
 0x889   : > { %16572 = vmatmul.mubr.msk.bf16.gmra.mrb[204].mxu1 %vm3966_vm8, %v20918_v42 }
 0x88a   : > { %16575 = vmatprep.mubr.msk.bf16.mxu1 %vm19052_vm5, %v24174_v60 }
 0x88f   : > { %v6401_v1 = vpop.f32.mrb[140].mxu0 }
 0x890   : > { %v16419_v17 = vpop.f32.mrb[141].mxu0 }
 0x891   : > { %v6404_v15 = vpop.f32.mrb[142].mxu0  ;;  %16576 = vmatmul.mubr.msk.bf16.gmra.mrb[208].mxu1 %vm3966_vm8, %v20933_v18 }
 0x892   : > { %v16420_v31 = vpop.f32.mrb[143].mxu0  ;;  %16579 = vmatprep.mubr.msk.bf16.mxu1 %vm19052_vm5, %v24174_v60 }
 0x897   : > { %v6409_v25 = vpop.f32.mrb[144].mxu0 }
 0x898   : > { %v16423_v35 = vpop.f32.mrb[145].mxu0 }
 0x899   : > { %v6412_v0 = vpop.f32.mrb[146].mxu0  ;;  %16580 = vmatmul.mubr.msk.bf16.gmra.mrb[212].mxu1 %vm3966_vm8, %v20951_v9 }
 0x89a   : > { %v16424_v42 = vpop.f32.mrb[147].mxu0  ;;  %16583 = vmatprep.mubr.msk.bf16.mxu1 %vm19052_vm5, %v24174_v60 }
 0x89c   : > { %v6295_v51 = vpop.f32.mrb[108].mxu1 }
 0x89d   : > { %v21236_v7 = vadd.f32 %v6401_v1, %v6295_v51  ;;  %v16389_v22 = vpop.f32.mrb[109].mxu1 }
 0x89e   : > { %v6298_v13 = vpop.f32.mrb[110].mxu1 }
 0x89f   : > { %v21238_v18 = vadd.f32 %v6404_v15, %v6298_v13  ;;  %v16390_v37 = vpop.f32.mrb[111].mxu1  ;;  %v6417_v40 = vpop.f32.mrb[148].mxu0 }
 0x8a0   : > { %v16427_v62 = vpop.f32.mrb[149].mxu0 }
 0x8a1   : > { %v6420_v58 = vpop.f32.mrb[150].mxu0  ;;  %16584 = vmatmul.mubr.msk.bf16.gmra.mrb[216].mxu1 %vm3966_vm8, %v20971_v34 }
 0x8a2   : > { %v16428_v23 = vpop.f32.mrb[151].mxu0  ;;  %16587 = vmatprep.mubr.msk.bf16.mxu1 %vm19052_vm5, %v24174_v60 }
 0x8a4   : > { %v6303_v9 = vpop.f32.mrb[112].mxu1 }
 0x8a5   : > { %v21244_v30 = vadd.f32 %v6409_v25, %v6303_v9  ;;  %v16393_v10 = vpop.f32.mrb[113].mxu1 }
 0x8a6   : > { %v6306_v27 = vpop.f32.mrb[114].mxu1 }
 0x8a7   : > { %v21246_v44 = vadd.f32 %v6412_v0, %v6306_v27  ;;  %v16394_v50 = vpop.f32.mrb[115].mxu1  ;;  %v6425_v46 = vpop.f32.mrb[152].mxu0 }
 0x8a8   : > { %v16431_v39 = vpop.f32.mrb[153].mxu0 }
 0x8a9   : > { %v6428_v38 = vpop.f32.mrb[154].mxu0  ;;  %16588 = vmatmul.mubr.msk.bf16.gmra.mrb[220].mxu1 %vm3966_vm8, %v20986_v56 }
 0x8aa   : > { %v16432_v16 = vpop.f32.mrb[155].mxu0  ;;  %16591 = vmatprep.mubr.msk.bf16.mxu1 %vm19052_vm5, %v24174_v60 }
 0x8ac   : > { %v6311_v34 = vpop.f32.mrb[116].mxu1 }
 0x8ad   : > { %v16397_v3 = vpop.f32.mrb[117].mxu1  ;;  %v21252_v14 = vadd.f32 %v6417_v40, %v6311_v34 }
 0x8ae   : > { %v6314_v48 = vpop.f32.mrb[118].mxu1 }
 0x8af   : > { %v16398_v41 = vpop.f32.mrb[119].mxu1  ;;  %v6433_v1 = vpop.f32.mrb[156].mxu0  ;;  %v21254_v17 = vadd.f32 %v6420_v58, %v6314_v48 }
 0x8b0   : > { %v16435_v15 = vpop.f32.mrb[157].mxu0 }
 0x8b1   : > { %v6436_v31 = vpop.f32.mrb[158].mxu0  ;;  %16592 = vmatmul.mubr.msk.bf16.gmra.mrb[224].mxu1 %vm3966_vm8, %v21004_v29 }
 0x8b2   : > { %v16436_v25 = vpop.f32.mrb[159].mxu0  ;;  %16627 = vmatprep.mubr.msk.bf16.mxu1 %vm19052_vm5, %v24174_v60 }
 0x8b4   : > { %v6319_v56 = vpop.f32.mrb[120].mxu1 }
 0x8b5   : > { %v16401_v35 = vpop.f32.mrb[121].mxu1  ;;  %v21260_v0 = vadd.f32 %v6425_v46, %v6319_v56 }
 0x8b6   : > { %v6322_v42 = vpop.f32.mrb[122].mxu1 }
 0x8b7   : > { %v16402_v51 = vpop.f32.mrb[123].mxu1  ;;  %v21262_v22 = vpop.f32.mrb[160].mxu0  ;;  %v21264_v13 = vadd.f32 %v6428_v38, %v6322_v42 }
 0x8b8   : > { %v16479_v37 = vpop.f32.mrb[161].mxu0 }
 0x8b9   : > { %v21266_v40 = vpop.f32.mrb[162].mxu0  ;;  %16628 = vmatmul.mubr.msk.bf16.vlgmr.msra.gmra.mrb[228].mxu1 %vm3966_vm8, %v21079_v45 }
 0x8ba   : > { %v16480_v29 = vpop.f32.mrb[163].mxu0  ;;  %16631 = vmatprep.mubr.msk.bf16.mxu1 %vm19052_vm5, %v24174_v60 }
 0x8bc   : > { %v6327_v62 = vpop.f32.mrb[124].mxu1 }
 0x8bd   : > { %v16405_v58 = vpop.f32.mrb[125].mxu1  ;;  %v21272_v23 = vadd.f32 %v6433_v1, %v6327_v62 }
 0x8be   : > { %v6330_v9 = vpop.f32.mrb[126].mxu1 }
 0x8bf   : > { %v16406_v10 = vpop.f32.mrb[127].mxu1  ;;  %v21274_v27 = vpop.f32.mrb[164].mxu0  ;;  %v21276_v50 = vadd.f32 %v6436_v31, %v6330_v9 }
 0x8c0   : > { %v16483_v46 = vpop.f32.mrb[165].mxu0 }
 0x8c1   : > { %v21278_v39 = vpop.f32.mrb[166].mxu0  ;;  %16632 = vmatmul.mubr.msk.bf16.gmra.mrb[232].mxu1 %vm3966_vm8, %v21091_v19 }
 0x8c2   : > { %v16484_v45 = vpop.f32.mrb[167].mxu0  ;;  %16635 = vmatprep.mubr.msk.bf16.mxu1 %vm19052_vm5, %v24174_v60 }
 0x8c4   : > { %v6335_v38 = vpop.f32.mrb[128].mxu1 }
 0x8c5   : > { %v16409_v16 = vpop.f32.mrb[129].mxu1 }
 0x8c6   : > { %v6338_v34 = vpop.f32.mrb[130].mxu1 }
 0x8c7   : > { %v16410_v3 = vpop.f32.mrb[131].mxu1  ;;  %v21284_v48 = vpop.f32.mrb[168].mxu0 }
 0x8c8   : > { %v16487_v41 = vpop.f32.mrb[169].mxu0 }
 0x8c9   : > { %v21286_v1 = vpop.f32.mrb[170].mxu0  ;;  %16636 = vmatmul.mubr.msk.bf16.gmra.mrb[236].mxu1 %vm3966_vm8, %v21103_v61 }
 0x8ca   : > { %v16488_v15 = vpop.f32.mrb[171].mxu0  ;;  %16639 = vmatprep.mubr.msk.bf16.mxu1 %vm19052_vm5, %v24174_v60 }
 0x8cc   : > { %v6343_v19 = vpop.f32.mrb[132].mxu1 }
 0x8cd   : > { %v16413_v31 = vpop.f32.mrb[133].mxu1 }
 0x8ce   : > { %v6346_v25 = vpop.f32.mrb[134].mxu1 }
 0x8cf   : > { %v16414_v56 = vpop.f32.mrb[135].mxu1  ;;  %v21292_v35 = vpop.f32.mrb[172].mxu0 }
 0x8d0   : > { %v16491_v42 = vpop.f32.mrb[173].mxu0 }
 0x8d1   : > { %v21294_v51 = vpop.f32.mrb[174].mxu0  ;;  %16640 = vmatmul.mubr.msk.bf16.gmra.mrb[240].mxu1 %vm3966_vm8, %v21115_v52 }
 0x8d2   : > { %v16492_v37 = vpop.f32.mrb[175].mxu0  ;;  %16643 = vmatprep.mubr.msk.bf16.mxu1 %vm19052_vm5, %v24174_v60 }
 0x8d4   : > { %v6441_v61 = vpop.f32.mrb[136].mxu1 }
 0x8d5   : > { %v16439_v29 = vpop.f32.mrb[137].mxu1  ;;  %v21300_v62 = vadd.f32 %v6441_v61, %v6335_v38 }
 0x8d6   : > { %v6444_v58 = vpop.f32.mrb[138].mxu1 }
 0x8d7   : > { %v16440_v9 = vpop.f32.mrb[139].mxu1  ;;  %v21302_v10 = vpop.f32.mrb[176].mxu0  ;;  %v21304_v46 = vadd.f32 %v6444_v58, %v6338_v34 }
 0x8d8   : > { %v16495_v45 = vpop.f32.mrb[177].mxu0 }
 0x8d9   : > { %v21306_v16 = vpop.f32.mrb[178].mxu0  ;;  %16644 = vmatmul.mubr.msk.bf16.gmra.mrb[244].mxu1 %vm3966_vm8, %v21127_v43 }
 0x8da   : > { %v16496_v52 = vpop.f32.mrb[179].mxu0  ;;  %16647 = vmatprep.mubr.msk.bf16.mxu1 %vm19052_vm5, %v24174_v60 }
 0x8dc   : > { %v6449_v3 = vpop.f32.mrb[140].mxu1 }
 0x8dd   : > { %v16443_v41 = vpop.f32.mrb[141].mxu1  ;;  %v21312_v38 = vadd.f32 %v6449_v3, %v6343_v19 }
 0x8de   : > { %v6452_v15 = vpop.f32.mrb[142].mxu1 }
 0x8df   : > { %v16444_v31 = vpop.f32.mrb[143].mxu1  ;;  %v21314_v56 = vpop.f32.mrb[180].mxu0  ;;  %v21316_v34 = vadd.f32 %v6452_v15, %v6346_v25 }
 0x8e0   : > { %v16499_v42 = vpop.f32.mrb[181].mxu0 }
 0x8e1   : > { %v21318_v37 = vpop.f32.mrb[182].mxu0  ;;  %16648 = vmatmul.mubr.msk.bf16.gmra.mrb[248].mxu1 %vm3966_vm8, %v21149_v12 }
 0x8e2   : > { %v16500_v43 = vpop.f32.mrb[183].mxu0  ;;  %16651 = vmatprep.mubr.msk.bf16.mxu1 %vm19052_vm5, %v24174_v60 }
 0x8e4   : > { %v6537_v61 = vpop.f32.mrb[144].mxu1 }
 0x8e5   : > { %v6592_v19 = vadd.f32 %v6537_v61, %v21236_v7  ;;  %v16449_v29 = vpop.f32.mrb[145].mxu1 }
 0x8e6   : > { %v6540_v58 = vpop.f32.mrb[146].mxu1 }
 0x8e7   : > { %v6593_v9 = vadd.f32 %v6540_v58, %v21238_v18  ;;  %v16450_v45 = vpop.f32.mrb[147].mxu1  ;;  %v21326_v25 = vpop.f32.mrb[184].mxu0  ;;  %v21329_v52 = vadd.f32 %v21262_v22, %v6592_v19 }
 0x8e8   : > { %v16503_v3 = vpop.f32.mrb[185].mxu0 }
 0x8e9   : > { %v21331_v41 = vpop.f32.mrb[186].mxu0  ;;  %16652 = vmatmul.mubr.msk.bf16.gmra.mrb[252].mxu1 %vm3966_vm8, %v21033_v6  ;;  %v21336_v12 = vadd.f32 %v21266_v40, %v6593_v9 }
 0x8ea   : > { %v16504_v7 = vpop.f32.mrb[187].mxu0  ;;  %16667 = vmatprep.mubr.msk.bf16.mxu1 %vm19052_vm5, %v24174_v60 }
 0x8ec   : > { %v6545_v18 = vpop.f32.mrb[148].mxu1 }
 0x8ed   : > { %v6594_v15 = vadd.f32 %v6545_v18, %v21244_v30  ;;  %v16453_v31 = vpop.f32.mrb[149].mxu1 }
 0x8ee   : > { %v6548_v42 = vpop.f32.mrb[150].mxu1 }
 0x8ef   : > { %v6595_v22 = vadd.f32 %v6548_v42, %v21246_v44  ;;  %v16454_v43 = vpop.f32.mrb[151].mxu1  ;;  %v21342_v61 = vpop.f32.mrb[188].mxu0  ;;  %v21345_v19 = vadd.f32 %v21274_v27, %v6594_v15 }
 0x8f0   : > { %v16539_v6 = vpop.f32.mrb[189].mxu0 }
 0x8f1   : > { %v21347_v40 = vpop.f32.mrb[190].mxu0  ;;  %v21350_v29 = vadd.f32 %v21278_v39, %v6595_v22 }
 0x8f2   : > { %v16540_v58 = vpop.f32.mrb[191].mxu0 }
 0x8f4   : > { %v6553_v9 = vpop.f32.mrb[152].mxu1 }
 0x8f5   : > { %v6596_v30 = vadd.f32 %v6553_v9, %v21252_v14  ;;  %v16457_v45 = vpop.f32.mrb[153].mxu1 }
 0x8f6   : > { %v6556_v3 = vpop.f32.mrb[154].mxu1 }
 0x8f7   : > { %v6597_v44 = vadd.f32 %v6556_v3, %v21254_v17  ;;  %v16458_v7 = vpop.f32.mrb[155].mxu1  ;;  %v21354_v18 = vpop.f32.mrb[192].mxu0  ;;  %v21357_v27 = vadd.f32 %v21284_v48, %v6596_v30 }
 0x8f8   : > { %v16543_v15 = vpop.f32.mrb[193].mxu0 }
 0x8f9   : > { %v21359_v31 = vpop.f32.mrb[194].mxu0  ;;  %v21362_v39 = vadd.f32 %v21286_v1, %v6597_v44 }
 0x8fa   : > { %v16544_v42 = vpop.f32.mrb[195].mxu0 }
 0x8fc   : > { %v6561_v22 = vpop.f32.mrb[156].mxu1 }
 0x8fd   : > { %v6598_v14 = vadd.f32 %v6561_v22, %v21260_v0  ;;  %v16461_v43 = vpop.f32.mrb[157].mxu1 }
 0x8fe   : > { %v6564_v6 = vpop.f32.mrb[158].mxu1 }
 0x8ff   : > { %v6599_v17 = vadd.f32 %v6564_v6, %v21264_v13  ;;  %v16462_v58 = vpop.f32.mrb[159].mxu1  ;;  %v21366_v9 = vpop.f32.mrb[196].mxu0  ;;  %v21369_v48 = vadd.f32 %v21292_v35, %v6598_v14 }
 0x900   : > { %v16547_v30 = vpop.f32.mrb[197].mxu0 }
 0x901   : > { %v21371_v45 = vpop.f32.mrb[198].mxu0  ;;  %v21374_v1 = vadd.f32 %v21294_v51, %v6599_v17 }
 0x902   : > { %v16548_v3 = vpop.f32.mrb[199].mxu0 }
 0x904   : > { %v6569_v44 = vpop.f32.mrb[160].mxu1 }
 0x905   : > { %v6600_v0 = vadd.f32 %v6569_v44, %v21272_v23  ;;  %v16465_v7 = vpop.f32.mrb[161].mxu1 }
 0x906   : > { %v6572_v15 = vpop.f32.mrb[162].mxu1 }
 0x907   : > { %v6601_v13 = vadd.f32 %v6572_v15, %v21276_v50  ;;  %v16466_v42 = vpop.f32.mrb[163].mxu1  ;;  %v21378_v22 = vpop.f32.mrb[200].mxu0  ;;  %v21381_v35 = vadd.f32 %v21302_v10, %v6600_v0 }
 0x908   : > { %v16551_v14 = vpop.f32.mrb[201].mxu0 }
 0x909   : > { %v21383_v43 = vpop.f32.mrb[202].mxu0  ;;  %v21386_v51 = vadd.f32 %v21306_v16, %v6601_v13 }
 0x90a   : > { %v16552_v6 = vpop.f32.mrb[203].mxu0 }
 0x90c   : > { %v6577_v17 = vpop.f32.mrb[164].mxu1 }
 0x90d   : > { %v6602_v23 = vadd.f32 %v6577_v17, %v21300_v62  ;;  %v16469_v58 = vpop.f32.mrb[165].mxu1 }
 0x90e   : > { %v6580_v30 = vpop.f32.mrb[166].mxu1 }
 0x90f   : > { %v6603_v50 = vadd.f32 %v6580_v30, %v21304_v46  ;;  %v16470_v3 = vpop.f32.mrb[167].mxu1  ;;  %v21390_v44 = vpop.f32.mrb[204].mxu0  ;;  %v21393_v10 = vadd.f32 %v21314_v56, %v6602_v23 }
 0x910   : > { %v16555_v0 = vpop.f32.mrb[205].mxu0 }
 0x911   : > { %v21395_v7 = vpop.f32.mrb[206].mxu0  ;;  %v21398_v16 = vadd.f32 %v21318_v37, %v6603_v50 }
 0x912   : > { %v16556_v15 = vpop.f32.mrb[207].mxu0 }
 0x914   : > { %v6585_v13 = vpop.f32.mrb[168].mxu1 }
 0x915   : > { %v6604_v62 = vadd.f32 %v6585_v13, %v21312_v38  ;;  %v16473_v42 = vpop.f32.mrb[169].mxu1 }
 0x916   : > { %v6588_v14 = vpop.f32.mrb[170].mxu1 }
 0x917   : > { %v6605_v46 = vadd.f32 %v6588_v14, %v21316_v34  ;;  %v16474_v6 = vpop.f32.mrb[171].mxu1  ;;  %v21402_v17 = vpop.f32.mrb[208].mxu0  ;;  %v21405_v56 = vadd.f32 %v21326_v25, %v6604_v62 }
 0x918   : > { %v16559_v23 = vpop.f32.mrb[209].mxu0 }
 0x919   : > { %v21407_v58 = vpop.f32.mrb[210].mxu0  ;;  %v21410_v37 = vadd.f32 %v21331_v41, %v6605_v46 }
 0x91a   : > { %v16560_v30 = vpop.f32.mrb[211].mxu0 }
 0x91c   : > { %v6762_v50 = vpop.f32.mrb[172].mxu1 }
 0x91d   : > { %v6817_v38 = vadd.f32 %v6762_v50, %v21329_v52  ;;  %v16509_v3 = vpop.f32.mrb[173].mxu1 }
 0x91e   : > { %v6765_v0 = vpop.f32.mrb[174].mxu1 }
 0x91f   : > { %v6818_v34 = vadd.f32 %v6765_v0, %v21336_v12  ;;  %v16510_v15 = vpop.f32.mrb[175].mxu1  ;;  %v21414_v13 = vpop.f32.mrb[212].mxu0  ;;  %v21417_v25 = vadd.f32 %v21342_v61, %v6817_v38 }
 0x920   : > { %v16563_v62 = vpop.f32.mrb[213].mxu0 }
 0x921   : > { %v21419_v42 = vpop.f32.mrb[214].mxu0  ;;  %v21422_v41 = vadd.f32 %v21347_v40, %v6818_v34 }
 0x922   : > { %v16564_v14 = vpop.f32.mrb[215].mxu0 }
 0x924   : > { %v6770_v46 = vpop.f32.mrb[176].mxu1 }
 0x925   : > { %v6819_v52 = vadd.f32 %v6770_v46, %v21345_v19  ;;  %v16513_v6 = vpop.f32.mrb[177].mxu1 }
 0x926   : > { %v6773_v23 = vpop.f32.mrb[178].mxu1 }
 0x927   : > { %v6820_v12 = vadd.f32 %v6773_v23, %v21350_v29  ;;  %v16514_v30 = vpop.f32.mrb[179].mxu1  ;;  %v21426_v50 = vpop.f32.mrb[216].mxu0  ;;  %v21429_v61 = vadd.f32 %v21354_v18, %v6819_v52 }
 0x928   : > { %v16599_v38 = vpop.f32.mrb[217].mxu0 }
 0x929   : > { %v21431_v3 = vpop.f32.mrb[218].mxu0  ;;  %v21434_v40 = vadd.f32 %v21359_v31, %v6820_v12 }
 0x92a   : > { %v16600_v0 = vpop.f32.mrb[219].mxu0 }
 0x92c   : > { %v6778_v34 = vpop.f32.mrb[180].mxu1 }
 0x92d   : > { %v6821_v19 = vadd.f32 %v6778_v34, %v21357_v27  ;;  %v16517_v15 = vpop.f32.mrb[181].mxu1 }
 0x92e   : > { %v6781_v62 = vpop.f32.mrb[182].mxu1 }
 0x92f   : > { %v6822_v29 = vadd.f32 %v6781_v62, %v21362_v39  ;;  %v16518_v14 = vpop.f32.mrb[183].mxu1  ;;  %v21438_v46 = vpop.f32.mrb[220].mxu0  ;;  %v21441_v18 = vadd.f32 %v21366_v9, %v6821_v19 }
 0x930   : > { %v16603_v52 = vpop.f32.mrb[221].mxu0 }
 0x931   : > { %v21443_v6 = vpop.f32.mrb[222].mxu0  ;;  %v21446_v31 = vadd.f32 %v21371_v45, %v6822_v29 }
 0x932   : > { %v16604_v23 = vpop.f32.mrb[223].mxu0 }
 0x934   : > { %v6786_v12 = vpop.f32.mrb[184].mxu1 }
 0x935   : > { %v6823_v27 = vadd.f32 %v6786_v12, %v21369_v48  ;;  %v16521_v30 = vpop.f32.mrb[185].mxu1 }
 0x936   : > { %v6789_v38 = vpop.f32.mrb[186].mxu1 }
 0x937   : > { %v6824_v39 = vadd.f32 %v6789_v38, %v21374_v1  ;;  %v16522_v0 = vpop.f32.mrb[187].mxu1  ;;  %v21450_v34 = vpop.f32.mrb[224].mxu0  ;;  %v21453_v9 = vadd.f32 %v21378_v22, %v6823_v27 }
 0x938   : > { %v16607_v19 = vpop.f32.mrb[225].mxu0 }
 0x939   : > { %v21455_v15 = vpop.f32.mrb[226].mxu0  ;;  %v21458_v45 = vadd.f32 %v21383_v43, %v6824_v39 }
 0x93a   : > { %v16608_v62 = vpop.f32.mrb[227].mxu0 }
 0x93c   : > { %v6794_v29 = vpop.f32.mrb[188].mxu1 }
 0x93d   : > { %v6825_v48 = vadd.f32 %v6794_v29, %v21381_v35  ;;  %v16525_v14 = vpop.f32.mrb[189].mxu1 }
 0x93e   : > { %v6797_v52 = vpop.f32.mrb[190].mxu1 }
 0x93f   : > { %v6826_v1 = vadd.f32 %v6797_v52, %v21386_v51  ;;  %v16526_v23 = vpop.f32.mrb[191].mxu1  ;;  %v21462_v12 = vpop.f32.mrb[228].mxu0  ;;  %v21465_v22 = vadd.f32 %v21390_v44, %v6825_v48 }
 0x940   : > { %v16611_v27 = vpop.f32.mrb[229].mxu0 }
 0x941   : > { %v7126_v30 = vpop.f32.mrb[230].mxu0  ;;  %v21468_v38 = vadd.f32 %v21395_v7, %v6826_v1 }
 0x942   : > { %v16612_v43 = vpop.f32.mrb[231].mxu0 }
 0x944   : > { %v6802_v39 = vpop.f32.mrb[192].mxu1 }
 0x945   : > { %v6827_v0 = vadd.f32 %v6802_v39, %v21393_v10  ;;  %v16529_v35 = vpop.f32.mrb[193].mxu1 }
 0x946   : > { %v6805_v19 = vpop.f32.mrb[194].mxu1 }
 0x947   : > { %v6828_v62 = vadd.f32 %v6805_v19, %v21398_v16  ;;  %v16530_v51 = vpop.f32.mrb[195].mxu1  ;;  %v7131_v29 = vpop.f32.mrb[232].mxu0  ;;  %v6939_v14 = vadd.f32 %v21402_v17, %v6827_v0 }
 0x948   : > { %v16615_v52 = vpop.f32.mrb[233].mxu0 }
 0x949   : > { %v7134_v44 = vpop.f32.mrb[234].mxu0  ;;  %v6940_v48 = vadd.f32 %v21407_v58, %v6828_v62 }
 0x94a   : > { %v16616_v23 = vpop.f32.mrb[235].mxu0 }
 0x94c   : > { %v6810_v27 = vpop.f32.mrb[196].mxu1 }
 0x94d   : > { %v6829_v7 = vadd.f32 %v6810_v27, %v21405_v56  ;;  %v16533_v1 = vpop.f32.mrb[197].mxu1 }
 0x94e   : > { %v6813_v43 = vpop.f32.mrb[198].mxu1 }
 0x94f   : > { %v6830_v10 = vadd.f32 %v6813_v43, %v21410_v37  ;;  %v16534_v39 = vpop.f32.mrb[199].mxu1  ;;  %v7139_v35 = vpop.f32.mrb[236].mxu0  ;;  %v6941_v16 = vadd.f32 %v21414_v13, %v6829_v7 }
 0x950   : > { %v16619_v19 = vpop.f32.mrb[237].mxu0 }
 0x951   : > { %v7142_v51 = vpop.f32.mrb[238].mxu0  ;;  %v6942_v17 = vadd.f32 %v21419_v42, %v6830_v10 }
 0x952   : > { %v16620_v0 = vpop.f32.mrb[239].mxu0 }
 0x954   : > { %v6982_v52 = vpop.f32.mrb[200].mxu1 }
 0x955   : > { %v7037_v58 = vadd.f32 %v6982_v52, %v21417_v25  ;;  %v16569_v62 = vpop.f32.mrb[201].mxu1 }
 0x956   : > { %v6985_v23 = vpop.f32.mrb[202].mxu1 }
 0x957   : > { %v7038_v56 = vadd.f32 %v6985_v23, %v21422_v41  ;;  %v16570_v27 = vpop.f32.mrb[203].mxu1  ;;  %v7147_v1 = vpop.f32.mrb[240].mxu0  ;;  %v7154_v37 = vadd.f32 %v21426_v50, %v7037_v58 }
 0x958   : > { %v16623_v43 = vpop.f32.mrb[241].mxu0 }
 0x959   : > { %v7150_v39 = vpop.f32.mrb[242].mxu0  ;;  %v7155_v13 = vadd.f32 %v21431_v3, %v7038_v56 }
 0x95a   : > { %v16624_v7 = vpop.f32.mrb[243].mxu0 }
 0x95c   : > { %v6990_v19 = vpop.f32.mrb[204].mxu1 }
 0x95d   : > { %v7039_v42 = vadd.f32 %v6990_v19, %v21429_v61  ;;  %v16573_v10 = vpop.f32.mrb[205].mxu1 }
 0x95e   : > { %v6993_v0 = vpop.f32.mrb[206].mxu1 }
 0x95f   : > { %v7040_v25 = vadd.f32 %v6993_v0, %v21434_v40  ;;  %v16574_v52 = vpop.f32.mrb[207].mxu1  ;;  %v7156_v62 = vadd.f32 %v21438_v46, %v7039_v42 }
 0x961   : > { %v7157_v41 = vadd.f32 %v21443_v6, %v7040_v25 }
 0x964   : > { %v6998_v23 = vpop.f32.mrb[208].mxu1 }
 0x965   : > { %v7041_v50 = vadd.f32 %v6998_v23, %v21441_v18  ;;  %v16577_v58 = vpop.f32.mrb[209].mxu1 }
 0x966   : > { %v7001_v27 = vpop.f32.mrb[210].mxu1 }
 0x967   : > { %v7042_v3 = vadd.f32 %v7001_v27, %v21446_v31  ;;  %v16578_v56 = vpop.f32.mrb[211].mxu1  ;;  %v7158_v43 = vadd.f32 %v21450_v34, %v7041_v50 }
 0x969   : > { %v21490_v61 = vadd.f32 %v21455_v15, %v7042_v3 }
 0x96c   : > { %v7006_v7 = vpop.f32.mrb[212].mxu1 }
 0x96d   : > { %v7043_v40 = vadd.f32 %v7006_v7, %v21453_v9  ;;  %v16581_v19 = vpop.f32.mrb[213].mxu1 }
 0x96e   : > { %v7009_v46 = vpop.f32.mrb[214].mxu1 }
 0x96f   : > { %v7044_v6 = vadd.f32 %v7009_v46, %v21458_v45  ;;  %v16582_v42 = vpop.f32.mrb[215].mxu1  ;;  %v21495_v18 = vadd.f32 %v21462_v12, %v7043_v40 }
 0x971   : > { %v21497_v10 = vadd.f32 %v7126_v30, %v7044_v6 }
 0x974   : > { %v7014_v31 = vpop.f32.mrb[216].mxu1 }
 0x975   : > { %v7045_v0 = vadd.f32 %v7014_v31, %v21465_v22  ;;  %v16585_v34 = vpop.f32.mrb[217].mxu1 }
 0x976   : > { %v7017_v25 = vpop.f32.mrb[218].mxu1 }
 0x977   : > { %v7046_v15 = vadd.f32 %v7017_v25, %v21468_v38  ;;  %v16586_v52 = vpop.f32.mrb[219].mxu1  ;;  %v21501_v23 = vadd.f32 %v7131_v29, %v7045_v0 }
 0x979   : > { %v21503_v9 = vadd.f32 %v7134_v44, %v7046_v15 }
 0x97c   : > { %v7022_v50 = vpop.f32.mrb[220].mxu1 }
 0x97d   : > { %v7047_v45 = vadd.f32 %v7022_v50, %v6939_v14  ;;  %v16589_v58 = vpop.f32.mrb[221].mxu1  ;;  %v21516_v14 = vld [vmem:[%s24165_s6] ss:$0 sm:$0xff] }
 0x97e   : > { %v7025_v27 = vpop.f32.mrb[222].mxu1 }
 0x97f   : > { %v7048_v12 = vadd.f32 %v7025_v27, %v6940_v48  ;;  %v16590_v3 = vpop.f32.mrb[223].mxu1  ;;  %v21505_v30 = vadd.f32 %v7139_v35, %v7047_v45 }
 0x981   : > { %v21507_v56 = vadd.f32 %v7142_v51, %v7048_v12 }
 0x984   : > { %v7030_v22 = vpop.f32.mrb[224].mxu1 }
 0x985   : > { %v7049_v7 = vadd.f32 %v7030_v22, %v6941_v16  ;;  %v16593_v40 = vpop.f32.mrb[225].mxu1 }
 0x986   : > { %v7033_v19 = vpop.f32.mrb[226].mxu1 }
 0x987   : > { %v7050_v38 = vadd.f32 %v7033_v19, %v6942_v17  ;;  %v16594_v46 = vpop.f32.mrb[227].mxu1  ;;  %v21509_v29 = vadd.f32 %v7147_v1, %v7049_v7 }
 0x989   : > { %v21511_v44 = vadd.f32 %v7150_v39, %v7050_v38 }
 0x98c   : > { %v7211_v48 = vpop.f32.mrb[228].mxu1 }
 0x98d   : > { %v7266_v35 = vadd.f32 %v7211_v48, %v7154_v37  ;;  %v16629_v6 = vpop.f32.mrb[229].mxu1 }
 0x98e   : > { %v7214_v51 = vpop.f32.mrb[230].mxu1 }
 0x98f   : > { %v7286_v42 = vadd.f32 %v21516_v14, %v7266_v35  ;;  %v7267_v16 = vadd.f32 %v7214_v51, %v7155_v13  ;;  %v16630_v31 = vpop.f32.mrb[231].mxu1 }
 0x991   : > { %v7300_v0 = vmax.f32 %v7286_v42, 0.0  ;;  %v7287_v17 = vadd.f32 %v21516_v14, %v7267_v16 }
 0x993   : > { %v7301_v1 = vmax.f32 %v7287_v17, 0.0  ;;  %v7328_v39 = vrot.slane %v7300_v0, 1 }
 0x994   : > { %v7219_v34 = vpop.f32.mrb[232].mxu1 }
 0x995   : > { %v7329_v25 = vrot.slane %v7301_v1, 1  ;;  %v7268_v15 = vadd.f32 %v7219_v34, %v7156_v62  ;;  %v16633_v52 = vpop.f32.mrb[233].mxu1 }
 0x996   : > { %v7222_v50 = vpop.f32.mrb[234].mxu1 }
 0x997   : > { %v7288_v45 = vadd.f32 %v21516_v14, %v7268_v15  ;;  %v7269_v58 = vadd.f32 %v7222_v50, %v7157_v41  ;;  %v16634_v37 = vpop.f32.mrb[235].mxu1  ;;  %v7330_v27 = vsel %vm1893_vm3, %v7328_v39, %v7329_v25 }
 0x998   : > { %v7369_v12 = vmax.f32 %v7300_v0, %v7330_v27 }
 0x999   : > { %v7302_v3 = vmax.f32 %v7288_v45, 0.0  ;;  %v7289_v13 = vadd.f32 %v21516_v14, %v7269_v58 }
 0x99b   : > { %v7331_v22 = vrot.slane %v7302_v3, 1  ;;  %v7303_v7 = vmax.f32 %v7289_v13, 0.0 }
 0x99c   : > { %v7227_v40 = vpop.f32.mrb[236].mxu1 }
 0x99d   : > { %v7333_v19 = vrot.slane %v7303_v7, 1  ;;  %v7270_v38 = vadd.f32 %v7227_v40, %v7158_v43  ;;  %v16637_v46 = vpop.f32.mrb[237].mxu1  ;;  %v7332_v62 = vsel %vm1893_vm3, %v7329_v25, %v7331_v22 }
 0x99e   : > { %v7230_v48 = vpop.f32.mrb[238].mxu1  ;;  %v7370_v35 = vmax.f32 %v7301_v1, %v7332_v62 }
 0x99f   : > { %v7290_v6 = vadd.f32 %v21516_v14, %v7270_v38  ;;  %v7271_v41 = vadd.f32 %v7230_v48, %v21490_v61  ;;  %v16638_v51 = vpop.f32.mrb[239].mxu1  ;;  %v7334_v42 = vsel %vm1893_vm3, %v7331_v22, %v7333_v19 }
 0x9a0   : > { %v7371_v16 = vmax.f32 %v7302_v3, %v7334_v42 }
 0x9a1   : > { %v7304_v31 = vmax.f32 %v7290_v6, 0.0  ;;  %v7291_v0 = vadd.f32 %v21516_v14, %v7271_v41 }
 0x9a2   : > { %v7383_v17 = vmax.f32 %v7369_v12, %v7371_v16 }
 0x9a3   : > { %v7335_v34 = vrot.slane %v7304_v31, 1  ;;  %v7305_v39 = vmax.f32 %v7291_v0, 0.0 }
 0x9a4   : > { %v7235_v43 = vpop.f32.mrb[240].mxu1 }
 0x9a5   : > { %v7337_v15 = vrot.slane %v7305_v39, 1  ;;  %v7272_v25 = vadd.f32 %v7235_v43, %v21495_v18  ;;  %v16641_v52 = vpop.f32.mrb[241].mxu1  ;;  %v7336_v1 = vsel %vm1893_vm3, %v7333_v19, %v7335_v34 }
 0x9a6   : > { %v7238_v50 = vpop.f32.mrb[242].mxu1  ;;  %v7372_v45 = vmax.f32 %v7303_v7, %v7336_v1 }
 0x9a7   : > { %v7292_v61 = vadd.f32 %v21516_v14, %v7272_v25  ;;  %v7273_v58 = vadd.f32 %v7238_v50, %v21497_v10  ;;  %v16642_v37 = vpop.f32.mrb[243].mxu1  ;;  %v7338_v27 = vsel %vm1893_vm3, %v7335_v34, %v7337_v15 }
 0x9a8   : > { %v7384_v3 = vmax.f32 %v7370_v35, %v7372_v45  ;;  %v7373_v12 = vmax.f32 %v7304_v31, %v7338_v27 }
 0x9a9   : > { %v7306_v13 = vmax.f32 %v7292_v61, 0.0  ;;  %v7293_v22 = vadd.f32 %v21516_v14, %v7273_v58 }
 0x9aa   : > { %v7395_v40 = vpack.c.bf16 %v7384_v3, %v7383_v17  ;;  %v7385_v38 = vmax.f32 %v7371_v16, %v7373_v12 }
 0x9ab   : > { %v7339_v18 = vrot.slane %v7306_v13, 1  ;;  %v7307_v46 = vmax.f32 %v7293_v22, 0.0 }
 0x9ac   : > { %v7243_v62 = vpop.f32.mrb[244].mxu1  ;;  %16656 = vmatpush3.bf16.msra.mxu1 %v7395_v40 }
 0x9ad   : > { %v7341_v19 = vrot.slane %v7307_v46, 1  ;;  %v7274_v7 = vadd.f32 %v7243_v62, %v21501_v23  ;;  %v16645_v48 = vpop.f32.mrb[245].mxu1  ;;  %16657 = vmatprep.subr.bf16.mxu1 %v24174_v60  ;;  %v7340_v10 = vsel %vm1893_vm3, %v7337_v15, %v7339_v18 }
 0x9ae   : > { %v7246_v6 = vpop.f32.mrb[246].mxu1  ;;  %v7374_v35 = vmax.f32 %v7305_v39, %v7340_v10 }
 0x9af   : > { %v7294_v41 = vadd.f32 %v21516_v14, %v7274_v7  ;;  %v7275_v51 = vadd.f32 %v7246_v6, %v21503_v9  ;;  %v16646_v42 = vpop.f32.mrb[247].mxu1  ;;  %v7342_v16 = vsel %vm1893_vm3, %v7339_v18, %v7341_v19 }
 0x9b0   : > { %v7386_v31 = vmax.f32 %v7372_v45, %v7374_v35  ;;  %v7375_v0 = vmax.f32 %v7306_v13, %v7342_v16 }
 0x9b1   : > { %v7308_v17 = vmax.f32 %v7294_v41, 0.0  ;;  %v7295_v34 = vadd.f32 %v21516_v14, %v7275_v51 }
 0x9b2   : > { %v7396_v23 = vpack.c.bf16 %v7386_v31, %v7385_v38  ;;  %v7387_v43 = vmax.f32 %v7373_v12, %v7375_v0 }
 0x9b3   : > { %v7343_v25 = vrot.slane %v7308_v17, 1  ;;  %v7309_v52 = vmax.f32 %v7295_v34, 0.0 }
 0x9b4   : > { %v7251_v1 = vpop.f32.mrb[248].mxu1  ;;  %16658 = vmatpush3.bf16.msra.mxu1 %v7396_v23 }
 0x9b5   : > { %v7345_v15 = vrot.slane %v7309_v52, 1  ;;  %v7276_v39 = vadd.f32 %v7251_v1, %v21505_v30  ;;  %v16649_v50 = vpop.f32.mrb[249].mxu1  ;;  %16659 = vmatprep.subr.bf16.mxu1 %v24174_v60  ;;  %v7344_v9 = vsel %vm1893_vm3, %v7341_v19, %v7343_v25 }
 0x9b6   : > { %v7254_v61 = vpop.f32.mrb[250].mxu1  ;;  %v7376_v45 = vmax.f32 %v7307_v46, %v7344_v9 }
 0x9b7   : > { %v7296_v58 = vadd.f32 %v21516_v14, %v7276_v39  ;;  %v7277_v37 = vadd.f32 %v7254_v61, %v21507_v56  ;;  %v16650_v27 = vpop.f32.mrb[251].mxu1  ;;  %v7346_v3 = vsel %vm1893_vm3, %v7343_v25, %v7345_v15 }
 0x9b8   : > { %v7388_v12 = vmax.f32 %v7374_v35, %v7376_v45  ;;  %v7377_v13 = vmax.f32 %v7308_v17, %v7346_v3  ;;  %v18773_v27 = vld [vmem:[%s19180_s26 + $0x1c0] sm:$0xff]  }
 0x9b9   : > { %v7310_v22 = vmax.f32 %v7296_v58, 0.0  ;;  %v7297_v40 = vadd.f32 %v21516_v14, %v7277_v37  ;;  %v18772_v37 = vld [vmem:[%s24170_s11] sm:$0x1f]  }
 0x9ba   : > { %v7397_v30 = vpack.c.bf16 %v7388_v12, %v7387_v43  ;;  %v7389_v38 = vmax.f32 %v7375_v0, %v7377_v13  ;;  %v18831_v3 = vld [vmem:[%s24162_s3 + $0x4] sm:$0xf]  ;;  %v18774_v12 = vld [vmem:[%s19180_s26 + $0x1c8] sm:$0xff]  }
 0x9bb   : > { %v7347_v18 = vrot.slane %v7310_v22, 1  ;;  %v7311_v62 = vmax.f32 %v7297_v40, 0.0  ;;  %v18777_v40 = vld [vmem:[%s19180_s26 + $0x1e0] sm:$0xff]  }
 0x9bc   : > { %v7259_v7 = vpop.f32.mrb[252].mxu1  ;;  %16660 = vmatpush3.bf16.msra.mxu1 %v7397_v30  ;;  %v18778_v30 = vld [vmem:[%s19180_s26 + $0x1e8] sm:$0xff]  }
 0x9bd   : > { %v7349_v19 = vrot.slane %v7311_v62, 1  ;;  %v7278_v46 = vadd.f32 %v7259_v7, %v21509_v29  ;;  %v16653_v48 = vpop.f32.mrb[253].mxu1  ;;  %16661 = vmatprep.subr.bf16.mxu1 %v24174_v60  ;;  %v7348_v56 = vsel %vm1893_vm3, %v7345_v15, %v7347_v18  ;;  %v18783_v7 = vld [vmem:[%s19180_s26 + $0x210] sm:$0xff]  }
 0x9be   : > { %v7262_v10 = vpop.f32.mrb[254].mxu1  ;;  %v7378_v6 = vmax.f32 %v7309_v52, %v7348_v56  ;;  %v18786_v48 = vld [vmem:[%s19180_s26 + $0x228] sm:$0xff]   ;;  %v18787_v56 = vld [vmem:[%s19180_s26 + $0x230] sm:$0xff]  }
 0x9bf   : > { %v7298_v35 = vadd.f32 %v21516_v14, %v7278_v46  ;;  %v7279_v41 = vadd.f32 %v7262_v10, %v21511_v44  ;;  %v16654_v51 = vpop.f32.mrb[255].mxu1  ;;  %v7350_v42 = vsel %vm1893_vm3, %v7347_v18, %v7349_v19  ;;  %v18781_v18 = vld [vmem:[%s19180_s26 + $0x200] sm:$0xff]   ;;  %v18788_v10 = vld [vmem:[%s19180_s26 + $0x238] sm:$0xff]  }
 0x9c0   : > { %v7390_v16 = vmax.f32 %v7376_v45, %v7378_v6  ;;  %v7379_v31 = vmax.f32 %v7310_v22, %v7350_v42  ;;  %v18776_v22 = vld [vmem:[%s19180_s26 + $0x1d8] sm:$0xff]   ;;  %v18785_v46 = vld [vmem:[%s19180_s26 + $0x220] sm:$0xff]  }
 0x9c1   : > { %v7312_v0 = vmax.f32 %v7298_v35, 0.0  ;;  %v7299_v17 = vadd.f32 %v21516_v14, %v7279_v41  ;;  %v18790_v35 = vld [vmem:[%s19180_s26 + $0x248] sm:$0xff]   ;;  %v18791_v41 = vld [vmem:[%s19180_s26 + $0x250] sm:$0xff]   ;;  %v18792_v51 = vld [vmem:[%s19180_s26 + $0x258] sm:$0xff]  }
 0x9c2   : > { %v7398_v29 = vpack.c.bf16 %v7390_v16, %v7389_v38  ;;  %v7391_v34 = vmax.f32 %v7377_v13, %v7379_v31  ;;  %v18775_v13 = vld [vmem:[%s19180_s26 + $0x1d0] sm:$0xff]   ;;  %v18793_v42 = vld [vmem:[%s19180_s26 + $0x260] sm:$0xff]   ;;  %v18794_v16 = vld [vmem:[%s19180_s26 + $0x268] sm:$0xff]  }
 0x9c3   : > { %v7351_v23 = vrot.slane %v7312_v0, 1  ;;  %v7313_v43 = vmax.f32 %v7299_v17, 0.0  ;;  %v18779_v38 = vld [vmem:[%s19180_s26 + $0x1f0] sm:$0xff]  }
 0x9c4   : > { %16662 = vmatpush3.bf16.msra.mxu1 %v7398_v29  ;;  %v18796_v29 = vld [vmem:[%s19180_s26 + $0x278] sm:$0xff]  }
 0x9c5   : > { %v7352_v25 = vsel %vm1893_vm3, %v7349_v19, %v7351_v23  ;;  %v7353_v52 = vrot.slane %v7313_v43, 1  ;;  %16663 = vmatprep.subr.bf16.mxu1 %v24174_v60  ;;  %v18784_v19 = vld [vmem:[%s19180_s26 + $0x218] sm:$0xff]  }
 0x9c6   : > { %v7380_v44 = vmax.f32 %v7311_v62, %v7352_v25  ;;  %v18782_v62 = vld [vmem:[%s19180_s26 + $0x208] sm:$0xff]   ;;  %v18800_v25 = vld [vmem:[%s19180_s26 + $0x298] sm:$0xff]  }
 0x9c7   : > { %v7354_v1 = vsel %vm1893_vm3, %v7351_v23, %v7353_v52  ;;  %v7382_v15 = vmax.f32 %v7313_v43, %v7353_v52  ;;  %v18798_v23 = vld [vmem:[%s19180_s26 + $0x288] sm:$0xff]   ;;  %v18799_v43 = vld [vmem:[%s19180_s26 + $0x290] sm:$0xff]   ;;  %v18801_v52 = vld [vmem:[%s19180_s26 + $0x2a0] sm:$0xff]  }
 0x9c8   : > { %v7392_v39 = vmax.f32 %v7378_v6, %v7380_v44  ;;  %v7381_v50 = vmax.f32 %v7312_v0, %v7354_v1  ;;  %v18789_v6 = vld [vmem:[%s19180_s26 + $0x240] sm:$0xff]   ;;  %v18803_v1 = vld [vmem:[%s19180_s26 + $0x2b0] sm:$0xff]  }
 0x9c9   : > { %v7394_v9 = vmax.f32 %v7380_v44, %v7382_v15  ;;  %v441_v0 = vld [vmem:[%s24166_s7] sm:$0xf]  ;;  %v18802_v44 = vld [vmem:[%s19180_s26 + $0x2a8] sm:$0xff]   ;;  %v18804_v15 = vld [vmem:[%s19180_s26 + $0x2b8] sm:$0xff]  }
 0x9ca   : > { %v7399_v14 = vpack.c.bf16 %v7392_v39, %v7391_v34  ;;  %v7393_v61 = vmax.f32 %v7379_v31, %v7381_v50  ;;  %v18795_v31 = vld [vmem:[%s19180_s26 + $0x270] sm:$0xff]   ;;  %v21623_v17 = vsel %vm1181_vm0, %v441_v0, 0  ;;  %v18797_v34 = vld [vmem:[%s19180_s26 + $0x280] sm:$0xff]   ;;  %v18806_v50 = vld [vmem:[%s19180_s26 + $0x2c8] sm:$0xff]  }
 0x9cb   : > { %24203 = vst [vmem:[#allocation11_spill] sm:$0xff] %v21623_v17  ;;  %16672 = vmatpush3.bf16.msra.mxu0 %v21623_v17  ;;  %v18805_v39 = vld [vmem:[%s19180_s26 + $0x2c0] sm:$0xff]  }
 0x9cc   : > { %16664 = vmatpush3.bf16.msra.mxu1 %v7399_v14  ;;  %v7400_v45 = vpack.c.bf16 %v7394_v9, %v7393_v61  ;;  %16677 = vmatprep.subr.bf16.mxu0 %v24174_v60  ;;  %v18807_v9 = vld [vmem:[%s19180_s26 + $0x2d0] sm:$0xff]   ;;  %v18808_v14 = vld [vmem:[%s19180_s26 + $0x2d8] sm:$0xff]   ;;  %v18809_v61 = vld [vmem:[%s19180_s26 + $0x2e0] sm:$0xff]  }
 0x9cd   : > { %16665 = vmatprep.subr.bf16.mxu1 %v24174_v60 }
 0x9ce   : > { %v7410_v58 = vand.u32 %v7400_v45, %v20019_v32  ;;  %v18810_v45 = vld [vmem:[%s19180_s26 + $0x2e8] sm:$0xff]  }
 0x9d0   : > { %16666 = vmatpush3.bf16.msra.mxu1 %v7410_v58  ;;  %v18811_v58 = vld [vmem:[%s19180_s26 + $0x2f0] sm:$0xff]  }
 0x9d1   : > { %16725 = vmatprep.subr.bf16.mxu1 %v19173_v4 }
 0x9d3   : > { %16668 = vmatmul.mubr.msk.bf16.vlgmr.msra.gmra.mrb[0].mxu1 %vm3098_vm6, %v18772_v37  ;;  %v18812_v37 = vld [vmem:[%s19180_s26 + $0x2f8] sm:$0xff]  }
 0x9d4   : > { %16726 = vmatpush3.bf16.msra.mxu1 %v19173_v4  ;;  %16727 = vmatprep.mubr.msk.bf16.mxu1 %vm1012_vm2, %v18773_v27  ;;  %v18832_v4 = vld [vmem:[%s24162_s3] sm:$0xf] }
 0x9d5   : > { %18462 = vmatprep.subr.msk.bf16.mxu1 %vm1181_vm0, %v18831_v3  ;;  %v442_v3 = vld [vmem:[%s24166_s7 + $0x4] sm:$0xf] }
 0x9db   : > { %16728 = vmatmul.mubr.msk.bf16.vlgmr.msra.gmra.mrb[4].mxu1 %vm1012_vm2, %v18774_v12 }
 0x9dc   : > { %16731 = vmatprep.mubr.msk.bf16.mxu1 %vm1012_vm2, %v18775_v13  ;;  %16920 = vmatpush3.bf16.msra.mxu1 %v20119_v21  ;;  %v18780_v21 = vld [vmem:[%s19180_s26 + $0x1f8] sm:$0xff]  }
 0x9dd   : > { %18463 = vmatprep.subr.msk.bf16.mxu1 %vm1181_vm0, %v18832_v4 }
 0x9e3   : > { %16732 = vmatmul.mubr.msk.bf16.gmra.mrb[8].mxu1 %vm1012_vm2, %v18776_v22 }
 0x9e4   : > { %16735 = vmatprep.mubr.msk.bf16.mxu1 %vm1012_vm2, %v18777_v40  ;;  %v21669_v40 = vsel %vm1181_vm0, %v442_v3, 0 }
 0x9e5   : > { %24204 = vst [vmem:[#allocation12_spill] sm:$0xff] %v21669_v40 }
 0x9eb   : > { %16736 = vmatmul.mubr.msk.bf16.gmra.mrb[12].mxu1 %vm1012_vm2, %v18778_v30 }
 0x9ec   : > { %16739 = vmatprep.mubr.msk.bf16.mxu1 %vm1012_vm2, %v18779_v38  ;;  %v21680_v38 = vld [vmem:[%s24161_s2] ss:$0 sm:$0xff] }
 0x9f3   : > { %16740 = vmatmul.mubr.msk.bf16.gmra.mrb[16].mxu1 %vm1012_vm2, %v18780_v21 }
 0x9f4   : > { %16743 = vmatprep.mubr.msk.bf16.mxu1 %vm1012_vm2, %v18781_v18 }
 0x9fb   : > { %16744 = vmatmul.mubr.msk.bf16.gmra.mrb[20].mxu1 %vm1012_vm2, %v18782_v62 }
 0x9fc   : > { %16747 = vmatprep.mubr.msk.bf16.mxu1 %vm1012_vm2, %v18783_v7 }
 0xa03   : > { %16748 = vmatmul.mubr.msk.bf16.gmra.mrb[24].mxu1 %vm1012_vm2, %v18784_v19 }
 0xa04   : > { %16751 = vmatprep.mubr.msk.bf16.mxu1 %vm1012_vm2, %v18785_v46 }
 0xa0b   : > { %16752 = vmatmul.mubr.msk.bf16.gmra.mrb[28].mxu1 %vm1012_vm2, %v18786_v48 }
 0xa0c   : > { %16755 = vmatprep.mubr.msk.bf16.mxu1 %vm1012_vm2, %v18787_v56  ;;  %v443_v56 = vld [vmem:[%s24166_s7 + $0x8] sm:$0xf] }
 0xa13   : > { %16756 = vmatmul.mubr.msk.bf16.gmra.mrb[32].mxu1 %vm1012_vm2, %v18788_v10 }
 0xa14   : > { %16759 = vmatprep.mubr.msk.bf16.mxu1 %vm1012_vm2, %v18789_v6 }
 0xa1b   : > { %16760 = vmatmul.mubr.msk.bf16.gmra.mrb[36].mxu1 %vm1012_vm2, %v18790_v35 }
 0xa1c   : > { %16763 = vmatprep.mubr.msk.bf16.mxu1 %vm1012_vm2, %v18791_v41 }
 0xa23   : > { %16764 = vmatmul.mubr.msk.bf16.gmra.mrb[40].mxu1 %vm1012_vm2, %v18792_v51 }
 0xa24   : > { %16767 = vmatprep.mubr.msk.bf16.mxu1 %vm1012_vm2, %v18793_v42 }
 0xa2b   : > { %16768 = vmatmul.mubr.msk.bf16.gmra.mrb[44].mxu1 %vm1012_vm2, %v18794_v16 }
 0xa2c   : > { %16771 = vmatprep.mubr.msk.bf16.mxu1 %vm1012_vm2, %v18795_v31  ;;  %v21693_v31 = vsel %vm1181_vm0, %v443_v56, 0 }
 0xa2d   : > { %24205 = vst [vmem:[#allocation13_spill] sm:$0xff] %v21693_v31 }
 0xa33   : > { %16772 = vmatmul.mubr.msk.bf16.gmra.mrb[48].mxu1 %vm1012_vm2, %v18796_v29 }
 0xa34   : > { %16775 = vmatprep.mubr.msk.bf16.mxu1 %vm1012_vm2, %v18797_v34 }
 0xa3b   : > { %16776 = vmatmul.mubr.msk.bf16.gmra.mrb[52].mxu1 %vm1012_vm2, %v18798_v23 }
 0xa3c   : > { %16779 = vmatprep.mubr.msk.bf16.mxu1 %vm1012_vm2, %v18799_v43 }
 0xa43   : > { %16780 = vmatmul.mubr.msk.bf16.gmra.mrb[56].mxu1 %vm1012_vm2, %v18800_v25 }
 0xa44   : > { %16783 = vmatprep.mubr.msk.bf16.mxu1 %vm1012_vm2, %v18801_v52 }
 0xa4b   : > { %16784 = vmatmul.mubr.msk.bf16.gmra.mrb[60].mxu1 %vm1012_vm2, %v18802_v44 }
 0xa4c   : > { %16787 = vmatprep.mubr.msk.bf16.mxu1 %vm1012_vm2, %v18803_v1 }
 0xa53   : > { %16788 = vmatmul.mubr.msk.bf16.gmra.mrb[64].mxu1 %vm1012_vm2, %v18804_v15 }
 0xa54   : > { %16791 = vmatprep.mubr.msk.bf16.mxu1 %vm1012_vm2, %v18805_v39  ;;  %v18813_v39 = vld [vmem:[%s19180_s26 + $0x300] sm:$0xff]  }
 0xa5b   : > { %16792 = vmatmul.mubr.msk.bf16.gmra.mrb[68].mxu1 %vm1012_vm2, %v18806_v50  ;;  %v18814_v50 = vld [vmem:[%s19180_s26 + $0x308] sm:$0xff]  }
 0xa5c   : > { %16795 = vmatprep.mubr.msk.bf16.mxu1 %vm1012_vm2, %v18807_v9 }
 0xa63   : > { %16796 = vmatmul.mubr.msk.bf16.gmra.mrb[72].mxu1 %vm1012_vm2, %v18808_v14 }
 0xa64   : > { %16799 = vmatprep.mubr.msk.bf16.mxu1 %vm1012_vm2, %v18809_v61 }
 0xa6b   : > { %16800 = vmatmul.mubr.msk.bf16.gmra.mrb[76].mxu1 %vm1012_vm2, %v18810_v45 }
 0xa6c   : > { %16803 = vmatprep.mubr.msk.bf16.mxu1 %vm1012_vm2, %v18811_v58 }
 0xa73   : > { %16804 = vmatmul.mubr.msk.bf16.gmra.mrb[80].mxu1 %vm1012_vm2, %v18812_v37 }
 0xa74   : > { %16807 = vmatprep.mubr.msk.bf16.mxu1 %vm1012_vm2, %v18813_v39 }
 0xa7b   : > { %16808 = vmatmul.mubr.msk.bf16.gmra.mrb[84].mxu1 %vm1012_vm2, %v18814_v50 }
 0xaa6   : > { %v7446_v27 = vpop.f32.mrb[0].mxu1 }
 0xaa7   : > { %v16669_v12 = vpop.f32.mrb[1].mxu1 }
 0xaa8   : > { %v7449_v13 = vpop.f32.mrb[2].mxu1  ;;  %v444_v12 = vld [vmem:[%s24166_s7 + $0xc] sm:$0xf] }
 0xaa9   : > { %v21666_v4 = vpack.c.bf16 %v7449_v13, %v7446_v27  ;;  %v16670_v22 = vpop.f32.mrb[3].mxu1 }
 0xaab   : > { %16674 = vmatmul.mubr.msk.bf16.vlgmr.msra.gmra.mrb[244].mxu0 %vm3966_vm8, %v21666_v4  ;;  %v21690_v16 = vshrl.u32 %v21666_v4, 16 }
 0xaac   : > { %16678 = vmatpush3.bf16.msra.mxu0 %v21669_v40  ;;  %16679 = vmatprep.mubr.msk.bf16.mxu0 %vm19052_vm5, %v24174_v60 }
 0xaad   : > { %16683 = vmatprep.subr.bf16.mxu0 %v24174_v60 }
 0xaae   : > { %v16729_v30 = vpop.f32.mrb[4].mxu1 }
 0xaaf   : > { %v8491_v21 = vadd.f32 %v21680_v38, %v16729_v30  ;;  %v8482_v18 = vpop.f32.mrb[5].mxu1 }
 0xab0   : > { %v8483_v62 = vadd.f32 %v21680_v38, %v8482_v18  ;;  %v16730_v7 = vpop.f32.mrb[6].mxu1 }
 0xab1   : > { %v8931_v19 = vmax.f32 %v8491_v21, 0.0  ;;  %v8494_v46 = vadd.f32 %v21680_v38, %v16730_v7  ;;  %v8485_v48 = vpop.f32.mrb[7].mxu1 }
 0xab2   : > { %v8929_v10 = vmax.f32 %v8483_v62, 0.0  ;;  %v8486_v6 = vadd.f32 %v21680_v38, %v8485_v48  ;;  %v21718_v62 = vsel %vm1181_vm0, %v444_v12, 0  ;;  %v7551_v48 = vrot.slane %v21666_v4, 1 }
 0xab3   : > { %v9156_v35 = vrot.slane %v8931_v19, 1  ;;  %v8932_v41 = vmax.f32 %v8494_v46, 0.0  ;;  %24206 = vst [vmem:[#allocation14_spill] sm:$0xff] %v21718_v62 }
 0xab4   : > { %v9153_v51 = vrot.slane %v8929_v10, 1  ;;  %v8930_v42 = vmax.f32 %v8486_v6, 0.0 }
 0xab5   : > { %v9158_v0 = vrot.slane %v8932_v41, 1 }
 0xab6   : > { %v9154_v29 = vrot.slane %v8930_v42, 1  ;;  %v16733_v34 = vpop.f32.mrb[8].mxu1 }
 0xab7   : > { %16680 = vmatmul.mubr.msk.bf16.vlgmr.msra.gmra.mrb[244].mxu0 %vm3966_vm8, %v21690_v16  ;;  %v9159_v23 = vsel %vm1893_vm3, %v9156_v35, %v9158_v0  ;;  %v8507_v43 = vadd.f32 %v21680_v38, %v16733_v34  ;;  %v8498_v25 = vpop.f32.mrb[9].mxu1 }
 0xab8   : > { %16684 = vmatpush3.bf16.msra.mxu0 %v21693_v31  ;;  %16685 = vmatprep.mubr.msk.bf16.mxu0 %vm19052_vm5, %v24174_v60  ;;  %v9155_v52 = vsel %vm1893_vm3, %v9153_v51, %v9154_v29  ;;  %v9157_v44 = vsel %vm1893_vm3, %v9154_v29, %v9156_v35  ;;  %v8499_v1 = vadd.f32 %v21680_v38, %v8498_v25  ;;  %v16734_v15 = vpop.f32.mrb[10].mxu1 }
 0xab9   : > { %16689 = vmatprep.subr.bf16.mxu0 %v24174_v60  ;;  %v9489_v9 = vmax.f32 %v8930_v42, %v9157_v44  ;;  %v8935_v14 = vmax.f32 %v8507_v43, 0.0  ;;  %v8510_v61 = vadd.f32 %v21680_v38, %v16734_v15  ;;  %v8501_v45 = vpop.f32.mrb[11].mxu1  ;;  %v9488_v58 = vmax.f32 %v8929_v10, %v9155_v52  ;;  %v18816_v43 = vld [vmem:[%s19180_s26 + $0x318] sm:$0xff]  }
 0xaba   : > { %v8933_v37 = vmax.f32 %v8499_v1, 0.0  ;;  %v8502_v27 = vadd.f32 %v21680_v38, %v8501_v45  ;;  %v21710_v3 = vmax.f32 %v8931_v19, %v9159_v23 }
 0xabb   : > { %v9164_v13 = vrot.slane %v8935_v14, 1  ;;  %v8936_v22 = vmax.f32 %v8510_v61, 0.0 }
 0xabc   : > { %v9160_v30 = vrot.slane %v8933_v37, 1  ;;  %v8934_v21 = vmax.f32 %v8502_v27, 0.0 }
 0xabd   : > { %v9166_v18 = vrot.slane %v8936_v22, 1 }
 0xabe   : > { %v9161_v7 = vsel %vm1893_vm3, %v9158_v0, %v9160_v30  ;;  %v9162_v19 = vrot.slane %v8934_v21, 1  ;;  %v16737_v46 = vpop.f32.mrb[12].mxu1  ;;  %v18815_v0 = vld [vmem:[%s19180_s26 + $0x310] sm:$0xff]  }
 0xabf   : > { %v9167_v56 = vsel %vm1893_vm3, %v9164_v13, %v9166_v18  ;;  %v8523_v10 = vadd.f32 %v21680_v38, %v16737_v46  ;;  %v8514_v6 = vpop.f32.mrb[13].mxu1  ;;  %v9491_v35 = vmax.f32 %v8932_v41, %v9161_v7  ;;  %16811 = vmatprep.mubr.msk.bf16.mxu1 %vm1012_vm2, %v18815_v0 }
 0xac0   : > { %v9163_v51 = vsel %vm1893_vm3, %v9160_v30, %v9162_v19  ;;  %v9165_v42 = vsel %vm1893_vm3, %v9162_v19, %v9164_v13  ;;  %v8515_v29 = vadd.f32 %v21680_v38, %v8514_v6  ;;  %v16738_v34 = vpop.f32.mrb[14].mxu1  ;;  %v21727_v23 = vmax.f32 %v8935_v14, %v9167_v56  ;;  %16812 = vmatmul.mubr.msk.bf16.gmra.mrb[88].mxu1 %vm1012_vm2, %v18816_v43 }
 0xac1   : > { %v9493_v25 = vmax.f32 %v8934_v21, %v9165_v42  ;;  %v8939_v52 = vmax.f32 %v8523_v10, 0.0  ;;  %v21732_v44 = vadd.f32 %v21680_v38, %v16738_v34  ;;  %v8517_v1 = vpop.f32.mrb[15].mxu1  ;;  %v9492_v15 = vmax.f32 %v8933_v37, %v9163_v51  ;;  %v18817_v42 = vld [vmem:[%s19180_s26 + $0x320] sm:$0xff]  }
 0xac2   : > { %v8937_v39 = vmax.f32 %v8515_v29, 0.0  ;;  %v8518_v41 = vadd.f32 %v21680_v38, %v8517_v1  ;;  %v9602_v50 = vmax.f32 %v21710_v3, %v21727_v23  ;;  %16815 = vmatprep.mubr.msk.bf16.mxu1 %vm1012_vm2, %v18817_v42 }
 0xac3   : > { %16686 = vmatmul.mubr.msk.bf16.vlgmr.msra.gmra.mrb[244].mxu0 %vm3966_vm8, %v7551_v48  ;;  %v9601_v14 = vmax.f32 %v9489_v9, %v9493_v25  ;;  %v9172_v61 = vrot.slane %v8939_v52, 1  ;;  %v8940_v45 = vmax.f32 %v21732_v44, 0.0  ;;  %v9600_v27 = vmax.f32 %v9488_v58, %v9492_v15  ;;  %v445_v44 = vld [vmem:[%s24166_s7 + $0x10] sm:$0xf] }
 0xac4   : > { %16690 = vmatpush3.bf16.msra.mxu0 %v21718_v62  ;;  %16691 = vmatprep.mubr.msk.bf16.mxu0 %vm19052_vm5, %v24174_v60  ;;  %v9168_v37 = vrot.slane %v8937_v39, 1  ;;  %v8938_v12 = vmax.f32 %v8518_v41, 0.0 }
 0xac5   : > { %16695 = vmatprep.subr.bf16.mxu0 %v24174_v60  ;;  %v9174_v3 = vrot.slane %v8940_v45, 1  ;;  %v21745_v13 = vpack.c.bf16 %v9601_v14, %v9600_v27 }
 0xac6   : > { %v9169_v9 = vsel %vm1893_vm3, %v9166_v18, %v9168_v37  ;;  %v9170_v30 = vrot.slane %v8938_v12, 1  ;;  %v16741_v58 = vpop.f32.mrb[16].mxu1  ;;  %v18818_v18 = vld [vmem:[%s19180_s26 + $0x328] sm:$0xff]  }
 0xac7   : > { %v9175_v21 = vsel %vm1893_vm3, %v9172_v61, %v9174_v3  ;;  %v8539_v7 = vadd.f32 %v21680_v38, %v16741_v58  ;;  %v8530_v19 = vpop.f32.mrb[17].mxu1  ;;  %v21750_v46 = vmax.f32 %v8936_v22, %v9169_v9  ;;  %v7599_v58 = vrot.slane %v21690_v16, 1 }
 0xac8   : > { %v9171_v48 = vsel %vm1893_vm3, %v9168_v37, %v9170_v30  ;;  %v9173_v56 = vsel %vm1893_vm3, %v9170_v30, %v9172_v61  ;;  %v8531_v10 = vadd.f32 %v21680_v38, %v8530_v19  ;;  %v16742_v6 = vpop.f32.mrb[18].mxu1  ;;  %v21755_v51 = vmax.f32 %v8939_v52, %v9175_v21  ;;  %16816 = vmatmul.mubr.msk.bf16.gmra.mrb[92].mxu1 %vm1012_vm2, %v18818_v18  ;;  %v18819_v18 = vld [vmem:[%s19180_s26 + $0x330] sm:$0xff]  }
 0xac9   : > { %v21759_v29 = vmax.f32 %v8938_v12, %v9173_v56  ;;  %v8943_v34 = vmax.f32 %v8539_v7, 0.0  ;;  %v21762_v0 = vadd.f32 %v21680_v38, %v16742_v6  ;;  %v8533_v43 = vpop.f32.mrb[19].mxu1  ;;  %v9603_v22 = vmax.f32 %v9491_v35, %v21750_v46  ;;  %16819 = vmatprep.mubr.msk.bf16.mxu1 %vm1012_vm2, %v18819_v18 }
 0xaca   : > { %v8941_v1 = vmax.f32 %v8531_v10, 0.0  ;;  %v8534_v41 = vadd.f32 %v21680_v38, %v8533_v43  ;;  %v9496_v52 = vmax.f32 %v8937_v39, %v9171_v48  ;;  %v9606_v14 = vmax.f32 %v21727_v23, %v21755_v51 }
 0xacb   : > { %v9605_v61 = vmax.f32 %v9493_v25, %v21759_v29  ;;  %v9180_v27 = vrot.slane %v8943_v34, 1  ;;  %v8944_v37 = vmax.f32 %v21762_v0, 0.0  ;;  %v21774_v12 = vpack.c.bf16 %v9603_v22, %v9602_v50  ;;  %v18820_v0 = vld [vmem:[%s19180_s26 + $0x338] sm:$0xff]  }
 0xacc   : > { %v9176_v35 = vrot.slane %v8941_v1, 1  ;;  %v8942_v9 = vmax.f32 %v8534_v41, 0.0  ;;  %v9604_v30 = vmax.f32 %v9492_v15, %v9496_v52  ;;  %v21779_v39 = vsel %vm1181_vm0, %v445_v44, 0 }
 0xacd   : > { %24207 = vst [vmem:[#allocation15_spill] sm:$0xff] %v21779_v39  ;;  %v9182_v23 = vrot.slane %v8944_v37, 1 }
 0xace   : > { %v9177_v21 = vsel %vm1893_vm3, %v9174_v3, %v9176_v35  ;;  %v9178_v25 = vrot.slane %v8942_v9, 1  ;;  %v16745_v7 = vpop.f32.mrb[20].mxu1  ;;  %v21782_v19 = vpack.c.bf16 %v9605_v61, %v9604_v30 }
 0xacf   : > { %16692 = vmatmul.mubr.msk.bf16.vlgmr.msra.gmra.mrb[244].mxu0 %vm3966_vm8, %v7599_v58  ;;  %v9183_v50 = vsel %vm1893_vm3, %v9180_v27, %v9182_v23  ;;  %v8555_v15 = vadd.f32 %v21680_v38, %v16745_v7  ;;  %v8546_v48 = vpop.f32.mrb[21].mxu1  ;;  %v21787_v56 = vmax.f32 %v8940_v45, %v9177_v21 }
 0xad0   : > { %16696 = vmatpush3.bf16.msra.mxu0 %v21779_v39  ;;  %16697 = vmatprep.mubr.msk.bf16.mxu0 %vm19052_vm5, %v24174_v60  ;;  %v9179_v3 = vsel %vm1893_vm3, %v9176_v35, %v9178_v25  ;;  %v9181_v10 = vsel %vm1893_vm3, %v9178_v25, %v9180_v27  ;;  %v8547_v6 = vadd.f32 %v21680_v38, %v8546_v48  ;;  %v16746_v42 = vpop.f32.mrb[22].mxu1 }
 0xad1   : > { %16701 = vmatprep.subr.bf16.mxu0 %v24174_v60  ;;  %v21798_v43 = vmax.f32 %v8942_v9, %v9181_v10  ;;  %v8947_v45 = vmax.f32 %v8555_v15, 0.0  ;;  %v21801_v22 = vadd.f32 %v21680_v38, %v16746_v42  ;;  %v8549_v44 = vpop.f32.mrb[23].mxu1  ;;  %v9607_v41 = vmax.f32 %v21750_v46, %v21787_v56  ;;  %v446_v9 = vld [vmem:[%s24166_s7 + $0x14] sm:$0xf]  ;;  %16820 = vmatmul.mubr.msk.bf16.gmra.mrb[96].mxu1 %vm1012_vm2, %v18820_v0 }
 0xad2   : > { %v8945_v61 = vmax.f32 %v8547_v6, 0.0  ;;  %v8550_v27 = vadd.f32 %v21680_v38, %v8549_v44  ;;  %v9500_v35 = vmax.f32 %v8941_v1, %v9179_v3  ;;  %v21806_v30 = vmax.f32 %v8943_v34, %v9183_v50 }
 0xad3   : > { %v9609_v58 = vmax.f32 %v21759_v29, %v21798_v43  ;;  %v9188_v21 = vrot.slane %v8947_v45, 1  ;;  %v8948_v25 = vmax.f32 %v21801_v22, 0.0  ;;  %v21815_v7 = vpack.c.bf16 %v9607_v41, %v9606_v14 }
 0xad4   : > { %v9184_v46 = vrot.slane %v8945_v61, 1  ;;  %v8946_v1 = vmax.f32 %v8550_v27, 0.0  ;;  %v9608_v34 = vmax.f32 %v9496_v52, %v9500_v35  ;;  %v9610_v50 = vmax.f32 %v21755_v51, %v21806_v30  ;;  %v18821_v27 = vld [vmem:[%s19180_s26 + $0x340] sm:$0xff]  }
 0xad5   : > { %v9190_v15 = vrot.slane %v8948_v25, 1  ;;  %v21821_v48 = vsel %vm1181_vm0, %v446_v9, 0  ;;  %v7647_v6 = vrot.slane %v21666_v4, 2  ;;  %v18822_v9 = vld [vmem:[%s19180_s26 + $0x348] sm:$0xff]   ;;  %16823 = vmatprep.mubr.msk.bf16.mxu1 %vm1012_vm2, %v18821_v27 }
 0xad6   : > { %24208 = vst [vmem:[#allocation16_spill] sm:$0xff] %v21821_v48  ;;  %v9185_v29 = vsel %vm1893_vm3, %v9182_v23, %v9184_v46  ;;  %v9186_v3 = vrot.slane %v8946_v1, 1  ;;  %v16749_v10 = vpop.f32.mrb[24].mxu1  ;;  %v21824_v14 = vpack.c.bf16 %v9609_v58, %v9608_v34 }
 0xad7   : > { %v9191_v42 = vsel %vm1893_vm3, %v9188_v21, %v9190_v15  ;;  %v8571_v52 = vadd.f32 %v21680_v38, %v16749_v10  ;;  %v8562_v18 = vpop.f32.mrb[25].mxu1  ;;  %v21829_v51 = vmax.f32 %v8944_v37, %v9185_v29 }
 0xad8   : > { %v9187_v0 = vsel %vm1893_vm3, %v9184_v46, %v9186_v3  ;;  %v9189_v22 = vsel %vm1893_vm3, %v9186_v3, %v9188_v21  ;;  %v8563_v44 = vadd.f32 %v21680_v38, %v8562_v18  ;;  %v16750_v23 = vpop.f32.mrb[26].mxu1  ;;  %v21834_v41 = vmax.f32 %v8947_v45, %v9191_v42 }
 0xad9   : > { %v9505_v58 = vmax.f32 %v8946_v1, %v9189_v22  ;;  %v8951_v34 = vmax.f32 %v8571_v52, 0.0  ;;  %v21839_v36 = vadd.f32 %v21680_v38, %v16750_v23  ;;  %v8565_v10 = vpop.f32.mrb[27].mxu1  ;;  %v9611_v37 = vmax.f32 %v21787_v56, %v21829_v51  ;;  %16824 = vmatmul.mubr.msk.bf16.gmra.mrb[100].mxu1 %vm1012_vm2, %v18822_v9  ;;  %v18823_v56 = vld [vmem:[%s19180_s26 + $0x350] sm:$0xff]   ;;  %v18824_v9 = vld [vmem:[%s19180_s26 + $0x358] sm:$0xff]  }
 0xada   : > { %v8949_v46 = vmax.f32 %v8563_v44, 0.0  ;;  %v8566_v21 = vadd.f32 %v21680_v38, %v8565_v10  ;;  %v9504_v29 = vmax.f32 %v8945_v61, %v9187_v0  ;;  %v9614_v45 = vmax.f32 %v21806_v30, %v21834_v41  ;;  %16827 = vmatprep.mubr.msk.bf16.mxu1 %vm1012_vm2, %v18823_v56 }
 0xadb   : > { %16698 = vmatmul.mubr.msk.bf16.vlgmr.msra.gmra.mrb[244].mxu0 %vm3966_vm8, %v7647_v6  ;;  %v9613_v1 = vmax.f32 %v21798_v43, %v9505_v58  ;;  %v9196_v3 = vrot.slane %v8951_v34, 1  ;;  %v8952_v42 = vmax.f32 %v21839_v36, 0.0  ;;  %v21850_v52 = vpack.c.bf16 %v9611_v37, %v9610_v50 }
 0xadc   : > { %16702 = vmatpush3.bf16.msra.mxu0 %v21821_v48  ;;  %16703 = vmatprep.mubr.msk.bf16.mxu0 %vm19052_vm5, %v24174_v60  ;;  %v9192_v61 = vrot.slane %v8949_v46, 1  ;;  %v8950_v30 = vmax.f32 %v8566_v21, 0.0  ;;  %v9612_v18 = vmax.f32 %v9500_v35, %v9504_v29 }
 0xadd   : > { %16707 = vmatprep.subr.bf16.mxu0 %v24174_v60  ;;  %v9198_v43 = vrot.slane %v8952_v42, 1 }
 0xade   : > { %v9193_v36 = vsel %vm1893_vm3, %v9190_v15, %v9192_v61  ;;  %v9194_v50 = vrot.slane %v8950_v30, 1  ;;  %v16753_v6 = vpop.f32.mrb[28].mxu1  ;;  %v21860_v0 = vpack.c.bf16 %v9613_v1, %v9612_v18 }
 0xadf   : > { %v9199_v22 = vsel %vm1893_vm3, %v9196_v3, %v9198_v43  ;;  %v8587_v44 = vadd.f32 %v21680_v38, %v16753_v6  ;;  %v8578_v23 = vpop.f32.mrb[29].mxu1  ;;  %v21864_v27 = vmax.f32 %v8948_v25, %v9193_v36  ;;  %v447_v25 = vld [vmem:[%s24166_s7 + $0x18] sm:$0xf] }
 0xae0   : > { %v9195_v35 = vsel %vm1893_vm3, %v9192_v61, %v9194_v50  ;;  %v9197_v10 = vsel %vm1893_vm3, %v9194_v50, %v9196_v3  ;;  %v8579_v37 = vadd.f32 %v21680_v38, %v8578_v23  ;;  %v16754_v21 = vpop.f32.mrb[30].mxu1  ;;  %v21870_v15 = vmax.f32 %v8951_v34, %v9199_v22 }
 0xae1   : > { %v9509_v1 = vmax.f32 %v8950_v30, %v9197_v10  ;;  %v8955_v56 = vmax.f32 %v8587_v44, 0.0  ;;  %v21873_v18 = vadd.f32 %v21680_v38, %v16754_v21  ;;  %v8581_v6 = vpop.f32.mrb[31].mxu1  ;;  %v9508_v60 = vmax.f32 %v8949_v46, %v9195_v35  ;;  %16828 = vmatmul.mubr.msk.bf16.gmra.mrb[104].mxu1 %vm1012_vm2, %v18824_v9  ;;  %v18825_v46 = vld [vmem:[%s19180_s26 + $0x360] sm:$0xff]  }
 0xae2   : > { %v8953_v61 = vmax.f32 %v8579_v37, 0.0  ;;  %v8582_v3 = vadd.f32 %v21680_v38, %v8581_v6  ;;  %v9615_v36 = vmax.f32 %v21829_v51, %v21864_v27  ;;  %v9618_v34 = vmax.f32 %v21834_v41, %v21870_v15  ;;  %16831 = vmatprep.mubr.msk.bf16.mxu1 %vm1012_vm2, %v18825_v46 }
 0xae3   : > { %v9617_v30 = vmax.f32 %v9505_v58, %v9509_v1  ;;  %v9204_v50 = vrot.slane %v8955_v56, 1  ;;  %v8956_v22 = vmax.f32 %v21873_v18, 0.0  ;;  %v9616_v44 = vmax.f32 %v9504_v29, %v9508_v60 }
 0xae4   : > { %v9200_v23 = vrot.slane %v8953_v61, 1  ;;  %v8954_v35 = vmax.f32 %v8582_v3, 0.0  ;;  %v21886_v10 = vpack.c.bf16 %v9615_v36, %v9614_v45  ;;  %v7695_v37 = vrot.slane %v21690_v16, 2 }
 0xae5   : > { %v21890_v51 = vsel %vm1181_vm0, %v447_v25, 0  ;;  %v9206_v21 = vrot.slane %v8956_v22, 1  ;;  %v21892_v41 = vpack.c.bf16 %v9617_v30, %v9616_v44  ;;  %v18826_v25 = vld [vmem:[%s19180_s26 + $0x368] sm:$0xff]   ;;  %v24210_v36 = vmov 0.0  }
 0xae6   : > { %24209 = vst [vmem:[#allocation17_spill] sm:$0xff] %v21890_v51  ;;  %v9201_v58 = vsel %vm1893_vm3, %v9198_v43, %v9200_v23  ;;  %v9202_v29 = vrot.slane %v8954_v35, 1  ;;  %v16757_v9 = vpop.f32.mrb[32].mxu1 }
 0xae7   : > { %16704 = vmatmul.mubr.msk.bf16.vlgmr.msra.gmra.mrb[244].mxu0 %vm3966_vm8, %v7695_v37  ;;  %v21897_v18 = vmax.f32 %v8952_v42, %v9201_v58  ;;  %v9207_v45 = vsel %vm1893_vm3, %v9204_v50, %v9206_v21  ;;  %v8603_v6 = vadd.f32 %v21680_v38, %v16757_v9  ;;  %v8594_v3 = vpop.f32.mrb[33].mxu1 }
 0xae8   : > { %16708 = vmatpush3.bf16.msra.mxu0 %v21890_v51  ;;  %16709 = vmatprep.mubr.msk.bf16.mxu0 %vm19052_vm5, %v24210_v36  ;;  %v21905_v30 = vmax.f32 %v8955_v56, %v9207_v45  ;;  %v9203_v43 = vsel %vm1893_vm3, %v9200_v23, %v9202_v29  ;;  %v9205_v44 = vsel %vm1893_vm3, %v9202_v29, %v9204_v50  ;;  %v16758_v42 = vpop.f32.mrb[34].mxu1 }
 0xae9   : > { %16713 = vmatprep.subr.bf16.mxu0 %v24210_v36  ;;  %v9512_v46 = vmax.f32 %v8953_v61, %v9203_v43  ;;  %v9513_v37 = vmax.f32 %v8954_v35, %v9205_v44  ;;  %v8959_v58 = vmax.f32 %v8603_v6, 0.0  ;;  %v8595_v9 = vadd.f32 %v21680_v38, %v8594_v3  ;;  %v8597_v48 = vpop.f32.mrb[35].mxu1  ;;  %16832 = vmatmul.mubr.msk.bf16.gmra.mrb[108].mxu1 %vm1012_vm2, %v18826_v25  ;;  %v18827_v61 = vld [vmem:[%s19180_s26 + $0x370] sm:$0xff]   ;;  %v448_v35 = vld [vmem:[%s24166_s7 + $0x1c] sm:$0xf] }
 0xaea   : > { %v21912_v51 = vadd.f32 %v21680_v38, %v16758_v42  ;;  %v8598_v56 = vadd.f32 %v21680_v38, %v8597_v48  ;;  %v9619_v23 = vmax.f32 %v21864_v27, %v21897_v18  ;;  %v9622_v50 = vmax.f32 %v21870_v15, %v21905_v30  ;;  %16835 = vmatprep.mubr.msk.bf16.mxu1 %vm1012_vm2, %v18827_v61 }
 0xaeb   : > { %v9620_v29 = vmax.f32 %v9508_v60, %v9512_v46  ;;  %v9621_v45 = vmax.f32 %v9509_v1, %v9513_v37  ;;  %v8957_v39 = vmax.f32 %v8595_v9, 0.0  ;;  %v9212_v6 = vrot.slane %v8959_v58, 1 }
 0xaec   : > { %v8960_v48 = vmax.f32 %v21912_v51, 0.0  ;;  %v8958_v3 = vmax.f32 %v8598_v56, 0.0  ;;  %v21925_v43 = vpack.c.bf16 %v9619_v23, %v9618_v34  ;;  %v7743_v44 = vrot.slane %v21666_v4, 3  ;;  %v18828_v34 = vld [vmem:[%s19180_s26 + $0x378] sm:$0xff]   ;;  %s15294_s26 = sshll.u32 %s19140_s25, 5  ;;  %s14282_s25 = scalar_lea.sflag [#allocation3], %s407_s0 }
 0xaed   : > { %v21927_v27 = vpack.c.bf16 %v9621_v45, %v9620_v29  ;;  %v9208_v15 = vrot.slane %v8957_v39, 1  ;;  %v21932_v42 = vsel %vm1181_vm0, %v448_v35, 0  ;;  %s24117_s28 = scalar_lea.hbm %s24171_s12, %s15294_s26 }
 0xaee   : > { %v9214_v60 = vrot.slane %v8960_v48, 1  ;;  %v9210_v1 = vrot.slane %v8958_v3, 1  ;;  %v16761_v25 = vpop.f32.mrb[36].mxu1  ;;  %24211 = vst [vmem:[#allocation18_spill] sm:$0xff] %v21932_v42 }
 0xaef   : > { %v9209_v9 = vsel %vm1893_vm3, %v9206_v21, %v9208_v15  ;;  %v8619_v51 = vadd.f32 %v21680_v38, %v16761_v25  ;;  %v8610_v56 = vpop.f32.mrb[37].mxu1 }
 0xaf0   : > { %v9515_v23 = vmax.f32 %v8956_v22, %v9209_v9  ;;  %v9215_v29 = vsel %vm1893_vm3, %v9212_v6, %v9214_v60  ;;  %v9211_v45 = vsel %vm1893_vm3, %v9208_v15, %v9210_v1  ;;  %v9213_v61 = vsel %vm1893_vm3, %v9210_v1, %v9212_v6  ;;  %v16762_v62 = vpop.f32.mrb[38].mxu1 }
 0xaf1   : > { %v21940_v31 = vmax.f32 %v8959_v58, %v9215_v29  ;;  %v9516_v40 = vmax.f32 %v8957_v39, %v9211_v45  ;;  %v9517_v17 = vmax.f32 %v8958_v3, %v9213_v61  ;;  %v8963_v35 = vmax.f32 %v8619_v51, 0.0  ;;  %v8613_v53 = vpop.f32.mrb[39].mxu1  ;;  %16836 = vmatmul.mubr.msk.bf16.gmra.mrb[112].mxu1 %vm1012_vm2, %v18828_v34 }
 0xaf2   : > { %v8611_v21 = vadd.f32 %v21680_v38, %v8610_v56  ;;  %v21944_v25 = vadd.f32 %v21680_v38, %v16762_v62  ;;  %v8614_v22 = vadd.f32 %v21680_v38, %v8613_v53  ;;  %v9623_v9 = vmax.f32 %v21897_v18, %v9515_v23 }
 0xaf3   : > { %16710 = vmatmul.mubr.msk.bf16.vlgmr.msra.gmra.mrb[244].mxu0 %vm3966_vm8, %v7743_v44  ;;  %v9624_v15 = vmax.f32 %v9512_v46, %v9516_v40  ;;  %v9625_v6 = vmax.f32 %v9513_v37, %v9517_v17  ;;  %v9220_v1 = vrot.slane %v8963_v35, 1  ;;  %v9626_v39 = vmax.f32 %v21905_v30, %v21940_v31 }
 0xaf4   : > { %16714 = vmatpush3.bf16.msra.mxu0 %v21932_v42  ;;  %16715 = vmatprep.mubr.msk.bf16.mxu0 %vm19052_vm5, %v24210_v36  ;;  %v8961_v62 = vmax.f32 %v8611_v21, 0.0  ;;  %v8964_v53 = vmax.f32 %v21944_v25, 0.0  ;;  %v8962_v58 = vmax.f32 %v8614_v22, 0.0  ;;  %v21956_v18 = vpack.c.bf16 %v9623_v9, %v9622_v50 }
 0xaf5   : > { %16719 = vmatprep.subr.bf16.mxu0 %v24210_v36  ;;  %v21959_v46 = vpack.c.bf16 %v9625_v6, %v9624_v15  ;;  %v449_v6 = vld [vmem:[%s24166_s7 + $0x20] sm:$0xf] }
 0xaf6   : > { %v9216_v37 = vrot.slane %v8961_v62, 1  ;;  %v9222_v3 = vrot.slane %v8964_v53, 1  ;;  %v9218_v30 = vrot.slane %v8962_v58, 1  ;;  %v16765_v44 = vpop.f32.mrb[40].mxu1 }
 0xaf7   : > { %v8635_v51 = vadd.f32 %v21680_v38, %v16765_v44  ;;  %v8626_v56 = vpop.f32.mrb[41].mxu1 }
 0xaf8   : > { %v9217_v34 = vsel %vm1893_vm3, %v9214_v60, %v9216_v37  ;;  %v9223_v29 = vsel %vm1893_vm3, %v9220_v1, %v9222_v3  ;;  %v9219_v45 = vsel %vm1893_vm3, %v9216_v37, %v9218_v30  ;;  %v9221_v50 = vsel %vm1893_vm3, %v9218_v30, %v9220_v1  ;;  %v16766_v61 = vpop.f32.mrb[42].mxu1 }
 0xaf9   : > { %v9519_v21 = vmax.f32 %v8960_v48, %v9217_v34  ;;  %v21966_v25 = vmax.f32 %v8963_v35, %v9223_v29  ;;  %v9520_v22 = vmax.f32 %v8961_v62, %v9219_v45  ;;  %v9521_v9 = vmax.f32 %v8962_v58, %v9221_v50  ;;  %v8629_v15 = vpop.f32.mrb[43].mxu1 }
 0xafa   : > { %v8967_v44 = vmax.f32 %v8635_v51, 0.0  ;;  %v8627_v60 = vadd.f32 %v21680_v38, %v8626_v56  ;;  %v8638_v42 = vadd.f32 %v21680_v38, %v16766_v61  ;;  %v8630_v37 = vadd.f32 %v21680_v38, %v8629_v15 }
 0xafb   : > { %v9628_v11 = vmax.f32 %v9516_v40, %v9520_v22  ;;  %v9629_v1 = vmax.f32 %v9517_v17, %v9521_v9  ;;  %v9627_v30 = vmax.f32 %v9515_v23, %v9519_v21  ;;  %v9630_v48 = vmax.f32 %v21940_v31, %v21966_v25 }
 0xafc   : > { %v9228_v35 = vrot.slane %v8967_v44, 1  ;;  %v8965_v62 = vmax.f32 %v8627_v60, 0.0  ;;  %v8968_v58 = vmax.f32 %v8638_v42, 0.0  ;;  %v8966_v34 = vmax.f32 %v8630_v37, 0.0 }
 0xafd   : > { %v7791_v29 = vrot.slane %v21690_v16, 3  ;;  %v21978_v51 = vsel %vm1181_vm0, %v449_v6, 0  ;;  %v21980_v56 = vpack.c.bf16 %v9629_v1, %v9628_v11  ;;  %v21982_v45 = vpack.c.bf16 %v9627_v30, %v9626_v39 }
 0xafe   : > { %24212 = vst [vmem:[#allocation19_spill] sm:$0xff] %v21978_v51  ;;  %v9224_v50 = vrot.slane %v8965_v62, 1  ;;  %v9230_v40 = vrot.slane %v8968_v58, 1  ;;  %v9226_v17 = vrot.slane %v8966_v34, 1  ;;  %v16769_v23 = vpop.f32.mrb[44].mxu1  ;;  %v24213_v15 = vmov 0  }
 0xaff   : > { %16716 = vmatmul.mubr.msk.bf16.vlgmr.msra.gmra.mrb[244].mxu0 %vm3966_vm8, %v7791_v29  ;;  %v8651_v31 = vadd.f32 %v21680_v38, %v16769_v23  ;;  %v8642_v61 = vpop.f32.mrb[45].mxu1 }
 0xb00   : > { %16720 = vmatpush3.bf16.msra.mxu0 %v21978_v51  ;;  %16721 = vmatprep.mubr.msk.bf16.mxu0 %vm19052_vm5, %v24210_v36  ;;  %v9225_v16 = vsel %vm1893_vm3, %v9222_v3, %v9224_v50  ;;  %v9231_v11 = vsel %vm1893_vm3, %v9228_v35, %v9230_v40  ;;  %v9227_v42 = vsel %vm1893_vm3, %v9224_v50, %v9226_v17  ;;  %v16770_v39 = vpop.f32.mrb[46].mxu1 }
 0xb01   : > { %9765 = vmatprep.subr.bf16.mxu0 %v24213_v15  ;;  %v9523_v6 = vmax.f32 %v8964_v53, %v9225_v16  ;;  %v21993_v60 = vmax.f32 %v8967_v44, %v9231_v11  ;;  %v9229_v37 = vsel %vm1893_vm3, %v9226_v17, %v9228_v35  ;;  %v9524_v1 = vmax.f32 %v8965_v62, %v9227_v42  ;;  %v8645_v30 = vpop.f32.mrb[47].mxu1 }
 0xb02   : > { %v9525_v29 = vmax.f32 %v8966_v34, %v9229_v37  ;;  %v8971_v23 = vmax.f32 %v8651_v31, 0.0  ;;  %v8643_v51 = vadd.f32 %v21680_v38, %v8642_v61  ;;  %v8654_v3 = vadd.f32 %v21680_v38, %v16770_v39 }
 0xb03   : > { %v9632_v57 = vmax.f32 %v9520_v22, %v9524_v1  ;;  %v8646_v28 = vadd.f32 %v21680_v38, %v8645_v30  ;;  %v9631_v50 = vmax.f32 %v9519_v21, %v9523_v6  ;;  %v9634_v59 = vmax.f32 %v21966_v25, %v21993_v60 }
 0xb04   : > { %v9633_v53 = vmax.f32 %v9521_v9, %v9525_v29  ;;  %v9236_v44 = vrot.slane %v8971_v23, 1  ;;  %v8969_v16 = vmax.f32 %v8643_v51, 0.0  ;;  %v8972_v11 = vmax.f32 %v8654_v3, 0.0 }
 0xb05   : > { %v8970_v35 = vmax.f32 %v8646_v28, 0.0  ;;  %v22001_v62 = vpack.c.bf16 %v9631_v50, %v9630_v48  ;;  %v7839_v21 = vrot.slane %v21666_v4, 4 }
 0xb06   : > { %v22003_v34 = vpack.c.bf16 %v9633_v53, %v9632_v57  ;;  %v9232_v17 = vrot.slane %v8969_v16, 1  ;;  %v9238_v31 = vrot.slane %v8972_v11, 1  ;;  %v16773_v61 = vpop.f32.mrb[48].mxu1 }
 0xb07   : > { %v9234_v42 = vrot.slane %v8970_v35, 1  ;;  %v8667_v22 = vadd.f32 %v21680_v38, %v16773_v61  ;;  %v8658_v39 = vpop.f32.mrb[49].mxu1 }
 0xb08   : > { %v9233_v25 = vsel %vm1893_vm3, %v9230_v40, %v9232_v17  ;;  %v9239_v9 = vsel %vm1893_vm3, %v9236_v44, %v9238_v31  ;;  %v8659_v51 = vadd.f32 %v21680_v38, %v8658_v39  ;;  %v16774_v28 = vpop.f32.mrb[50].mxu1 }
 0xb09   : > { %v9527_v48 = vmax.f32 %v8968_v58, %v9233_v25  ;;  %v22010_v37 = vmax.f32 %v8971_v23, %v9239_v9  ;;  %v9235_v57 = vsel %vm1893_vm3, %v9232_v17, %v9234_v42  ;;  %v9237_v30 = vsel %vm1893_vm3, %v9234_v42, %v9236_v44  ;;  %v8661_v3 = vpop.f32.mrb[51].mxu1 }
 0xb0a   : > { %v9528_v50 = vmax.f32 %v8969_v16, %v9235_v57  ;;  %v9529_v53 = vmax.f32 %v8970_v35, %v9237_v30  ;;  %v8975_v61 = vmax.f32 %v8667_v22, 0.0  ;;  %v8973_v54 = vmax.f32 %v8659_v51, 0.0  ;;  %v18834_v16 = vld [vmem:[%s24168_s9 + $0x4] ss:$28 sps:$4 sm:$0xff]  }
 0xb0b   : > { %16722 = vmatmul.mubr.msk.bf16.vlgmr.msra.gmra.mrb[244].mxu0 %vm3966_vm8, %v7839_v21  ;;  %v9635_v4 = vmax.f32 %v9523_v6, %v9527_v48  ;;  %v9638_v40 = vmax.f32 %v21993_v60, %v22010_v37  ;;  %v8670_v39 = vadd.f32 %v21680_v38, %v16774_v28  ;;  %v8662_v58 = vadd.f32 %v21680_v38, %v8661_v3 }
 0xb0c   : > { %9766 = vmatpush1.bf16.msra.mxu0 %v21745_v13  ;;  %v9636_v23 = vmax.f32 %v9524_v1, %v9528_v50  ;;  %v9637_v17 = vmax.f32 %v9525_v29, %v9529_v53  ;;  %v9240_v44 = vrot.slane %v8973_v54, 1  ;;  %9797 = vmatprep.mubr.bf16.mxu0 %v18834_v16  ;;  %v9244_v6 = vrot.slane %v8975_v61, 1 }
 0xb0d   : > { %9767 = vmatprep.subr.bf16.mxu0 %v24213_v15  ;;  %v22024_v35 = vpack.c.bf16 %v9635_v4, %v9634_v59  ;;  %v8976_v60 = vmax.f32 %v8670_v39, 0.0  ;;  %v8974_v42 = vmax.f32 %v8662_v58, 0.0 }
 0xb0e   : > { %v22026_v22 = vpack.c.bf16 %v9637_v17, %v9636_v23  ;;  %v9241_v21 = vsel %vm1893_vm3, %v9238_v31, %v9240_v44  ;;  %v16777_v13 = vpop.f32.mrb[52].mxu1 }
 0xb0f   : > { %v22029_v1 = vmax.f32 %v8972_v11, %v9241_v21  ;;  %v9246_v29 = vrot.slane %v8976_v60, 1  ;;  %v9242_v25 = vrot.slane %v8974_v42, 1  ;;  %v8683_v9 = vadd.f32 %v21680_v38, %v16777_v13  ;;  %v8674_v51 = vpop.f32.mrb[53].mxu1 }
 0xb10   : > { %9768 = vmatpush1.bf16.msra.mxu0 %v21774_v12  ;;  %v8675_v28 = vadd.f32 %v21680_v38, %v8674_v51  ;;  %v16778_v59 = vpop.f32.mrb[54].mxu1 }
 0xb11   : > { %9769 = vmatprep.subr.bf16.mxu0 %v24213_v15  ;;  %v9639_v57 = vmax.f32 %v9527_v48, %v22029_v1  ;;  %v9247_v30 = vsel %vm1893_vm3, %v9244_v6, %v9246_v29  ;;  %v9243_v31 = vsel %vm1893_vm3, %v9240_v44, %v9242_v25  ;;  %v9245_v11 = vsel %vm1893_vm3, %v9242_v25, %v9244_v6  ;;  %v8677_v3 = vpop.f32.mrb[55].mxu1 }
 0xb12   : > { %v22039_v4 = vmax.f32 %v8975_v61, %v9247_v30  ;;  %v9532_v39 = vmax.f32 %v8973_v54, %v9243_v31  ;;  %v9533_v58 = vmax.f32 %v8974_v42, %v9245_v11  ;;  %v8979_v23 = vmax.f32 %v8683_v9, 0.0 }
 0xb13   : > { %v22041_v12 = vpack.c.bf16 %v9639_v57, %v9638_v40  ;;  %v8977_v17 = vmax.f32 %v8675_v28, 0.0  ;;  %v8686_v16 = vadd.f32 %v21680_v38, %v16778_v59  ;;  %v8678_v21 = vadd.f32 %v21680_v38, %v8677_v3 }
 0xb14   : > { %9770 = vmatpush1.bf16.msra.mxu0 %v21782_v19  ;;  %v9640_v48 = vmax.f32 %v9528_v50, %v9532_v39  ;;  %v9641_v13 = vmax.f32 %v9529_v53, %v9533_v58  ;;  %v9642_v44 = vmax.f32 %v22010_v37, %v22039_v4  ;;  %v9252_v61 = vrot.slane %v8979_v23, 1 }
 0xb15   : > { %9771 = vmatprep.subr.bf16.mxu0 %v24213_v15  ;;  %v9248_v54 = vrot.slane %v8977_v17, 1  ;;  %v8980_v6 = vmax.f32 %v8686_v16, 0.0  ;;  %v8978_v42 = vmax.f32 %v8678_v21, 0.0 }
 0xb16   : > { %v22049_v40 = vpack.c.bf16 %v9641_v13, %v9640_v48  ;;  %v16781_v25 = vpop.f32.mrb[56].mxu1 }
 0xb17   : > { %v9249_v9 = vsel %vm1893_vm3, %v9246_v29, %v9248_v54  ;;  %v9254_v51 = vrot.slane %v8980_v6, 1  ;;  %v9250_v28 = vrot.slane %v8978_v42, 1  ;;  %v8699_v19 = vadd.f32 %v21680_v38, %v16781_v25  ;;  %v8690_v50 = vpop.f32.mrb[57].mxu1 }
 0xb18   : > { %9772 = vmatpush1.bf16.msra.mxu0 %v21815_v7  ;;  %v9535_v53 = vmax.f32 %v8976_v60, %v9249_v9  ;;  %v8691_v37 = vadd.f32 %v21680_v38, %v8690_v50  ;;  %v16782_v59 = vpop.f32.mrb[58].mxu1 }
 0xb19   : > { %9773 = vmatprep.subr.bf16.mxu0 %v24213_v15  ;;  %v9255_v57 = vsel %vm1893_vm3, %v9252_v61, %v9254_v51  ;;  %v9251_v30 = vsel %vm1893_vm3, %v9248_v54, %v9250_v28  ;;  %v9253_v31 = vsel %vm1893_vm3, %v9250_v28, %v9252_v61  ;;  %v8983_v29 = vmax.f32 %v8699_v19, 0.0  ;;  %v8693_v11 = vpop.f32.mrb[59].mxu1 }
 0xb1a   : > { %v22059_v3 = vmax.f32 %v8979_v23, %v9255_v57  ;;  %v9536_v16 = vmax.f32 %v8977_v17, %v9251_v30  ;;  %v9537_v21 = vmax.f32 %v8978_v42, %v9253_v31  ;;  %v8981_v48 = vmax.f32 %v8691_v37, 0.0 }
 0xb1b   : > { %v8702_v7 = vadd.f32 %v21680_v38, %v16782_v59  ;;  %v8694_v60 = vadd.f32 %v21680_v38, %v8693_v11  ;;  %v9643_v13 = vmax.f32 %v22029_v1, %v9535_v53  ;;  %v9260_v23 = vrot.slane %v8983_v29, 1 }
 0xb1c   : > { %9774 = vmatpush1.bf16.msra.mxu0 %v21824_v14  ;;  %v9644_v25 = vmax.f32 %v9532_v39, %v9536_v16  ;;  %v9645_v9 = vmax.f32 %v9533_v58, %v9537_v21  ;;  %v9256_v54 = vrot.slane %v8981_v48, 1  ;;  %v9646_v61 = vmax.f32 %v22039_v4, %v22059_v3 }
 0xb1d   : > { %9775 = vmatprep.subr.bf16.mxu0 %v24213_v15  ;;  %v8984_v17 = vmax.f32 %v8702_v7, 0.0  ;;  %v8982_v42 = vmax.f32 %v8694_v60, 0.0  ;;  %v22068_v28 = vpack.c.bf16 %v9643_v13, %v9642_v44 }
 0xb1e   : > { %v22070_v19 = vpack.c.bf16 %v9645_v9, %v9644_v25  ;;  %v9257_v50 = vsel %vm1893_vm3, %v9254_v51, %v9256_v54  ;;  %v16785_v1 = vpop.f32.mrb[60].mxu1 }
 0xb1f   : > { %v22073_v37 = vmax.f32 %v8980_v6, %v9257_v50  ;;  %v9262_v14 = vrot.slane %v8984_v17, 1  ;;  %v9258_v39 = vrot.slane %v8982_v42, 1  ;;  %v8715_v58 = vadd.f32 %v21680_v38, %v16785_v1  ;;  %v8706_v59 = vpop.f32.mrb[61].mxu1 }
 0xb20   : > { %9776 = vmatpush1.bf16.msra.mxu0 %v21850_v52  ;;  %v8707_v4 = vadd.f32 %v21680_v38, %v8706_v59  ;;  %v16786_v57 = vpop.f32.mrb[62].mxu1 }
 0xb21   : > { %9777 = vmatprep.subr.bf16.mxu0 %v24213_v15  ;;  %v9263_v44 = vsel %vm1893_vm3, %v9260_v23, %v9262_v14  ;;  %v9259_v30 = vsel %vm1893_vm3, %v9256_v54, %v9258_v39  ;;  %v9261_v51 = vsel %vm1893_vm3, %v9258_v39, %v9260_v23  ;;  %v8987_v6 = vmax.f32 %v8715_v58, 0.0  ;;  %v8709_v31 = vpop.f32.mrb[63].mxu1 }
 0xb22   : > { %v22082_v11 = vmax.f32 %v8983_v29, %v9263_v44  ;;  %v9540_v7 = vmax.f32 %v8981_v48, %v9259_v30  ;;  %v9541_v60 = vmax.f32 %v8982_v42, %v9261_v51  ;;  %v8985_v13 = vmax.f32 %v8707_v4, 0.0 }
 0xb23   : > { %v8718_v52 = vadd.f32 %v21680_v38, %v16786_v57  ;;  %v8710_v25 = vadd.f32 %v21680_v38, %v8709_v31  ;;  %v9647_v9 = vmax.f32 %v9535_v53, %v22073_v37  ;;  %v9268_v29 = vrot.slane %v8987_v6, 1 }
 0xb24   : > { %9778 = vmatpush1.bf16.msra.mxu0 %v21860_v0  ;;  %v9648_v50 = vmax.f32 %v9536_v16, %v9540_v7  ;;  %v9649_v1 = vmax.f32 %v9537_v21, %v9541_v60  ;;  %v9264_v54 = vrot.slane %v8985_v13, 1  ;;  %v9650_v23 = vmax.f32 %v22059_v3, %v22082_v11  ;;  %v22101_v3 = vld [vmem:[%s24161_s2] ss:$0 sm:$0xff] }
 0xb25   : > { %9779 = vmatprep.subr.bf16.mxu0 %v24213_v15  ;;  %v8988_v48 = vmax.f32 %v8718_v52, 0.0  ;;  %v8986_v42 = vmax.f32 %v8710_v25, 0.0  ;;  %v22091_v39 = vpack.c.bf16 %v9647_v9, %v9646_v61 }
 0xb26   : > { %v22093_v58 = vpack.c.bf16 %v9649_v1, %v9648_v50  ;;  %v9265_v38 = vsel %vm1893_vm3, %v9262_v14, %v9264_v54  ;;  %v16789_v53 = vpop.f32.mrb[64].mxu1 }
 0xb27   : > { %v22096_v59 = vmax.f32 %v8984_v17, %v9265_v38  ;;  %v9270_v0 = vrot.slane %v8988_v48, 1  ;;  %v9266_v16 = vrot.slane %v8986_v42, 1  ;;  %v8731_v21 = vadd.f32 %v22101_v3, %v16789_v53  ;;  %v8722_v4 = vpop.f32.mrb[65].mxu1 }
 0xb28   : > { %9780 = vmatpush1.bf16.msra.mxu0 %v21886_v10  ;;  %v8723_v61 = vadd.f32 %v22101_v3, %v8722_v4  ;;  %v16790_v57 = vpop.f32.mrb[66].mxu1 }
 0xb29   : > { %9781 = vmatprep.subr.bf16.mxu0 %v24213_v15  ;;  %v9271_v17 = vsel %vm1893_vm3, %v9268_v29, %v9270_v0  ;;  %v9267_v14 = vsel %vm1893_vm3, %v9264_v54, %v9266_v16  ;;  %v9269_v44 = vsel %vm1893_vm3, %v9266_v16, %v9268_v29  ;;  %v8991_v30 = vmax.f32 %v8731_v21, 0.0  ;;  %v8725_v51 = vpop.f32.mrb[67].mxu1 }
 0xb2a   : > { %v22110_v31 = vmax.f32 %v8987_v6, %v9271_v17  ;;  %v9544_v52 = vmax.f32 %v8985_v13, %v9267_v14  ;;  %v9545_v25 = vmax.f32 %v8986_v42, %v9269_v44  ;;  %v8989_v9 = vmax.f32 %v8723_v61, 0.0 }
 0xb2b   : > { %v8734_v10 = vadd.f32 %v22101_v3, %v16790_v57  ;;  %v8726_v50 = vadd.f32 %v22101_v3, %v8725_v51  ;;  %v9651_v1 = vmax.f32 %v22073_v37, %v22096_v59  ;;  %v9276_v6 = vrot.slane %v8991_v30, 1 }
 0xb2c   : > { %9782 = vmatpush1.bf16.msra.mxu0 %v21892_v41  ;;  %v9652_v38 = vmax.f32 %v9540_v7, %v9544_v52  ;;  %v9653_v54 = vmax.f32 %v9541_v60, %v9545_v25  ;;  %v9272_v53 = vrot.slane %v8989_v9, 1  ;;  %v9654_v29 = vmax.f32 %v22082_v11, %v22110_v31 }
 0xb2d   : > { %9783 = vmatprep.subr.bf16.mxu0 %v24213_v15  ;;  %v8992_v13 = vmax.f32 %v8734_v10, 0.0  ;;  %v8990_v42 = vmax.f32 %v8726_v50, 0.0  ;;  %v22120_v16 = vpack.c.bf16 %v9651_v1, %v9650_v23 }
 0xb2e   : > { %v22122_v21 = vpack.c.bf16 %v9653_v54, %v9652_v38  ;;  %v9273_v4 = vsel %vm1893_vm3, %v9270_v0, %v9272_v53  ;;  %v16793_v37 = vpop.f32.mrb[68].mxu1 }
 0xb2f   : > { %v22125_v61 = vmax.f32 %v8988_v48, %v9273_v4  ;;  %v9278_v41 = vrot.slane %v8992_v13, 1  ;;  %v9274_v7 = vrot.slane %v8990_v42, 1  ;;  %v8747_v60 = vadd.f32 %v22101_v3, %v16793_v37  ;;  %v8738_v57 = vpop.f32.mrb[69].mxu1 }
 0xb30   : > { %9784 = vmatpush1.bf16.msra.mxu0 %v21925_v43  ;;  %v8739_v11 = vadd.f32 %v22101_v3, %v8738_v57  ;;  %v16794_v17 = vpop.f32.mrb[70].mxu1 }
 0xb31   : > { %9785 = vmatprep.subr.bf16.mxu0 %v24213_v15  ;;  %v9279_v23 = vsel %vm1893_vm3, %v9276_v6, %v9278_v41  ;;  %v9275_v14 = vsel %vm1893_vm3, %v9272_v53, %v9274_v7  ;;  %v9277_v0 = vsel %vm1893_vm3, %v9274_v7, %v9276_v6  ;;  %v8995_v48 = vmax.f32 %v8747_v60, 0.0  ;;  %v8741_v44 = vpop.f32.mrb[71].mxu1 }
 0xb32   : > { %v22134_v51 = vmax.f32 %v8991_v30, %v9279_v23  ;;  %v9548_v10 = vmax.f32 %v8989_v9, %v9275_v14  ;;  %v9549_v50 = vmax.f32 %v8990_v42, %v9277_v0  ;;  %v8993_v1 = vmax.f32 %v8739_v11, 0.0 }
 0xb33   : > { %v8750_v43 = vadd.f32 %v22101_v3, %v16794_v17  ;;  %v8742_v38 = vadd.f32 %v22101_v3, %v8741_v44  ;;  %v9655_v54 = vmax.f32 %v22096_v59, %v22125_v61  ;;  %v9284_v30 = vrot.slane %v8995_v48, 1 }
 0xb34   : > { %9786 = vmatpush1.bf16.msra.mxu0 %v21927_v27  ;;  %v9656_v4 = vmax.f32 %v9544_v52, %v9548_v10  ;;  %v9657_v53 = vmax.f32 %v9545_v25, %v9549_v50  ;;  %v9280_v37 = vrot.slane %v8993_v1, 1  ;;  %v9658_v6 = vmax.f32 %v22110_v31, %v22134_v51 }
 0xb35   : > { %9787 = vmatprep.subr.bf16.mxu0 %v24213_v15  ;;  %v8996_v9 = vmax.f32 %v8750_v43, 0.0  ;;  %v8994_v42 = vmax.f32 %v8742_v38, 0.0  ;;  %v22144_v7 = vpack.c.bf16 %v9655_v54, %v9654_v29 }
 0xb36   : > { %v22146_v60 = vpack.c.bf16 %v9657_v53, %v9656_v4  ;;  %v9281_v57 = vsel %vm1893_vm3, %v9278_v41, %v9280_v37  ;;  %v16797_v59 = vpop.f32.mrb[72].mxu1 }
 0xb37   : > { %v22149_v11 = vmax.f32 %v8992_v13, %v9281_v57  ;;  %v9286_v27 = vrot.slane %v8996_v9, 1  ;;  %v9282_v52 = vrot.slane %v8994_v42, 1  ;;  %v8763_v25 = vadd.f32 %v22101_v3, %v16797_v59  ;;  %v8754_v17 = vpop.f32.mrb[73].mxu1 }
 0xb38   : > { %9788 = vmatpush1.bf16.msra.mxu0 %v21956_v18  ;;  %v8755_v31 = vadd.f32 %v22101_v3, %v8754_v17  ;;  %v16798_v23 = vpop.f32.mrb[74].mxu1 }
 0xb39   : > { %9789 = vmatprep.subr.bf16.mxu0 %v24213_v15  ;;  %v9287_v29 = vsel %vm1893_vm3, %v9284_v30, %v9286_v27  ;;  %v9283_v14 = vsel %vm1893_vm3, %v9280_v37, %v9282_v52  ;;  %v9285_v41 = vsel %vm1893_vm3, %v9282_v52, %v9284_v30  ;;  %v8999_v13 = vmax.f32 %v8763_v25, 0.0  ;;  %v8757_v0 = vpop.f32.mrb[75].mxu1 }
 0xb3a   : > { %v22158_v44 = vmax.f32 %v8995_v48, %v9287_v29  ;;  %v9552_v43 = vmax.f32 %v8993_v1, %v9283_v14  ;;  %v9553_v38 = vmax.f32 %v8994_v42, %v9285_v41  ;;  %v8997_v54 = vmax.f32 %v8755_v31, 0.0 }
 0xb3b   : > { %v8766_v18 = vadd.f32 %v22101_v3, %v16798_v23  ;;  %v8758_v4 = vadd.f32 %v22101_v3, %v8757_v0  ;;  %v9659_v53 = vmax.f32 %v22125_v61, %v22149_v11  ;;  %v9292_v48 = vrot.slane %v8999_v13, 1 }
 0xb3c   : > { %9790 = vmatpush1.bf16.msra.mxu0 %v21959_v46  ;;  %v9660_v57 = vmax.f32 %v9548_v10, %v9552_v43  ;;  %v9661_v37 = vmax.f32 %v9549_v50, %v9553_v38  ;;  %v9288_v59 = vrot.slane %v8997_v54, 1  ;;  %v9662_v30 = vmax.f32 %v22134_v51, %v22158_v44 }
 0xb3d   : > { %9791 = vmatprep.subr.bf16.mxu0 %v24213_v15  ;;  %v9000_v1 = vmax.f32 %v8766_v18, 0.0  ;;  %v8998_v42 = vmax.f32 %v8758_v4, 0.0  ;;  %v22168_v52 = vpack.c.bf16 %v9659_v53, %v9658_v6 }
 0xb3e   : > { %v22170_v25 = vpack.c.bf16 %v9661_v37, %v9660_v57  ;;  %v9289_v17 = vsel %vm1893_vm3, %v9286_v27, %v9288_v59  ;;  %v16801_v61 = vpop.f32.mrb[76].mxu1 }
 0xb3f   : > { %v9555_v31 = vmax.f32 %v8996_v9, %v9289_v17  ;;  %v9294_v46 = vrot.slane %v9000_v1, 1  ;;  %v9290_v10 = vrot.slane %v8998_v42, 1  ;;  %v8779_v50 = vadd.f32 %v22101_v3, %v16801_v61  ;;  %v8770_v23 = vpop.f32.mrb[77].mxu1 }
 0xb40   : > { %9792 = vmatpush1.bf16.msra.mxu0 %v21982_v45  ;;  %v8771_v51 = vadd.f32 %v22101_v3, %v8770_v23  ;;  %v16802_v29 = vpop.f32.mrb[78].mxu1 }
 0xb41   : > { %9793 = vmatprep.subr.bf16.mxu0 %v24213_v15  ;;  %v9295_v6 = vsel %vm1893_vm3, %v9292_v48, %v9294_v46  ;;  %v9291_v14 = vsel %vm1893_vm3, %v9288_v59, %v9290_v10  ;;  %v9293_v27 = vsel %vm1893_vm3, %v9290_v10, %v9292_v48  ;;  %v9003_v41 = vmax.f32 %v8779_v50, 0.0  ;;  %v8773_v9 = vpop.f32.mrb[79].mxu1 }
 0xb42   : > { %v9558_v0 = vmax.f32 %v8999_v13, %v9295_v6  ;;  %v9556_v18 = vmax.f32 %v8997_v54, %v9291_v14  ;;  %v9557_v4 = vmax.f32 %v8998_v42, %v9293_v27  ;;  %v9001_v53 = vmax.f32 %v8771_v51, 0.0 }
 0xb43   : > { %v8782_v57 = vadd.f32 %v22101_v3, %v16802_v29  ;;  %v8774_v45 = vadd.f32 %v22101_v3, %v8773_v9  ;;  %v9663_v37 = vmax.f32 %v22149_v11, %v9555_v31  ;;  %v9300_v48 = vrot.slane %v9003_v41, 1 }
 0xb44   : > { %9794 = vmatpush1.bf16.msra.mxu0 %v21980_v56  ;;  %v9664_v17 = vmax.f32 %v9552_v43, %v9556_v18  ;;  %v9665_v61 = vmax.f32 %v9553_v38, %v9557_v4  ;;  %v9296_v23 = vrot.slane %v9001_v53, 1  ;;  %v9666_v59 = vmax.f32 %v22158_v44, %v9558_v0 }
 0xb45   : > { %9795 = vmatprep.subr.bf16.mxu0 %v24213_v15  ;;  %v9004_v13 = vmax.f32 %v8782_v57, 0.0  ;;  %v9002_v54 = vmax.f32 %v8774_v45, 0.0  ;;  %v22186_v42 = vpack.c.bf16 %v9663_v37, %v9662_v30  ;;  %v18837_v57 = vld [vmem:[%s24168_s9 + $0x3c] ss:$28 sps:$4 sm:$0xff]  }
 0xb46   : > { %v22188_v10 = vpack.c.bf16 %v9665_v61, %v9664_v17  ;;  %v9297_v50 = vsel %vm1893_vm3, %v9294_v46, %v9296_v23  ;;  %v22191_v51 = vpop.f32.mrb[80].mxu1 }
 0xb47   : > { %v9559_v11 = vmax.f32 %v9000_v1, %v9297_v50  ;;  %v9302_v56 = vrot.slane %v9004_v13, 1  ;;  %v9298_v43 = vrot.slane %v9002_v54, 1  ;;  %v8786_v38 = vpop.f32.mrb[81].mxu1 }
 0xb48   : > { %9796 = vmatpush1.bf16.msra.mxu0 %v22001_v62  ;;  %v22195_v44 = vadd.f32 %v22101_v3, %v8786_v38  ;;  %v18836_v62 = vld [vmem:[%s24168_s9] ss:$28 sps:$4 sm:$0xff]  }
 0xb49   : > { %9934 = vmatprep.subr.bf16.mxu0 %v24213_v15  ;;  %v9303_v30 = vsel %vm1893_vm3, %v9300_v48, %v9302_v56  ;;  %v9299_v29 = vsel %vm1893_vm3, %v9296_v23, %v9298_v43  ;;  %v9301_v6 = vsel %vm1893_vm3, %v9298_v43, %v9300_v48  ;;  %v9667_v9 = vmax.f32 %v9555_v31, %v9559_v11  ;;  %v18839_v23 = vld [vmem:[%s24168_s9 + $0x74] ss:$28 sps:$4 sm:$0xff]  }
 0xb4a   : > { %v22201_v46 = vmax.f32 %v9003_v41, %v9303_v30  ;;  %v22203_v14 = vmax.f32 %v9001_v53, %v9299_v29  ;;  %v22205_v1 = vmax.f32 %v9002_v54, %v9301_v6  ;;  %v9005_v27 = vmax.f32 %v22195_v44, 0.0 }
 0xb4b   : > { %9798 = vmatmul.mubr.bf16.vlgmr.msra.gmra.mrb[248].mxu0 %v18836_v62  ;;  %v22223_v31 = vpack.c.bf16 %v9667_v9, %v9666_v59  ;;  %v18843_v59 = vld [vmem:[%s24168_s9 + $0xe4] ss:$28 sps:$4 sm:$0xff]  }
 0xb4c   : > { %9935 = vmatpush1.bf16.msra.mxu0 %v22003_v34  ;;  %9805 = vmatprep.mubr.bf16.mxu0 %v18837_v57  ;;  %v9668_v41 = vmax.f32 %v9556_v18, %v22203_v14  ;;  %v9669_v53 = vmax.f32 %v9557_v4, %v22205_v1  ;;  %v22219_v45 = vrot.slane %v9005_v27, 1  ;;  %v9670_v37 = vmax.f32 %v9558_v0, %v22201_v46  ;;  %v18838_v0 = vld [vmem:[%s24168_s9 + $0x38] ss:$28 sps:$4 sm:$0xff]  }
 0xb4d   : > { %9936 = vmatprep.subr.bf16.mxu0 %v24213_v15 }
 0xb4e   : > { %v22225_v34 = vpack.c.bf16 %v9669_v53, %v9668_v41  ;;  %v9305_v17 = vsel %vm1893_vm3, %v9302_v56, %v22219_v45 }
 0xb4f   : > { %v22229_v61 = vmax.f32 %v9004_v13, %v9305_v17  ;;  %v16806_v13 = vpop.f32.mrb[82].mxu1 }
 0xb50   : > { %9937 = vmatpush1.bf16.msra.mxu0 %v22024_v35  ;;  %v18840_v35 = vld [vmem:[%s24168_s9 + $0x70] ss:$28 sps:$4 sm:$0xff]   ;;  %v8798_v54 = vadd.f32 %v22101_v3, %v16806_v13  ;;  %v8789_v50 = vpop.f32.mrb[83].mxu1 }
 0xb51   : > { %9938 = vmatprep.subr.bf16.mxu0 %v24213_v15  ;;  %v9671_v18 = vmax.f32 %v9559_v11, %v22229_v61 }
 0xb53   : > { %9806 = vmatmul.mubr.bf16.gmra.mrb[252].mxu0 %v18838_v0  ;;  %v22237_v4 = vpack.c.bf16 %v9671_v18, %v9670_v37  ;;  %v16809_v37 = vpop.f32.mrb[84].mxu1 }
 0xb54   : > { %9939 = vmatpush1.bf16.msra.mxu0 %v22026_v22  ;;  %9813 = vmatprep.mubr.bf16.mxu0 %v18839_v23  ;;  %v18841_v22 = vld [vmem:[%s24168_s9 + $0xac] ss:$28 sps:$4 sm:$0xff]   ;;  %v8811_v17 = vadd.f32 %v22101_v3, %v16809_v37  ;;  %v8802_v18 = vpop.f32.mrb[85].mxu1 }
 0xb55   : > { %9940 = vmatprep.subr.bf16.mxu0 %v24213_v15  ;;  %v8803_v0 = vadd.f32 %v22101_v3, %v8802_v18  ;;  %v16810_v23 = vpop.f32.mrb[86].mxu1 }
 0xb57   : > { %v9009_v44 = vmax.f32 %v8803_v0, 0.0  ;;  %v18857_v0 = vld [vmem:[%s24168_s9 + $0x26c] ss:$28 sps:$4 sm:$0xff]  }
 0xb58   : > { %9941 = vmatpush1.bf16.msra.mxu0 %v22041_v12  ;;  %v18842_v12 = vld [vmem:[%s24168_s9 + $0xa8] ss:$28 sps:$4 sm:$0xff]  }
 0xb59   : > { %9942 = vmatprep.subr.bf16.mxu0 %v24213_v15 }
 0xb5b   : > { %9814 = vmatmul.mubr.bf16.gmra.mrb[0].mxu0 %v18840_v35  ;;  %v9011_v35 = vmax.f32 %v8811_v17, 0.0 }
 0xb5c   : > { %9821 = vmatprep.mubr.bf16.mxu0 %v18841_v22  ;;  %9943 = vmatpush1.bf16.msra.mxu0 %v22049_v40  ;;  %v18844_v40 = vld [vmem:[%s24168_s9 + $0xe0] ss:$28 sps:$4 sm:$0xff]   ;;  %v8814_v22 = vadd.f32 %v22101_v3, %v16810_v23 }
 0xb5d   : > { %9944 = vmatprep.subr.bf16.mxu0 %v24213_v15 }
 0xb60   : > { %9945 = vmatpush1.bf16.msra.mxu0 %v22068_v28  ;;  %v18845_v28 = vld [vmem:[%s24168_s9 + $0x11c] ss:$28 sps:$4 sm:$0xff]  }
 0xb61   : > { %9946 = vmatprep.subr.bf16.mxu0 %v24213_v15 }
 0xb63   : > { %9822 = vmatmul.mubr.bf16.gmra.mrb[4].mxu0 %v18842_v12  ;;  %v8805_v12 = vpop.f32.mrb[87].mxu1 }
 0xb64   : > { %9829 = vmatprep.mubr.bf16.mxu0 %v18843_v59  ;;  %9947 = vmatpush1.bf16.msra.mxu0 %v22070_v19  ;;  %v18846_v19 = vld [vmem:[%s24168_s9 + $0x118] ss:$28 sps:$4 sm:$0xff]  }
 0xb65   : > { %9948 = vmatprep.subr.bf16.mxu0 %v24213_v15  ;;  %v18855_v59 = vld [vmem:[%s24168_s9 + $0x234] ss:$28 sps:$4 sm:$0xff]  }
 0xb68   : > { %9949 = vmatpush1.bf16.msra.mxu0 %v22091_v39  ;;  %v18847_v39 = vld [vmem:[%s24168_s9 + $0x154] ss:$28 sps:$4 sm:$0xff]  }
 0xb69   : > { %9950 = vmatprep.subr.bf16.mxu0 %v24213_v15 }
 0xb6b   : > { %9830 = vmatmul.mubr.bf16.gmra.mrb[8].mxu0 %v18844_v40  ;;  %v9316_v40 = vrot.slane %v9011_v35, 1 }
 0xb6c   : > { %9837 = vmatprep.mubr.bf16.mxu0 %v18845_v28  ;;  %9951 = vmatpush1.bf16.msra.mxu0 %v22093_v58  ;;  %v18848_v58 = vld [vmem:[%s24168_s9 + $0x150] ss:$28 sps:$4 sm:$0xff]   ;;  %v9312_v28 = vrot.slane %v9009_v44, 1 }
 0xb6d   : > { %9952 = vmatprep.subr.bf16.mxu0 %v24213_v15 }
 0xb70   : > { %9953 = vmatpush1.bf16.msra.mxu0 %v22120_v16  ;;  %v18849_v16 = vld [vmem:[%s24168_s9 + $0x18c] ss:$28 sps:$4 sm:$0xff]  }
 0xb71   : > { %9954 = vmatprep.subr.bf16.mxu0 %v24213_v15 }
 0xb73   : > { %9838 = vmatmul.mubr.bf16.gmra.mrb[12].mxu0 %v18846_v19 }
 0xb74   : > { %9845 = vmatprep.mubr.bf16.mxu0 %v18847_v39  ;;  %9955 = vmatpush1.bf16.msra.mxu0 %v22122_v21  ;;  %v8795_v21 = vadd.f32 %v22101_v3, %v22191_v51  ;;  %v9008_v51 = vmax.f32 %v8798_v54, 0.0 }
 0xb75   : > { %9956 = vmatprep.subr.bf16.mxu0 %v24213_v15 }
 0xb76   : > { %v9007_v48 = vmax.f32 %v8795_v21, 0.0  ;;  %v9310_v43 = vrot.slane %v9008_v51, 1 }
 0xb78   : > { %9957 = vmatpush1.bf16.msra.mxu0 %v22144_v7  ;;  %v18850_v7 = vld [vmem:[%s24168_s9 + $0x188] ss:$28 sps:$4 sm:$0xff]   ;;  %v9308_v11 = vrot.slane %v9007_v48, 1 }
 0xb79   : > { %9958 = vmatprep.subr.bf16.mxu0 %v24213_v15 }
 0xb7a   : > { %v9311_v30 = vsel %vm1893_vm3, %v9308_v11, %v9310_v43 }
 0xb7b   : > { %9846 = vmatmul.mubr.bf16.gmra.mrb[16].mxu0 %v18848_v58  ;;  %v22314_v29 = vmax.f32 %v9007_v48, %v9311_v30  ;;  %v9313_v58 = vsel %vm1893_vm3, %v9310_v43, %v9312_v28 }
 0xb7c   : > { %9853 = vmatprep.mubr.bf16.mxu0 %v18849_v16  ;;  %9959 = vmatpush1.bf16.msra.mxu0 %v22146_v60  ;;  %v18851_v60 = vld [vmem:[%s24168_s9 + $0x1c4] ss:$28 sps:$4 sm:$0xff]  }
 0xb7d   : > { %9960 = vmatprep.subr.bf16.mxu0 %v24213_v15 }
 0xb80   : > { %9961 = vmatpush1.bf16.msra.mxu0 %v22168_v52  ;;  %v8790_v52 = vadd.f32 %v22101_v3, %v8789_v50 }
 0xb81   : > { %9962 = vmatprep.subr.bf16.mxu0 %v24213_v15 }
 0xb82   : > { %v9006_v56 = vmax.f32 %v8790_v52, 0.0 }
 0xb83   : > { %9854 = vmatmul.mubr.bf16.gmra.mrb[20].mxu0 %v18850_v7  ;;  %v22339_v7 = vmax.f32 %v9008_v51, %v9313_v58 }
 0xb84   : > { %9861 = vmatprep.mubr.bf16.mxu0 %v18851_v60  ;;  %9963 = vmatpush1.bf16.msra.mxu0 %v22170_v25  ;;  %v9306_v38 = vrot.slane %v9006_v56, 1  ;;  %v18852_v25 = vld [vmem:[%s24168_s9 + $0x1c0] ss:$28 sps:$4 sm:$0xff]  }
 0xb85   : > { %9964 = vmatprep.subr.bf16.mxu0 %v24213_v15 }
 0xb86   : > { %v9307_v6 = vsel %vm1893_vm3, %v22219_v45, %v9306_v38  ;;  %v9309_v62 = vsel %vm1893_vm3, %v9306_v38, %v9308_v11 }
 0xb87   : > { %v9564_v9 = vmax.f32 %v9005_v27, %v9307_v6  ;;  %v9565_v57 = vmax.f32 %v9006_v56, %v9309_v62  ;;  %v8806_v27 = vadd.f32 %v22101_v3, %v8805_v12 }
 0xb88   : > { %9965 = vmatpush1.bf16.msra.mxu0 %v22186_v42  ;;  %v18853_v42 = vld [vmem:[%s24168_s9 + $0x1fc] ss:$28 sps:$4 sm:$0xff]  }
 0xb89   : > { %10103 = vmatprep.subr.bf16.mxu0 %v24213_v15  ;;  %v9672_v41 = vmax.f32 %v22203_v14, %v9564_v9  ;;  %v9673_v53 = vmax.f32 %v22205_v1, %v9565_v57  ;;  %v18854_v14 = vld [vmem:[%s24168_s9 + $0x1f8] ss:$28 sps:$4 sm:$0xff]   ;;  %v9012_v1 = vmax.f32 %v8814_v22, 0.0  ;;  %v9010_v19 = vmax.f32 %v8806_v27, 0.0 }
 0xb8b   : > { %9862 = vmatmul.mubr.bf16.gmra.mrb[24].mxu0 %v18852_v25  ;;  %v22327_v45 = vpack.c.bf16 %v9673_v53, %v9672_v41  ;;  %v9318_v39 = vrot.slane %v9012_v1, 1  ;;  %v9314_v16 = vrot.slane %v9010_v19, 1  ;;  %v9675_v41 = vmax.f32 %v22229_v61, %v22339_v7  ;;  %v18856_v53 = vld [vmem:[%s24168_s9 + $0x230] ss:$28 sps:$4 sm:$0xff]  }
 0xb8c   : > { %9869 = vmatprep.mubr.bf16.mxu0 %v18853_v42  ;;  %v9674_v42 = vmax.f32 %v22201_v46, %v22314_v29 }
 0xb8d   : > { %v9319_v48 = vsel %vm1893_vm3, %v9316_v40, %v9318_v39  ;;  %v9315_v50 = vsel %vm1893_vm3, %v9312_v28, %v9314_v16  ;;  %v9317_v52 = vsel %vm1893_vm3, %v9314_v16, %v9316_v40 }
 0xb8e   : > { %v22343_v54 = vmax.f32 %v9011_v35, %v9319_v48  ;;  %v9568_v38 = vmax.f32 %v9009_v44, %v9315_v50  ;;  %v9569_v43 = vmax.f32 %v9010_v19, %v9317_v52  ;;  %v22360_v46 = vpack.c.bf16 %v9675_v41, %v9674_v42 }
 0xb90   : > { %v9676_v37 = vmax.f32 %v9564_v9, %v9568_v38  ;;  %v9677_v17 = vmax.f32 %v9565_v57, %v9569_v43 }
 0xb92   : > { %v22362_v12 = vpack.c.bf16 %v9677_v17, %v9676_v37 }
 0xb93   : > { %9870 = vmatmul.mubr.bf16.gmra.mrb[28].mxu0 %v18854_v14  ;;  %v16813_v21 = vpop.f32.mrb[88].mxu1 }
 0xb94   : > { %9877 = vmatprep.mubr.bf16.mxu0 %v18855_v59  ;;  %v8827_v13 = vadd.f32 %v22101_v3, %v16813_v21  ;;  %v8818_v60 = vpop.f32.mrb[89].mxu1 }
 0xb95   : > { %v8819_v11 = vadd.f32 %v22101_v3, %v8818_v60  ;;  %v16814_v56 = vpop.f32.mrb[90].mxu1 }
 0xb96   : > { %v9015_v30 = vmax.f32 %v8827_v13, 0.0  ;;  %v8830_v51 = vadd.f32 %v22101_v3, %v16814_v56  ;;  %v8821_v25 = vpop.f32.mrb[91].mxu1 }
 0xb97   : > { %v9013_v6 = vmax.f32 %v8819_v11, 0.0  ;;  %v8822_v62 = vadd.f32 %v22101_v3, %v8821_v25  ;;  %v9678_v11 = vmax.f32 %v22314_v29, %v22343_v54 }
 0xb98   : > { %v9016_v18 = vmax.f32 %v8830_v51, 0.0  ;;  %v9324_v23 = vrot.slane %v9015_v30, 1 }
 0xb99   : > { %v9320_v35 = vrot.slane %v9013_v6, 1  ;;  %v9014_v22 = vmax.f32 %v8822_v62, 0.0  ;;  %v18859_v62 = vld [vmem:[%s24168_s9 + $0x2a4] ss:$28 sps:$4 sm:$0xff]  }
 0xb9a   : > { %v9326_v61 = vrot.slane %v9016_v18, 1 }
 0xb9b   : > { %9878 = vmatmul.mubr.bf16.gmra.mrb[32].mxu0 %v18856_v53  ;;  %v9321_v44 = vsel %vm1893_vm3, %v9318_v39, %v9320_v35  ;;  %v9322_v27 = vrot.slane %v9014_v22, 1  ;;  %v16817_v14 = vpop.f32.mrb[92].mxu1 }
 0xb9c   : > { %9885 = vmatprep.mubr.bf16.mxu0 %v18857_v0  ;;  %v22365_v9 = vmax.f32 %v9012_v1, %v9321_v44  ;;  %v9327_v57 = vsel %vm1893_vm3, %v9324_v23, %v9326_v61  ;;  %v8843_v59 = vadd.f32 %v22101_v3, %v16817_v14  ;;  %v8834_v40 = vpop.f32.mrb[93].mxu1 }
 0xb9d   : > { %v22369_v28 = vmax.f32 %v9015_v30, %v9327_v57  ;;  %v9323_v19 = vsel %vm1893_vm3, %v9320_v35, %v9322_v27  ;;  %v9325_v58 = vsel %vm1893_vm3, %v9322_v27, %v9324_v23  ;;  %v8835_v16 = vadd.f32 %v22101_v3, %v8834_v40  ;;  %v16818_v21 = vpop.f32.mrb[94].mxu1  ;;  %v18858_v30 = vld [vmem:[%s24168_s9 + $0x268] ss:$28 sps:$4 sm:$0xff]  }
 0xb9e   : > { %v9572_v48 = vmax.f32 %v9013_v6, %v9323_v19  ;;  %v9573_v39 = vmax.f32 %v9014_v22, %v9325_v58  ;;  %v9019_v13 = vmax.f32 %v8843_v59, 0.0  ;;  %v8846_v1 = vadd.f32 %v22101_v3, %v16818_v21  ;;  %v8837_v60 = vpop.f32.mrb[95].mxu1 }
 0xb9f   : > { %v9017_v50 = vmax.f32 %v8835_v16, 0.0  ;;  %v8838_v52 = vadd.f32 %v22101_v3, %v8837_v60  ;;  %v9679_v56 = vmax.f32 %v22339_v7, %v22365_v9  ;;  %v18860_v60 = vld [vmem:[%s24168_s9 + $0x2a0] ss:$28 sps:$4 sm:$0xff]  }
 0xba0   : > { %v9680_v51 = vmax.f32 %v9568_v38, %v9572_v48  ;;  %v9681_v25 = vmax.f32 %v9569_v43, %v9573_v39  ;;  %v9020_v6 = vmax.f32 %v8846_v1, 0.0  ;;  %v9332_v42 = vrot.slane %v9019_v13, 1 }
 0xba1   : > { %v9328_v41 = vrot.slane %v9017_v50, 1  ;;  %v9018_v53 = vmax.f32 %v8838_v52, 0.0  ;;  %v22386_v29 = vpack.c.bf16 %v9679_v56, %v9678_v11  ;;  %v18861_v56 = vld [vmem:[%s24168_s9 + $0x2dc] ss:$28 sps:$4 sm:$0xff]  }
 0xba2   : > { %v22388_v37 = vpack.c.bf16 %v9681_v25, %v9680_v51  ;;  %v9334_v7 = vrot.slane %v9020_v6, 1 }
 0xba3   : > { %9886 = vmatmul.mubr.bf16.gmra.mrb[36].mxu0 %v18858_v30  ;;  %v9329_v17 = vsel %vm1893_vm3, %v9326_v61, %v9328_v41  ;;  %v9330_v0 = vrot.slane %v9018_v53, 1 }
 0xba4   : > { %9893 = vmatprep.mubr.bf16.mxu0 %v18859_v62  ;;  %v16821_v23 = vpop.f32.mrb[96].mxu1  ;;  %v22391_v38 = vmax.f32 %v9016_v18, %v9329_v17  ;;  %v9335_v43 = vsel %vm1893_vm3, %v9332_v42, %v9334_v7 }
 0xba5   : > { %v8859_v35 = vadd.f32 %v22101_v3, %v16821_v23  ;;  %v8850_v22 = vpop.f32.mrb[97].mxu1  ;;  %v22395_v44 = vmax.f32 %v9019_v13, %v9335_v43  ;;  %v9331_v27 = vsel %vm1893_vm3, %v9328_v41, %v9330_v0  ;;  %v9333_v14 = vsel %vm1893_vm3, %v9330_v0, %v9332_v42 }
 0xba6   : > { %v8851_v57 = vadd.f32 %v22101_v3, %v8850_v22  ;;  %v16822_v59 = vpop.f32.mrb[98].mxu1  ;;  %v9576_v40 = vmax.f32 %v9017_v50, %v9331_v27  ;;  %v9577_v61 = vmax.f32 %v9018_v53, %v9333_v14  ;;  %v9682_v13 = vmax.f32 %v22343_v54, %v22369_v28 }
 0xba7   : > { %v9023_v19 = vmax.f32 %v8859_v35, 0.0  ;;  %v8862_v18 = vadd.f32 %v22101_v3, %v16822_v59  ;;  %v8853_v58 = vpop.f32.mrb[99].mxu1  ;;  %v9683_v1 = vmax.f32 %v22365_v9, %v22391_v38 }
 0xba8   : > { %v9021_v16 = vmax.f32 %v8851_v57, 0.0  ;;  %v8854_v21 = vadd.f32 %v22101_v3, %v8853_v58  ;;  %v9684_v50 = vmax.f32 %v9572_v48, %v9576_v40  ;;  %v9685_v52 = vmax.f32 %v9573_v39, %v9577_v61 }
 0xba9   : > { %v9024_v11 = vmax.f32 %v8862_v18, 0.0  ;;  %v9340_v30 = vrot.slane %v9023_v19, 1  ;;  %v22412_v54 = vpack.c.bf16 %v9683_v1, %v9682_v13  ;;  %v18862_v13 = vld [vmem:[%s24168_s9 + $0x2d8] ss:$28 sps:$4 sm:$0xff]  }
 0xbaa   : > { %v9336_v51 = vrot.slane %v9021_v16, 1  ;;  %v9022_v25 = vmax.f32 %v8854_v21, 0.0  ;;  %v22414_v62 = vpack.c.bf16 %v9685_v52, %v9684_v50  ;;  %v18863_v50 = vld [vmem:[%s24168_s9 + $0x314] ss:$28 sps:$4 sm:$0xff]  }
 0xbab   : > { %9894 = vmatmul.mubr.bf16.gmra.mrb[40].mxu0 %v18860_v60  ;;  %v9342_v9 = vrot.slane %v9024_v11, 1 }
 0xbac   : > { %9901 = vmatprep.mubr.bf16.mxu0 %v18861_v56  ;;  %v9337_v42 = vsel %vm1893_vm3, %v9334_v7, %v9336_v51  ;;  %v9338_v41 = vrot.slane %v9022_v25, 1  ;;  %v16825_v53 = vpop.f32.mrb[100].mxu1 }
 0xbad   : > { %v9579_v48 = vmax.f32 %v9020_v6, %v9337_v42  ;;  %v9343_v39 = vsel %vm1893_vm3, %v9340_v30, %v9342_v9  ;;  %v8875_v17 = vadd.f32 %v22101_v3, %v16825_v53  ;;  %v8866_v0 = vpop.f32.mrb[101].mxu1 }
 0xbae   : > { %v22419_v23 = vmax.f32 %v9023_v19, %v9343_v39  ;;  %v9339_v43 = vsel %vm1893_vm3, %v9336_v51, %v9338_v41  ;;  %v9341_v35 = vsel %vm1893_vm3, %v9338_v41, %v9340_v30  ;;  %v8867_v22 = vadd.f32 %v22101_v3, %v8866_v0  ;;  %v16826_v27 = vpop.f32.mrb[102].mxu1 }
 0xbaf   : > { %v9580_v14 = vmax.f32 %v9021_v16, %v9339_v43  ;;  %v9581_v57 = vmax.f32 %v9022_v25, %v9341_v35  ;;  %v9027_v7 = vmax.f32 %v8875_v17, 0.0  ;;  %v8878_v59 = vadd.f32 %v22101_v3, %v16826_v27  ;;  %v8869_v6 = vpop.f32.mrb[103].mxu1 }
 0xbb0   : > { %v9025_v18 = vmax.f32 %v8867_v22, 0.0  ;;  %v8870_v58 = vadd.f32 %v22101_v3, %v8869_v6  ;;  %v9686_v19 = vmax.f32 %v22369_v28, %v22395_v44  ;;  %v9687_v21 = vmax.f32 %v22391_v38, %v9579_v48 }
 0xbb1   : > { %v9688_v1 = vmax.f32 %v9576_v40, %v9580_v14  ;;  %v9689_v16 = vmax.f32 %v9577_v61, %v9581_v57  ;;  %v9028_v60 = vmax.f32 %v8878_v59, 0.0  ;;  %v9348_v52 = vrot.slane %v9027_v7, 1 }
 0xbb2   : > { %v9344_v56 = vrot.slane %v9025_v18, 1  ;;  %v9026_v30 = vmax.f32 %v8870_v58, 0.0  ;;  %v22435_v51 = vpack.c.bf16 %v9687_v21, %v9686_v19  ;;  %v9690_v58 = vmax.f32 %v22395_v44, %v22419_v23 }
 0xbb3   : > { %9902 = vmatmul.mubr.bf16.gmra.mrb[44].mxu0 %v18862_v13  ;;  %v22437_v28 = vpack.c.bf16 %v9689_v16, %v9688_v1  ;;  %v9350_v38 = vrot.slane %v9028_v60, 1 }
 0xbb4   : > { %9909 = vmatprep.mubr.bf16.mxu0 %v18863_v50  ;;  %v9345_v25 = vsel %vm1893_vm3, %v9342_v9, %v9344_v56  ;;  %v9346_v42 = vrot.slane %v9026_v30, 1  ;;  %v16829_v41 = vpop.f32.mrb[104].mxu1 }
 0xbb5   : > { %v9583_v40 = vmax.f32 %v9024_v11, %v9345_v25  ;;  %v9351_v61 = vsel %vm1893_vm3, %v9348_v52, %v9350_v38  ;;  %v8891_v53 = vadd.f32 %v22101_v3, %v16829_v41  ;;  %v8882_v39 = vpop.f32.mrb[105].mxu1 }
 0xbb6   : > { %v22442_v17 = vmax.f32 %v9027_v7, %v9351_v61  ;;  %v9347_v0 = vsel %vm1893_vm3, %v9344_v56, %v9346_v42  ;;  %v9349_v43 = vsel %vm1893_vm3, %v9346_v42, %v9348_v52  ;;  %v8883_v35 = vadd.f32 %v22101_v3, %v8882_v39  ;;  %v16830_v22 = vpop.f32.mrb[106].mxu1  ;;  %v18864_v7 = vld [vmem:[%s24168_s9 + $0x310] ss:$28 sps:$4 sm:$0xff]  }
 0xbb7   : > { %v9584_v27 = vmax.f32 %v9025_v18, %v9347_v0  ;;  %v9585_v59 = vmax.f32 %v9026_v30, %v9349_v43  ;;  %v9031_v9 = vmax.f32 %v8891_v53, 0.0  ;;  %v8894_v6 = vadd.f32 %v22101_v3, %v16830_v22  ;;  %v8885_v50 = vpop.f32.mrb[107].mxu1  ;;  %v18865_v18 = vld [vmem:[%s24168_s9 + $0x34c] ss:$28 sps:$4 sm:$0xff]  }
 0xbb8   : > { %v9029_v11 = vmax.f32 %v8883_v35, 0.0  ;;  %v9691_v19 = vmax.f32 %v9579_v48, %v9583_v40  ;;  %v8886_v56 = vadd.f32 %v22101_v3, %v8885_v50 }
 0xbb9   : > { %v9692_v21 = vmax.f32 %v9580_v14, %v9584_v27  ;;  %v9693_v13 = vmax.f32 %v9581_v57, %v9585_v59  ;;  %v9356_v1 = vrot.slane %v9031_v9, 1  ;;  %v9032_v16 = vmax.f32 %v8894_v6, 0.0 }
 0xbba   : > { %v9352_v52 = vrot.slane %v9029_v11, 1  ;;  %v22457_v44 = vpack.c.bf16 %v9691_v19, %v9690_v58  ;;  %v9030_v14 = vmax.f32 %v8886_v56, 0.0  ;;  %v9694_v58 = vmax.f32 %v22419_v23, %v22442_v17  ;;  %v18867_v23 = vld [vmem:[%s24168_s9 + $0x384] ss:$28 sps:$4 sm:$0xff]  }
 0xbbb   : > { %9910 = vmatmul.mubr.bf16.gmra.mrb[48].mxu0 %v18864_v7  ;;  %v22459_v48 = vpack.c.bf16 %v9693_v13, %v9692_v21  ;;  %v9358_v30 = vrot.slane %v9032_v16, 1 }
 0xbbc   : > { %9917 = vmatprep.mubr.bf16.mxu0 %v18865_v18  ;;  %v9353_v25 = vsel %vm1893_vm3, %v9350_v38, %v9352_v52  ;;  %v16833_v57 = vpop.f32.mrb[108].mxu1  ;;  %v9354_v0 = vrot.slane %v9030_v14, 1 }
 0xbbd   : > { %v9587_v42 = vmax.f32 %v9028_v60, %v9353_v25  ;;  %v9359_v41 = vsel %vm1893_vm3, %v9356_v1, %v9358_v30  ;;  %v8907_v61 = vadd.f32 %v22101_v3, %v16833_v57  ;;  %v8898_v53 = vpop.f32.mrb[109].mxu1 }
 0xbbe   : > { %v9590_v39 = vmax.f32 %v9031_v9, %v9359_v41  ;;  %v8899_v43 = vadd.f32 %v22101_v3, %v8898_v53  ;;  %v16834_v35 = vpop.f32.mrb[110].mxu1  ;;  %v9355_v19 = vsel %vm1893_vm3, %v9352_v52, %v9354_v0  ;;  %v9357_v60 = vsel %vm1893_vm3, %v9354_v0, %v9356_v1  ;;  %v18866_v9 = vld [vmem:[%s24168_s9 + $0x348] ss:$28 sps:$4 sm:$0xff]  }
 0xbbf   : > { %v9035_v22 = vmax.f32 %v8907_v61, 0.0  ;;  %v8910_v6 = vadd.f32 %v22101_v3, %v16834_v35  ;;  %v9695_v38 = vmax.f32 %v9583_v40, %v9587_v42  ;;  %v9588_v21 = vmax.f32 %v9029_v11, %v9355_v19  ;;  %v8901_v56 = vpop.f32.mrb[111].mxu1 }
 0xbc0   : > { %v9033_v7 = vmax.f32 %v8899_v43, 0.0  ;;  %v9589_v13 = vmax.f32 %v9030_v14, %v9357_v60  ;;  %v8902_v52 = vadd.f32 %v22101_v3, %v8901_v56 }
 0xbc1   : > { %v9364_v50 = vrot.slane %v9035_v22, 1  ;;  %v9036_v18 = vmax.f32 %v8910_v6, 0.0  ;;  %v22477_v1 = vpack.c.bf16 %v9695_v38, %v9694_v58  ;;  %v9696_v25 = vmax.f32 %v9584_v27, %v9588_v21 }
 0xbc2   : > { %v9360_v40 = vrot.slane %v9033_v7, 1  ;;  %v9697_v57 = vmax.f32 %v9585_v59, %v9589_v13  ;;  %v9034_v11 = vmax.f32 %v8902_v52, 0.0  ;;  %v9698_v27 = vmax.f32 %v22442_v17, %v9590_v39  ;;  %v18869_v17 = vld [vmem:[%s24168_s9 + $0xc] ss:$28 sps:$4 sm:$0xff]  }
 0xbc3   : > { %9918 = vmatmul.mubr.bf16.gmra.mrb[52].mxu0 %v18866_v9  ;;  %v9366_v41 = vrot.slane %v9036_v18, 1 }
 0xbc4   : > { %9925 = vmatprep.mubr.bf16.mxu0 %v18867_v23  ;;  %v9361_v61 = vsel %vm1893_vm3, %v9358_v30, %v9360_v40  ;;  %v22480_v14 = vpop.f32.mrb[112].mxu1  ;;  %v22482_v53 = vpack.c.bf16 %v9697_v57, %v9696_v25  ;;  %v9362_v19 = vrot.slane %v9034_v11, 1  ;;  %v18870_v57 = vld [vmem:[%s24168_s9 + $0x8] ss:$28 sps:$4 sm:$0xff]  }
 0xbc5   : > { %v9591_v0 = vmax.f32 %v9032_v16, %v9361_v61  ;;  %v9367_v43 = vsel %vm1893_vm3, %v9364_v50, %v9366_v41  ;;  %v8914_v35 = vpop.f32.mrb[113].mxu1  ;;  %v18868_v16 = vld [vmem:[%s24168_s9 + $0x380] ss:$28 sps:$4 sm:$0xff]  }
 0xbc6   : > { %v22485_v6 = vmax.f32 %v9035_v22, %v9367_v43  ;;  %v22488_v58 = vadd.f32 %v22101_v3, %v8914_v35  ;;  %v9363_v30 = vsel %vm1893_vm3, %v9360_v40, %v9362_v19  ;;  %v9365_v38 = vsel %vm1893_vm3, %v9362_v19, %v9364_v50  ;;  %v18890_v43 = vld [vmem:[%s24168_s9 + $0x238] ss:$28 sps:$4 sm:$0xff]   ;;  %v18892_v19 = vld [vmem:[%s24161_s2] ss:$0 sm:$0xff] }
 0xbc7   : > { %v9699_v59 = vmax.f32 %v9587_v42, %v9591_v0  ;;  %v22497_v22 = vmax.f32 %v9033_v7, %v9363_v30  ;;  %v22499_v9 = vmax.f32 %v9034_v11, %v9365_v38  ;;  %v18875_v11 = vld [vmem:[%s24168_s9 + $0xb4] ss:$28 sps:$4 sm:$0xff]   ;;  %v16838_v38 = vpop.f32.mrb[114].mxu1 }
 0xbc8   : > { %v9037_v60 = vmax.f32 %v22488_v58, 0.0  ;;  %v9702_v52 = vmax.f32 %v9590_v39, %v22485_v6  ;;  %v18872_v39 = vld [vmem:[%s24168_s9 + $0x40] ss:$28 sps:$4 sm:$0xff]   ;;  %v18891_v35 = vld [vmem:[%s24168_s9 + $0x274] ss:$28 sps:$4 sm:$0xff]  }
 0xbc9   : > { %v22501_v3 = vpack.c.bf16 %v9699_v59, %v9698_v27  ;;  %v9700_v50 = vmax.f32 %v9588_v21, %v22497_v22  ;;  %v9701_v56 = vmax.f32 %v9589_v13, %v22499_v9  ;;  %v18871_v21 = vld [vmem:[%s24168_s9 + $0x44] ss:$28 sps:$4 sm:$0xff]   ;;  %v8923_v27 = vadd.f32 %v18892_v19, %v22480_v14  ;;  %v18893_v59 = vld [vmem:[%s24168_s9 + $0x270] ss:$28 sps:$4 sm:$0xff]  }
 0xbca   : > { %v22508_v42 = vrot.slane %v9037_v60, 1  ;;  %v18900_v58 = vld [vmem:[%s24168_s9 + $0x354] ss:$28 sps:$4 sm:$0xff]  }
 0xbcb   : > { %9926 = vmatmul.mubr.bf16.gmra.mrb[56].mxu0 %v18868_v16  ;;  %v22514_v23 = vpack.c.bf16 %v9701_v56, %v9700_v50  ;;  %v9039_v30 = vmax.f32 %v8923_v27, 0.0  ;;  %v18894_v16 = vld [vmem:[%s24168_s9 + $0x2ac] ss:$28 sps:$4 sm:$0xff]   ;;  %v8917_v50 = vpop.f32.mrb[115].mxu1  ;;  %v18917_v27 = vld [vmem:[%s24168_s9 + $0x160] ss:$28 sps:$4 sm:$0xff]  }
 0xbcc   : > { %9966 = vmatprep.mubr.bf16.mxu0 %v18869_v17  ;;  %v9369_v7 = vsel %vm1893_vm3, %v9366_v41, %v22508_v42  ;;  %v8926_v17 = vadd.f32 %v18892_v19, %v16838_v38  ;;  %v8918_v56 = vadd.f32 %v18892_v19, %v8917_v50  ;;  %v18916_v19 = vld [vmem:[%s24168_s9 + $0x164] ss:$28 sps:$4 sm:$0xff]   ;;  %v18920_v38 = vld [vmem:[%s24168_s9 + $0x1d4] ss:$28 sps:$4 sm:$0xff]  }
 0xbcd   : > { %v22516_v40 = vmax.f32 %v9036_v18, %v9369_v7  ;;  %v18923_v50 = vld [vmem:[%s24168_s9 + $0x208] ss:$28 sps:$4 sm:$0xff]  }
 0xbce   : > { %v9040_v7 = vmax.f32 %v8926_v17, 0.0  ;;  %v18922_v17 = vld [vmem:[%s24168_s9 + $0x20c] ss:$28 sps:$4 sm:$0xff]  }
 0xbcf   : > { %v9703_v25 = vmax.f32 %v9591_v0, %v22516_v40  ;;  %v18877_v0 = vld [vmem:[%s24168_s9 + $0xec] ss:$28 sps:$4 sm:$0xff]  }
 0xbd1   : > { %v22523_v61 = vpack.c.bf16 %v9703_v25, %v9702_v52  ;;  %v9372_v52 = vrot.slane %v9039_v30, 1  ;;  %v9038_v25 = vmax.f32 %v8918_v56, 0.0  ;;  %v18924_v56 = vld [vmem:[%s24168_s9 + $0x244] ss:$28 sps:$4 sm:$0xff]  }
 0xbd3   : > { %9967 = vmatmul.mubr.bf16.vlgmr.msra.gmra.mrb[248].mxu0 %v18870_v57  ;;  %v9374_v57 = vrot.slane %v9040_v7, 1  ;;  %v9370_v14 = vrot.slane %v9038_v25, 1 }
 0xbd4   : > { %10104 = vmatpush1.bf16.msra.mxu0 %v22188_v10  ;;  %9974 = vmatprep.mubr.bf16.mxu0 %v18871_v21  ;;  %v18873_v10 = vld [vmem:[%s24168_s9 + $0x7c] ss:$28 sps:$4 sm:$0xff]  }
 0xbd5   : > { %10105 = vmatprep.subr.bf16.mxu0 %v24213_v15  ;;  %v9375_v21 = vsel %vm1893_vm3, %v9372_v52, %v9374_v57 }
 0xbd8   : > { %10106 = vmatpush1.bf16.msra.mxu0 %v22223_v31 }
 0xbd9   : > { %10107 = vmatprep.subr.bf16.mxu0 %v24213_v15 }
 0xbdb   : > { %9975 = vmatmul.mubr.bf16.gmra.mrb[252].mxu0 %v18872_v39  ;;  %v9599_v39 = vmax.f32 %v9040_v7, %v9374_v57  ;;  %v18925_v7 = vld [vmem:[%s24168_s9 + $0x240] ss:$28 sps:$4 sm:$0xff]   ;;  %v18928_v57 = vld [vmem:[%s24168_s9 + $0x2b4] ss:$28 sps:$4 sm:$0xff]  }
 0xbdc   : > { %10108 = vmatpush1.bf16.msra.mxu0 %v22225_v34  ;;  %9982 = vmatprep.mubr.bf16.mxu0 %v18873_v10  ;;  %v18874_v34 = vld [vmem:[%s24168_s9 + $0x78] ss:$28 sps:$4 sm:$0xff]   ;;  %v18895_v10 = vld [vmem:[%s24168_s9 + $0x2a8] ss:$28 sps:$4 sm:$0xff]  }
 0xbdd   : > { %10109 = vmatprep.subr.bf16.mxu0 %v24213_v15 }
 0xbde   : > { %v22540_v13 = vpop.f32.mrb[244].mxu0 }
 0xbdf   : > { %v16723_v18 = vpop.f32.mrb[245].mxu0 }
 0xbe0   : > { %10110 = vmatpush1.bf16.msra.mxu0 %v22237_v4  ;;  %v7883_v31 = vpop.f32.mrb[246].mxu0  ;;  %v18876_v4 = vld [vmem:[%s24168_s9 + $0xb0] ss:$28 sps:$4 sm:$0xff]   ;;  %v9598_v18 = vmax.f32 %v9039_v30, %v9375_v21  ;;  %v18919_v30 = vld [vmem:[%s24168_s9 + $0x198] ss:$28 sps:$4 sm:$0xff]  }
 0xbe1   : > { %v16724_v41 = vpop.f32.mrb[247].mxu0  ;;  %10111 = vmatprep.subr.bf16.mxu0 %v24213_v15  ;;  %v9371_v31 = vsel %vm1893_vm3, %v22508_v42, %v9370_v14  ;;  %v18930_v21 = vld [vmem:[%s24168_s9 + $0x2ec] ss:$28 sps:$4 sm:$0xff]  }
 0xbe2   : > { %v9373_v41 = vsel %vm1893_vm3, %v9370_v14, %v9372_v52  ;;  %v18926_v52 = vld [vmem:[%s24168_s9 + $0x27c] ss:$28 sps:$4 sm:$0xff]   ;;  %v18929_v14 = vld [vmem:[%s24168_s9 + $0x2b0] ss:$28 sps:$4 sm:$0xff]  }
 0xbe3   : > { %9983 = vmatmul.mubr.bf16.gmra.mrb[0].mxu0 %v18874_v34  ;;  %v18896_v34 = vld [vmem:[%s24168_s9 + $0x2e4] ss:$28 sps:$4 sm:$0xff]  }
 0xbe4   : > { %9990 = vmatprep.mubr.bf16.mxu0 %v18875_v11  ;;  %10112 = vmatpush1.bf16.msra.mxu0 %v22327_v45  ;;  %v18878_v45 = vld [vmem:[%s24168_s9 + $0xe8] ss:$28 sps:$4 sm:$0xff]   ;;  %v9707_v11 = vmax.f32 %v22516_v40, %v9599_v39  ;;  %v18898_v40 = vld [vmem:[%s24168_s9 + $0x31c] ss:$28 sps:$4 sm:$0xff]  }
 0xbe5   : > { %10113 = vmatprep.subr.bf16.mxu0 %v24213_v15  ;;  %v18931_v39 = vld [vmem:[%s24168_s9 + $0x2e8] ss:$28 sps:$4 sm:$0xff]  }
 0xbe8   : > { %10114 = vmatpush1.bf16.msra.mxu0 %v22360_v46  ;;  %v18879_v46 = vld [vmem:[%s24168_s9 + $0x124] ss:$28 sps:$4 sm:$0xff]  }
 0xbe9   : > { %10115 = vmatprep.subr.bf16.mxu0 %v24213_v15 }
 0xbeb   : > { %9991 = vmatmul.mubr.bf16.gmra.mrb[4].mxu0 %v18876_v4  ;;  %v9596_v4 = vmax.f32 %v9037_v60, %v9371_v31  ;;  %v18901_v60 = vld [vmem:[%s24168_s9 + $0x350] ss:$28 sps:$4 sm:$0xff]   ;;  %v18934_v31 = vld [vmem:[%s24168_s9 + $0x35c] ss:$28 sps:$4 sm:$0xff]  }
 0xbec   : > { %9998 = vmatprep.mubr.bf16.mxu0 %v18877_v0  ;;  %10116 = vmatpush1.bf16.msra.mxu0 %v22362_v12  ;;  %v18880_v12 = vld [vmem:[%s24168_s9 + $0x120] ss:$28 sps:$4 sm:$0xff]   ;;  %v9597_v0 = vmax.f32 %v9038_v25, %v9373_v41  ;;  %v18927_v25 = vld [vmem:[%s24168_s9 + $0x278] ss:$28 sps:$4 sm:$0xff]  }
 0xbed   : > { %10117 = vmatprep.subr.bf16.mxu0 %v24213_v15  ;;  %v18935_v41 = vld [vmem:[%s24168_s9 + $0x358] ss:$28 sps:$4 sm:$0xff]  }
 0xbf0   : > { %10118 = vmatpush1.bf16.msra.mxu0 %v22386_v29  ;;  %v18881_v29 = vld [vmem:[%s24168_s9 + $0x15c] ss:$28 sps:$4 sm:$0xff]  }
 0xbf1   : > { %10119 = vmatprep.subr.bf16.mxu0 %v24213_v15 }
 0xbf3   : > { %9999 = vmatmul.mubr.bf16.gmra.mrb[8].mxu0 %v18878_v45  ;;  %v9706_v45 = vmax.f32 %v22485_v6, %v9598_v18  ;;  %v18899_v6 = vld [vmem:[%s24168_s9 + $0x318] ss:$28 sps:$4 sm:$0xff]   ;;  %v18933_v18 = vld [vmem:[%s24168_s9 + $0x320] ss:$28 sps:$4 sm:$0xff]  }
 0xbf4   : > { %10006 = vmatprep.mubr.bf16.mxu0 %v18879_v46  ;;  %10120 = vmatpush1.bf16.msra.mxu0 %v22388_v37  ;;  %v18882_v37 = vld [vmem:[%s24168_s9 + $0x158] ss:$28 sps:$4 sm:$0xff]   ;;  %v9704_v46 = vmax.f32 %v22497_v22, %v9596_v4  ;;  %v18902_v22 = vld [vmem:[%s24168_s9 + $0x38c] ss:$28 sps:$4 sm:$0xff]  }
 0xbf5   : > { %10121 = vmatprep.subr.bf16.mxu0 %v24213_v15  ;;  %v9761_v42 = vpack.c.bf16 %v9707_v11, %v9706_v45  ;;  %v18937_v11 = vld [vmem:[%s24168_s9 + $0x390] ss:$28 sps:$4 sm:$0xff]   ;;  %v18938_v4 = vld [vmem:[%s24168_s9 + $0x18] ss:$28 sps:$4 sm:$0xff]   ;;  %v18940_v45 = vld [vmem:[%s24168_s9 + $0x88] ss:$28 sps:$4 sm:$0xff]  }
 0xbf8   : > { %10122 = vmatpush1.bf16.msra.mxu0 %v22412_v54  ;;  %v18883_v54 = vld [vmem:[%s24168_s9 + $0x194] ss:$28 sps:$4 sm:$0xff]  }
 0xbf9   : > { %10123 = vmatprep.subr.bf16.mxu0 %v24213_v15 }
 0xbfb   : > { %10007 = vmatmul.mubr.bf16.gmra.mrb[12].mxu0 %v18880_v12  ;;  %v9705_v12 = vmax.f32 %v22499_v9, %v9597_v0  ;;  %v18903_v9 = vld [vmem:[%s24168_s9 + $0x388] ss:$28 sps:$4 sm:$0xff]   ;;  %v18939_v0 = vld [vmem:[%s24168_s9 + $0x50] ss:$28 sps:$4 sm:$0xff]  }
 0xbfc   : > { %10014 = vmatprep.mubr.bf16.mxu0 %v18881_v29  ;;  %10124 = vmatpush1.bf16.msra.mxu0 %v22414_v62  ;;  %v18884_v62 = vld [vmem:[%s24168_s9 + $0x190] ss:$28 sps:$4 sm:$0xff]  }
 0xbfd   : > { %10125 = vmatprep.subr.bf16.mxu0 %v24213_v15  ;;  %v9760_v29 = vpack.c.bf16 %v9705_v12, %v9704_v46  ;;  %v18941_v46 = vld [vmem:[%s24168_s9 + $0xc0] ss:$28 sps:$4 sm:$0xff]   ;;  %v18942_v12 = vld [vmem:[%s24168_s9 + $0xf8] ss:$28 sps:$4 sm:$0xff]  }
 0xc00   : > { %10126 = vmatpush1.bf16.msra.mxu0 %v22435_v51  ;;  %v18885_v51 = vld [vmem:[%s24168_s9 + $0x1cc] ss:$28 sps:$4 sm:$0xff]  }
 0xc01   : > { %10127 = vmatprep.subr.bf16.mxu0 %v24213_v15 }
 0xc03   : > { %10015 = vmatmul.mubr.bf16.gmra.mrb[16].mxu0 %v18882_v37  ;;  %v18897_v37 = vld [vmem:[%s24168_s9 + $0x2e0] ss:$28 sps:$4 sm:$0xff]  }
 0xc04   : > { %10022 = vmatprep.mubr.bf16.mxu0 %v18883_v54  ;;  %10128 = vmatpush1.bf16.msra.mxu0 %v22437_v28  ;;  %v18886_v28 = vld [vmem:[%s24168_s9 + $0x1c8] ss:$28 sps:$4 sm:$0xff]   ;;  %v18904_v54 = vld [vmem:[%s24168_s9 + $0x14] ss:$28 sps:$4 sm:$0xff]  }
 0xc05   : > { %10129 = vmatprep.subr.bf16.mxu0 %v24213_v15 }
 0xc08   : > { %10130 = vmatpush1.bf16.msra.mxu0 %v22457_v44  ;;  %v18887_v44 = vld [vmem:[%s24168_s9 + $0x204] ss:$28 sps:$4 sm:$0xff]  }
 0xc09   : > { %10131 = vmatprep.subr.bf16.mxu0 %v24213_v15 }
 0xc0b   : > { %10023 = vmatmul.mubr.bf16.gmra.mrb[20].mxu0 %v18884_v62  ;;  %v18905_v62 = vld [vmem:[%s24168_s9 + $0x10] ss:$28 sps:$4 sm:$0xff]  }
 0xc0c   : > { %10030 = vmatprep.mubr.bf16.mxu0 %v18885_v51  ;;  %10132 = vmatpush1.bf16.msra.mxu0 %v22459_v48  ;;  %v18888_v48 = vld [vmem:[%s24168_s9 + $0x200] ss:$28 sps:$4 sm:$0xff]   ;;  %v18906_v51 = vld [vmem:[%s24168_s9 + $0x4c] ss:$28 sps:$4 sm:$0xff]  }
 0xc0d   : > { %10133 = vmatprep.subr.bf16.mxu0 %v24213_v15 }
 0xc10   : > { %10134 = vmatpush1.bf16.msra.mxu0 %v22477_v1  ;;  %v18889_v1 = vld [vmem:[%s24168_s9 + $0x23c] ss:$28 sps:$4 sm:$0xff]  }
 0xc11   : > { %16839 = vmatprep.subr.bf16.mxu0 %v24210_v36 }
 0xc13   : > { %10031 = vmatmul.mubr.bf16.gmra.mrb[24].mxu0 %v18886_v28  ;;  %v18907_v28 = vld [vmem:[%s24168_s9 + $0x48] ss:$28 sps:$4 sm:$0xff]  }
 0xc14   : > { %10038 = vmatprep.mubr.bf16.mxu0 %v18887_v44  ;;  %v9763_v44 = vand.u32 %v9761_v42, %v20019_v32  ;;  %v18943_v42 = vld [vmem:[%s24168_s9 + $0x130] ss:$28 sps:$4 sm:$0xff]  }
 0xc1b   : > { %10039 = vmatmul.mubr.bf16.gmra.mrb[28].mxu0 %v18888_v48  ;;  %v18912_v48 = vld [vmem:[%s24168_s9 + $0xf4] ss:$28 sps:$4 sm:$0xff]  }
 0xc1c   : > { %10046 = vmatprep.mubr.bf16.mxu0 %v18889_v1  ;;  %v18913_v1 = vld [vmem:[%s24168_s9 + $0xf0] ss:$28 sps:$4 sm:$0xff]  }
 0xc23   : > { %10047 = vmatmul.mubr.bf16.gmra.mrb[32].mxu0 %v18890_v43  ;;  %v18914_v43 = vld [vmem:[%s24168_s9 + $0x12c] ss:$28 sps:$4 sm:$0xff]  }
 0xc24   : > { %10054 = vmatprep.mubr.bf16.mxu0 %v18891_v35  ;;  %v18915_v35 = vld [vmem:[%s24168_s9 + $0x128] ss:$28 sps:$4 sm:$0xff]  }
 0xc2b   : > { %10055 = vmatmul.mubr.bf16.gmra.mrb[36].mxu0 %v18893_v59  ;;  %v18918_v59 = vld [vmem:[%s24168_s9 + $0x19c] ss:$28 sps:$4 sm:$0xff]  }
 0xc2c   : > { %10062 = vmatprep.mubr.bf16.mxu0 %v18894_v16  ;;  %v18921_v16 = vld [vmem:[%s24168_s9 + $0x1d0] ss:$28 sps:$4 sm:$0xff]  }
 0xc33   : > { %10063 = vmatmul.mubr.bf16.gmra.mrb[40].mxu0 %v18895_v10  ;;  %v18932_v10 = vld [vmem:[%s24168_s9 + $0x324] ss:$28 sps:$4 sm:$0xff]  }
 0xc34   : > { %10070 = vmatprep.mubr.bf16.mxu0 %v18896_v34  ;;  %v18936_v34 = vld [vmem:[%s24168_s9 + $0x394] ss:$28 sps:$4 sm:$0xff]  }
 0xc3b   : > { %10071 = vmatmul.mubr.bf16.gmra.mrb[44].mxu0 %v18897_v37  ;;  %v18945_v37 = vld [vmem:[%s24168_s9 + $0x1a0] ss:$28 sps:$4 sm:$0xff]  }
 0xc3c   : > { %10078 = vmatprep.mubr.bf16.mxu0 %v18898_v40  ;;  %v18946_v40 = vld [vmem:[%s24168_s9 + $0x1d8] ss:$28 sps:$4 sm:$0xff]  }
 0xc43   : > { %10079 = vmatmul.mubr.bf16.gmra.mrb[48].mxu0 %v18899_v6  ;;  %v18947_v6 = vld [vmem:[%s24168_s9 + $0x210] ss:$28 sps:$4 sm:$0xff]  }
 0xc44   : > { %10086 = vmatprep.mubr.bf16.mxu0 %v18900_v58  ;;  %v18948_v58 = vld [vmem:[%s24168_s9 + $0x248] ss:$28 sps:$4 sm:$0xff]  }
 0xc4b   : > { %10087 = vmatmul.mubr.bf16.gmra.mrb[52].mxu0 %v18901_v60  ;;  %v18949_v60 = vld [vmem:[%s24168_s9 + $0x280] ss:$28 sps:$4 sm:$0xff]  }
 0xc4c   : > { %10094 = vmatprep.mubr.bf16.mxu0 %v18902_v22  ;;  %v18950_v22 = vld [vmem:[%s24168_s9 + $0x2b8] ss:$28 sps:$4 sm:$0xff]  }
 0xc53   : > { %10095 = vmatmul.mubr.bf16.gmra.mrb[56].mxu0 %v18903_v9  ;;  %v18951_v9 = vld [vmem:[%s24168_s9 + $0x2f0] ss:$28 sps:$4 sm:$0xff]  }
 0xc54   : > { %10135 = vmatprep.mubr.bf16.mxu0 %v18904_v54  ;;  %v18952_v54 = vld [vmem:[%s24168_s9 + $0x328] ss:$28 sps:$4 sm:$0xff]  }
 0xc5b   : > { %10136 = vmatmul.mubr.bf16.vlgmr.msra.gmra.mrb[248].mxu0 %v18905_v62  ;;  %v18953_v62 = vld [vmem:[%s24168_s9 + $0x360] ss:$28 sps:$4 sm:$0xff]  }
 0xc5c   : > { %16840 = vmatpush3.bf16.msra.mxu0 %v22482_v53  ;;  %10143 = vmatprep.mubr.bf16.mxu0 %v18906_v51  ;;  %v18908_v53 = vld [vmem:[%s24168_s9 + $0x84] ss:$28 sps:$4 sm:$0xff]   ;;  %v18954_v51 = vld [vmem:[%s24168_s9 + $0x398] ss:$28 sps:$4 sm:$0xff]  }
 0xc5d   : > { %16841 = vmatprep.subr.bf16.mxu0 %v24210_v36 }
 0xc60   : > { %16842 = vmatpush3.bf16.msra.mxu0 %v22501_v3  ;;  %v18909_v3 = vld [vmem:[%s24168_s9 + $0x80] ss:$28 sps:$4 sm:$0xff]  }
 0xc61   : > { %16843 = vmatprep.subr.bf16.mxu0 %v24210_v36 }
 0xc63   : > { %10144 = vmatmul.mubr.bf16.gmra.mrb[252].mxu0 %v18907_v28  ;;  %v18955_v28 = vld [vmem:[%s24169_s10 + $0x4] ss:$8 sps:$4 sm:$0xff]  }
 0xc64   : > { %16844 = vmatpush3.bf16.msra.mxu0 %v22514_v23  ;;  %10151 = vmatprep.mubr.bf16.mxu0 %v18908_v53  ;;  %v18910_v23 = vld [vmem:[%s24168_s9 + $0xbc] ss:$28 sps:$4 sm:$0xff]  }
 0xc65   : > { %16845 = vmatprep.subr.bf16.mxu0 %v24210_v36 }
 0xc68   : > { %16846 = vmatpush3.bf16.msra.mxu0 %v22523_v61  ;;  %v18911_v61 = vld [vmem:[%s24168_s9 + $0xb8] ss:$28 sps:$4 sm:$0xff]  }
 0xc69   : > { %16847 = vmatprep.subr.bf16.mxu0 %v24210_v36 }
 0xc6b   : > { %10152 = vmatmul.mubr.bf16.gmra.mrb[0].mxu0 %v18909_v3 }
 0xc6c   : > { %10159 = vmatprep.mubr.bf16.mxu0 %v18910_v23  ;;  %16848 = vmatpush3.bf16.msra.mxu0 %v9760_v29  ;;  %v18944_v29 = vld [vmem:[%s24168_s9 + $0x168] ss:$28 sps:$4 sm:$0xff]  }
 0xc6d   : > { %16849 = vmatprep.subr.bf16.mxu0 %v24210_v36 }
 0xc70   : > { %16850 = vmatpush3.bf16.msra.mxu0 %v9763_v44 }
 0xc71   : > { %12506 = vmatprep.subr.bf16.mxu0 %v24213_v15 }
 0xc73   : > { %10160 = vmatmul.mubr.bf16.gmra.mrb[4].mxu0 %v18911_v61 }
 0xc74   : > { %10167 = vmatprep.mubr.bf16.mxu0 %v18912_v48 }
 0xc7b   : > { %10168 = vmatmul.mubr.bf16.gmra.mrb[8].mxu0 %v18913_v1 }
 0xc7c   : > { %10175 = vmatprep.mubr.bf16.mxu0 %v18914_v43 }
 0xc83   : > { %10176 = vmatmul.mubr.bf16.gmra.mrb[12].mxu0 %v18915_v35 }
 0xc84   : > { %10183 = vmatprep.mubr.bf16.mxu0 %v18916_v19 }
 0xc8b   : > { %10184 = vmatmul.mubr.bf16.gmra.mrb[16].mxu0 %v18917_v27 }
 0xc8c   : > { %10191 = vmatprep.mubr.bf16.mxu0 %v18918_v59 }
 0xc93   : > { %10192 = vmatmul.mubr.bf16.gmra.mrb[20].mxu0 %v18919_v30 }
 0xc94   : > { %10199 = vmatprep.mubr.bf16.mxu0 %v18920_v38 }
 0xc9b   : > { %10200 = vmatmul.mubr.bf16.gmra.mrb[24].mxu0 %v18921_v16 }
 0xc9c   : > { %10207 = vmatprep.mubr.bf16.mxu0 %v18922_v17 }
 0xca3   : > { %10208 = vmatmul.mubr.bf16.gmra.mrb[28].mxu0 %v18923_v50 }
 0xca4   : > { %10215 = vmatprep.mubr.bf16.mxu0 %v18924_v56 }
 0xcab   : > { %10216 = vmatmul.mubr.bf16.gmra.mrb[32].mxu0 %v18925_v7 }
 0xcac   : > { %10223 = vmatprep.mubr.bf16.mxu0 %v18926_v52 }
 0xcb3   : > { %10224 = vmatmul.mubr.bf16.gmra.mrb[36].mxu0 %v18927_v25 }
 0xcb4   : > { %10231 = vmatprep.mubr.bf16.mxu0 %v18928_v57 }
 0xcbb   : > { %10232 = vmatmul.mubr.bf16.gmra.mrb[40].mxu0 %v18929_v14 }
 0xcbc   : > { %10239 = vmatprep.mubr.bf16.mxu0 %v18930_v21 }
 0xcc3   : > { %10240 = vmatmul.mubr.bf16.gmra.mrb[44].mxu0 %v18931_v39 }
 0xcc4   : > { %10247 = vmatprep.mubr.bf16.mxu0 %v18932_v10 }
 0xccb   : > { %10248 = vmatmul.mubr.bf16.gmra.mrb[48].mxu0 %v18933_v18 }
 0xccc   : > { %10255 = vmatprep.mubr.bf16.mxu0 %v18934_v31 }
 0xcd3   : > { %10256 = vmatmul.mubr.bf16.gmra.mrb[52].mxu0 %v18935_v41 }
 0xcd4   : > { %10263 = vmatprep.mubr.bf16.mxu0 %v18936_v34 }
 0xcdb   : > { %10264 = vmatmul.mubr.bf16.gmra.mrb[56].mxu0 %v18937_v11 }
 0xcdc   : > { %16851 = vmatprep.mubr.msk.bf16.mxu0 %vm19052_vm5, %v24210_v36 }
 0xce3   : > { %16852 = vmatmul.mubr.msk.bf16.vlgmr.msra.gmra.mrb[248].mxu0 %vm3098_vm6, %v18938_v4 }
 0xce4   : > { %16855 = vmatprep.mubr.msk.bf16.mxu0 %vm19052_vm5, %v24210_v36 }
 0xceb   : > { %16856 = vmatmul.mubr.msk.bf16.gmra.mrb[252].mxu0 %vm3098_vm6, %v18939_v0  ;;  %v18956_v0 = vld [vmem:[%s24162_s3 + $0x8] sm:$0xf] }
 0xcec   : > { %16859 = vmatprep.mubr.msk.bf16.mxu0 %vm19052_vm5, %v24210_v36 }
 0xcf3   : > { %16860 = vmatmul.mubr.msk.bf16.gmra.mrb[0].mxu0 %vm3098_vm6, %v18940_v45 }
 0xcf4   : > { %16863 = vmatprep.mubr.msk.bf16.mxu0 %vm19052_vm5, %v24210_v36 }
 0xcfb   : > { %16864 = vmatmul.mubr.msk.bf16.gmra.mrb[4].mxu0 %vm3098_vm6, %v18941_v46 }
 0xcfc   : > { %16867 = vmatprep.mubr.msk.bf16.mxu0 %vm19052_vm5, %v24210_v36 }
 0xd03   : > { %16868 = vmatmul.mubr.msk.bf16.gmra.mrb[8].mxu0 %vm3098_vm6, %v18942_v12 }
 0xd04   : > { %16871 = vmatprep.mubr.msk.bf16.mxu0 %vm19052_vm5, %v24210_v36 }
 0xd0b   : > { %16872 = vmatmul.mubr.msk.bf16.gmra.mrb[12].mxu0 %vm3098_vm6, %v18943_v42 }
 0xd0c   : > { %16875 = vmatprep.mubr.msk.bf16.mxu0 %vm19052_vm5, %v24210_v36 }
 0xd13   : > { %16876 = vmatmul.mubr.msk.bf16.gmra.mrb[16].mxu0 %vm3098_vm6, %v18944_v29 }
 0xd14   : > { %16879 = vmatprep.mubr.msk.bf16.mxu0 %vm19052_vm5, %v24210_v36 }
 0xd1b   : > { %16880 = vmatmul.mubr.msk.bf16.gmra.mrb[20].mxu0 %vm3098_vm6, %v18945_v37 }
 0xd1c   : > { %16883 = vmatprep.mubr.msk.bf16.mxu0 %vm19052_vm5, %v24210_v36 }
 0xd23   : > { %16884 = vmatmul.mubr.msk.bf16.gmra.mrb[24].mxu0 %vm3098_vm6, %v18946_v40 }
 0xd24   : > { %16887 = vmatprep.mubr.msk.bf16.mxu0 %vm19052_vm5, %v24210_v36 }
 0xd2b   : > { %16888 = vmatmul.mubr.msk.bf16.gmra.mrb[28].mxu0 %vm3098_vm6, %v18947_v6 }
 0xd2c   : > { %16891 = vmatprep.mubr.msk.bf16.mxu0 %vm19052_vm5, %v24210_v36 }
 0xd33   : > { %16892 = vmatmul.mubr.msk.bf16.gmra.mrb[32].mxu0 %vm3098_vm6, %v18948_v58 }
 0xd34   : > { %16895 = vmatprep.mubr.msk.bf16.mxu0 %vm19052_vm5, %v24210_v36 }
 0xd3b   : > { %16896 = vmatmul.mubr.msk.bf16.gmra.mrb[36].mxu0 %vm3098_vm6, %v18949_v60 }
 0xd3c   : > { %16899 = vmatprep.mubr.msk.bf16.mxu0 %vm19052_vm5, %v24210_v36 }
 0xd43   : > { %16900 = vmatmul.mubr.msk.bf16.gmra.mrb[40].mxu0 %vm3098_vm6, %v18950_v22 }
 0xd44   : > { %16903 = vmatprep.mubr.msk.bf16.mxu0 %vm19052_vm5, %v24210_v36 }
 0xd4b   : > { %16904 = vmatmul.mubr.msk.bf16.gmra.mrb[44].mxu0 %vm3098_vm6, %v18951_v9 }
 0xd4c   : > { %16907 = vmatprep.mubr.msk.bf16.mxu0 %vm19052_vm5, %v24210_v36 }
 0xd53   : > { %16908 = vmatmul.mubr.msk.bf16.gmra.mrb[48].mxu0 %vm3098_vm6, %v18952_v54 }
 0xd54   : > { %16911 = vmatprep.mubr.msk.bf16.mxu0 %vm19052_vm5, %v24210_v36 }
 0xd5b   : > { %16912 = vmatmul.mubr.msk.bf16.gmra.mrb[52].mxu0 %vm3098_vm6, %v18953_v62 }
 0xd5c   : > { %16915 = vmatprep.mubr.msk.bf16.mxu0 %vm19052_vm5, %v24210_v36 }
 0xd63   : > { %16916 = vmatmul.mubr.msk.bf16.gmra.mrb[56].mxu0 %vm3098_vm6, %v18954_v51 }
 0xd64   : > { %15210 = vmatprep.mubr.msk.bf16.mxu0 %vm6020_vm9, %v18955_v28 }
 0xdb6   : > { %v10306_v53 = vpop.f32.mrb[248].mxu0 }
 0xdb7   : > { %v16853_v3 = vpop.f32.mrb[249].mxu0 }
 0xdb8   : > { %v10309_v23 = vpop.f32.mrb[250].mxu0 }
 0xdb9   : > { %v22888_v44 = vpack.c.bf16 %v10309_v23, %v10306_v53  ;;  %v16854_v61 = vpop.f32.mrb[251].mxu0 }
 0xdbb   : > { %v10461_v48 = vshll.u32 %v22888_v44, 16  ;;  %v10459_v30 = vshrl.u32 %v22888_v44, 16 }
 0xdbd   : > { %v10463_v19 = vrot.slane %v10461_v48, 1 }
 0xdbe   : > { %v10314_v1 = vpop.f32.mrb[252].mxu0 }
 0xdbf   : > { %v16857_v43 = vpop.f32.mrb[253].mxu0  ;;  %v10464_v16 = vor.u32 %v10463_v19, %v10459_v30 }
 0xdc0   : > { %v10317_v35 = vpop.f32.mrb[254].mxu0 }
 0xdc1   : > { %v22891_v27 = vpack.c.bf16 %v10317_v35, %v10314_v1  ;;  %v16858_v59 = vpop.f32.mrb[255].mxu0 }
 0xdc3   : > { %v10466_v38 = vshll.u32 %v22891_v27, 16  ;;  %v10470_v21 = vshrl.u32 %v22891_v27, 16 }
 0xdc5   : > { %v10468_v17 = vrot.slane %v10466_v38, 1 }
 0xdc6   : > { %v10322_v50 = vpop.f32.mrb[0].mxu0 }
 0xdc7   : > { %v16861_v56 = vpop.f32.mrb[1].mxu0  ;;  %v10469_v7 = vsel %vm3849_vm7, %v10464_v16, %v10468_v17  ;;  %v10472_v39 = vor.u32 %v10470_v21, %v10468_v17 }
 0xdc8   : > { %v10325_v52 = vpop.f32.mrb[2].mxu0  ;;  %16921 = vmatprep.mubr.msk.bf16.mxu1 %vm3966_vm8, %v10469_v7 }
 0xdc9   : > { %v22897_v25 = vpack.c.bf16 %v10325_v52, %v10322_v50  ;;  %v16862_v57 = vpop.f32.mrb[3].mxu0 }
 0xdcb   : > { %v10474_v14 = vshll.u32 %v22897_v25, 16  ;;  %v10478_v45 = vshrl.u32 %v22897_v25, 16 }
 0xdcd   : > { %v10476_v10 = vrot.slane %v10474_v14, 1 }
 0xdce   : > { %v10330_v18 = vpop.f32.mrb[4].mxu0 }
 0xdcf   : > { %v22902_v31 = vsel %vm3849_vm7, %v10472_v39, %v10476_v10  ;;  %v16865_v41 = vpop.f32.mrb[5].mxu0  ;;  %v10480_v12 = vor.u32 %v10478_v45, %v10476_v10 }
 0xdd0   : > { %v10333_v34 = vpop.f32.mrb[6].mxu0  ;;  %16922 = vmatmul.mubr.msk.bf16.vlgmr.msra.gmra.mrb[116].mxu1 %vm3966_vm8, %v22902_v31 }
 0xdd1   : > { %v22906_v11 = vpack.c.bf16 %v10333_v34, %v10330_v18  ;;  %v16866_v4 = vpop.f32.mrb[7].mxu0  ;;  %16950 = vmatpush3.bf16.msra.mxu1 %v20234_v63 }
 0xdd2   : > { %18464 = vmatprep.subr.msk.bf16.mxu1 %vm1181_vm0, %v18956_v0 }
 0xdd3   : > { %v10482_v46 = vshll.u32 %v22906_v11, 16  ;;  %v10486_v22 = vshrl.u32 %v22906_v11, 16 }
 0xdd5   : > { %v10484_v42 = vrot.slane %v10482_v46, 1 }
 0xdd6   : > { %v10338_v29 = vpop.f32.mrb[8].mxu0 }
 0xdd7   : > { %v16869_v37 = vpop.f32.mrb[9].mxu0  ;;  %v22916_v40 = vsel %vm3849_vm7, %v10480_v12, %v10484_v42  ;;  %v10488_v9 = vor.u32 %v10486_v22, %v10484_v42 }
 0xdd8   : > { %v10341_v6 = vpop.f32.mrb[10].mxu0  ;;  %16925 = vmatprep.mubr.msk.bf16.mxu1 %vm3966_vm8, %v22916_v40 }
 0xdd9   : > { %v22920_v63 = vpack.c.bf16 %v10341_v6, %v10338_v29  ;;  %v16870_v58 = vpop.f32.mrb[11].mxu0 }
 0xddb   : > { %v10490_v60 = vshll.u32 %v22920_v63, 16  ;;  %v10494_v61 = vshrl.u32 %v22920_v63, 16 }
 0xddd   : > { %v10492_v54 = vrot.slane %v10490_v60, 1 }
 0xdde   : > { %v10346_v62 = vpop.f32.mrb[12].mxu0 }
 0xddf   : > { %v22925_v51 = vsel %vm3849_vm7, %v10488_v9, %v10492_v54  ;;  %v16873_v28 = vpop.f32.mrb[13].mxu0  ;;  %v10496_v1 = vor.u32 %v10494_v61, %v10492_v54 }
 0xde0   : > { %v10349_v53 = vpop.f32.mrb[14].mxu0  ;;  %16926 = vmatmul.mubr.msk.bf16.gmra.mrb[120].mxu1 %vm3966_vm8, %v22925_v51 }
 0xde1   : > { %v22929_v3 = vpack.c.bf16 %v10349_v53, %v10346_v62  ;;  %v16874_v23 = vpop.f32.mrb[15].mxu0 }
 0xde3   : > { %v10498_v48 = vshll.u32 %v22929_v3, 16  ;;  %v10502_v50 = vshrl.u32 %v22929_v3, 16 }
 0xde5   : > { %v10500_v43 = vrot.slane %v10498_v48, 1 }
 0xde6   : > { %v10354_v35 = vpop.f32.mrb[16].mxu0 }
 0xde7   : > { %v16877_v19 = vpop.f32.mrb[17].mxu0  ;;  %v22934_v59 = vsel %vm3849_vm7, %v10496_v1, %v10500_v43  ;;  %v10504_v56 = vor.u32 %v10502_v50, %v10500_v43 }
 0xde8   : > { %v10357_v30 = vpop.f32.mrb[18].mxu0  ;;  %16929 = vmatprep.mubr.msk.bf16.mxu1 %vm3966_vm8, %v22934_v59 }
 0xde9   : > { %v22938_v38 = vpack.c.bf16 %v10357_v30, %v10354_v35  ;;  %v16878_v16 = vpop.f32.mrb[19].mxu0 }
 0xdeb   : > { %v10506_v17 = vshll.u32 %v22938_v38, 16  ;;  %v10510_v18 = vshrl.u32 %v22938_v38, 16 }
 0xded   : > { %v10508_v7 = vrot.slane %v10506_v17, 1 }
 0xdee   : > { %v10362_v52 = vpop.f32.mrb[20].mxu0 }
 0xdef   : > { %v22943_v57 = vsel %vm3849_vm7, %v10504_v56, %v10508_v7  ;;  %v16881_v14 = vpop.f32.mrb[21].mxu0  ;;  %v10512_v34 = vor.u32 %v10510_v18, %v10508_v7 }
 0xdf0   : > { %v10365_v21 = vpop.f32.mrb[22].mxu0  ;;  %16930 = vmatmul.mubr.msk.bf16.gmra.mrb[124].mxu1 %vm3966_vm8, %v22943_v57 }
 0xdf1   : > { %v22947_v39 = vpack.c.bf16 %v10365_v21, %v10362_v52  ;;  %v16882_v10 = vpop.f32.mrb[23].mxu0 }
 0xdf3   : > { %v10514_v41 = vshll.u32 %v22947_v39, 16  ;;  %v10518_v6 = vshrl.u32 %v22947_v39, 16 }
 0xdf5   : > { %v10516_v4 = vrot.slane %v10514_v41, 1 }
 0xdf6   : > { %v10370_v0 = vpop.f32.mrb[24].mxu0 }
 0xdf7   : > { %v16885_v45 = vpop.f32.mrb[25].mxu0  ;;  %v22952_v46 = vsel %vm3849_vm7, %v10512_v34, %v10516_v4  ;;  %v10520_v58 = vor.u32 %v10518_v6, %v10516_v4 }
 0xdf8   : > { %v10373_v12 = vpop.f32.mrb[26].mxu0  ;;  %16933 = vmatprep.mubr.msk.bf16.mxu1 %vm3966_vm8, %v22952_v46 }
 0xdf9   : > { %v22956_v42 = vpack.c.bf16 %v10373_v12, %v10370_v0  ;;  %v16886_v29 = vpop.f32.mrb[27].mxu0 }
 0xdfb   : > { %v10522_v37 = vshll.u32 %v22956_v42, 16  ;;  %v10526_v23 = vshrl.u32 %v22956_v42, 16 }
 0xdfd   : > { %v10524_v60 = vrot.slane %v10522_v37, 1 }
 0xdfe   : > { %v10378_v22 = vpop.f32.mrb[28].mxu0 }
 0xdff   : > { %v22961_v9 = vsel %vm3849_vm7, %v10520_v58, %v10524_v60  ;;  %v16889_v54 = vpop.f32.mrb[29].mxu0  ;;  %v10528_v48 = vor.u32 %v10526_v23, %v10524_v60 }
 0xe00   : > { %v10381_v62 = vpop.f32.mrb[30].mxu0  ;;  %16934 = vmatmul.mubr.msk.bf16.gmra.mrb[128].mxu1 %vm3966_vm8, %v22961_v9 }
 0xe01   : > { %v22965_v28 = vpack.c.bf16 %v10381_v62, %v10378_v22  ;;  %v16890_v53 = vpop.f32.mrb[31].mxu0 }
 0xe03   : > { %v10530_v61 = vshll.u32 %v22965_v28, 16  ;;  %v10534_v56 = vshrl.u32 %v22965_v28, 16 }
 0xe05   : > { %v10532_v1 = vrot.slane %v10530_v61, 1 }
 0xe06   : > { %v10386_v43 = vpop.f32.mrb[32].mxu0 }
 0xe07   : > { %v16893_v35 = vpop.f32.mrb[33].mxu0  ;;  %v22970_v19 = vsel %vm3849_vm7, %v10528_v48, %v10532_v1  ;;  %v10536_v7 = vor.u32 %v10534_v56, %v10532_v1 }
 0xe08   : > { %v10389_v30 = vpop.f32.mrb[34].mxu0  ;;  %16937 = vmatprep.mubr.msk.bf16.mxu1 %vm3966_vm8, %v22970_v19 }
 0xe09   : > { %v22974_v16 = vpack.c.bf16 %v10389_v30, %v10386_v43  ;;  %v16894_v17 = vpop.f32.mrb[35].mxu0 }
 0xe0b   : > { %v10538_v50 = vshll.u32 %v22974_v16, 16  ;;  %v10542_v4 = vshrl.u32 %v22974_v16, 16 }
 0xe0d   : > { %v10540_v52 = vrot.slane %v10538_v50, 1 }
 0xe0e   : > { %v10394_v14 = vpop.f32.mrb[36].mxu0 }
 0xe0f   : > { %v22979_v21 = vsel %vm3849_vm7, %v10536_v7, %v10540_v52  ;;  %v16897_v10 = vpop.f32.mrb[37].mxu0  ;;  %v10544_v45 = vor.u32 %v10542_v4, %v10540_v52 }
 0xe10   : > { %v10397_v18 = vpop.f32.mrb[38].mxu0  ;;  %16938 = vmatmul.mubr.msk.bf16.gmra.mrb[132].mxu1 %vm3966_vm8, %v22979_v21 }
 0xe11   : > { %v22983_v41 = vpack.c.bf16 %v10397_v18, %v10394_v14  ;;  %v16898_v34 = vpop.f32.mrb[39].mxu0 }
 0xe13   : > { %v10546_v0 = vshll.u32 %v22983_v41, 16  ;;  %v10550_v62 = vshrl.u32 %v22983_v41, 16 }
 0xe15   : > { %v10548_v12 = vrot.slane %v10546_v0, 1 }
 0xe16   : > { %v10402_v29 = vpop.f32.mrb[40].mxu0 }
 0xe17   : > { %v16901_v37 = vpop.f32.mrb[41].mxu0  ;;  %v22988_v6 = vsel %vm3849_vm7, %v10544_v45, %v10548_v12  ;;  %v10552_v53 = vor.u32 %v10550_v62, %v10548_v12 }
 0xe18   : > { %v10405_v58 = vpop.f32.mrb[42].mxu0  ;;  %16941 = vmatprep.mubr.msk.bf16.mxu1 %vm3966_vm8, %v22988_v6 }
 0xe19   : > { %v22992_v60 = vpack.c.bf16 %v10405_v58, %v10402_v29  ;;  %v16902_v22 = vpop.f32.mrb[43].mxu0 }
 0xe1b   : > { %v10554_v54 = vshll.u32 %v22992_v60, 16  ;;  %v10558_v17 = vshrl.u32 %v22992_v60, 16 }
 0xe1d   : > { %v10556_v23 = vrot.slane %v10554_v54, 1 }
 0xe1e   : > { %v10410_v61 = vpop.f32.mrb[44].mxu0 }
 0xe1f   : > { %v22997_v48 = vsel %vm3849_vm7, %v10552_v53, %v10556_v23  ;;  %v16905_v1 = vpop.f32.mrb[45].mxu0  ;;  %v10560_v56 = vor.u32 %v10558_v17, %v10556_v23 }
 0xe20   : > { %v10413_v43 = vpop.f32.mrb[46].mxu0  ;;  %16942 = vmatmul.mubr.msk.bf16.gmra.mrb[136].mxu1 %vm3966_vm8, %v22997_v48 }
 0xe21   : > { %v23001_v35 = vpack.c.bf16 %v10413_v43, %v10410_v61  ;;  %v16906_v30 = vpop.f32.mrb[47].mxu0 }
 0xe23   : > { %v10562_v50 = vshll.u32 %v23001_v35, 16  ;;  %v10566_v45 = vshrl.u32 %v23001_v35, 16 }
 0xe25   : > { %v10564_v7 = vrot.slane %v10562_v50, 1 }
 0xe26   : > { %v10418_v52 = vpop.f32.mrb[48].mxu0 }
 0xe27   : > { %v16909_v14 = vpop.f32.mrb[49].mxu0  ;;  %v23006_v10 = vsel %vm3849_vm7, %v10560_v56, %v10564_v7  ;;  %v10568_v29 = vor.u32 %v10566_v45, %v10564_v7  ;;  %v18957_v56 = vld [vmem:[%s24162_s3 + $0xc] sm:$0xf] }
 0xe28   : > { %v10421_v18 = vpop.f32.mrb[50].mxu0  ;;  %16945 = vmatprep.mubr.msk.bf16.mxu1 %vm3966_vm8, %v23006_v10 }
 0xe29   : > { %v23010_v34 = vpack.c.bf16 %v10421_v18, %v10418_v52  ;;  %v16910_v4 = vpop.f32.mrb[51].mxu0 }
 0xe2b   : > { %v10570_v0 = vshll.u32 %v23010_v34, 16 }
 0xe2d   : > { %v23014_v12 = vrot.slane %v10570_v0, 1 }
 0xe2e   : > { %v10426_v37 = vpop.f32.mrb[52].mxu0 }
 0xe2f   : > { %v23018_v58 = vsel %vm3849_vm7, %v10568_v29, %v23014_v12  ;;  %v16913_v22 = vpop.f32.mrb[53].mxu0  ;;  %v10950_v29 = vrot.slane %v22891_v27, 1 }
 0xe30   : > { %v10429_v54 = vpop.f32.mrb[54].mxu0  ;;  %16946 = vmatmul.mubr.msk.bf16.gmra.mrb[140].mxu1 %vm3966_vm8, %v23018_v58 }
 0xe31   : > { %v23022_v62 = vpack.c.bf16 %v10429_v54, %v10426_v37  ;;  %v16914_v53 = vpop.f32.mrb[55].mxu0  ;;  %16951 = vmatprep.mubr.msk.bf16.mxu1 %vm3966_vm8, %v22888_v44  ;;  %v10949_v37 = vrot.slane %v22888_v44, 1  ;;  %v10952_v54 = vrot.slane %v22897_v25, 1  ;;  %v18958_v44 = vld [vmem:[%s24162_s3 + $0x10] sm:$0xf] }
 0xe32   : > { %v10954_v53 = vrot.slane %v22906_v11, 1 }
 0xe33   : > { %v11372_v23 = vshll.u32 %v23022_v62, 16  ;;  %v11553_v7 = vrot.slane %v23022_v62, 1  ;;  %v11906_v52 = vshrl.u32 %v23022_v62, 16  ;;  %v10951_v22 = vsel %vm1893_vm3, %v10949_v37, %v10950_v29 }
 0xe34   : > { %v10968_v37 = vrot.slane %v22974_v16, 1 }
 0xe35   : > { %v23029_v30 = vrot.slane %v11372_v23, 1  ;;  %v23078_v23 = vsel %vm1893_vm3, %v10950_v29, %v10952_v54 }
 0xe36   : > { %v10434_v61 = vpop.f32.mrb[56].mxu0 }
 0xe37   : > { %v16917_v1 = vpop.f32.mrb[57].mxu0  ;;  %v11908_v4 = vor.u32 %v11906_v52, %v23029_v30 }
 0xe38   : > { %v10437_v43 = vpop.f32.mrb[58].mxu0  ;;  %16952 = vmatmul.mubr.msk.bf16.vlgmr.msra.gmra.mrb[116].mxu1 %vm3966_vm8, %v22891_v27  ;;  %v10956_v1 = vrot.slane %v22920_v63, 1 }
 0xe39   : > { %v10457_v17 = vpack.c.bf16 %v10437_v43, %v10434_v61  ;;  %v16918_v50 = vpop.f32.mrb[59].mxu0  ;;  %16955 = vmatprep.mubr.msk.bf16.mxu1 %vm3966_vm8, %v22897_v25  ;;  %16980 = vmatpush3.bf16.msra.mxu1 %v20367_v20  ;;  %v23083_v61 = vsel %vm1893_vm3, %v10952_v54, %v10954_v53  ;;  %v10958_v43 = vrot.slane %v22929_v3, 1 }
 0xe3a   : > { %18465 = vmatprep.subr.msk.bf16.mxu1 %vm1181_vm0, %v18957_v56  ;;  %v10962_v56 = vrot.slane %v22947_v39, 1 }
 0xe3b   : > { %v11910_v14 = vshll.u32 %v10457_v17, 16  ;;  %v12091_v18 = vrot.slane %v10457_v17, 1  ;;  %v23095_v17 = vsel %vm1893_vm3, %v10954_v53, %v10956_v1  ;;  %v23100_v50 = vsel %vm1893_vm3, %v10956_v1, %v10958_v43 }
 0xe3c   : > { %v10974_v1 = vrot.slane %v23001_v35, 1 }
 0xe3d   : > { %v11912_v0 = vrot.slane %v11910_v14, 1  ;;  %v23044_v45 = vsel %vm1893_vm3, %v11553_v7, %v12091_v18  ;;  %v10964_v18 = vrot.slane %v22956_v42, 1 }
 0xe3f   : > { %v23047_v20 = vsel %vm3849_vm7, %v11908_v4, %v11912_v0  ;;  %v10966_v4 = vrot.slane %v22965_v28, 1  ;;  %v23119_v0 = vsel %vm1893_vm3, %v10962_v56, %v10964_v18 }
 0xe40   : > { %16956 = vmatmul.mubr.msk.bf16.gmra.mrb[120].mxu1 %vm3966_vm8, %v22906_v11 }
 0xe41   : > { %16959 = vmatprep.mubr.msk.bf16.mxu1 %vm3966_vm8, %v22920_v63  ;;  %v23124_v29 = vsel %vm1893_vm3, %v10964_v18, %v10966_v4  ;;  %v23131_v54 = vsel %vm1893_vm3, %v10966_v4, %v10968_v37  ;;  %v18959_v4 = vld [vmem:[%s24162_s3 + $0x14] sm:$0xf] }
 0xe48   : > { %16960 = vmatmul.mubr.msk.bf16.gmra.mrb[124].mxu1 %vm3966_vm8, %v22929_v3 }
 0xe49   : > { %16963 = vmatprep.mubr.msk.bf16.mxu1 %vm3966_vm8, %v22938_v38 }
 0xe50   : > { %16964 = vmatmul.mubr.msk.bf16.gmra.mrb[128].mxu1 %vm3966_vm8, %v22947_v39 }
 0xe51   : > { %16967 = vmatprep.mubr.msk.bf16.mxu1 %vm3966_vm8, %v22956_v42 }
 0xe58   : > { %16968 = vmatmul.mubr.msk.bf16.gmra.mrb[132].mxu1 %vm3966_vm8, %v22965_v28 }
 0xe59   : > { %16971 = vmatprep.mubr.msk.bf16.mxu1 %vm3966_vm8, %v22974_v16 }
 0xe60   : > { %16972 = vmatmul.mubr.msk.bf16.gmra.mrb[136].mxu1 %vm3966_vm8, %v22983_v41 }
 0xe61   : > { %16975 = vmatprep.mubr.msk.bf16.mxu1 %vm3966_vm8, %v22992_v60 }
 0xe68   : > { %16976 = vmatmul.mubr.msk.bf16.gmra.mrb[140].mxu1 %vm3966_vm8, %v23001_v35 }
 0xe69   : > { %16981 = vmatprep.mubr.msk.bf16.mxu1 %vm3966_vm8, %v10951_v22  ;;  %v10970_v22 = vrot.slane %v22983_v41, 1 }
 0xe6b   : > { %v23136_v53 = vsel %vm1893_vm3, %v10968_v37, %v10970_v22 }
 0xe70   : > { %16982 = vmatmul.mubr.msk.bf16.vlgmr.msra.gmra.mrb[116].mxu1 %vm3966_vm8, %v23078_v23 }
 0xe71   : > { %16985 = vmatprep.mubr.msk.bf16.mxu1 %vm3966_vm8, %v23083_v61  ;;  %17010 = vmatpush3.bf16.msra.mxu1 %v20420_v47  ;;  %v10960_v47 = vrot.slane %v22938_v38, 1 }
 0xe72   : > { %18466 = vmatprep.subr.msk.bf16.mxu1 %vm1181_vm0, %v18958_v44  ;;  %v10972_v44 = vrot.slane %v22992_v60, 1 }
 0xe73   : > { %v23107_v52 = vsel %vm1893_vm3, %v10958_v43, %v10960_v47  ;;  %v23112_v14 = vsel %vm1893_vm3, %v10960_v47, %v10962_v56  ;;  %v10976_v56 = vrot.slane %v23010_v34, 1 }
 0xe74   : > { %v23143_v43 = vsel %vm1893_vm3, %v10970_v22, %v10972_v44  ;;  %v23148_v47 = vsel %vm1893_vm3, %v10972_v44, %v10974_v1 }
 0xe75   : > { %v23154_v18 = vsel %vm1893_vm3, %v10974_v1, %v10976_v56 }
 0xe78   : > { %16986 = vmatmul.mubr.msk.bf16.gmra.mrb[120].mxu1 %vm3966_vm8, %v23095_v17 }
 0xe79   : > { %16989 = vmatprep.mubr.msk.bf16.mxu1 %vm3966_vm8, %v23100_v50 }
 0xe80   : > { %16990 = vmatmul.mubr.msk.bf16.gmra.mrb[124].mxu1 %vm3966_vm8, %v23107_v52 }
 0xe81   : > { %16993 = vmatprep.mubr.msk.bf16.mxu1 %vm3966_vm8, %v23112_v14 }
 0xe88   : > { %16994 = vmatmul.mubr.msk.bf16.gmra.mrb[128].mxu1 %vm3966_vm8, %v23119_v0 }
 0xe89   : > { %16997 = vmatprep.mubr.msk.bf16.mxu1 %vm3966_vm8, %v23124_v29 }
 0xe90   : > { %16998 = vmatmul.mubr.msk.bf16.gmra.mrb[132].mxu1 %vm3966_vm8, %v23131_v54 }
 0xe91   : > { %17001 = vmatprep.mubr.msk.bf16.mxu1 %vm3966_vm8, %v23136_v53 }
 0xe98   : > { %17002 = vmatmul.mubr.msk.bf16.gmra.mrb[136].mxu1 %vm3966_vm8, %v23143_v43 }
 0xe99   : > { %17005 = vmatprep.mubr.msk.bf16.mxu1 %vm3966_vm8, %v23148_v47 }
 0xea0   : > { %17006 = vmatmul.mubr.msk.bf16.gmra.mrb[140].mxu1 %vm3966_vm8, %v23154_v18 }
 0xea1   : > { %17011 = vmatprep.mubr.msk.bf16.mxu1 %vm3966_vm8, %v22891_v27 }
 0xea8   : > { %17012 = vmatmul.mubr.msk.bf16.vlgmr.msra.gmra.mrb[116].mxu1 %vm3966_vm8, %v22897_v25 }
 0xea9   : > { %17015 = vmatprep.mubr.msk.bf16.mxu1 %vm3966_vm8, %v22906_v11  ;;  %17040 = vmatpush3.bf16.msra.mxu1 %v20506_v26  ;;  %v18960_v26 = vld [vmem:[%s24162_s3 + $0x18] sm:$0xf] }
 0xeaa   : > { %18467 = vmatprep.subr.msk.bf16.mxu1 %vm1181_vm0, %v18959_v4 }
 0xeb0   : > { %17016 = vmatmul.mubr.msk.bf16.gmra.mrb[120].mxu1 %vm3966_vm8, %v22920_v63 }
 0xeb1   : > { %17019 = vmatprep.mubr.msk.bf16.mxu1 %vm3966_vm8, %v22929_v3 }
 0xeb8   : > { %17020 = vmatmul.mubr.msk.bf16.gmra.mrb[124].mxu1 %vm3966_vm8, %v22938_v38 }
 0xeb9   : > { %17023 = vmatprep.mubr.msk.bf16.mxu1 %vm3966_vm8, %v22947_v39 }
 0xec0   : > { %17024 = vmatmul.mubr.msk.bf16.gmra.mrb[128].mxu1 %vm3966_vm8, %v22956_v42 }
 0xec1   : > { %17027 = vmatprep.mubr.msk.bf16.mxu1 %vm3966_vm8, %v22965_v28 }
 0xec8   : > { %17028 = vmatmul.mubr.msk.bf16.gmra.mrb[132].mxu1 %vm3966_vm8, %v22974_v16 }
 0xec9   : > { %17031 = vmatprep.mubr.msk.bf16.mxu1 %vm3966_vm8, %v22983_v41 }
 0xed0   : > { %17032 = vmatmul.mubr.msk.bf16.gmra.mrb[136].mxu1 %vm3966_vm8, %v22992_v60 }
 0xed1   : > { %17035 = vmatprep.mubr.msk.bf16.mxu1 %vm3966_vm8, %v23001_v35 }
 0xed8   : > { %17036 = vmatmul.mubr.msk.bf16.gmra.mrb[140].mxu1 %vm3966_vm8, %v23010_v34 }
 0xed9   : > { %17041 = vmatprep.mubr.msk.bf16.mxu1 %vm3966_vm8, %v22902_v31 }
 0xee0   : > { %17042 = vmatmul.mubr.msk.bf16.vlgmr.msra.gmra.mrb[116].mxu1 %vm3966_vm8, %v22916_v40 }
 0xee1   : > { %17045 = vmatprep.mubr.msk.bf16.mxu1 %vm3966_vm8, %v22925_v51  ;;  %17070 = vmatpush3.bf16.msra.mxu1 %v20542_v33  ;;  %v11368_v33 = vshrl.u32 %v23010_v34, 16 }
 0xee2   : > { %18468 = vmatprep.subr.msk.bf16.mxu1 %vm1181_vm0, %v18960_v26 }
 0xee3   : > { %v11370_v27 = vor.u32 %v11368_v33, %v23014_v12  ;;  %v18961_v12 = vld [vmem:[%s24162_s3 + $0x1c] sm:$0xf] }
 0xee5   : > { %v11375_v31 = vsel %vm3849_vm7, %v11370_v27, %v23029_v30  ;;  %v18962_v30 = vld [vmem:[%s24162_s3 + $0x20] sm:$0xf] }
 0xee8   : > { %17046 = vmatmul.mubr.msk.bf16.gmra.mrb[120].mxu1 %vm3966_vm8, %v22934_v59 }
 0xee9   : > { %17049 = vmatprep.mubr.msk.bf16.mxu1 %vm3966_vm8, %v22943_v57 }
 0xef0   : > { %17050 = vmatmul.mubr.msk.bf16.gmra.mrb[124].mxu1 %vm3966_vm8, %v22952_v46 }
 0xef1   : > { %17053 = vmatprep.mubr.msk.bf16.mxu1 %vm3966_vm8, %v22961_v9 }
 0xef8   : > { %17054 = vmatmul.mubr.msk.bf16.gmra.mrb[128].mxu1 %vm3966_vm8, %v22970_v19 }
 0xef9   : > { %17057 = vmatprep.mubr.msk.bf16.mxu1 %vm3966_vm8, %v22979_v21 }
 0xf00   : > { %17058 = vmatmul.mubr.msk.bf16.gmra.mrb[132].mxu1 %vm3966_vm8, %v22988_v6 }
 0xf01   : > { %17061 = vmatprep.mubr.msk.bf16.mxu1 %vm3966_vm8, %v22997_v48 }
 0xf08   : > { %17062 = vmatmul.mubr.msk.bf16.gmra.mrb[136].mxu1 %vm3966_vm8, %v23006_v10 }
 0xf09   : > { %17065 = vmatprep.mubr.msk.bf16.mxu1 %vm3966_vm8, %v23018_v58 }
 0xf10   : > { %17066 = vmatmul.mubr.msk.bf16.gmra.mrb[140].mxu1 %vm3966_vm8, %v11375_v31 }
 0xf11   : > { %17071 = vmatprep.mubr.msk.bf16.mxu1 %vm3966_vm8, %v23078_v23 }
 0xf18   : > { %17072 = vmatmul.mubr.msk.bf16.vlgmr.msra.gmra.mrb[116].mxu1 %vm3966_vm8, %v23083_v61 }
 0xf19   : > { %17075 = vmatprep.mubr.msk.bf16.mxu1 %vm3966_vm8, %v23095_v17  ;;  %17100 = vmatpush3.bf16.msra.mxu1 %v20581_v24  ;;  %v11554_v24 = vsel %vm1893_vm3, %v10976_v56, %v11553_v7 }
 0xf1a   : > { %18469 = vmatprep.subr.msk.bf16.mxu1 %vm1181_vm0, %v18961_v12 }
 0xf20   : > { %17076 = vmatmul.mubr.msk.bf16.gmra.mrb[120].mxu1 %vm3966_vm8, %v23100_v50 }
 0xf21   : > { %17079 = vmatprep.mubr.msk.bf16.mxu1 %vm3966_vm8, %v23107_v52 }
 0xf28   : > { %17080 = vmatmul.mubr.msk.bf16.gmra.mrb[124].mxu1 %vm3966_vm8, %v23112_v14 }
 0xf29   : > { %17083 = vmatprep.mubr.msk.bf16.mxu1 %vm3966_vm8, %v23119_v0 }
 0xf30   : > { %17084 = vmatmul.mubr.msk.bf16.gmra.mrb[128].mxu1 %vm3966_vm8, %v23124_v29 }
 0xf31   : > { %17087 = vmatprep.mubr.msk.bf16.mxu1 %vm3966_vm8, %v23131_v54 }
 0xf38   : > { %17088 = vmatmul.mubr.msk.bf16.gmra.mrb[132].mxu1 %vm3966_vm8, %v23136_v53 }
 0xf39   : > { %17091 = vmatprep.mubr.msk.bf16.mxu1 %vm3966_vm8, %v23143_v43 }
 0xf40   : > { %17092 = vmatmul.mubr.msk.bf16.gmra.mrb[136].mxu1 %vm3966_vm8, %v23148_v47 }
 0xf41   : > { %17095 = vmatprep.mubr.msk.bf16.mxu1 %vm3966_vm8, %v23154_v18 }
 0xf48   : > { %17096 = vmatmul.mubr.msk.bf16.gmra.mrb[140].mxu1 %vm3966_vm8, %v11554_v24 }
 0xf49   : > { %17101 = vmatprep.mubr.msk.bf16.mxu1 %vm3966_vm8, %v22897_v25 }
 0xf50   : > { %17102 = vmatmul.mubr.msk.bf16.vlgmr.msra.gmra.mrb[116].mxu1 %vm3966_vm8, %v22906_v11 }
 0xf51   : > { %17105 = vmatprep.mubr.msk.bf16.mxu1 %vm3966_vm8, %v22920_v63  ;;  %17130 = vmatpush3.bf16.msra.mxu1 %v20619_v55 }
 0xf52   : > { %18470 = vmatprep.subr.msk.bf16.mxu1 %vm1181_vm0, %v18962_v30 }
 0xf58   : > { %17106 = vmatmul.mubr.msk.bf16.gmra.mrb[120].mxu1 %vm3966_vm8, %v22929_v3 }
 0xf59   : > { %17109 = vmatprep.mubr.msk.bf16.mxu1 %vm3966_vm8, %v22938_v38 }
 0xf60   : > { %17110 = vmatmul.mubr.msk.bf16.gmra.mrb[124].mxu1 %vm3966_vm8, %v22947_v39 }
 0xf61   : > { %17113 = vmatprep.mubr.msk.bf16.mxu1 %vm3966_vm8, %v22956_v42 }
 0xf68   : > { %17114 = vmatmul.mubr.msk.bf16.gmra.mrb[128].mxu1 %vm3966_vm8, %v22965_v28 }
 0xf69   : > { %17117 = vmatprep.mubr.msk.bf16.mxu1 %vm3966_vm8, %v22974_v16 }
 0xf70   : > { %17118 = vmatmul.mubr.msk.bf16.gmra.mrb[132].mxu1 %vm3966_vm8, %v22983_v41 }
 0xf71   : > { %17121 = vmatprep.mubr.msk.bf16.mxu1 %vm3966_vm8, %v22992_v60 }
 0xf78   : > { %17122 = vmatmul.mubr.msk.bf16.gmra.mrb[136].mxu1 %vm3966_vm8, %v23001_v35 }
 0xf79   : > { %17125 = vmatprep.mubr.msk.bf16.mxu1 %vm3966_vm8, %v23010_v34 }
 0xf80   : > { %17126 = vmatmul.mubr.msk.bf16.gmra.mrb[140].mxu1 %vm3966_vm8, %v23022_v62 }
 0xf81   : > { %17131 = vmatprep.mubr.msk.bf16.mxu1 %vm3966_vm8, %v22916_v40 }
 0xf88   : > { %17132 = vmatmul.mubr.msk.bf16.vlgmr.msra.gmra.mrb[116].mxu1 %vm3966_vm8, %v22925_v51 }
 0xf89   : > { %17135 = vmatprep.mubr.msk.bf16.mxu1 %vm3966_vm8, %v22934_v59  ;;  %17160 = vmatpush3.bf16.msra.mxu1 %v20655_v2  ;;  %v23358_v2 = vld [vmem:[%s24163_s4] ss:$0 sm:$0xff] }
 0xf8a   : > { %17189 = vmatprep.subr.bf16.mxu1 %v24210_v36 }
 0xf90   : > { %17136 = vmatmul.mubr.msk.bf16.gmra.mrb[120].mxu1 %vm3966_vm8, %v22943_v57 }
 0xf91   : > { %17139 = vmatprep.mubr.msk.bf16.mxu1 %vm3966_vm8, %v22952_v46 }
 0xf98   : > { %17140 = vmatmul.mubr.msk.bf16.gmra.mrb[124].mxu1 %vm3966_vm8, %v22961_v9 }
 0xf99   : > { %17143 = vmatprep.mubr.msk.bf16.mxu1 %vm3966_vm8, %v22970_v19 }
 0xfa0   : > { %17144 = vmatmul.mubr.msk.bf16.gmra.mrb[128].mxu1 %vm3966_vm8, %v22979_v21 }
 0xfa1   : > { %17147 = vmatprep.mubr.msk.bf16.mxu1 %vm3966_vm8, %v22988_v6 }
 0xfa8   : > { %17148 = vmatmul.mubr.msk.bf16.gmra.mrb[132].mxu1 %vm3966_vm8, %v22997_v48 }
 0xfa9   : > { %17151 = vmatprep.mubr.msk.bf16.mxu1 %vm3966_vm8, %v23006_v10 }
 0xfb0   : > { %17152 = vmatmul.mubr.msk.bf16.gmra.mrb[136].mxu1 %vm3966_vm8, %v23018_v58 }
 0xfb1   : > { %17155 = vmatprep.mubr.msk.bf16.mxu1 %vm3966_vm8, %v11375_v31 }
 0xfb8   : > { %17156 = vmatmul.mubr.msk.bf16.gmra.mrb[140].mxu1 %vm3966_vm8, %v23047_v20 }
 0xfb9   : > { %17161 = vmatprep.mubr.msk.bf16.mxu1 %vm3966_vm8, %v23083_v61 }
 0xfc0   : > { %17162 = vmatmul.mubr.msk.bf16.vlgmr.msra.gmra.mrb[116].mxu1 %vm3966_vm8, %v23095_v17 }
 0xfc1   : > { %17165 = vmatprep.mubr.msk.bf16.mxu1 %vm3966_vm8, %v23100_v50  ;;  %17190 = vmatpush3.bf16.msra.mxu1 %v20871_v5 }
 0xfc2   : > { %17249 = vmatprep.subr.bf16.mxu1 %v24210_v36 }
 0xfc8   : > { %17166 = vmatmul.mubr.msk.bf16.gmra.mrb[120].mxu1 %vm3966_vm8, %v23107_v52 }
 0xfc9   : > { %17169 = vmatprep.mubr.msk.bf16.mxu1 %vm3966_vm8, %v23112_v14 }
 0xfd0   : > { %17170 = vmatmul.mubr.msk.bf16.gmra.mrb[124].mxu1 %vm3966_vm8, %v23119_v0 }
 0xfd1   : > { %17173 = vmatprep.mubr.msk.bf16.mxu1 %vm3966_vm8, %v23124_v29 }
 0xfd8   : > { %17174 = vmatmul.mubr.msk.bf16.gmra.mrb[128].mxu1 %vm3966_vm8, %v23131_v54 }
 0xfd9   : > { %17177 = vmatprep.mubr.msk.bf16.mxu1 %vm3966_vm8, %v23136_v53 }
 0xfe0   : > { %17178 = vmatmul.mubr.msk.bf16.gmra.mrb[132].mxu1 %vm3966_vm8, %v23143_v43 }
 0xfe1   : > { %17181 = vmatprep.mubr.msk.bf16.mxu1 %vm3966_vm8, %v23148_v47 }
 0xfe8   : > { %17182 = vmatmul.mubr.msk.bf16.gmra.mrb[136].mxu1 %vm3966_vm8, %v23154_v18 }
 0xfe9   : > { %17185 = vmatprep.mubr.msk.bf16.mxu1 %vm3966_vm8, %v11554_v24 }
 0xff0   : > { %17186 = vmatmul.mubr.msk.bf16.gmra.mrb[140].mxu1 %vm3966_vm8, %v23044_v45 }
 0xff1   : > { %17191 = vmatprep.mubr.msk.bf16.mxu1 %vm19052_vm5, %v24210_v36 }
0x1093   : > { %v17163_v55 = vpop.f32.mrb[116].mxu1 }
0x1094   : > { %v12271_v5 = vadd.f32 %v23358_v2, %v17163_v55  ;;  %v12130_v25 = vpop.f32.mrb[117].mxu1 }
0x1095   : > { %v12269_v11 = vadd.f32 %v23358_v2, %v12130_v25  ;;  %v17164_v40 = vpop.f32.mrb[118].mxu1 }
0x1096   : > { %v12299_v63 = vmax.f32 %v12271_v5, 0.0  ;;  %v12272_v51 = vadd.f32 %v23358_v2, %v17164_v40  ;;  %v12133_v3 = vpop.f32.mrb[119].mxu1 }
0x1097   : > { %v12297_v59 = vmax.f32 %v12269_v11, 0.0  ;;  %v12270_v38 = vadd.f32 %v23358_v2, %v12133_v3 }
0x1098   : > { %v12300_v57 = vmax.f32 %v12272_v51, 0.0  ;;  %v12356_v46 = vrot.slane %v12299_v63, 1 }
0x1099   : > { %v12298_v39 = vmax.f32 %v12270_v38, 0.0  ;;  %v12353_v9 = vrot.slane %v12297_v59, 1 }
0x109a   : > { %v12358_v42 = vrot.slane %v12300_v57, 1 }
0x109b   : > { %v12354_v28 = vrot.slane %v12298_v39, 1  ;;  %v17167_v19 = vpop.f32.mrb[120].mxu1 }
0x109c   : > { %v12359_v16 = vsel %vm1893_vm3, %v12356_v46, %v12358_v42  ;;  %v12275_v21 = vadd.f32 %v23358_v2, %v17167_v19  ;;  %v12146_v41 = vpop.f32.mrb[121].mxu1 }
0x109d   : > { %v12438_v6 = vmax.f32 %v12299_v63, %v12359_v16  ;;  %v12355_v60 = vsel %vm1893_vm3, %v12353_v9, %v12354_v28  ;;  %v12357_v48 = vsel %vm1893_vm3, %v12354_v28, %v12356_v46  ;;  %v12273_v35 = vadd.f32 %v23358_v2, %v12146_v41  ;;  %v17168_v10 = vpop.f32.mrb[122].mxu1 }
0x109e   : > { %v12436_v34 = vmax.f32 %v12297_v59, %v12355_v60  ;;  %v12437_v58 = vmax.f32 %v12298_v39, %v12357_v48  ;;  %v12303_v62 = vmax.f32 %v12275_v21, 0.0  ;;  %v12276_v7 = vadd.f32 %v23358_v2, %v17168_v10  ;;  %v12149_v45 = vpop.f32.mrb[123].mxu1 }
0x109f   : > { %v12301_v20 = vmax.f32 %v12273_v35, 0.0  ;;  %v12274_v23 = vadd.f32 %v23358_v2, %v12149_v45 }
0x10a0   : > { %v12304_v61 = vmax.f32 %v12276_v7, 0.0  ;;  %v12464_v17 = vmax.f32 %v12436_v34, %v12438_v6  ;;  %v12364_v14 = vrot.slane %v12303_v62, 1 }
0x10a1   : > { %v12360_v50 = vrot.slane %v12301_v20, 1  ;;  %v12302_v52 = vmax.f32 %v12274_v23, 0.0 }
0x10a2   : > { %v12366_v0 = vrot.slane %v12304_v61, 1 }
0x10a3   : > { %v12361_v29 = vsel %vm1893_vm3, %v12358_v42, %v12360_v50  ;;  %v12362_v37 = vrot.slane %v12302_v52, 1  ;;  %v17171_v22 = vpop.f32.mrb[124].mxu1 }
0x10a4   : > { %v12367_v54 = vsel %vm1893_vm3, %v12364_v14, %v12366_v0  ;;  %v12439_v53 = vmax.f32 %v12300_v57, %v12361_v29  ;;  %v12279_v44 = vadd.f32 %v23358_v2, %v17171_v22  ;;  %v12162_v1 = vpop.f32.mrb[125].mxu1 }
0x10a5   : > { %v12442_v43 = vmax.f32 %v12303_v62, %v12367_v54  ;;  %v12363_v47 = vsel %vm1893_vm3, %v12360_v50, %v12362_v37  ;;  %v12365_v56 = vsel %vm1893_vm3, %v12362_v37, %v12364_v14  ;;  %v12277_v18 = vadd.f32 %v23358_v2, %v12162_v1  ;;  %v17172_v4 = vpop.f32.mrb[126].mxu1 }
0x10a6   : > { %v12440_v26 = vmax.f32 %v12301_v20, %v12363_v47  ;;  %v12441_v33 = vmax.f32 %v12302_v52, %v12365_v56  ;;  %v12465_v27 = vmax.f32 %v12437_v58, %v12439_v53  ;;  %v12165_v31 = vpop.f32.mrb[127].mxu1  ;;  %v12307_v12 = vmax.f32 %v12279_v44, 0.0 }
0x10a7   : > { %v12305_v24 = vmax.f32 %v12277_v18, 0.0  ;;  %v12280_v30 = vadd.f32 %v23358_v2, %v17172_v4  ;;  %v12278_v55 = vadd.f32 %v23358_v2, %v12165_v31 }
0x10a8   : > { %v12466_v5 = vmax.f32 %v12438_v6, %v12440_v26  ;;  %v12467_v25 = vmax.f32 %v12439_v53, %v12441_v33  ;;  %v12490_v11 = vpack.c.bf16 %v12465_v27, %v12464_v17  ;;  %v12468_v3 = vmax.f32 %v12440_v26, %v12442_v43 }
0x10a9   : > { %v12368_v40 = vrot.slane %v12305_v24, 1  ;;  %v12308_v63 = vmax.f32 %v12280_v30, 0.0  ;;  %v12306_v51 = vmax.f32 %v12278_v55, 0.0  ;;  %v12372_v38 = vrot.slane %v12307_v12, 1 }
0x10aa   : > { %v12491_v59 = vpack.c.bf16 %v12467_v25, %v12466_v5  ;;  %12507 = vmatpush1.bf16.msra.mxu0 %v12490_v11 }
0x10ab   : > { %v12369_v57 = vsel %vm1893_vm3, %v12366_v0, %v12368_v40  ;;  %v12374_v39 = vrot.slane %v12308_v63, 1  ;;  %v12370_v46 = vrot.slane %v12306_v51, 1  ;;  %v17175_v42 = vpop.f32.mrb[128].mxu1  ;;  %12508 = vmatprep.subr.bf16.mxu0 %v24213_v15 }
0x10ac   : > { %v12443_v9 = vmax.f32 %v12304_v61, %v12369_v57  ;;  %v12283_v28 = vadd.f32 %v23358_v2, %v17175_v42  ;;  %v12178_v19 = vpop.f32.mrb[129].mxu1 }
0x10ad   : > { %v12375_v16 = vsel %vm1893_vm3, %v12372_v38, %v12374_v39  ;;  %v12371_v21 = vsel %vm1893_vm3, %v12368_v40, %v12370_v46  ;;  %v12373_v41 = vsel %vm1893_vm3, %v12370_v46, %v12372_v38  ;;  %v12281_v6 = vadd.f32 %v23358_v2, %v12178_v19  ;;  %v17176_v60 = vpop.f32.mrb[130].mxu1 }
0x10ae   : > { %v12446_v48 = vmax.f32 %v12307_v12, %v12375_v16  ;;  %v12444_v35 = vmax.f32 %v12305_v24, %v12371_v21  ;;  %v12445_v10 = vmax.f32 %v12306_v51, %v12373_v41  ;;  %v12469_v34 = vmax.f32 %v12441_v33, %v12443_v9  ;;  %v12181_v58 = vpop.f32.mrb[131].mxu1  ;;  %12509 = vmatpush1.bf16.msra.mxu0 %v12491_v59 }
0x10af   : > { %v12311_v62 = vmax.f32 %v12283_v28, 0.0  ;;  %v12309_v7 = vmax.f32 %v12281_v6, 0.0  ;;  %v12284_v45 = vadd.f32 %v23358_v2, %v17176_v60  ;;  %v12282_v20 = vadd.f32 %v23358_v2, %v12181_v58  ;;  %12510 = vmatprep.subr.bf16.mxu0 %v24213_v15 }
0x10b0   : > { %v12470_v23 = vmax.f32 %v12442_v43, %v12444_v35  ;;  %v12471_v61 = vmax.f32 %v12443_v9, %v12445_v10  ;;  %v12492_v17 = vpack.c.bf16 %v12469_v34, %v12468_v3  ;;  %v12472_v50 = vmax.f32 %v12444_v35, %v12446_v48 }
0x10b1   : > { %v12376_v52 = vrot.slane %v12309_v7, 1  ;;  %v12312_v14 = vmax.f32 %v12284_v45, 0.0  ;;  %v12310_v0 = vmax.f32 %v12282_v20, 0.0  ;;  %v12380_v37 = vrot.slane %v12311_v62, 1 }
0x10b2   : > { %v12493_v29 = vpack.c.bf16 %v12471_v61, %v12470_v23  ;;  %12511 = vmatpush1.bf16.msra.mxu0 %v12492_v17 }
0x10b3   : > { %v12377_v22 = vsel %vm1893_vm3, %v12374_v39, %v12376_v52  ;;  %v12382_v54 = vrot.slane %v12312_v14, 1  ;;  %v12378_v53 = vrot.slane %v12310_v0, 1  ;;  %v17179_v44 = vpop.f32.mrb[132].mxu1  ;;  %12512 = vmatprep.subr.bf16.mxu0 %v24213_v15 }
0x10b4   : > { %v12447_v1 = vmax.f32 %v12308_v63, %v12377_v22  ;;  %v12287_v47 = vadd.f32 %v23358_v2, %v17179_v44  ;;  %v12194_v43 = vpop.f32.mrb[133].mxu1 }
0x10b5   : > { %v12383_v56 = vsel %vm1893_vm3, %v12380_v37, %v12382_v54  ;;  %v12379_v18 = vsel %vm1893_vm3, %v12376_v52, %v12378_v53  ;;  %v12381_v4 = vsel %vm1893_vm3, %v12378_v53, %v12380_v37  ;;  %v12285_v26 = vadd.f32 %v23358_v2, %v12194_v43  ;;  %v17180_v33 = vpop.f32.mrb[134].mxu1 }
0x10b6   : > { %v12450_v27 = vmax.f32 %v12311_v62, %v12383_v56  ;;  %v12448_v31 = vmax.f32 %v12309_v7, %v12379_v18  ;;  %v12449_v12 = vmax.f32 %v12310_v0, %v12381_v4  ;;  %v12473_v24 = vmax.f32 %v12445_v10, %v12447_v1  ;;  %v12197_v30 = vpop.f32.mrb[135].mxu1  ;;  %12513 = vmatpush1.bf16.msra.mxu0 %v12493_v29 }
0x10b7   : > { %v12315_v55 = vmax.f32 %v12287_v47, 0.0  ;;  %v12313_v5 = vmax.f32 %v12285_v26, 0.0  ;;  %v12288_v25 = vadd.f32 %v23358_v2, %v17180_v33  ;;  %v12286_v11 = vadd.f32 %v23358_v2, %v12197_v30  ;;  %12514 = vmatprep.subr.bf16.mxu0 %v24213_v15 }
0x10b8   : > { %v12474_v40 = vmax.f32 %v12446_v48, %v12448_v31  ;;  %v12475_v63 = vmax.f32 %v12447_v1, %v12449_v12  ;;  %v12494_v51 = vpack.c.bf16 %v12473_v24, %v12472_v50  ;;  %v12476_v3 = vmax.f32 %v12448_v31, %v12450_v27 }
0x10b9   : > { %v12384_v59 = vrot.slane %v12313_v5, 1  ;;  %v12316_v38 = vmax.f32 %v12288_v25, 0.0  ;;  %v12314_v57 = vmax.f32 %v12286_v11, 0.0  ;;  %v12388_v46 = vrot.slane %v12315_v55, 1 }
0x10ba   : > { %v12495_v39 = vpack.c.bf16 %v12475_v63, %v12474_v40  ;;  %12515 = vmatpush1.bf16.msra.mxu0 %v12494_v51 }
0x10bb   : > { %v12385_v42 = vsel %vm1893_vm3, %v12382_v54, %v12384_v59  ;;  %v12390_v9 = vrot.slane %v12316_v38, 1  ;;  %v12386_v28 = vrot.slane %v12314_v57, 1  ;;  %v17183_v19 = vpop.f32.mrb[136].mxu1  ;;  %12516 = vmatprep.subr.bf16.mxu0 %v24213_v15 }
0x10bc   : > { %v12451_v16 = vmax.f32 %v12312_v14, %v12385_v42  ;;  %v12291_v21 = vadd.f32 %v23358_v2, %v17183_v19  ;;  %v12210_v41 = vpop.f32.mrb[137].mxu1 }
0x10bd   : > { %v12391_v6 = vsel %vm1893_vm3, %v12388_v46, %v12390_v9  ;;  %v12387_v60 = vsel %vm1893_vm3, %v12384_v59, %v12386_v28  ;;  %v12389_v48 = vsel %vm1893_vm3, %v12386_v28, %v12388_v46  ;;  %v12289_v35 = vadd.f32 %v23358_v2, %v12210_v41  ;;  %v17184_v10 = vpop.f32.mrb[138].mxu1 }
0x10be   : > { %v12454_v34 = vmax.f32 %v12315_v55, %v12391_v6  ;;  %v12452_v58 = vmax.f32 %v12313_v5, %v12387_v60  ;;  %v12453_v62 = vmax.f32 %v12314_v57, %v12389_v48  ;;  %v12477_v7 = vmax.f32 %v12449_v12, %v12451_v16  ;;  %v12213_v45 = vpop.f32.mrb[139].mxu1  ;;  %12517 = vmatpush1.bf16.msra.mxu0 %v12495_v39 }
0x10bf   : > { %v12319_v20 = vmax.f32 %v12291_v21, 0.0  ;;  %v12317_v23 = vmax.f32 %v12289_v35, 0.0  ;;  %v12292_v61 = vadd.f32 %v23358_v2, %v17184_v10  ;;  %v12290_v17 = vadd.f32 %v23358_v2, %v12213_v45  ;;  %12518 = vmatprep.subr.bf16.mxu0 %v24213_v15 }
0x10c0   : > { %v12478_v50 = vmax.f32 %v12450_v27, %v12452_v58  ;;  %v12479_v52 = vmax.f32 %v12451_v16, %v12453_v62  ;;  %v12496_v14 = vpack.c.bf16 %v12477_v7, %v12476_v3  ;;  %v12480_v0 = vmax.f32 %v12452_v58, %v12454_v34 }
0x10c1   : > { %v12392_v29 = vrot.slane %v12317_v23, 1  ;;  %v12320_v37 = vmax.f32 %v12292_v61, 0.0  ;;  %v12318_v22 = vmax.f32 %v12290_v17, 0.0  ;;  %v12396_v53 = vrot.slane %v12319_v20, 1 }
0x10c2   : > { %v12497_v54 = vpack.c.bf16 %v12479_v52, %v12478_v50  ;;  %12519 = vmatpush1.bf16.msra.mxu0 %v12496_v14  ;;  %v18964_v52 = vld [vmem:[%s24169_s10] ss:$8 sps:$4 sm:$0xff]   ;;  %v18965_v14 = vld [vmem:[%s24169_s10 + $0x14] ss:$8 sps:$4 sm:$0xff]  }
0x10c3   : > { %v12393_v44 = vsel %vm1893_vm3, %v12390_v9, %v12392_v29  ;;  %v12398_v1 = vrot.slane %v12320_v37, 1  ;;  %v12394_v47 = vrot.slane %v12318_v22, 1  ;;  %v17187_v43 = vpop.f32.mrb[140].mxu1  ;;  %12520 = vmatprep.subr.bf16.mxu0 %v24213_v15 }
0x10c4   : > { %v12455_v56 = vmax.f32 %v12316_v38, %v12393_v44  ;;  %v12295_v18 = vadd.f32 %v23358_v2, %v17187_v43  ;;  %v12226_v4 = vpop.f32.mrb[141].mxu1  ;;  %v18974_v44 = vld [vmem:[%s24169_s10 + $0x50] ss:$8 sps:$4 sm:$0xff]   ;;  %v18977_v43 = vld [vmem:[%s24169_s10 + $0x74] ss:$8 sps:$4 sm:$0xff]  }
0x10c5   : > { %v12399_v26 = vsel %vm1893_vm3, %v12396_v53, %v12398_v1  ;;  %v12395_v33 = vsel %vm1893_vm3, %v12392_v29, %v12394_v47  ;;  %v12397_v27 = vsel %vm1893_vm3, %v12394_v47, %v12396_v53  ;;  %v12293_v31 = vadd.f32 %v23358_v2, %v12226_v4  ;;  %v17188_v12 = vpop.f32.mrb[142].mxu1  ;;  %v18968_v29 = vld [vmem:[%s24169_s10 + $0x20] ss:$8 sps:$4 sm:$0xff]   ;;  %v18973_v53 = vld [vmem:[%s24169_s10 + $0x54] ss:$8 sps:$4 sm:$0xff]  }
0x10c6   : > { %v12458_v24 = vmax.f32 %v12319_v20, %v12399_v26  ;;  %v12456_v30 = vmax.f32 %v12317_v23, %v12395_v33  ;;  %v12457_v55 = vmax.f32 %v12318_v22, %v12397_v27  ;;  %v12481_v5 = vmax.f32 %v12453_v62, %v12455_v56  ;;  %v12229_v25 = vpop.f32.mrb[143].mxu1  ;;  %12521 = vmatpush1.bf16.msra.mxu0 %v12497_v54  ;;  %v18971_v22 = vld [vmem:[%s24169_s10 + $0x44] ss:$8 sps:$4 sm:$0xff]   ;;  %v18972_v54 = vld [vmem:[%s24169_s10 + $0x40] ss:$8 sps:$4 sm:$0xff]  }
0x10c7   : > { %v12323_v11 = vmax.f32 %v12295_v18, 0.0  ;;  %v12321_v40 = vmax.f32 %v12293_v31, 0.0  ;;  %v12296_v63 = vadd.f32 %v23358_v2, %v17188_v12  ;;  %v12294_v51 = vadd.f32 %v23358_v2, %v12229_v25  ;;  %12522 = vmatprep.subr.bf16.mxu0 %v24213_v15  ;;  %v18976_v47 = vld [vmem:[%s24169_s10 + $0x60] ss:$8 sps:$4 sm:$0xff]   ;;  %v18979_v18 = vld [vmem:[%s24169_s10 + $0x84] ss:$8 sps:$4 sm:$0xff]  }
0x10c8   : > { %v12482_v3 = vmax.f32 %v12454_v34, %v12456_v30  ;;  %v12483_v59 = vmax.f32 %v12455_v56, %v12457_v55  ;;  %v12498_v38 = vpack.c.bf16 %v12481_v5, %v12480_v0  ;;  %v12484_v57 = vmax.f32 %v12456_v30, %v12458_v24  ;;  %v18967_v0 = vld [vmem:[%s24169_s10 + $0x24] ss:$8 sps:$4 sm:$0xff]   ;;  %v18978_v56 = vld [vmem:[%s24169_s10 + $0x70] ss:$8 sps:$4 sm:$0xff]   ;;  %v18980_v4 = vld [vmem:[%s24169_s10 + $0x80] ss:$8 sps:$4 sm:$0xff]  }
0x10c9   : > { %v12400_v39 = vrot.slane %v12321_v40, 1  ;;  %v12324_v46 = vmax.f32 %v12296_v63, 0.0  ;;  %v12322_v42 = vmax.f32 %v12294_v51, 0.0  ;;  %v12404_v28 = vrot.slane %v12323_v11, 1  ;;  %v18981_v26 = vld [vmem:[%s24169_s10 + $0x94] ss:$8 sps:$4 sm:$0xff]  }
0x10ca   : > { %v12499_v9 = vpack.c.bf16 %v12483_v59, %v12482_v3  ;;  %12523 = vmatpush1.bf16.msra.mxu0 %v12498_v38  ;;  %v18982_v33 = vld [vmem:[%s24169_s10 + $0x90] ss:$8 sps:$4 sm:$0xff]  }
0x10cb   : > { %v12401_v19 = vsel %vm1893_vm3, %v12398_v1, %v12400_v39  ;;  %v12406_v16 = vrot.slane %v12324_v46, 1  ;;  %v12402_v21 = vrot.slane %v12322_v42, 1  ;;  %12524 = vmatprep.subr.bf16.mxu0 %v24213_v15  ;;  %v18975_v1 = vld [vmem:[%s24169_s10 + $0x64] ss:$8 sps:$4 sm:$0xff]  }
0x10cc   : > { %v12459_v41 = vmax.f32 %v12320_v37, %v12401_v19  ;;  %v18970_v37 = vld [vmem:[%s24169_s10 + $0x30] ss:$8 sps:$4 sm:$0xff]  }
0x10cd   : > { %v12407_v2 = vsel %vm1893_vm3, %v12404_v28, %v12406_v16  ;;  %v12463_v6 = vmax.f32 %v12324_v46, %v12406_v16  ;;  %v12403_v60 = vsel %vm1893_vm3, %v12400_v39, %v12402_v21  ;;  %v12405_v48 = vsel %vm1893_vm3, %v12402_v21, %v12404_v28 }
0x10ce   : > { %v12462_v35 = vmax.f32 %v12323_v11, %v12407_v2  ;;  %v12460_v10 = vmax.f32 %v12321_v40, %v12403_v60  ;;  %v12461_v34 = vmax.f32 %v12322_v42, %v12405_v48  ;;  %v12485_v58 = vmax.f32 %v12457_v55, %v12459_v41  ;;  %12525 = vmatpush1.bf16.msra.mxu0 %v12499_v9 }
0x10cf   : > { %12526 = vmatprep.subr.bf16.mxu0 %v24213_v15 }
0x10d0   : > { %v12486_v62 = vmax.f32 %v12458_v24, %v12460_v10  ;;  %v12487_v7 = vmax.f32 %v12459_v41, %v12461_v34  ;;  %v12488_v45 = vmax.f32 %v12460_v10, %v12462_v35  ;;  %v12489_v20 = vmax.f32 %v12461_v34, %v12463_v6  ;;  %v24214_v41 = vld [vmem:[#allocation6_spill] sm:$0xff] }
0x10d1   : > { %v12500_v23 = vpack.c.bf16 %v12485_v58, %v12484_v57 }
0x10d2   : > { %v12501_v61 = vpack.c.bf16 %v12487_v7, %v12486_v62  ;;  %v12502_v17 = vpack.c.bf16 %v12489_v20, %v12488_v45 }
0x10d3   : > { %12527 = vmatpush1.bf16.msra.mxu0 %v12500_v23 }
0x10d4   : > { %12528 = vmatprep.subr.bf16.mxu0 %v24213_v15  ;;  %v12504_v50 = vand.u32 %v12502_v17, %v20019_v32 }
0x10d7   : > { %12529 = vmatpush1.bf16.msra.mxu0 %v12501_v61 }
0x10d8   : > { %12530 = vmatprep.subr.bf16.mxu0 %v24213_v15  ;;  %v18966_v15 = vld [vmem:[%s24169_s10 + $0x10] ss:$8 sps:$4 sm:$0xff]  }
0x10db   : > { %12531 = vmatpush1.bf16.msra.mxu0 %v12504_v50 }
0x10dc   : > { %17219 = vmatprep.subr.bf16.mxu0 %v24210_v36 }
0x10de   : > { %12539 = vmatmul.mubr.bf16.vlgmr.msra.gmra.mrb[60].mxu0 %v18964_v52 }
0x10df   : > { %15211 = vmatprep.mubr.msk.bf16.mxu0 %vm6020_vm9, %v18965_v14  ;;  %17220 = vmatpush3.bf16.msra.mxu0 %v20863_v49  ;;  %v18969_v49 = vld [vmem:[%s24169_s10 + $0x34] ss:$8 sps:$4 sm:$0xff]  }
0x10e0   : > { %17279 = vmatprep.subr.bf16.mxu0 %v24210_v36 }
0x10e6   : > { %12547 = vmatmul.mubr.bf16.gmra.mrb[64].mxu0 %v18966_v15 }
0x10e7   : > { %15212 = vmatprep.mubr.msk.bf16.mxu0 %vm6020_vm9, %v18967_v0 }
0x10ee   : > { %12555 = vmatmul.mubr.bf16.gmra.mrb[68].mxu0 %v18968_v29 }
0x10ef   : > { %15213 = vmatprep.mubr.msk.bf16.mxu0 %vm6020_vm9, %v18969_v49 }
0x10f6   : > { %12563 = vmatmul.mubr.bf16.gmra.mrb[72].mxu0 %v18970_v37 }
0x10f7   : > { %15214 = vmatprep.mubr.msk.bf16.mxu0 %vm6020_vm9, %v18971_v22 }
0x10fe   : > { %12571 = vmatmul.mubr.bf16.gmra.mrb[76].mxu0 %v18972_v54 }
0x10ff   : > { %15215 = vmatprep.mubr.msk.bf16.mxu0 %vm6020_vm9, %v18973_v53 }
0x1106   : > { %12579 = vmatmul.mubr.bf16.gmra.mrb[80].mxu0 %v18974_v44 }
0x1107   : > { %15216 = vmatprep.mubr.msk.bf16.mxu0 %vm6020_vm9, %v18975_v1 }
0x110e   : > { %12587 = vmatmul.mubr.bf16.gmra.mrb[84].mxu0 %v18976_v47 }
0x110f   : > { %15217 = vmatprep.mubr.msk.bf16.mxu0 %vm6020_vm9, %v18977_v43 }
0x1116   : > { %12595 = vmatmul.mubr.bf16.gmra.mrb[88].mxu0 %v18978_v56 }
0x1117   : > { %15218 = vmatprep.mubr.msk.bf16.mxu0 %vm6020_vm9, %v18979_v18 }
0x111e   : > { %12603 = vmatmul.mubr.bf16.gmra.mrb[92].mxu0 %v18980_v4 }
0x111f   : > { %15219 = vmatprep.mubr.msk.bf16.mxu0 %vm6020_vm9, %v18981_v26 }
0x1126   : > { %12611 = vmatmul.mubr.bf16.gmra.mrb[96].mxu0 %v18982_v33 }
0x1127   : > { %17221 = vmatprep.mubr.msk.bf16.mxu0 %vm19052_vm5, %v24210_v36 }
0x11b1   : > { %v12540_v27 = vpop.f32.mrb[60].mxu0 }
0x11b2   : > { %v12542_v31 = vpop.f32.mrb[61].mxu0 }
0x11b3   : > { %v12543_v12 = vpop.f32.mrb[62].mxu0 }
0x11b4   : > { %v12619_v24 = vpack.c.bf16 %v12543_v12, %v12540_v27  ;;  %v12545_v30 = vpop.f32.mrb[63].mxu0 }
0x11b6   : > { %17222 = vmatmul.mubr.msk.bf16.vlgmr.msra.gmra.mrb[100].mxu0 %vm3966_vm8, %v12619_v24  ;;  %v12632_v55 = vshll.u32 %v12619_v24, 16  ;;  %v12630_v3 = vshrl.u32 %v12619_v24, 16  ;;  %v12910_v59 = vrot.slane %v12619_v24, 1 }
0x11b7   : > { %17225 = vmatprep.mubr.msk.bf16.mxu0 %vm19052_vm5, %v24210_v36  ;;  %17280 = vmatpush3.bf16.msra.mxu0 %v20879_v8 }
0x11b8   : > { %17339 = vmatprep.subr.bf16.mxu0 %v24210_v36  ;;  %v12634_v40 = vrot.slane %v12632_v55, 1 }
0x11b9   : > { %v12548_v5 = vpop.f32.mrb[64].mxu0 }
0x11ba   : > { %v12550_v25 = vpop.f32.mrb[65].mxu0  ;;  %v12635_v8 = vor.u32 %v12634_v40, %v12630_v3 }
0x11bb   : > { %v12551_v11 = vpop.f32.mrb[66].mxu0 }
0x11bc   : > { %v23504_v63 = vpack.c.bf16 %v12551_v11, %v12548_v5  ;;  %v12553_v51 = vpop.f32.mrb[67].mxu0 }
0x11be   : > { %v12637_v38 = vshll.u32 %v23504_v63, 16  ;;  %v12911_v57 = vrot.slane %v23504_v63, 1  ;;  %17226 = vmatmul.mubr.msk.bf16.gmra.mrb[104].mxu0 %vm3966_vm8, %v23504_v63  ;;  %v12641_v2 = vshrl.u32 %v23504_v63, 16 }
0x11bf   : > { %17229 = vmatprep.mubr.msk.bf16.mxu0 %vm19052_vm5, %v24210_v36 }
0x11c0   : > { %v12639_v39 = vrot.slane %v12637_v38, 1  ;;  %v23515_v46 = vsel %vm1893_vm3, %v12910_v59, %v12911_v57 }
0x11c1   : > { %v12556_v42 = vpop.f32.mrb[68].mxu0 }
0x11c2   : > { %v12640_v9 = vsel %vm3849_vm7, %v12635_v8, %v12639_v39  ;;  %v12558_v28 = vpop.f32.mrb[69].mxu0  ;;  %v12643_v60 = vor.u32 %v12641_v2, %v12639_v39 }
0x11c3   : > { %v12559_v19 = vpop.f32.mrb[70].mxu0  ;;  %17192 = vmatmul.mubr.msk.bf16.vlgmr.msra.gmra.mrb[144].mxu1 %vm3966_vm8, %v12640_v9  ;;  %v24215_v9 = vld [vmem:[#allocation5_spill] sm:$0xff] }
0x11c4   : > { %v23519_v16 = vpack.c.bf16 %v12559_v19, %v12556_v42  ;;  %v12561_v21 = vpop.f32.mrb[71].mxu0  ;;  %17195 = vmatprep.mubr.msk.bf16.mxu1 %vm19052_vm5, %v24210_v36  ;;  %17250 = vmatpush3.bf16.msra.mxu1 %v24214_v41 }
0x11c5   : > { %17309 = vmatprep.subr.bf16.mxu1 %v24210_v36 }
0x11c6   : > { %v12645_v6 = vshll.u32 %v23519_v16, 16  ;;  %17230 = vmatmul.mubr.msk.bf16.gmra.mrb[108].mxu0 %vm3966_vm8, %v23519_v16  ;;  %v12649_v45 = vshrl.u32 %v23519_v16, 16 }
0x11c7   : > { %17233 = vmatprep.mubr.msk.bf16.mxu0 %vm19052_vm5, %v24210_v36 }
0x11c8   : > { %v12647_v48 = vrot.slane %v12645_v6, 1 }
0x11c9   : > { %v12564_v35 = vpop.f32.mrb[72].mxu0 }
0x11ca   : > { %v12566_v10 = vpop.f32.mrb[73].mxu0  ;;  %v23532_v34 = vsel %vm3849_vm7, %v12643_v60, %v12647_v48  ;;  %v12651_v61 = vor.u32 %v12649_v45, %v12647_v48 }
0x11cb   : > { %v12567_v58 = vpop.f32.mrb[74].mxu0  ;;  %17196 = vmatmul.mubr.msk.bf16.gmra.mrb[148].mxu1 %vm3966_vm8, %v23532_v34 }
0x11cc   : > { %v23536_v62 = vpack.c.bf16 %v12567_v58, %v12564_v35  ;;  %v12569_v7 = vpop.f32.mrb[75].mxu0  ;;  %17199 = vmatprep.mubr.msk.bf16.mxu1 %vm19052_vm5, %v24210_v36 }
0x11cd   : > { %v24216_v7 = vld [vmem:[#allocation7_spill] sm:$0xff] }
0x11ce   : > { %v12653_v20 = vshll.u32 %v23536_v62, 16  ;;  %17234 = vmatmul.mubr.msk.bf16.gmra.mrb[112].mxu0 %vm3966_vm8, %v23536_v62  ;;  %v12657_v29 = vshrl.u32 %v23536_v62, 16 }
0x11cf   : > { %17237 = vmatprep.mubr.msk.bf16.mxu0 %vm19052_vm5, %v24210_v36 }
0x11d0   : > { %v12655_v23 = vrot.slane %v12653_v20, 1 }
0x11d1   : > { %v12572_v17 = vpop.f32.mrb[76].mxu0 }
0x11d2   : > { %v12574_v50 = vpop.f32.mrb[77].mxu0  ;;  %v23547_v52 = vsel %vm3849_vm7, %v12651_v61, %v12655_v23  ;;  %v12659_v22 = vor.u32 %v12657_v29, %v12655_v23  ;;  %v12913_v23 = vrot.slane %v23519_v16, 1 }
0x11d3   : > { %v12575_v14 = vpop.f32.mrb[78].mxu0  ;;  %17200 = vmatmul.mubr.msk.bf16.gmra.mrb[152].mxu1 %vm3966_vm8, %v23547_v52 }
0x11d4   : > { %v23551_v15 = vpack.c.bf16 %v12575_v14, %v12572_v17  ;;  %v12577_v0 = vpop.f32.mrb[79].mxu0  ;;  %17203 = vmatprep.mubr.msk.bf16.mxu1 %vm19052_vm5, %v24210_v36  ;;  %v12914_v50 = vsel %vm1893_vm3, %v12911_v57, %v12913_v23  ;;  %v12915_v14 = vrot.slane %v23536_v62, 1 }
0x11d6   : > { %v12661_v49 = vshll.u32 %v23551_v15, 16  ;;  %17238 = vmatmul.mubr.msk.bf16.gmra.mrb[116].mxu0 %vm3966_vm8, %v23551_v15  ;;  %v12665_v56 = vshrl.u32 %v23551_v15, 16  ;;  %v23654_v0 = vsel %vm1893_vm3, %v12913_v23, %v12915_v14 }
0x11d7   : > { %17241 = vmatprep.mubr.msk.bf16.mxu0 %vm19052_vm5, %v24210_v36 }
0x11d8   : > { %v12663_v37 = vrot.slane %v12661_v49, 1 }
0x11d9   : > { %v12580_v54 = vpop.f32.mrb[80].mxu0 }
0x11da   : > { %v12582_v53 = vpop.f32.mrb[81].mxu0  ;;  %v23562_v44 = vsel %vm3849_vm7, %v12659_v22, %v12663_v37  ;;  %v12667_v26 = vor.u32 %v12665_v56, %v12663_v37 }
0x11db   : > { %v12583_v1 = vpop.f32.mrb[82].mxu0  ;;  %17204 = vmatmul.mubr.msk.bf16.gmra.mrb[156].mxu1 %vm3966_vm8, %v23562_v44  ;;  %v24217_v53 = vld [vmem:[#allocation8_spill] sm:$0xff] }
0x11dc   : > { %v23566_v47 = vpack.c.bf16 %v12583_v1, %v12580_v54  ;;  %v12585_v43 = vpop.f32.mrb[83].mxu0  ;;  %17207 = vmatprep.mubr.msk.bf16.mxu1 %vm19052_vm5, %v24210_v36 }
0x11dd   : > { %v24218_v43 = vld [vmem:[#allocation9_spill] sm:$0xff] }
0x11de   : > { %v12669_v18 = vshll.u32 %v23566_v47, 16  ;;  %17242 = vmatmul.mubr.msk.bf16.gmra.mrb[120].mxu0 %vm3966_vm8, %v23566_v47  ;;  %v12673_v55 = vshrl.u32 %v23566_v47, 16  ;;  %v12919_v29 = vrot.slane %v23566_v47, 1 }
0x11df   : > { %17245 = vmatprep.mubr.msk.bf16.mxu0 %vm19052_vm5, %v24210_v36 }
0x11e0   : > { %v12671_v4 = vrot.slane %v12669_v18, 1 }
0x11e1   : > { %v12588_v33 = vpop.f32.mrb[84].mxu0 }
0x11e2   : > { %v12590_v27 = vpop.f32.mrb[85].mxu0  ;;  %v23577_v31 = vsel %vm3849_vm7, %v12667_v26, %v12671_v4  ;;  %v12675_v11 = vor.u32 %v12673_v55, %v12671_v4 }
0x11e3   : > { %v12591_v12 = vpop.f32.mrb[86].mxu0  ;;  %17208 = vmatmul.mubr.msk.bf16.gmra.mrb[160].mxu1 %vm3966_vm8, %v23577_v31 }
0x11e4   : > { %v23581_v24 = vpack.c.bf16 %v12591_v12, %v12588_v33  ;;  %v12593_v30 = vpop.f32.mrb[87].mxu0  ;;  %17211 = vmatprep.mubr.msk.bf16.mxu1 %vm19052_vm5, %v24210_v36 }
0x11e6   : > { %v12677_v5 = vshll.u32 %v23581_v24, 16  ;;  %17246 = vmatmul.mubr.msk.bf16.gmra.mrb[124].mxu0 %vm3966_vm8, %v23581_v24  ;;  %v12681_v39 = vshrl.u32 %v23581_v24, 16  ;;  %v12921_v37 = vrot.slane %v23581_v24, 1 }
0x11e7   : > { %17281 = vmatprep.mubr.msk.bf16.mxu0 %vm19052_vm5, %v24210_v36 }
0x11e8   : > { %v12679_v25 = vrot.slane %v12677_v5, 1  ;;  %v23690_v22 = vsel %vm1893_vm3, %v12919_v29, %v12921_v37 }
0x11e9   : > { %v12596_v40 = vpop.f32.mrb[88].mxu0 }
0x11ea   : > { %v12598_v51 = vpop.f32.mrb[89].mxu0  ;;  %v23592_v3 = vsel %vm3849_vm7, %v12675_v11, %v12679_v25  ;;  %v12683_v19 = vor.u32 %v12681_v39, %v12679_v25 }
0x11eb   : > { %v12599_v59 = vpop.f32.mrb[90].mxu0  ;;  %17212 = vmatmul.mubr.msk.bf16.gmra.mrb[164].mxu1 %vm3966_vm8, %v23592_v3 }
0x11ec   : > { %v23596_v38 = vpack.c.bf16 %v12599_v59, %v12596_v40  ;;  %17215 = vmatprep.mubr.msk.bf16.mxu1 %vm19052_vm5, %v24210_v36  ;;  %v12601_v8 = vpop.f32.mrb[91].mxu0 }
0x11ee   : > { %v12685_v42 = vshll.u32 %v23596_v38, 16  ;;  %17282 = vmatmul.mubr.msk.bf16.vlgmr.msra.gmra.mrb[128].mxu0 %vm3966_vm8, %v23504_v63  ;;  %v12917_v63 = vrot.slane %v23551_v15, 1  ;;  %v12923_v54 = vrot.slane %v23596_v38, 1  ;;  %v13154_v18 = vshrl.u32 %v23596_v38, 16 }
0x11ef   : > { %17285 = vmatprep.mubr.msk.bf16.mxu0 %vm19052_vm5, %v24210_v36  ;;  %17340 = vmatpush3.bf16.msra.mxu0 %v24215_v9 }
0x11f0   : > { %v23607_v28 = vrot.slane %v12685_v42, 1  ;;  %17399 = vmatprep.subr.bf16.mxu0 %v24210_v36  ;;  %v23666_v57 = vsel %vm1893_vm3, %v12915_v14, %v12917_v63  ;;  %v23678_v49 = vsel %vm1893_vm3, %v12917_v63, %v12919_v29  ;;  %v23703_v1 = vsel %vm1893_vm3, %v12921_v37, %v12923_v54 }
0x11f1   : > { %v12604_v21 = vpop.f32.mrb[92].mxu0 }
0x11f2   : > { %v23612_v41 = vsel %vm3849_vm7, %v12683_v19, %v23607_v28  ;;  %v12606_v2 = vpop.f32.mrb[93].mxu0  ;;  %v13156_v26 = vor.u32 %v13154_v18, %v23607_v28 }
0x11f3   : > { %17216 = vmatmul.mubr.msk.bf16.gmra.mrb[168].mxu1 %vm3966_vm8, %v23612_v41  ;;  %v12607_v6 = vpop.f32.mrb[94].mxu0 }
0x11f4   : > { %17251 = vmatprep.mubr.msk.bf16.mxu1 %vm19052_vm5, %v24210_v36  ;;  %v23618_v60 = vpack.c.bf16 %v12607_v6, %v12604_v21  ;;  %v12609_v48 = vpop.f32.mrb[95].mxu0 }
0x11f6   : > { %17286 = vmatmul.mubr.msk.bf16.gmra.mrb[132].mxu0 %vm3966_vm8, %v23519_v16  ;;  %v13269_v61 = vrot.slane %v23618_v60, 1  ;;  %v13158_v56 = vshll.u32 %v23618_v60, 16 }
0x11f7   : > { %17289 = vmatprep.mubr.msk.bf16.mxu0 %vm19052_vm5, %v24210_v36 }
0x11f8   : > { %v13160_v4 = vrot.slane %v13158_v56, 1 }
0x11f9   : > { %v12612_v35 = vpop.f32.mrb[96].mxu0 }
0x11fa   : > { %v12614_v10 = vpop.f32.mrb[97].mxu0  ;;  %v13161_v33 = vsel %vm3849_vm7, %v13156_v26, %v13160_v4 }
0x11fb   : > { %17252 = vmatmul.mubr.msk.bf16.vlgmr.msra.gmra.mrb[172].mxu1 %vm3966_vm8, %v23515_v46  ;;  %v12615_v58 = vpop.f32.mrb[98].mxu0 }
0x11fc   : > { %17255 = vmatprep.mubr.msk.bf16.mxu1 %vm19052_vm5, %v24210_v36  ;;  %17310 = vmatpush3.bf16.msra.mxu1 %v24216_v7  ;;  %v23629_v45 = vpack.c.bf16 %v12615_v58, %v12612_v35  ;;  %v12617_v20 = vpop.f32.mrb[99].mxu0 }
0x11fd   : > { %17369 = vmatprep.subr.bf16.mxu1 %v24210_v36 }
0x11fe   : > { %17290 = vmatmul.mubr.msk.bf16.gmra.mrb[136].mxu0 %vm3966_vm8, %v23536_v62  ;;  %v13597_v46 = vrot.slane %v23629_v45, 1 }
0x11ff   : > { %17293 = vmatprep.mubr.msk.bf16.mxu0 %vm19052_vm5, %v24210_v36 }
0x1200   : > { %v23640_v17 = vsel %vm1893_vm3, %v13269_v61, %v13597_v46 }
0x1203   : > { %17256 = vmatmul.mubr.msk.bf16.gmra.mrb[176].mxu1 %vm3966_vm8, %v12914_v50 }
0x1204   : > { %17259 = vmatprep.mubr.msk.bf16.mxu1 %vm19052_vm5, %v24210_v36 }
0x1206   : > { %17294 = vmatmul.mubr.msk.bf16.gmra.mrb[140].mxu0 %vm3966_vm8, %v23551_v15 }
0x1207   : > { %17297 = vmatprep.mubr.msk.bf16.mxu0 %vm19052_vm5, %v24210_v36 }
0x120b   : > { %17260 = vmatmul.mubr.msk.bf16.gmra.mrb[180].mxu1 %vm3966_vm8, %v23654_v0 }
0x120c   : > { %17263 = vmatprep.mubr.msk.bf16.mxu1 %vm19052_vm5, %v24210_v36 }
0x120e   : > { %17298 = vmatmul.mubr.msk.bf16.gmra.mrb[144].mxu0 %vm3966_vm8, %v23566_v47 }
0x120f   : > { %17301 = vmatprep.mubr.msk.bf16.mxu0 %vm19052_vm5, %v24210_v36 }
0x1213   : > { %17264 = vmatmul.mubr.msk.bf16.gmra.mrb[184].mxu1 %vm3966_vm8, %v23666_v57 }
0x1214   : > { %17267 = vmatprep.mubr.msk.bf16.mxu1 %vm19052_vm5, %v24210_v36 }
0x1216   : > { %17302 = vmatmul.mubr.msk.bf16.gmra.mrb[148].mxu0 %vm3966_vm8, %v23581_v24 }
0x1217   : > { %17305 = vmatprep.mubr.msk.bf16.mxu0 %vm19052_vm5, %v24210_v36 }
0x121b   : > { %17268 = vmatmul.mubr.msk.bf16.gmra.mrb[188].mxu1 %vm3966_vm8, %v23678_v49 }
0x121c   : > { %17271 = vmatprep.mubr.msk.bf16.mxu1 %vm19052_vm5, %v24210_v36 }
0x121e   : > { %17306 = vmatmul.mubr.msk.bf16.gmra.mrb[152].mxu0 %vm3966_vm8, %v23596_v38 }
0x121f   : > { %17341 = vmatprep.mubr.msk.bf16.mxu0 %vm19052_vm5, %v24210_v36 }
0x1223   : > { %17272 = vmatmul.mubr.msk.bf16.gmra.mrb[192].mxu1 %vm3966_vm8, %v23690_v22 }
0x1224   : > { %17275 = vmatprep.mubr.msk.bf16.mxu1 %vm19052_vm5, %v24210_v36 }
0x1226   : > { %17342 = vmatmul.mubr.msk.bf16.vlgmr.msra.gmra.mrb[156].mxu0 %vm3966_vm8, %v12914_v50 }
0x1227   : > { %17345 = vmatprep.mubr.msk.bf16.mxu0 %vm19052_vm5, %v24210_v36  ;;  %17400 = vmatpush3.bf16.msra.mxu0 %v24217_v53 }
0x1228   : > { %17459 = vmatprep.subr.bf16.mxu0 %v24210_v36 }
0x122b   : > { %17276 = vmatmul.mubr.msk.bf16.gmra.mrb[196].mxu1 %vm3966_vm8, %v23703_v1 }
0x122c   : > { %17311 = vmatprep.mubr.msk.bf16.mxu1 %vm19052_vm5, %v24210_v36 }
0x122e   : > { %17346 = vmatmul.mubr.msk.bf16.gmra.mrb[160].mxu0 %vm3966_vm8, %v23654_v0 }
0x122f   : > { %17349 = vmatprep.mubr.msk.bf16.mxu0 %vm19052_vm5, %v24210_v36 }
0x1233   : > { %17312 = vmatmul.mubr.msk.bf16.vlgmr.msra.gmra.mrb[200].mxu1 %vm3966_vm8, %v23532_v34  ;;  %v23752_v34 = vsel %vm1893_vm3, %v12923_v54, %v13269_v61 }
0x1234   : > { %17315 = vmatprep.mubr.msk.bf16.mxu1 %vm19052_vm5, %v24210_v36  ;;  %17370 = vmatpush3.bf16.msra.mxu1 %v24218_v43 }
0x1235   : > { %17429 = vmatprep.subr.bf16.mxu1 %v24210_v36 }
0x1236   : > { %17350 = vmatmul.mubr.msk.bf16.gmra.mrb[164].mxu0 %vm3966_vm8, %v23666_v57 }
0x1237   : > { %17353 = vmatprep.mubr.msk.bf16.mxu0 %vm19052_vm5, %v24210_v36 }
0x123b   : > { %17316 = vmatmul.mubr.msk.bf16.gmra.mrb[204].mxu1 %vm3966_vm8, %v23547_v52 }
0x123c   : > { %17319 = vmatprep.mubr.msk.bf16.mxu1 %vm19052_vm5, %v24210_v36 }
0x123e   : > { %17354 = vmatmul.mubr.msk.bf16.gmra.mrb[168].mxu0 %vm3966_vm8, %v23678_v49 }
0x123f   : > { %17357 = vmatprep.mubr.msk.bf16.mxu0 %vm19052_vm5, %v24210_v36 }
0x1243   : > { %17320 = vmatmul.mubr.msk.bf16.gmra.mrb[208].mxu1 %vm3966_vm8, %v23562_v44 }
0x1244   : > { %17323 = vmatprep.mubr.msk.bf16.mxu1 %vm19052_vm5, %v24210_v36 }
0x1246   : > { %17358 = vmatmul.mubr.msk.bf16.gmra.mrb[172].mxu0 %vm3966_vm8, %v23690_v22 }
0x1247   : > { %17361 = vmatprep.mubr.msk.bf16.mxu0 %vm19052_vm5, %v24210_v36 }
0x124b   : > { %17324 = vmatmul.mubr.msk.bf16.gmra.mrb[212].mxu1 %vm3966_vm8, %v23577_v31 }
0x124c   : > { %17327 = vmatprep.mubr.msk.bf16.mxu1 %vm19052_vm5, %v24210_v36 }
0x124e   : > { %17362 = vmatmul.mubr.msk.bf16.gmra.mrb[176].mxu0 %vm3966_vm8, %v23703_v1 }
0x124f   : > { %17365 = vmatprep.mubr.msk.bf16.mxu0 %vm19052_vm5, %v24210_v36 }
0x1253   : > { %17328 = vmatmul.mubr.msk.bf16.gmra.mrb[216].mxu1 %vm3966_vm8, %v23592_v3 }
0x1254   : > { %17331 = vmatprep.mubr.msk.bf16.mxu1 %vm19052_vm5, %v24210_v36 }
0x1256   : > { %17366 = vmatmul.mubr.msk.bf16.gmra.mrb[180].mxu0 %vm3966_vm8, %v23752_v34 }
0x1257   : > { %17401 = vmatprep.mubr.msk.bf16.mxu0 %vm19052_vm5, %v24210_v36 }
0x125b   : > { %17332 = vmatmul.mubr.msk.bf16.gmra.mrb[220].mxu1 %vm3966_vm8, %v23612_v41 }
0x125c   : > { %17335 = vmatprep.mubr.msk.bf16.mxu1 %vm19052_vm5, %v24210_v36 }
0x125e   : > { %17402 = vmatmul.mubr.msk.bf16.vlgmr.msra.gmra.mrb[184].mxu0 %vm3966_vm8, %v23547_v52  ;;  %v24219_v52 = vld [vmem:[#allocation10_spill] sm:$0xff] }
0x125f   : > { %17405 = vmatprep.mubr.msk.bf16.mxu0 %vm19052_vm5, %v24210_v36 }
0x1263   : > { %17336 = vmatmul.mubr.msk.bf16.gmra.mrb[224].mxu1 %vm3966_vm8, %v13161_v33 }
0x1264   : > { %17371 = vmatprep.mubr.msk.bf16.mxu1 %vm19052_vm5, %v24210_v36 }
0x1266   : > { %17406 = vmatmul.mubr.msk.bf16.gmra.mrb[188].mxu0 %vm3966_vm8, %v23562_v44 }
0x1267   : > { %17409 = vmatprep.mubr.msk.bf16.mxu0 %vm19052_vm5, %v24210_v36 }
0x126b   : > { %17372 = vmatmul.mubr.msk.bf16.vlgmr.msra.gmra.mrb[228].mxu1 %vm3966_vm8, %v23519_v16  ;;  %v13482_v16 = vshrl.u32 %v23618_v60, 16 }
0x126c   : > { %17375 = vmatprep.mubr.msk.bf16.mxu1 %vm19052_vm5, %v24210_v36  ;;  %17430 = vmatpush3.bf16.msra.mxu1 %v24219_v52 }
0x126e   : > { %17410 = vmatmul.mubr.msk.bf16.gmra.mrb[192].mxu0 %vm3966_vm8, %v23577_v31 }
0x126f   : > { %17413 = vmatprep.mubr.msk.bf16.mxu0 %vm19052_vm5, %v24210_v36 }
0x1273   : > { %17376 = vmatmul.mubr.msk.bf16.gmra.mrb[232].mxu1 %vm3966_vm8, %v23536_v62  ;;  %v13486_v62 = vshll.u32 %v23629_v45, 16 }
0x1274   : > { %17379 = vmatprep.mubr.msk.bf16.mxu1 %vm19052_vm5, %v24210_v36 }
0x1275   : > { %v13488_v44 = vrot.slane %v13486_v62, 1 }
0x1276   : > { %17414 = vmatmul.mubr.msk.bf16.gmra.mrb[196].mxu0 %vm3966_vm8, %v23592_v3 }
0x1277   : > { %17417 = vmatprep.mubr.msk.bf16.mxu0 %vm19052_vm5, %v24210_v36 }
0x127b   : > { %17380 = vmatmul.mubr.msk.bf16.gmra.mrb[236].mxu1 %vm3966_vm8, %v23551_v15  ;;  %v13484_v15 = vor.u32 %v13482_v16, %v13160_v4 }
0x127c   : > { %17383 = vmatprep.mubr.msk.bf16.mxu1 %vm19052_vm5, %v24210_v36 }
0x127d   : > { %v13489_v30 = vsel %vm3849_vm7, %v13484_v15, %v13488_v44 }
0x127e   : > { %17418 = vmatmul.mubr.msk.bf16.gmra.mrb[200].mxu0 %vm3966_vm8, %v23612_v41 }
0x127f   : > { %17421 = vmatprep.mubr.msk.bf16.mxu0 %vm19052_vm5, %v24210_v36 }
0x1283   : > { %17384 = vmatmul.mubr.msk.bf16.gmra.mrb[240].mxu1 %vm3966_vm8, %v23566_v47 }
0x1284   : > { %17387 = vmatprep.mubr.msk.bf16.mxu1 %vm19052_vm5, %v24210_v36 }
0x1286   : > { %17422 = vmatmul.mubr.msk.bf16.gmra.mrb[204].mxu0 %vm3966_vm8, %v13161_v33 }
0x1287   : > { %17425 = vmatprep.mubr.msk.bf16.mxu0 %vm19052_vm5, %v24210_v36 }
0x1289   : > { %v12847_v27 = vpop.f32.mrb[100].mxu0 }
0x128a   : > { %v17223_v31 = vpop.f32.mrb[101].mxu0 }
0x128b   : > { %17388 = vmatmul.mubr.msk.bf16.gmra.mrb[244].mxu1 %vm3966_vm8, %v23581_v24  ;;  %v12850_v47 = vpop.f32.mrb[102].mxu0 }
0x128c   : > { %17391 = vmatprep.mubr.msk.bf16.mxu1 %vm19052_vm5, %v24210_v36  ;;  %v17224_v12 = vpop.f32.mrb[103].mxu0 }
0x128e   : > { %17426 = vmatmul.mubr.msk.bf16.gmra.mrb[208].mxu0 %vm3966_vm8, %v13489_v30 }
0x128f   : > { %17471 = vmatprep.mubr.msk.bf16.mxu0 %vm19052_vm5, %v24210_v36 }
0x1291   : > { %v12855_v55 = vpop.f32.mrb[104].mxu0 }
0x1292   : > { %v17227_v5 = vpop.f32.mrb[105].mxu0 }
0x1293   : > { %17392 = vmatmul.mubr.msk.bf16.gmra.mrb[248].mxu1 %vm3966_vm8, %v23596_v38  ;;  %v12858_v25 = vpop.f32.mrb[106].mxu0 }
0x1294   : > { %17395 = vmatprep.mubr.msk.bf16.mxu1 %vm19052_vm5, %v24210_v36  ;;  %v17228_v24 = vpop.f32.mrb[107].mxu0 }
0x1296   : > { %v12744_v11 = vpop.f32.mrb[144].mxu1 }
0x1297   : > { %v17193_v40 = vpop.f32.mrb[145].mxu1  ;;  %v23823_v51 = vadd.f32 %v12847_v27, %v12744_v11 }
0x1298   : > { %v12747_v3 = vpop.f32.mrb[146].mxu1 }
0x1299   : > { %v17194_v59 = vpop.f32.mrb[147].mxu1  ;;  %v23825_v8 = vadd.f32 %v12850_v47, %v12747_v3  ;;  %v12863_v39 = vpop.f32.mrb[108].mxu0 }
0x129a   : > { %v17231_v42 = vpop.f32.mrb[109].mxu0 }
0x129b   : > { %17396 = vmatmul.mubr.msk.bf16.gmra.mrb[252].mxu1 %vm3966_vm8, %v23618_v60  ;;  %v12866_v9 = vpop.f32.mrb[110].mxu0 }
0x129c   : > { %17431 = vmatprep.mubr.msk.bf16.mxu1 %vm19052_vm5, %v24210_v36  ;;  %v17232_v38 = vpop.f32.mrb[111].mxu0 }
0x129e   : > { %v12752_v28 = vpop.f32.mrb[148].mxu1 }
0x129f   : > { %v17197_v19 = vpop.f32.mrb[149].mxu1  ;;  %v23831_v21 = vadd.f32 %v12855_v55, %v12752_v28 }
0x12a0   : > { %v12755_v41 = vpop.f32.mrb[150].mxu1 }
0x12a1   : > { %v17198_v2 = vpop.f32.mrb[151].mxu1  ;;  %v23833_v6 = vadd.f32 %v12858_v25, %v12755_v41  ;;  %v12871_v48 = vpop.f32.mrb[112].mxu0 }
0x12a2   : > { %v17235_v35 = vpop.f32.mrb[113].mxu0 }
0x12a3   : > { %17432 = vmatmul.mubr.msk.bf16.vlgmr.msra.gmra.mrb[0].mxu1 %vm3966_vm8, %v23654_v0  ;;  %v12874_v10 = vpop.f32.mrb[114].mxu0 }
0x12a4   : > { %17435 = vmatprep.mubr.msk.bf16.mxu1 %vm19052_vm5, %v24210_v36  ;;  %v17236_v60 = vpop.f32.mrb[115].mxu0 }
0x12a6   : > { %v12760_v58 = vpop.f32.mrb[152].mxu1 }
0x12a7   : > { %v17201_v7 = vpop.f32.mrb[153].mxu1  ;;  %v23839_v45 = vadd.f32 %v12863_v39, %v12760_v58 }
0x12a8   : > { %v12763_v20 = vpop.f32.mrb[154].mxu1 }
0x12a9   : > { %v17202_v23 = vpop.f32.mrb[155].mxu1  ;;  %v23841_v61 = vadd.f32 %v12866_v9, %v12763_v20  ;;  %v12879_v46 = vpop.f32.mrb[116].mxu0 }
0x12aa   : > { %v17239_v50 = vpop.f32.mrb[117].mxu0 }
0x12ab   : > { %17436 = vmatmul.mubr.msk.bf16.gmra.mrb[4].mxu1 %vm3966_vm8, %v23666_v57  ;;  %v12882_v14 = vpop.f32.mrb[118].mxu0 }
0x12ac   : > { %17439 = vmatprep.mubr.msk.bf16.mxu1 %vm19052_vm5, %v24210_v36  ;;  %v17240_v0 = vpop.f32.mrb[119].mxu0 }
0x12ae   : > { %v12768_v63 = vpop.f32.mrb[156].mxu1 }
0x12af   : > { %v17205_v29 = vpop.f32.mrb[157].mxu1  ;;  %v23847_v37 = vadd.f32 %v12871_v48, %v12768_v63 }
0x12b0   : > { %v12771_v54 = vpop.f32.mrb[158].mxu1 }
0x12b1   : > { %v17206_v53 = vpop.f32.mrb[159].mxu1  ;;  %v23849_v43 = vadd.f32 %v12874_v10, %v12771_v54  ;;  %v12887_v56 = vpop.f32.mrb[120].mxu0 }
0x12b2   : > { %v17243_v18 = vpop.f32.mrb[121].mxu0 }
0x12b3   : > { %17440 = vmatmul.mubr.msk.bf16.gmra.mrb[8].mxu1 %vm3966_vm8, %v23678_v49  ;;  %v12890_v4 = vpop.f32.mrb[122].mxu0 }
0x12b4   : > { %17443 = vmatprep.mubr.msk.bf16.mxu1 %vm19052_vm5, %v24210_v36  ;;  %v17244_v57 = vpop.f32.mrb[123].mxu0 }
0x12b6   : > { %v12776_v26 = vpop.f32.mrb[160].mxu1 }
0x12b7   : > { %v17209_v33 = vpop.f32.mrb[161].mxu1  ;;  %v23855_v52 = vadd.f32 %v12879_v46, %v12776_v26 }
0x12b8   : > { %v12779_v16 = vpop.f32.mrb[162].mxu1 }
0x12b9   : > { %v17210_v62 = vpop.f32.mrb[163].mxu1  ;;  %v23857_v15 = vadd.f32 %v12882_v14, %v12779_v16  ;;  %v12895_v44 = vpop.f32.mrb[124].mxu0 }
0x12ba   : > { %v17247_v27 = vpop.f32.mrb[125].mxu0 }
0x12bb   : > { %17444 = vmatmul.mubr.msk.bf16.gmra.mrb[12].mxu1 %vm3966_vm8, %v23690_v22  ;;  %v12898_v31 = vpop.f32.mrb[126].mxu0 }
0x12bc   : > { %17447 = vmatprep.mubr.msk.bf16.mxu1 %vm19052_vm5, %v24210_v36  ;;  %v17248_v49 = vpop.f32.mrb[127].mxu0 }
0x12be   : > { %v12784_v47 = vpop.f32.mrb[164].mxu1 }
0x12bf   : > { %v17213_v12 = vpop.f32.mrb[165].mxu1  ;;  %v23863_v30 = vadd.f32 %v12887_v56, %v12784_v47 }
0x12c0   : > { %v12787_v55 = vpop.f32.mrb[166].mxu1 }
0x12c1   : > { %v17214_v5 = vpop.f32.mrb[167].mxu1  ;;  %v23865_v25 = vadd.f32 %v12890_v4, %v12787_v55  ;;  %v13085_v24 = vpop.f32.mrb[128].mxu0 }
0x12c2   : > { %v17283_v11 = vpop.f32.mrb[129].mxu0 }
0x12c3   : > { %17448 = vmatmul.mubr.msk.bf16.gmra.mrb[16].mxu1 %vm3966_vm8, %v23703_v1  ;;  %v13088_v40 = vpop.f32.mrb[130].mxu0 }
0x12c4   : > { %17451 = vmatprep.mubr.msk.bf16.mxu1 %vm19052_vm5, %v24210_v36  ;;  %v17284_v22 = vpop.f32.mrb[131].mxu0 }
0x12c6   : > { %v12792_v3 = vpop.f32.mrb[168].mxu1 }
0x12c7   : > { %v17217_v59 = vpop.f32.mrb[169].mxu1  ;;  %v23871_v39 = vadd.f32 %v12895_v44, %v12792_v3 }
0x12c8   : > { %v12795_v42 = vpop.f32.mrb[170].mxu1 }
0x12c9   : > { %v17218_v9 = vpop.f32.mrb[171].mxu1  ;;  %v23873_v38 = vadd.f32 %v12898_v31, %v12795_v42  ;;  %v13093_v28 = vpop.f32.mrb[132].mxu0 }
0x12ca   : > { %v17287_v19 = vpop.f32.mrb[133].mxu0 }
0x12cb   : > { %17452 = vmatmul.mubr.msk.bf16.gmra.mrb[20].mxu1 %vm3966_vm8, %v23752_v34  ;;  %v13096_v41 = vpop.f32.mrb[134].mxu0 }
0x12cc   : > { %17455 = vmatprep.mubr.msk.bf16.mxu1 %vm19052_vm5, %v24210_v36  ;;  %v17288_v1 = vpop.f32.mrb[135].mxu0 }
0x12ce   : > { %v12980_v2 = vpop.f32.mrb[172].mxu1 }
0x12cf   : > { %v13035_v48 = vadd.f32 %v12980_v2, %v23823_v51  ;;  %v17253_v35 = vpop.f32.mrb[173].mxu1 }
0x12d0   : > { %v12983_v10 = vpop.f32.mrb[174].mxu1 }
0x12d1   : > { %v13036_v60 = vadd.f32 %v12983_v10, %v23825_v8  ;;  %v23881_v58 = vadd.f32 %v13085_v24, %v13035_v48  ;;  %v17254_v7 = vpop.f32.mrb[175].mxu1  ;;  %v13101_v20 = vpop.f32.mrb[136].mxu0 }
0x12d2   : > { %v17291_v23 = vpop.f32.mrb[137].mxu0 }
0x12d3   : > { %v23883_v46 = vadd.f32 %v13088_v40, %v13036_v60  ;;  %17456 = vmatmul.mubr.msk.bf16.gmra.mrb[24].mxu1 %vm3966_vm8, %v23640_v17  ;;  %v13104_v34 = vpop.f32.mrb[138].mxu0 }
0x12d4   : > { %v17292_v50 = vpop.f32.mrb[139].mxu0 }
0x12d6   : > { %v12988_v14 = vpop.f32.mrb[176].mxu1 }
0x12d7   : > { %v13037_v0 = vadd.f32 %v12988_v14, %v23831_v21  ;;  %v17257_v51 = vpop.f32.mrb[177].mxu1 }
0x12d8   : > { %v12991_v63 = vpop.f32.mrb[178].mxu1 }
0x12d9   : > { %v13038_v29 = vadd.f32 %v12991_v63, %v23833_v6  ;;  %v23889_v8 = vadd.f32 %v13093_v28, %v13037_v0  ;;  %v17258_v54 = vpop.f32.mrb[179].mxu1  ;;  %v13109_v53 = vpop.f32.mrb[140].mxu0 }
0x12da   : > { %v17295_v56 = vpop.f32.mrb[141].mxu0 }
0x12db   : > { %v23891_v18 = vadd.f32 %v13096_v41, %v13038_v29  ;;  %v13112_v4 = vpop.f32.mrb[142].mxu0 }
0x12dc   : > { %v17296_v57 = vpop.f32.mrb[143].mxu0 }
0x12de   : > { %v12996_v26 = vpop.f32.mrb[180].mxu1 }
0x12df   : > { %v13039_v17 = vadd.f32 %v12996_v26, %v23839_v45  ;;  %v17261_v33 = vpop.f32.mrb[181].mxu1 }
0x12e0   : > { %v12999_v16 = vpop.f32.mrb[182].mxu1 }
0x12e1   : > { %v13040_v21 = vadd.f32 %v12999_v16, %v23841_v61  ;;  %v23895_v62 = vadd.f32 %v13101_v20, %v13039_v17  ;;  %v17262_v44 = vpop.f32.mrb[183].mxu1  ;;  %v13117_v6 = vpop.f32.mrb[144].mxu0 }
0x12e2   : > { %v17299_v27 = vpop.f32.mrb[145].mxu0 }
0x12e3   : > { %v23897_v31 = vadd.f32 %v13104_v34, %v13040_v21  ;;  %v13120_v49 = vpop.f32.mrb[146].mxu0 }
0x12e4   : > { %v17300_v47 = vpop.f32.mrb[147].mxu0 }
0x12e6   : > { %v13004_v12 = vpop.f32.mrb[184].mxu1 }
0x12e7   : > { %v13041_v55 = vadd.f32 %v13004_v12, %v23847_v37  ;;  %v17265_v5 = vpop.f32.mrb[185].mxu1 }
0x12e8   : > { %v13007_v24 = vpop.f32.mrb[186].mxu1 }
0x12e9   : > { %v13042_v45 = vadd.f32 %v13007_v24, %v23849_v43  ;;  %v23901_v11 = vadd.f32 %v13109_v53, %v13041_v55  ;;  %v17266_v40 = vpop.f32.mrb[187].mxu1  ;;  %v13125_v61 = vpop.f32.mrb[148].mxu0 }
0x12ea   : > { %v17303_v22 = vpop.f32.mrb[149].mxu0 }
0x12eb   : > { %v23903_v3 = vadd.f32 %v13112_v4, %v13042_v45  ;;  %v13128_v59 = vpop.f32.mrb[150].mxu0 }
0x12ec   : > { %v17304_v42 = vpop.f32.mrb[151].mxu0 }
0x12ee   : > { %v13012_v9 = vpop.f32.mrb[188].mxu1 }
0x12ef   : > { %v13043_v28 = vadd.f32 %v13012_v9, %v23855_v52  ;;  %v17269_v19 = vpop.f32.mrb[189].mxu1 }
0x12f0   : > { %v13015_v41 = vpop.f32.mrb[190].mxu1 }
0x12f1   : > { %v13044_v37 = vadd.f32 %v13015_v41, %v23857_v15  ;;  %v17270_v1 = vpop.f32.mrb[191].mxu1  ;;  %v13133_v2 = vpop.f32.mrb[152].mxu0  ;;  %v23907_v48 = vadd.f32 %v13117_v6, %v13043_v28 }
0x12f2   : > { %v17307_v43 = vpop.f32.mrb[153].mxu0 }
0x12f3   : > { %v13136_v35 = vpop.f32.mrb[154].mxu0  ;;  %v23909_v10 = vadd.f32 %v13120_v49, %v13044_v37 }
0x12f4   : > { %v17308_v60 = vpop.f32.mrb[155].mxu0 }
0x12f6   : > { %v13020_v7 = vpop.f32.mrb[192].mxu1 }
0x12f7   : > { %v13045_v20 = vadd.f32 %v13020_v7, %v23863_v30  ;;  %v17273_v23 = vpop.f32.mrb[193].mxu1 }
0x12f8   : > { %v13023_v34 = vpop.f32.mrb[194].mxu1 }
0x12f9   : > { %v13046_v52 = vadd.f32 %v13023_v34, %v23865_v25  ;;  %v17274_v50 = vpop.f32.mrb[195].mxu1  ;;  %v13308_v14 = vpop.f32.mrb[156].mxu0  ;;  %v23913_v0 = vadd.f32 %v13125_v61, %v13045_v20 }
0x12fa   : > { %v17343_v15 = vpop.f32.mrb[157].mxu0 }
0x12fb   : > { %v13311_v51 = vpop.f32.mrb[158].mxu0  ;;  %v23915_v63 = vadd.f32 %v13128_v59, %v13046_v52 }
0x12fc   : > { %v17344_v29 = vpop.f32.mrb[159].mxu0 }
0x12fe   : > { %v13028_v54 = vpop.f32.mrb[196].mxu1 }
0x12ff   : > { %v13047_v53 = vadd.f32 %v13028_v54, %v23871_v39  ;;  %v17277_v56 = vpop.f32.mrb[197].mxu1 }
0x1300   : > { %v13031_v4 = vpop.f32.mrb[198].mxu1 }
0x1301   : > { %v13048_v30 = vadd.f32 %v13031_v4, %v23873_v38  ;;  %v17278_v57 = vpop.f32.mrb[199].mxu1  ;;  %v13316_v26 = vpop.f32.mrb[160].mxu0  ;;  %v23919_v17 = vadd.f32 %v13133_v2, %v13047_v53 }
0x1302   : > { %v17347_v25 = vpop.f32.mrb[161].mxu0 }
0x1303   : > { %v13319_v33 = vpop.f32.mrb[162].mxu0  ;;  %v23921_v16 = vadd.f32 %v13136_v35, %v13048_v30 }
0x1304   : > { %v17348_v21 = vpop.f32.mrb[163].mxu0 }
0x1306   : > { %v13199_v44 = vpop.f32.mrb[200].mxu1 }
0x1307   : > { %v13254_v6 = vadd.f32 %v13199_v44, %v23881_v58  ;;  %v17313_v27 = vpop.f32.mrb[201].mxu1 }
0x1308   : > { %v13202_v49 = vpop.f32.mrb[202].mxu1 }
0x1309   : > { %v13255_v39 = vadd.f32 %v13202_v49, %v23883_v46  ;;  %v17314_v47 = vpop.f32.mrb[203].mxu1  ;;  %v13324_v12 = vpop.f32.mrb[164].mxu0  ;;  %v23925_v55 = vadd.f32 %v13308_v14, %v13254_v6 }
0x130a   : > { %v17351_v38 = vpop.f32.mrb[165].mxu0 }
0x130b   : > { %v13327_v5 = vpop.f32.mrb[166].mxu0  ;;  %v23927_v24 = vadd.f32 %v13311_v51, %v13255_v39 }
0x130c   : > { %v17352_v45 = vpop.f32.mrb[167].mxu0 }
0x130e   : > { %v13207_v40 = vpop.f32.mrb[204].mxu1 }
0x130f   : > { %v13256_v61 = vadd.f32 %v13207_v40, %v23889_v8  ;;  %v17317_v22 = vpop.f32.mrb[205].mxu1 }
0x1310   : > { %v13210_v59 = vpop.f32.mrb[206].mxu1 }
0x1311   : > { %v13257_v58 = vadd.f32 %v13210_v59, %v23891_v18  ;;  %v17318_v42 = vpop.f32.mrb[207].mxu1  ;;  %v13332_v9 = vpop.f32.mrb[168].mxu0  ;;  %v23931_v28 = vadd.f32 %v13316_v26, %v13256_v61 }
0x1312   : > { %v17355_v46 = vpop.f32.mrb[169].mxu0 }
0x1313   : > { %v13335_v19 = vpop.f32.mrb[170].mxu0  ;;  %v23933_v41 = vadd.f32 %v13319_v33, %v13257_v58 }
0x1314   : > { %v17356_v37 = vpop.f32.mrb[171].mxu0 }
0x1316   : > { %v13215_v1 = vpop.f32.mrb[208].mxu1 }
0x1317   : > { %v13258_v2 = vadd.f32 %v13215_v1, %v23895_v62  ;;  %v17321_v43 = vpop.f32.mrb[209].mxu1 }
0x1318   : > { %v13218_v35 = vpop.f32.mrb[210].mxu1 }
0x1319   : > { %v13259_v8 = vadd.f32 %v13218_v35, %v23897_v31  ;;  %v17322_v60 = vpop.f32.mrb[211].mxu1  ;;  %v13340_v7 = vpop.f32.mrb[172].mxu0  ;;  %v23937_v20 = vadd.f32 %v13324_v12, %v13258_v2 }
0x131a   : > { %v17359_v18 = vpop.f32.mrb[173].mxu0 }
0x131b   : > { %v13343_v23 = vpop.f32.mrb[174].mxu0  ;;  %v23939_v34 = vadd.f32 %v13327_v5, %v13259_v8 }
0x131c   : > { %v17360_v52 = vpop.f32.mrb[175].mxu0 }
0x131e   : > { %v13223_v50 = vpop.f32.mrb[212].mxu1 }
0x131f   : > { %v13260_v14 = vadd.f32 %v13223_v50, %v23901_v11  ;;  %v17325_v15 = vpop.f32.mrb[213].mxu1 }
0x1320   : > { %v13226_v51 = vpop.f32.mrb[214].mxu1 }
0x1321   : > { %v13261_v62 = vadd.f32 %v13226_v51, %v23903_v3  ;;  %v17326_v29 = vpop.f32.mrb[215].mxu1  ;;  %v13348_v54 = vpop.f32.mrb[176].mxu0  ;;  %v23943_v53 = vadd.f32 %v13332_v9, %v13260_v14 }
0x1322   : > { %v17363_v31 = vpop.f32.mrb[177].mxu0 }
0x1323   : > { %v13351_v56 = vpop.f32.mrb[178].mxu0  ;;  %v23945_v4 = vadd.f32 %v13335_v19, %v13261_v62 }
0x1324   : > { %v17364_v30 = vpop.f32.mrb[179].mxu0 }
0x1326   : > { %v13231_v57 = vpop.f32.mrb[216].mxu1 }
0x1327   : > { %v13262_v26 = vadd.f32 %v13231_v57, %v23907_v48  ;;  %v17329_v25 = vpop.f32.mrb[217].mxu1 }
0x1328   : > { %v13234_v33 = vpop.f32.mrb[218].mxu1 }
0x1329   : > { %v13263_v11 = vadd.f32 %v13234_v33, %v23909_v10  ;;  %v17330_v21 = vpop.f32.mrb[219].mxu1  ;;  %v13356_v44 = vpop.f32.mrb[180].mxu0  ;;  %v23949_v6 = vadd.f32 %v13340_v7, %v13262_v26 }
0x132a   : > { %v17367_v3 = vpop.f32.mrb[181].mxu0 }
0x132b   : > { %v13359_v27 = vpop.f32.mrb[182].mxu0  ;;  %v23951_v49 = vadd.f32 %v13343_v23, %v13263_v11 }
0x132c   : > { %v17368_v39 = vpop.f32.mrb[183].mxu0 }
0x132e   : > { %v13239_v47 = vpop.f32.mrb[220].mxu1 }
0x132f   : > { %v13264_v12 = vadd.f32 %v13239_v47, %v23913_v0  ;;  %v17333_v38 = vpop.f32.mrb[221].mxu1 }
0x1330   : > { %v13242_v5 = vpop.f32.mrb[222].mxu1 }
0x1331   : > { %v13265_v48 = vadd.f32 %v13242_v5, %v23915_v63  ;;  %v17334_v45 = vpop.f32.mrb[223].mxu1  ;;  %v13527_v40 = vpop.f32.mrb[184].mxu0  ;;  %v23955_v61 = vadd.f32 %v13348_v54, %v13264_v12 }
0x1332   : > { %v17403_v10 = vpop.f32.mrb[185].mxu0 }
0x1333   : > { %v13530_v22 = vpop.f32.mrb[186].mxu0  ;;  %v23957_v59 = vadd.f32 %v13351_v56, %v13265_v48 }
0x1334   : > { %v17404_v58 = vpop.f32.mrb[187].mxu0 }
0x1336   : > { %v13247_v42 = vpop.f32.mrb[224].mxu1 }
0x1337   : > { %v13266_v9 = vadd.f32 %v13247_v42, %v23919_v17  ;;  %v17337_v46 = vpop.f32.mrb[225].mxu1 }
0x1338   : > { %v13250_v19 = vpop.f32.mrb[226].mxu1 }
0x1339   : > { %v13267_v0 = vadd.f32 %v13250_v19, %v23921_v16  ;;  %v17338_v37 = vpop.f32.mrb[227].mxu1  ;;  %v13535_v1 = vpop.f32.mrb[188].mxu0  ;;  %v23961_v2 = vadd.f32 %v13356_v44, %v13266_v9 }
0x133a   : > { %v17407_v63 = vpop.f32.mrb[189].mxu0 }
0x133b   : > { %v13538_v43 = vpop.f32.mrb[190].mxu0  ;;  %v23963_v35 = vadd.f32 %v13359_v27, %v13267_v0 }
0x133c   : > { %v17408_v8 = vpop.f32.mrb[191].mxu0 }
0x133e   : > { %v13413_v60 = vpop.f32.mrb[228].mxu1 }
0x133f   : > { %v13468_v7 = vadd.f32 %v13413_v60, %v23925_v55  ;;  %v17373_v18 = vpop.f32.mrb[229].mxu1 }
0x1340   : > { %v13416_v23 = vpop.f32.mrb[230].mxu1 }
0x1341   : > { %v13469_v17 = vadd.f32 %v13416_v23, %v23927_v24  ;;  %v17374_v52 = vpop.f32.mrb[231].mxu1  ;;  %v13543_v50 = vpop.f32.mrb[192].mxu0  ;;  %v23967_v14 = vadd.f32 %v13527_v40, %v13468_v7 }
0x1342   : > { %v17411_v16 = vpop.f32.mrb[193].mxu0 }
0x1343   : > { %v13546_v15 = vpop.f32.mrb[194].mxu0  ;;  %v23969_v51 = vadd.f32 %v13530_v22, %v13469_v17 }
0x1344   : > { %v17412_v62 = vpop.f32.mrb[195].mxu0 }
0x1346   : > { %v13421_v29 = vpop.f32.mrb[232].mxu1 }
0x1347   : > { %v13470_v54 = vadd.f32 %v13421_v29, %v23931_v28  ;;  %v17377_v31 = vpop.f32.mrb[233].mxu1 }
0x1348   : > { %v13424_v56 = vpop.f32.mrb[234].mxu1 }
0x1349   : > { %v13471_v55 = vadd.f32 %v13424_v56, %v23933_v41  ;;  %v17378_v30 = vpop.f32.mrb[235].mxu1  ;;  %v13551_v57 = vpop.f32.mrb[196].mxu0  ;;  %v23973_v26 = vadd.f32 %v13535_v1, %v13470_v54 }
0x134a   : > { %v17415_v24 = vpop.f32.mrb[197].mxu0 }
0x134b   : > { %v13554_v25 = vpop.f32.mrb[198].mxu0  ;;  %v23975_v33 = vadd.f32 %v13538_v43, %v13471_v55 }
0x134c   : > { %v17416_v11 = vpop.f32.mrb[199].mxu0 }
0x134e   : > { %v13429_v21 = vpop.f32.mrb[236].mxu1 }
0x134f   : > { %v13472_v44 = vadd.f32 %v13429_v21, %v23937_v20  ;;  %v17381_v3 = vpop.f32.mrb[237].mxu1 }
0x1350   : > { %v13432_v27 = vpop.f32.mrb[238].mxu1 }
0x1351   : > { %v13473_v28 = vadd.f32 %v13432_v27, %v23939_v34  ;;  %v17382_v39 = vpop.f32.mrb[239].mxu1  ;;  %v13559_v47 = vpop.f32.mrb[200].mxu0  ;;  %v23979_v12 = vadd.f32 %v13543_v50, %v13472_v44  ;;  %v24011_v44 = vld [vmem:[%s24165_s6] ss:$0 sm:$0xff] }
0x1352   : > { %v17419_v41 = vpop.f32.mrb[201].mxu0 }
0x1353   : > { %v13562_v38 = vpop.f32.mrb[202].mxu0  ;;  %v23981_v5 = vadd.f32 %v13546_v15, %v13473_v28 }
0x1354   : > { %v17420_v48 = vpop.f32.mrb[203].mxu0 }
0x1356   : > { %v13437_v45 = vpop.f32.mrb[240].mxu1 }
0x1357   : > { %v13474_v40 = vadd.f32 %v13437_v45, %v23943_v53  ;;  %v17385_v10 = vpop.f32.mrb[241].mxu1 }
0x1358   : > { %v13440_v22 = vpop.f32.mrb[242].mxu1 }
0x1359   : > { %v13475_v20 = vadd.f32 %v13440_v22, %v23945_v4  ;;  %v17386_v58 = vpop.f32.mrb[243].mxu1  ;;  %v13567_v42 = vpop.f32.mrb[204].mxu0  ;;  %v23985_v9 = vadd.f32 %v13551_v57, %v13474_v40 }
0x135a   : > { %v17423_v34 = vpop.f32.mrb[205].mxu0 }
0x135b   : > { %v13570_v46 = vpop.f32.mrb[206].mxu0  ;;  %v23987_v19 = vadd.f32 %v13554_v25, %v13475_v20 }
0x135c   : > { %v17424_v0 = vpop.f32.mrb[207].mxu0 }
0x135e   : > { %v13445_v37 = vpop.f32.mrb[244].mxu1 }
0x135f   : > { %v13476_v1 = vadd.f32 %v13445_v37, %v23949_v6  ;;  %v17389_v63 = vpop.f32.mrb[245].mxu1 }
0x1360   : > { %v13448_v43 = vpop.f32.mrb[246].mxu1 }
0x1361   : > { %v13477_v53 = vadd.f32 %v13448_v43, %v23951_v49  ;;  %v17390_v8 = vpop.f32.mrb[247].mxu1  ;;  %v13575_v60 = vpop.f32.mrb[208].mxu0  ;;  %v23991_v7 = vadd.f32 %v13559_v47, %v13476_v1 }
0x1362   : > { %v17427_v4 = vpop.f32.mrb[209].mxu0 }
0x1363   : > { %v13578_v18 = vpop.f32.mrb[210].mxu0  ;;  %v23993_v23 = vadd.f32 %v13562_v38, %v13477_v53 }
0x1364   : > { %v17428_v17 = vpop.f32.mrb[211].mxu0 }
0x1366   : > { %v13453_v52 = vpop.f32.mrb[248].mxu1 }
0x1367   : > { %v13478_v50 = vadd.f32 %v13453_v52, %v23955_v61  ;;  %v17393_v16 = vpop.f32.mrb[249].mxu1 }
0x1368   : > { %v13456_v15 = vpop.f32.mrb[250].mxu1 }
0x1369   : > { %v13479_v6 = vadd.f32 %v13456_v15, %v23957_v59  ;;  %v17394_v62 = vpop.f32.mrb[251].mxu1  ;;  %v23997_v29 = vadd.f32 %v13567_v42, %v13478_v50 }
0x136b   : > { %v23999_v49 = vadd.f32 %v13570_v46, %v13479_v6 }
0x136e   : > { %v13461_v54 = vpop.f32.mrb[252].mxu1 }
0x136f   : > { %v13480_v31 = vadd.f32 %v13461_v54, %v23961_v2  ;;  %v17397_v56 = vpop.f32.mrb[253].mxu1 }
0x1370   : > { %v13464_v55 = vpop.f32.mrb[254].mxu1 }
0x1371   : > { %v13481_v30 = vadd.f32 %v13464_v55, %v23963_v35  ;;  %v24003_v57 = vadd.f32 %v13575_v60, %v13480_v31  ;;  %v17398_v24 = vpop.f32.mrb[255].mxu1 }
0x1373   : > { %v24005_v61 = vadd.f32 %v13578_v18, %v13481_v30 }
0x1376   : > { %v13636_v25 = vpop.f32.mrb[0].mxu1 }
0x1377   : > { %v13691_v59 = vadd.f32 %v13636_v25, %v23967_v14  ;;  %v17433_v11 = vpop.f32.mrb[1].mxu1 }
0x1378   : > { %v13639_v21 = vpop.f32.mrb[2].mxu1 }
0x1379   : > { %v13705_v2 = vadd.f32 %v24011_v44, %v13691_v59  ;;  %v13692_v3 = vadd.f32 %v13639_v21, %v23969_v51  ;;  %v17434_v35 = vpop.f32.mrb[3].mxu1 }
0x137b   : > { %v13719_v27 = vmax.f32 %v13705_v2, 0.0  ;;  %v13706_v28 = vadd.f32 %v24011_v44, %v13692_v3 }
0x137d   : > { %v13720_v39 = vmax.f32 %v13706_v28, 0.0  ;;  %v13747_v41 = vrot.slane %v13719_v27, 1 }
0x137e   : > { %v13644_v47 = vpop.f32.mrb[4].mxu1 }
0x137f   : > { %v13748_v38 = vrot.slane %v13720_v39, 1  ;;  %v13693_v14 = vadd.f32 %v13644_v47, %v23973_v26  ;;  %v17437_v48 = vpop.f32.mrb[5].mxu1 }
0x1380   : > { %v13647_v45 = vpop.f32.mrb[6].mxu1 }
0x1381   : > { %v13749_v40 = vsel %vm1893_vm3, %v13747_v41, %v13748_v38  ;;  %v13707_v10 = vadd.f32 %v24011_v44, %v13693_v14  ;;  %v13694_v22 = vadd.f32 %v13647_v45, %v23975_v33  ;;  %v17438_v20 = vpop.f32.mrb[7].mxu1 }
0x1382   : > { %v13788_v51 = vmax.f32 %v13719_v27, %v13749_v40 }
0x1383   : > { %v13721_v58 = vmax.f32 %v13707_v10, 0.0  ;;  %v13708_v42 = vadd.f32 %v24011_v44, %v13694_v22 }
0x1385   : > { %v13750_v34 = vrot.slane %v13721_v58, 1  ;;  %v13722_v46 = vmax.f32 %v13708_v42, 0.0 }
0x1386   : > { %v13652_v0 = vpop.f32.mrb[8].mxu1 }
0x1387   : > { %v13751_v37 = vsel %vm1893_vm3, %v13748_v38, %v13750_v34  ;;  %v13752_v1 = vrot.slane %v13722_v46, 1  ;;  %v13695_v26 = vadd.f32 %v13652_v0, %v23979_v12  ;;  %v17441_v63 = vpop.f32.mrb[9].mxu1 }
0x1388   : > { %v13789_v43 = vmax.f32 %v13720_v39, %v13751_v37  ;;  %v13655_v53 = vpop.f32.mrb[10].mxu1 }
0x1389   : > { %v13753_v8 = vsel %vm1893_vm3, %v13750_v34, %v13752_v1  ;;  %v13709_v33 = vadd.f32 %v24011_v44, %v13695_v26  ;;  %v13696_v60 = vadd.f32 %v13655_v53, %v23981_v5  ;;  %v17442_v4 = vpop.f32.mrb[11].mxu1 }
0x138a   : > { %v13790_v18 = vmax.f32 %v13721_v58, %v13753_v8 }
0x138b   : > { %v13723_v17 = vmax.f32 %v13709_v33, 0.0  ;;  %v13710_v52 = vadd.f32 %v24011_v44, %v13696_v60 }
0x138c   : > { %v13802_v50 = vmax.f32 %v13788_v51, %v13790_v18 }
0x138d   : > { %v13754_v16 = vrot.slane %v13723_v17, 1  ;;  %v13724_v15 = vmax.f32 %v13710_v52, 0.0 }
0x138e   : > { %v13660_v6 = vpop.f32.mrb[12].mxu1 }
0x138f   : > { %v13755_v12 = vsel %vm1893_vm3, %v13752_v1, %v13754_v16  ;;  %v13756_v62 = vrot.slane %v13724_v15, 1  ;;  %v13697_v54 = vadd.f32 %v13660_v6, %v23985_v9  ;;  %v17445_v31 = vpop.f32.mrb[13].mxu1 }
0x1390   : > { %v13791_v56 = vmax.f32 %v13722_v46, %v13755_v12  ;;  %v13663_v55 = vpop.f32.mrb[14].mxu1 }
0x1391   : > { %v13757_v30 = vsel %vm1893_vm3, %v13754_v16, %v13756_v62  ;;  %v13711_v5 = vadd.f32 %v24011_v44, %v13697_v54  ;;  %v13698_v24 = vadd.f32 %v13663_v55, %v23987_v19  ;;  %v17446_v25 = vpop.f32.mrb[15].mxu1 }
0x1392   : > { %v13792_v59 = vmax.f32 %v13723_v17, %v13757_v30  ;;  %v13803_v11 = vmax.f32 %v13789_v43, %v13791_v56 }
0x1393   : > { %v13725_v21 = vmax.f32 %v13711_v5, 0.0  ;;  %v13712_v2 = vadd.f32 %v24011_v44, %v13698_v24 }
0x1394   : > { %v13814_v3 = vpack.c.bf16 %v13803_v11, %v13802_v50  ;;  %v13804_v35 = vmax.f32 %v13790_v18, %v13792_v59 }
0x1395   : > { %v13758_v27 = vrot.slane %v13725_v21, 1  ;;  %v13726_v28 = vmax.f32 %v13712_v2, 0.0 }
0x1396   : > { %v13668_v9 = vpop.f32.mrb[16].mxu1  ;;  %17460 = vmatpush3.bf16.msra.mxu0 %v13814_v3 }
0x1397   : > { %v13759_v39 = vsel %vm1893_vm3, %v13756_v62, %v13758_v27  ;;  %v13760_v47 = vrot.slane %v13726_v28, 1  ;;  %v13699_v41 = vadd.f32 %v13668_v9, %v23991_v7  ;;  %v17449_v38 = vpop.f32.mrb[17].mxu1  ;;  %17461 = vmatprep.subr.bf16.mxu0 %v24210_v36 }
0x1398   : > { %v13793_v19 = vmax.f32 %v13724_v15, %v13759_v39  ;;  %v13671_v14 = vpop.f32.mrb[18].mxu1 }
0x1399   : > { %v13761_v48 = vsel %vm1893_vm3, %v13758_v27, %v13760_v47  ;;  %v13713_v45 = vadd.f32 %v24011_v44, %v13699_v41  ;;  %v13700_v40 = vadd.f32 %v13671_v14, %v23993_v23  ;;  %v17450_v10 = vpop.f32.mrb[19].mxu1 }
0x139a   : > { %v13794_v22 = vmax.f32 %v13725_v21, %v13761_v48  ;;  %v13805_v20 = vmax.f32 %v13791_v56, %v13793_v19 }
0x139b   : > { %v13727_v51 = vmax.f32 %v13713_v45, 0.0  ;;  %v13714_v58 = vadd.f32 %v24011_v44, %v13700_v40  ;;  %v18984_v45 = vld [vmem:[%s24170_s11] sm:$0x1f]   ;;  %v24220_v40 = vld [vmem:[#allocation11_spill] sm:$0xff] }
0x139c   : > { %v13815_v42 = vpack.c.bf16 %v13805_v20, %v13804_v35  ;;  %v13806_v34 = vmax.f32 %v13792_v59, %v13794_v22 }
0x139d   : > { %v13762_v7 = vrot.slane %v13727_v51, 1  ;;  %v13728_v46 = vmax.f32 %v13714_v58, 0.0  ;;  %v24221_v58 = vld [vmem:[#allocation12_spill] sm:$0xff] }
0x139e   : > { %v13676_v0 = vpop.f32.mrb[20].mxu1  ;;  %17462 = vmatpush3.bf16.msra.mxu0 %v13815_v42 }
0x139f   : > { %v13763_v37 = vsel %vm1893_vm3, %v13760_v47, %v13762_v7  ;;  %v13764_v1 = vrot.slane %v13728_v46, 1  ;;  %v13701_v26 = vadd.f32 %v13676_v0, %v23997_v29  ;;  %v17453_v63 = vpop.f32.mrb[21].mxu1  ;;  %17463 = vmatprep.subr.bf16.mxu0 %v24210_v36 }
0x13a0   : > { %v13795_v23 = vmax.f32 %v13726_v28, %v13763_v37  ;;  %v13679_v43 = vpop.f32.mrb[22].mxu1  ;;  %v24224_v37 = vld [vmem:[#allocation15_spill] sm:$0xff] }
0x13a1   : > { %v13765_v53 = vsel %vm1893_vm3, %v13762_v7, %v13764_v1  ;;  %v13715_v8 = vadd.f32 %v24011_v44, %v13701_v26  ;;  %v13702_v33 = vadd.f32 %v13679_v43, %v23999_v49  ;;  %v17454_v60 = vpop.f32.mrb[23].mxu1  ;;  %v24225_v26 = vld [vmem:[#allocation16_spill] sm:$0xff] }
0x13a2   : > { %v13796_v4 = vmax.f32 %v13727_v51, %v13765_v53  ;;  %v13807_v18 = vmax.f32 %v13793_v19, %v13795_v23  ;;  %v24227_v53 = vld [vmem:[#allocation18_spill] sm:$0xff] }
0x13a3   : > { %v13729_v17 = vmax.f32 %v13715_v8, 0.0  ;;  %v13716_v52 = vadd.f32 %v24011_v44, %v13702_v33  ;;  %v24228_v33 = vld [vmem:[#allocation19_spill] sm:$0xff] }
0x13a4   : > { %v13816_v50 = vpack.c.bf16 %v13807_v18, %v13806_v34  ;;  %v13808_v16 = vmax.f32 %v13794_v22, %v13796_v4  ;;  %v24222_v34 = vld [vmem:[#allocation13_spill] sm:$0xff] }
0x13a5   : > { %v13766_v29 = vrot.slane %v13729_v17, 1  ;;  %v13730_v15 = vmax.f32 %v13716_v52, 0.0  ;;  %v450_v52 = vld [vmem:[%s24167_s8] sm:$0x1] }
0x13a6   : > { %v13684_v6 = vpop.f32.mrb[24].mxu1  ;;  %17464 = vmatpush3.bf16.msra.mxu0 %v13816_v50 }
0x13a7   : > { %v13767_v12 = vsel %vm1893_vm3, %v13764_v1, %v13766_v29  ;;  %v13768_v62 = vrot.slane %v13730_v15, 1  ;;  %v13703_v54 = vadd.f32 %v13684_v6, %v24003_v57  ;;  %v17457_v31 = vpop.f32.mrb[25].mxu1  ;;  %17465 = vmatprep.subr.bf16.mxu0 %v24210_v36 }
0x13a8   : > { %v13797_v49 = vmax.f32 %v13728_v46, %v13767_v12  ;;  %v13687_v56 = vpop.f32.mrb[26].mxu1  ;;  %v24223_v46 = vld [vmem:[#allocation14_spill] sm:$0xff] }
0x13a9   : > { %v13769_v55 = vsel %vm1893_vm3, %v13766_v29, %v13768_v62  ;;  %v13717_v30 = vadd.f32 %v24011_v44, %v13703_v54  ;;  %v13704_v5 = vadd.f32 %v13687_v56, %v24005_v61  ;;  %v17458_v24 = vpop.f32.mrb[27].mxu1 }
0x13aa   : > { %v13798_v25 = vmax.f32 %v13729_v17, %v13769_v55  ;;  %v13809_v59 = vmax.f32 %v13795_v23, %v13797_v49  ;;  %v24226_v23 = vld [vmem:[#allocation17_spill] sm:$0xff] }
0x13ab   : > { %v13731_v11 = vmax.f32 %v13717_v30, 0.0  ;;  %v13718_v21 = vadd.f32 %v24011_v44, %v13704_v5 }
0x13ac   : > { %v13817_v2 = vpack.c.bf16 %v13809_v59, %v13808_v16  ;;  %v13810_v3 = vmax.f32 %v13796_v4, %v13798_v25  ;;  %v14272_v4 = vlaneseq }
0x13ad   : > { %v13770_v57 = vrot.slane %v13731_v11, 1  ;;  %v13732_v35 = vmax.f32 %v13718_v21, 0.0 }
0x13ae   : > { %17466 = vmatpush3.bf16.msra.mxu0 %v13817_v2  ;;  %v14273_v18 = vshrl.u32 %v14272_v4, 7 }
0x13af   : > { %v13771_v27 = vsel %vm1893_vm3, %v13768_v62, %v13770_v57  ;;  %v13772_v28 = vrot.slane %v13732_v35, 1  ;;  %17467 = vmatprep.subr.bf16.mxu0 %v24210_v36 }
0x13b0   : > { %v13799_v9 = vmax.f32 %v13730_v15, %v13771_v27  ;;  %v14274_v17 = vsub.s32 0, %v14273_v18  ;;  %v17531_v15 = vadd.f32 %v22540_v13, %v450_v52 }
0x13b1   : > { %v13773_v39 = vsel %vm1893_vm3, %v13770_v57, %v13772_v28  ;;  %v13801_v61 = vmax.f32 %v13732_v35, %v13772_v28 }
0x13b2   : > { %v13800_v47 = vmax.f32 %v13731_v11, %v13773_v39  ;;  %v13811_v41 = vmax.f32 %v13797_v49, %v13799_v9 }
0x13b3   : > { %v13813_v38 = vmax.f32 %v13799_v9, %v13801_v61 }
0x13b4   : > { %v13812_v19 = vmax.f32 %v13798_v25, %v13800_v47  ;;  %v13818_v14 = vpack.c.bf16 %v13811_v41, %v13810_v3 }
0x13b6   : > { %v13819_v44 = vpack.c.bf16 %v13813_v38, %v13812_v19  ;;  %17468 = vmatpush3.bf16.msra.mxu0 %v13818_v14 }
0x13b7   : > { %17469 = vmatprep.subr.bf16.mxu0 %v24210_v36 }
0x13b8   : > { %v13821_v48 = vand.u32 %v13819_v44, %v20019_v32 }
0x13ba   : > { %17470 = vmatpush3.bf16.msra.mxu0 %v13821_v48 }
0x13bb   : > { %17475 = vmatprep.subr.bf16.mxu0 %v24210_v36 }
0x13bd   : > { %17472 = vmatmul.mubr.msk.bf16.vlgmr.msra.gmra.mrb[212].mxu0 %vm3098_vm6, %v18984_v45 }
0x13be   : > { %17476 = vmatpush3.bf16.msra.mxu0 %v24220_v40  ;;  %17477 = vmatprep.mubr.msk.bf16.mxu0 %vm19052_vm5, %v24210_v36 }
0x13bf   : > { %17481 = vmatprep.subr.bf16.mxu0 %v24210_v36 }
0x1490   : > { %v13857_v10 = vpop.f32.mrb[212].mxu0 }
0x1491   : > { %v17473_v22 = vpop.f32.mrb[213].mxu0 }
0x1492   : > { %v13860_v20 = vpop.f32.mrb[214].mxu0 }
0x1493   : > { %v13864_v32 = vpack.c.bf16 %v13860_v20, %v13857_v10  ;;  %v17474_v51 = vpop.f32.mrb[215].mxu0 }
0x1495   : > { %17478 = vmatmul.mubr.msk.bf16.vlgmr.msra.gmra.mrb[216].mxu0 %vm3966_vm8, %v13864_v32  ;;  %v13909_v42 = vshrl.u32 %v13864_v32, 16  ;;  %v13956_v7 = vrot.slane %v13864_v32, 1  ;;  %v14046_v1 = vrot.slane %v13864_v32, 2  ;;  %v14136_v43 = vrot.slane %v13864_v32, 3 }
0x1496   : > { %17482 = vmatpush3.bf16.msra.mxu0 %v24221_v58  ;;  %17483 = vmatprep.mubr.msk.bf16.mxu0 %vm19052_vm5, %v24210_v36  ;;  %v14226_v60 = vrot.slane %v13864_v32, 4 }
0x1497   : > { %17487 = vmatprep.subr.bf16.mxu0 %v24210_v36  ;;  %v14001_v0 = vrot.slane %v13909_v42, 1  ;;  %v14091_v63 = vrot.slane %v13909_v42, 2  ;;  %v14181_v8 = vrot.slane %v13909_v42, 3 }
0x14a1   : > { %17484 = vmatmul.mubr.msk.bf16.vlgmr.msra.gmra.mrb[216].mxu0 %vm3966_vm8, %v13909_v42 }
0x14a2   : > { %17488 = vmatpush3.bf16.msra.mxu0 %v24222_v34  ;;  %17489 = vmatprep.mubr.msk.bf16.mxu0 %vm19052_vm5, %v24210_v36 }
0x14a3   : > { %17493 = vmatprep.subr.bf16.mxu0 %v24210_v36 }
0x14ad   : > { %17490 = vmatmul.mubr.msk.bf16.vlgmr.msra.gmra.mrb[216].mxu0 %vm3966_vm8, %v13956_v7 }
0x14ae   : > { %17494 = vmatpush3.bf16.msra.mxu0 %v24223_v46  ;;  %17495 = vmatprep.mubr.msk.bf16.mxu0 %vm19052_vm5, %v24210_v36 }
0x14af   : > { %17499 = vmatprep.subr.bf16.mxu0 %v24210_v36 }
0x14b9   : > { %17496 = vmatmul.mubr.msk.bf16.vlgmr.msra.gmra.mrb[216].mxu0 %vm3966_vm8, %v14001_v0 }
0x14ba   : > { %17500 = vmatpush3.bf16.msra.mxu0 %v24224_v37  ;;  %17501 = vmatprep.mubr.msk.bf16.mxu0 %vm19052_vm5, %v24210_v36 }
0x14bb   : > { %17505 = vmatprep.subr.bf16.mxu0 %v24210_v36 }
0x14c5   : > { %17502 = vmatmul.mubr.msk.bf16.vlgmr.msra.gmra.mrb[216].mxu0 %vm3966_vm8, %v14046_v1 }
0x14c6   : > { %17506 = vmatpush3.bf16.msra.mxu0 %v24225_v26  ;;  %17507 = vmatprep.mubr.msk.bf16.mxu0 %vm19052_vm5, %v24210_v36 }
0x14c7   : > { %17511 = vmatprep.subr.bf16.mxu0 %v24210_v36 }
0x14d1   : > { %17508 = vmatmul.mubr.msk.bf16.vlgmr.msra.gmra.mrb[216].mxu0 %vm3966_vm8, %v14091_v63 }
0x14d2   : > { %17512 = vmatpush3.bf16.msra.mxu0 %v24226_v23  ;;  %17513 = vmatprep.mubr.msk.bf16.mxu0 %vm19052_vm5, %v24210_v36 }
0x14d3   : > { %17517 = vmatprep.subr.bf16.mxu0 %v24210_v36 }
0x14dd   : > { %17514 = vmatmul.mubr.msk.bf16.vlgmr.msra.gmra.mrb[216].mxu0 %vm3966_vm8, %v14136_v43 }
0x14de   : > { %17518 = vmatpush3.bf16.msra.mxu0 %v24227_v53  ;;  %17519 = vmatprep.mubr.msk.bf16.mxu0 %vm19052_vm5, %v24210_v36 }
0x14df   : > { %17523 = vmatprep.subr.bf16.mxu0 %v24210_v36 }
0x14e9   : > { %17520 = vmatmul.mubr.msk.bf16.vlgmr.msra.gmra.mrb[216].mxu0 %vm3966_vm8, %v14181_v8 }
0x14ea   : > { %17524 = vmatpush3.bf16.msra.mxu0 %v24228_v33  ;;  %17525 = vmatprep.mubr.msk.bf16.mxu0 %vm19052_vm5, %v24210_v36 }
0x14f5   : > { %17526 = vmatmul.mubr.msk.bf16.vlgmr.msra.gmra.mrb[216].mxu0 %vm3966_vm8, %v14226_v60 }
0x15c8   : > { %v14264_v50 = vpop.f32.mrb[216].mxu0 }
0x15c9   : > { %v17532_v16 = vadd.f32 %v14264_v50, %v450_v52  ;;  %v17527_v29 = vpop.f32.mrb[217].mxu0 }
0x15ca   : > { %v14267_v36 = vpop.f32.mrb[218].mxu0 }
0x15cb   : > { %v14275_v6 = vrot.slane %v17532_v16, %v14274_v17  ;;  %v17528_v12 = vpop.f32.mrb[219].mxu0 }
0x15cd   : > { %v14278_v62 = vsel %vm14277_vm10, %v17531_v15, %v14275_v6 }
0x15ce   : > { %14280 = vst.msk [vmem:[%s409_s17] sm:$0x3] %vm14279_vm11, %v14278_v62 }
0x15cf   : > { %18998 = shalt.err (!%p18995_p3)
}
0x15d0   : > { %s18999_s0 = scalar_lea.hbm %s24117_s28, 32  ;;  %s19003_s19 = scalar_lea.hbm %s24171_s12, 128 }
0x15d1   : > { %p19000_p4 = scmp.ne.s32.totalorder %s24117_s28, %s18999_s0  ;;  %p19004_p9 = scmp.lt.u32.totalorder %s24117_s28, %s24171_s12 }
0x15d2   : > { %p19005_p10 = scmp.lt.u32.totalorder %s19003_s19, %s18999_s0  ;;  %p19007_p12 = scmp.lt.u32.totalorder %s18999_s0, %s24117_s28 }
0x15d3   : > { %p19001_p7 = pnand %p19000_p4, %p19157_p5 }
0x15d4   : > { %p19006_p11 = por %p19005_p10, %p19004_p9 }
0x15d5   : > { %p19002_p8 = pneg %p19001_p7 }
0x15d6   : > { %p19008_p13 = por %p19007_p12, %p19006_p11 }
0x15d8   : > { %p19009_p0 = pnand %p19008_p13, %p19002_p8 }
0x15da   : > { %19012 = shalt.err (!%p19009_p0)
}
0x15db   : > { %18472 = dma.vmem_to_hbm [thread:$0]  (%p19157_p5), %s24119_s18, 32, %s24117_s28, %s14282_s25  }
0x15dc PF: > { %p18478_p1 = scmp.ge.s32.totalorder %s19047_s24, 2  ;;  %s14307_s29 = sand.u32 1, %s19035_s21  }
0x15dd   : > { %s14308_s15 = scalar_lea.sflag [#allocation3], %s14307_s29 }
0x15de   : > { %p18475_p2 = pnand %p18478_p1, %p19161_p6 }
0x15e0   : > { %19030 = dma.done.wait (!%p18475_p2), %s14308_s15, 32  }
0x15e1   : > { %19032 = vsyncadd (!%p18475_p2), %s14308_s15, 4294967264  ;;  %p22_p3 = scmp.ge.s32.totalorder %s19144_s27, 6   ;;  %s24229_s21 = smov %s19039_s22 }
0x15e2   : > { %s24230_s22 = smov %s19043_s23  ;;  %s24231_s23 = smov %s19155_s30 }
0x15e3   : > { %s24232_s24 = smov %s19144_s27  ;;  %24 = sbr.rel (!%p22_p3) target bundleno = 6 (0x6), region = 104 }
0x15ea   :  { %14313 = vsyncpa [#allocation3], 1 }
0x15eb   :  { %14315 = vsyncpa [#allocation3 + $0x1], 1 }

</bundles_post_ra>
